<compile_context>
chip_gen: v7x
topology: tpu7x:2x2x1
jax: 0.10.0
libtpu: 0.0.40
codegen_flags: <defaults>
</compile_context>

<pallas_src>
import functools
import math

import jax
import jax.numpy as jnp
from jax.experimental import pallas as pl
from jax.experimental.pallas import tpu as pltpu

NUM_CLASSES = 264          # stand-in for len(classes) of the birdcall dataset
BN_EPS = 1e-5

_VMEM = pl.BlockSpec(memory_space=pltpu.MemorySpace.VMEM)


def _round_up(x, m):
    return ((x + m - 1) // m) * m


# ------------------------------ Pallas kernels -------------------------------

def _normalize_kernel(x_ref, o_ref):
    # x: (N, D). Divide each row by its (signed) max, only where max != 0,
    # matching `x[max_per_example != 0] /= max_per_example[...]`.
    x = x_ref[...]
    m = jnp.max(x, axis=1, keepdims=True)
    safe = jnp.where(m != 0, m, jnp.ones_like(m))
    o_ref[...] = jnp.where(m != 0, x / safe, x)


def _gemm_kernel(*refs, relu, has_res, has_proj):
    # refs = (a, w, shift, [res], [rin, rw], out, acc_scratch)
    # grid = (M tiles "parallel", K tiles "arbitrary"); acc is f32 scratch.
    a_ref, w_ref, shift_ref = refs[0], refs[1], refs[2]
    i = 3
    res_ref = rin_ref = rw_ref = None
    if has_res:
        res_ref = refs[i]; i += 1
    if has_proj:
        rin_ref, rw_ref = refs[i], refs[i + 1]; i += 2
    o_ref, acc_ref = refs[i], refs[i + 1]

    @pl.when(pl.program_id(1) == 0)
    def _():
        acc_ref[...] = jnp.zeros_like(acc_ref)

    acc_ref[...] += jnp.dot(a_ref[...], w_ref[...],
                            preferred_element_type=jnp.float32)

    @pl.when(pl.program_id(1) == pl.num_programs(1) - 1)
    def _():
        out = acc_ref[...] + shift_ref[...]
        if has_proj:   # fused 1x1 downsample projection of the identity path
            out = out + jnp.dot(rin_ref[...], rw_ref[...],
                                preferred_element_type=jnp.float32)
        if has_res:    # identity residual, added in f32
            out = out + res_ref[...]
        if relu:
            out = jnp.maximum(out, 0.0)
        o_ref[...] = out.astype(o_ref.dtype)


def _maxpool3x3s2_kernel(x00_ref, x01_ref, x10_ref, x11_ref, o_ref):
    # Inputs are the 4 parity planes of the (-inf)-padded map; the 9 shifted
    # maxima of the 3x3/stride-2 window are taken in-register.
    _, ho, wo, _ = o_ref.shape
    refs = ((x00_ref, x01_ref), (x10_ref, x11_ref))
    m = None
    for di in range(3):
        for dj in range(3):
            r = refs[di % 2][dj % 2]
            v = r[:, di // 2: di // 2 + ho, dj // 2: dj // 2 + wo, :]
            m = v if m is None else jnp.maximum(m, v)
    o_ref[...] = m


def _global_maxpool_kernel(x_ref, o_ref):
    # (N, H*W, C) -> (N, C)   (AdaptiveMaxPool2d(1) + [:, :, 0, 0])
    o_ref[...] = jnp.max(x_ref[...], axis=1)


# ------------------------------ Pallas wrappers ------------------------------

def _pick_tk(k_pad):
    for cand in (512, 384, 256, 128):
        if k_pad % cand == 0:
            return cand
    return k_pad   # K not 128-aligned -> single whole-K block


def fused_gemm(a, w, shift, res=None, rin=None, rw=None, *, relu):
    """out = maybe_relu(a @ w + shift [+ rin @ rw] [+ res]); tiled over (M, K)."""
    m, k = a.shape
    k_pad, n = w.shape                     # w is pre-padded along K, bf16
    tm = min(256, _round_up(m, 8))
    m_pad = _round_up(m, tm)
    tk = _pick_tk(k_pad)
    grid = (m_pad // tm, k_pad // tk)

    a_p = a.astype(jnp.bfloat16)
    if (m_pad, k_pad) != (m, k):
        a_p = jnp.pad(a_p, ((0, m_pad - m), (0, k_pad - k)))

    args = [a_p, w, shift.reshape(1, n).astype(jnp.float32)]
    in_specs = [
        pl.BlockSpec((tm, tk), lambda i, kk: (i, kk)),
        pl.BlockSpec((tk, n), lambda i, kk: (kk, 0)),
        pl.BlockSpec((1, n), lambda i, kk: (0, 0)),
    ]
    if res is not None:
        res_p = res.astype(jnp.float32)
        if m_pad != m:
            res_p = jnp.pad(res_p, ((0, m_pad - m), (0, 0)))
        args.append(res_p)
        in_specs.append(pl.BlockSpec((tm, n), lambda i, kk: (i, 0)))
    if rin is not None:
        kr = rin.shape[1]
        rin_p = rin.astype(jnp.bfloat16)
        if m_pad != m:
            rin_p = jnp.pad(rin_p, ((0, m_pad - m), (0, 0)))
        args.extend([rin_p, rw.astype(jnp.bfloat16)])
        in_specs.append(pl.BlockSpec((tm, kr), lambda i, kk: (i, 0)))
        in_specs.append(pl.BlockSpec((kr, n), lambda i, kk: (0, 0)))

    out = pl.pallas_call(
        functools.partial(_gemm_kernel, relu=relu,
                          has_res=res is not None, has_proj=rin is not None),
        out_shape=jax.ShapeDtypeStruct((m_pad, n), jnp.float32),
        grid=grid,
        in_specs=in_specs,
        out_specs=pl.BlockSpec((tm, n), lambda i, kk: (i, 0)),
        scratch_shapes=[pltpu.VMEM((tm, n), jnp.float32)],
        compiler_params=pltpu.CompilerParams(
            dimension_semantics=("parallel", "arbitrary")),
    )(*args)
    return out[:m] if m_pad != m else out


def conv2d_bn(x, w_mat, shift, *, kh, kw, stride, padding, relu,
              res=None, rin=None, rw=None):
    # x: NHWC f32; w_mat: (K_pad, Cout) bf16 with BN scale folded in.
    n, h, wd, cin = x.shape
    cout = w_mat.shape[1]
    ho = (h + 2 * padding - kh) // stride + 1
    wo = (wd + 2 * padding - kw) // stride + 1
    if kh == 1 and kw == 1 and padding == 0:
        patches = x[:, ::stride, ::stride, :].reshape(n * ho * wo, cin)
    else:
        xp = jnp.pad(x, ((0, 0), (padding, padding), (padding, padding), (0, 0)))
        cols = []
        for di in range(kh):
            for dj in range(kw):
                cols.append(jax.lax.slice(
                    xp, (0, di, dj, 0),
                    (n, di + stride * (ho - 1) + 1, dj + stride * (wo - 1) + 1, cin),
                    (1, stride, stride, 1)))
        patches = jnp.concatenate(cols, axis=-1).reshape(n * ho * wo, kh * kw * cin)
    patches = patches.astype(jnp.bfloat16)          # bf16 at the matmul boundary
    k_pad = w_mat.shape[0]
    if k_pad != patches.shape[1]:
        patches = jnp.pad(patches, ((0, 0), (0, k_pad - patches.shape[1])))
    out = fused_gemm(patches, w_mat, shift, res=res, rin=rin, rw=rw, relu=relu)
    return out.reshape(n, ho, wo, cout)


def maxpool3x3_s2_p1(x):
    n, h, w, c = x.shape
    ho = (h - 1) // 2 + 1
    wo = (w - 1) // 2 + 1
    hp = _round_up(h + 2, 2)
    wp = _round_up(w + 2, 2)
    xp = jnp.pad(x, ((0, 0), (1, hp - h - 1), (1, wp - w - 1), (0, 0)),
                 constant_values=-jnp.inf)
    parts = [xp[:, p::2, q::2, :] for p in range(2) for q in range(2)]
    hh, wh = hp // 2, wp // 2
    return pl.pallas_call(
        _maxpool3x3s2_kernel,
        out_shape=jax.ShapeDtypeStruct((n, ho, wo, c), x.dtype),
        grid=(n,),
        in_specs=[pl.BlockSpec((1, hh, wh, c), lambda b: (b, 0, 0, 0))] * 4,
        out_specs=pl.BlockSpec((1, ho, wo, c), lambda b: (b, 0, 0, 0)),
        compiler_params=pltpu.CompilerParams(dimension_semantics=("parallel",)),
    )(*parts)


def global_maxpool(x):
    n, h, w, c = x.shape
    return pl.pallas_call(
        _global_maxpool_kernel,
        out_shape=jax.ShapeDtypeStruct((n, c), x.dtype),
        in_specs=[_VMEM], out_specs=_VMEM,
    )(x.reshape(n, h * w, c))


def normalize_per_example(x_nchw):
    n = x_nchw.shape[0]
    flat = x_nchw.reshape(n, -1).astype(jnp.float32)
    out = pl.pallas_call(
        _normalize_kernel,
        out_shape=jax.ShapeDtypeStruct(flat.shape, jnp.float32),
        in_specs=[_VMEM], out_specs=_VMEM,
    )(flat)
    return out.reshape(x_nchw.shape)


# ------------------------------ parameter setup ------------------------------

def _init_conv(key, kh, kw, cin, cout):
    std = math.sqrt(2.0 / (kh * kw * cin))
    return std * jax.random.normal(key, (kh, kw, cin, cout), jnp.float32)


def _init_bn(key, c):
    # inference BN folded to (scale, shift)
    k1, k2, k3 = jax.random.split(key, 3)
    gamma = 1.0 + 0.05 * jax.random.normal(k1, (c,), jnp.float32)
    beta = 0.05 * jax.random.normal(k2, (c,), jnp.float32)
    mean = 0.05 * jax.random.normal(k3, (c,), jnp.float32)
    var = jnp.ones((c,), jnp.float32)
    scale = gamma / jnp.sqrt(var + BN_EPS)
    shift = beta - mean * scale
    return scale, shift


def _init_linear(key, cin, cout):
    k1, k2 = jax.random.split(key)
    bound = 1.0 / math.sqrt(cin)
    w = jax.random.uniform(k1, (cin, cout), jnp.float32, -bound, bound)
    b = jax.random.uniform(k2, (cout,), jnp.float32, -bound, bound)
    return w, b


def build_params(key):
    """Raw (un-folded) parameters, layout (kh, kw, cin, cout).

    NOTE: real PyTorch resnet weights are (cout, cin, kh, kw); a port must
    transpose into this layout or results will be wrong.
    """
    keys = iter(jax.random.split(key, 256))
    nk = lambda: next(keys)
    p = {"conv1_w": _init_conv(nk(), 7, 7, 3, 64), "bn1": _init_bn(nk(), 64)}
    stages = []
    in_c = 64
    for stage_idx, (n_blocks, out_c) in enumerate(zip((3, 4, 6, 3), (64, 128, 256, 512))):
        blocks = []
        for b in range(n_blocks):
            stride = 2 if (stage_idx > 0 and b == 0) else 1
            blk = dict(
                conv1_w=_init_conv(nk(), 3, 3, in_c, out_c),
                bn1=_init_bn(nk(), out_c),
                conv2_w=_init_conv(nk(), 3, 3, out_c, out_c),
                bn2=_init_bn(nk(), out_c),
            )
            if stride != 1 or in_c != out_c:
                blk["down_w"] = _init_conv(nk(), 1, 1, in_c, out_c)
                blk["down_bn"] = _init_bn(nk(), out_c)
            blocks.append(blk)
            in_c = out_c
        stages.append(blocks)
    p["stages"] = stages
    p["fc1"] = _init_linear(nk(), 512, 512)
    p["cls_bn1"] = _init_bn(nk(), 512)
    p["fc2"] = _init_linear(nk(), 512, 512)
    p["cls_bn2"] = _init_bn(nk(), 512)
    p["fc3"] = _init_linear(nk(), 512, NUM_CLASSES)
    return p


def _fold_conv_padK(w, bn):
    # Fold BN scale into the conv weight, flatten to (K, Cout), pad K to a
    # multiple of 128 (zero rows), cast to bf16.  Shift stays in f32.
    scale, shift = bn
    wf = (w * scale).reshape(-1, w.shape[-1])
    k = wf.shape[0]
    k_pad = _round_up(k, 128)
    if k_pad != k:
        wf = jnp.pad(wf, ((0, k_pad - k), (0, 0)))
    return wf.astype(jnp.bfloat16), shift.astype(jnp.float32)


def _fold_conv_nopad(w, bn):
    scale, shift = bn
    wf = (w * scale).reshape(-1, w.shape[-1])
    return wf.astype(jnp.bfloat16), shift.astype(jnp.float32)


def prepare_params(raw):
    """Fold BN into weights, reshape/pad/cast for the fused GEMM kernel."""
    p = {}
    p["stem_w"], p["stem_b"] = _fold_conv_padK(raw["conv1_w"], raw["bn1"])
    stages = []
    for blocks in raw["stages"]:
        out_blocks = []
        for blk in blocks:
            w1, b1 = _fold_conv_padK(blk["conv1_w"], blk["bn1"])
            w2, b2 = _fold_conv_padK(blk["conv2_w"], blk["bn2"])
            nb = {"w1": w1, "b1": b1, "w2": w2}
            if "down_w" in blk:
                wd, bd = _fold_conv_nopad(blk["down_w"], blk["down_bn"])
                nb["wd"] = wd
                nb["b2"] = b2 + bd     # conv2-BN shift + downsample-BN shift
            else:
                nb["b2"] = b2
            out_blocks.append(nb)
        stages.append(out_blocks)
    p["stages"] = stages

    # Classifier: Linear-ReLU-Dropout-BN1d-Linear-ReLU-Dropout-BN1d-Linear.
    # Each BN1d (eval) is folded into the FOLLOWING Linear:
    #   (x*s + t) @ W + b == x @ (s[:,None]*W) + (t @ W + b)
    w1, b1 = raw["fc1"]
    s1, t1 = raw["cls_bn1"]
    w2, b2 = raw["fc2"]
    s2, t2 = raw["cls_bn2"]
    w3, b3 = raw["fc3"]
    p["fc1_w"] = w1.astype(jnp.bfloat16)
    p["fc1_b"] = b1.astype(jnp.float32)
    p["fc2_w"] = (w2 * s1[:, None]).astype(jnp.bfloat16)
    p["fc2_b"] = (t1 @ w2 + b2).astype(jnp.float32)
    p["fc3_w"] = (w3 * s2[:, None]).astype(jnp.bfloat16)
    p["fc3_b"] = (t2 @ w3 + b3).astype(jnp.float32)
    return p


# ---------------------------------- forward ----------------------------------

def _forward(p, x_nchw):
    x = normalize_per_example(x_nchw)            # per-example max normalization
    x = jnp.transpose(x, (0, 2, 3, 1))           # NCHW -> NHWC (channels on lanes)

    # Stem: conv7x7/2 (+ folded BN) + ReLU, then maxpool 3x3/2
    x = conv2d_bn(x, p["stem_w"], p["stem_b"], kh=7, kw=7, stride=2, padding=3, relu=True)
    x = maxpool3x3_s2_p1(x)

    # Residual stages (BasicBlock x [3, 4, 6, 3]); strides are static structure.
    for si, blocks in enumerate(p["stages"]):
        for bi, blk in enumerate(blocks):
            s = 2 if (si > 0 and bi == 0) else 1
            y = conv2d_bn(x, blk["w1"], blk["b1"], kh=3, kw=3, stride=s,
                          padding=1, relu=True)
            if "wd" in blk:
                # relu(bn2(conv2(y)) + bn_d(conv1x1(x, stride=s))): the 1x1
                # projection is fused into the same GEMM kernel (second dot).
                rin = x[:, ::s, ::s, :].reshape(-1, x.shape[-1])
                x = conv2d_bn(y, blk["w2"], blk["b2"], kh=3, kw=3, stride=1,
                              padding=1, relu=True, rin=rin, rw=blk["wd"])
            else:
                # relu(bn2(conv2(y)) + x): identity residual added in-kernel (f32)
                res = x.reshape(-1, x.shape[-1])
                x = conv2d_bn(y, blk["w2"], blk["b2"], kh=3, kw=3, stride=1,
                              padding=1, relu=True, res=res)

    feat = global_maxpool(x)                     # (N, 512)

    # Classifier (eval: Dropout = identity, BN1d folded into the next Linear)
    h = fused_gemm(feat, p["fc1_w"], p["fc1_b"], relu=True)
    h = fused_gemm(h, p["fc2_w"], p["fc2_b"], relu=True)
    return fused_gemm(h, p["fc3_w"], p["fc3_b"], relu=False)


forward = jax.jit(_forward)


if __name__ == "__main__":
    key = jax.random.PRNGKey(0)
    kp, kx = jax.random.split(key)
    raw_params = build_params(kp)
    params = prepare_params(raw_params)
    # NCHW input like the PyTorch module: batch=2, channels=3, spatial=32
    x = jax.random.uniform(kx, (2, 3, 32, 32), jnp.float32)
    out = forward(params, x)
    out = jax.block_until_ready(out)
    assert out.shape == (2, NUM_CLASSES), out.shape
    assert bool(jnp.all(jnp.isfinite(out)))
    print("KERNEL_OK")
</pallas_src>

<mosaic_0001>
module attributes {stable_mosaic.version = 11 : i64} {
  func.func @_normalize_kernel(%arg0: memref<2x3072xf32, #tpu.memory_space<vmem>>, %arg1: memref<2x3072xf32, #tpu.memory_space<vmem>>) attributes {dimension_semantics = [], scalar_prefetch = 0 : i64, scratch_operands = 0 : i64, tpu.core_type = #tpu.core_type<tc>} {
    %c0 = arith.constant 0 : index
    %c0_0 = arith.constant 0 : index
    %0 = vector.load %arg0[%c0, %c0_0] : memref<2x3072xf32, #tpu.memory_space<vmem>>, vector<2x3072xf32>
    %cst = arith.constant dense<0xFF800000> : vector<2xf32>
    %1 = vector.multi_reduction <maximumf>, %0, %cst [1] : vector<2x3072xf32> to vector<2xf32>
    %2 = vector.shape_cast %1 : vector<2xf32> to vector<2x1xf32>
    %cst_1 = arith.constant 0.000000e+00 : f32
    %3 = vector.broadcast %cst_1 : f32 to vector<2x1xf32>
    %4 = arith.cmpf one, %2, %3 : vector<2x1xf32>
    %cst_2 = arith.constant 1.000000e+00 : f32
    %5 = vector.broadcast %cst_2 : f32 to vector<2x1xf32>
    %6 = arith.select %4, %2, %5 : vector<2x1xi1>, vector<2x1xf32>
    %cst_3 = arith.constant 0.000000e+00 : f32
    %7 = vector.broadcast %cst_3 : f32 to vector<2x1xf32>
    %8 = arith.cmpf one, %2, %7 : vector<2x1xf32>
    %9 = vector.broadcast %6 : vector<2x1xf32> to vector<2x3072xf32>
    %10 = arith.divf %0, %9 : vector<2x3072xf32>
    %11 = vector.shape_cast %8 : vector<2x1xi1> to vector<2x1xi1>
    %12 = vector.broadcast %11 : vector<2x1xi1> to vector<2x3072xi1>
    %13 = arith.select %12, %10, %0 : vector<2x3072xi1>, vector<2x3072xf32>
    %c0_4 = arith.constant 0 : index
    %c0_5 = arith.constant 0 : index
    %14 = vector.load %arg1[%c0_4, %c0_5] : memref<2x3072xf32, #tpu.memory_space<vmem>>, vector<2x3072xf32>
    tpu.vector_store %arg1[%c0_4, %c0_5], %13 {strides = array<i32>} : memref<2x3072xf32, #tpu.memory_space<vmem>>, vector<2x3072xf32>,
    return
  }
}

module attributes {stable_mosaic.version = 11 : i64} {
  func.func @_gemm_kernel(%arg0: i32, %arg1: i32, %arg2: memref<256x256xbf16, #tpu.memory_space<vmem>>, %arg3: memref<256x64xbf16, #tpu.memory_space<vmem>>, %arg4: memref<1x64xf32, #tpu.memory_space<vmem>>, %arg5: memref<256x64xf32, #tpu.memory_space<vmem>>, %arg6: memref<256x64xf32, #tpu.memory_space<vmem>>) attributes {dimension_semantics = [#tpu.dimension_semantics<parallel>, #tpu.dimension_semantics<arbitrary>], iteration_bounds = array<i64: 2, 1>, scalar_prefetch = 0 : i64, scratch_operands = 1 : i64, tpu.core_type = #tpu.core_type<tc>, window_params = [{transform_indices = @transform_0, window_bounds = array<i64: 256, 256>}, {transform_indices = @transform_1, window_bounds = array<i64: 256, 64>}, {pipeline_mode = #tpu.pipeline_mode<synchronous>, transform_indices = @transform_2, window_bounds = array<i64: 1, 64>}, {transform_indices = @transform_3, window_bounds = array<i64: 256, 64>}]} {
    %c0_i32 = arith.constant 0 : i32
    %0 = arith.cmpi eq, %arg1, %c0_i32 : i32
    %1 = arith.extui %0 : i1 to i32
    %c0_i32_0 = arith.constant 0 : i32
    %2 = arith.cmpi ne, %1, %c0_i32_0 : i32
    scf.if %2 {
      %cst_10 = arith.constant 0.000000e+00 : f32
      %12 = vector.broadcast %cst_10 : f32 to vector<256x64xf32>
      %c0_11 = arith.constant 0 : index
      %c0_12 = arith.constant 0 : index
      %13 = vector.load %arg6[%c0_11, %c0_12] : memref<256x64xf32, #tpu.memory_space<vmem>>, vector<256x64xf32>
      tpu.vector_store %arg6[%c0_11, %c0_12], %12 {strides = array<i32>} : memref<256x64xf32, #tpu.memory_space<vmem>>, vector<256x64xf32>,
    } else {
    }
    %c0 = arith.constant 0 : index
    %c0_1 = arith.constant 0 : index
    %3 = vector.load %arg6[%c0, %c0_1] : memref<256x64xf32, #tpu.memory_space<vmem>>, vector<256x64xf32>
    %c0_2 = arith.constant 0 : index
    %c0_3 = arith.constant 0 : index
    %4 = vector.load %arg2[%c0_2, %c0_3] : memref<256x256xbf16, #tpu.memory_space<vmem>>, vector<256x256xbf16>
    %c0_4 = arith.constant 0 : index
    %c0_5 = arith.constant 0 : index
    %5 = vector.load %arg3[%c0_4, %c0_5] : memref<256x64xbf16, #tpu.memory_space<vmem>>, vector<256x64xbf16>
    %cst = arith.constant dense<0.000000e+00> : vector<256x64xf32>
    %6 = tpu.matmul %4, %5, %cst {dimension_numbers = #tpu.dot_dimension_numbers<[1], [0], [0], [1], [0, 0, 1, 1], [], []>} : vector<256x256xbf16>, vector<256x64xbf16>, vector<256x64xf32> -> vector<256x64xf32>
    %7 = arith.addf %3, %6 : vector<256x64xf32>
    %c0_6 = arith.constant 0 : index
    %c0_7 = arith.constant 0 : index
    %8 = vector.load %arg6[%c0_6, %c0_7] : memref<256x64xf32, #tpu.memory_space<vmem>>, vector<256x64xf32>
    tpu.vector_store %arg6[%c0_6, %c0_7], %7 {strides = array<i32>} : memref<256x64xf32, #tpu.memory_space<vmem>>, vector<256x64xf32>,
    %c0_i32_8 = arith.constant 0 : i32
    %9 = arith.cmpi eq, %arg1, %c0_i32_8 : i32
    %10 = arith.extui %9 : i1 to i32
    %c0_i32_9 = arith.constant 0 : i32
    %11 = arith.cmpi ne, %10, %c0_i32_9 : i32
    scf.if %11 {
      %c0_10 = arith.constant 0 : index
      %c0_11 = arith.constant 0 : index
      %12 = vector.load %arg6[%c0_10, %c0_11] : memref<256x64xf32, #tpu.memory_space<vmem>>, vector<256x64xf32>
      %c0_12 = arith.constant 0 : index
      %c0_13 = arith.constant 0 : index
      %13 = vector.load %arg4[%c0_12, %c0_13] : memref<1x64xf32, #tpu.memory_space<vmem>>, vector<1x64xf32>
      %14 = vector.broadcast %13 : vector<1x64xf32> to vector<256x64xf32>
      %15 = arith.addf %12, %14 : vector<256x64xf32>
      %cst_14 = arith.constant 0.000000e+00 : f32
      %16 = vector.broadcast %cst_14 : f32 to vector<256x64xf32>
      %17 = arith.maximumf %15, %16 : vector<256x64xf32>
      %c0_15 = arith.constant 0 : index
      %c0_16 = arith.constant 0 : index
      %18 = vector.load %arg5[%c0_15, %c0_16] : memref<256x64xf32, #tpu.memory_space<vmem>>, vector<256x64xf32>
      tpu.vector_store %arg5[%c0_15, %c0_16], %17 {strides = array<i32>} : memref<256x64xf32, #tpu.memory_space<vmem>>, vector<256x64xf32>,
    } else {
    }
    return
  }
  func.func @transform_0(%arg0: i32, %arg1: i32) -> (i32, i32) {
    %c0_i32 = arith.constant 0 : i32
    return %arg0, %arg1 : i32, i32
  }
  func.func @transform_1(%arg0: i32, %arg1: i32) -> (i32, i32) {
    %c0_i32 = arith.constant 0 : i32
    %c0_i32_0 = arith.constant 0 : i32
    return %arg1, %c0_i32 : i32, i32
  }
  func.func @transform_2(%arg0: i32, %arg1: i32) -> (i32, i32) {
    %c0_i32 = arith.constant 0 : i32
    %c0_i32_0 = arith.constant 0 : i32
    %c0_i32_1 = arith.constant 0 : i32
    return %c0_i32, %c0_i32_0 : i32, i32
  }
  func.func @transform_3(%arg0: i32, %arg1: i32) -> (i32, i32) {
    %c0_i32 = arith.constant 0 : i32
    %c0_i32_0 = arith.constant 0 : i32
    return %arg0, %c0_i32 : i32, i32
  }
}

module attributes {stable_mosaic.version = 11 : i64} {
  func.func @_maxpool3x3s2_kernel(%arg0: i32, %arg1: memref<1x9x9x64xf32, #tpu.memory_space<vmem>>, %arg2: memref<1x9x9x64xf32, #tpu.memory_space<vmem>>, %arg3: memref<1x9x9x64xf32, #tpu.memory_space<vmem>>, %arg4: memref<1x9x9x64xf32, #tpu.memory_space<vmem>>, %arg5: memref<1x8x8x64xf32, #tpu.memory_space<vmem>>) attributes {dimension_semantics = [#tpu.dimension_semantics<parallel>], iteration_bounds = array<i64: 2>, scalar_prefetch = 0 : i64, scratch_operands = 0 : i64, tpu.core_type = #tpu.core_type<tc>, window_params = [{transform_indices = @transform_0, window_bounds = array<i64: 1, 9, 9, 64>}, {transform_indices = @transform_1, window_bounds = array<i64: 1, 9, 9, 64>}, {transform_indices = @transform_2, window_bounds = array<i64: 1, 9, 9, 64>}, {transform_indices = @transform_3, window_bounds = array<i64: 1, 9, 9, 64>}, {transform_indices = @transform_4, window_bounds = array<i64: 1, 8, 8, 64>}]} {
    %c0 = arith.constant 0 : index
    %c0_0 = arith.constant 0 : index
    %c0_1 = arith.constant 0 : index
    %c0_2 = arith.constant 0 : index
    %0 = vector.load %arg1[%c0, %c0_0, %c0_1, %c0_2] : memref<1x9x9x64xf32, #tpu.memory_space<vmem>>, vector<1x8x8x64xf32>
    %c0_3 = arith.constant 0 : index
    %c0_4 = arith.constant 0 : index
    %c0_5 = arith.constant 0 : index
    %c0_6 = arith.constant 0 : index
    %1 = vector.load %arg2[%c0_3, %c0_4, %c0_5, %c0_6] : memref<1x9x9x64xf32, #tpu.memory_space<vmem>>, vector<1x8x8x64xf32>
    %2 = arith.maximumf %0, %1 : vector<1x8x8x64xf32>
    %c0_7 = arith.constant 0 : index
    %c0_8 = arith.constant 0 : index
    %c1 = arith.constant 1 : index
    %c0_9 = arith.constant 0 : index
    %3 = vector.load %arg1[%c0_7, %c0_8, %c1, %c0_9] : memref<1x9x9x64xf32, #tpu.memory_space<vmem>>, vector<1x8x8x64xf32>
    %4 = arith.maximumf %2, %3 : vector<1x8x8x64xf32>
    %c0_10 = arith.constant 0 : index
    %c0_11 = arith.constant 0 : index
    %c0_12 = arith.constant 0 : index
    %c0_13 = arith.constant 0 : index
    %5 = vector.load %arg3[%c0_10, %c0_11, %c0_12, %c0_13] : memref<1x9x9x64xf32, #tpu.memory_space<vmem>>, vector<1x8x8x64xf32>
    %6 = arith.maximumf %4, %5 : vector<1x8x8x64xf32>
    %c0_14 = arith.constant 0 : index
    %c0_15 = arith.constant 0 : index
    %c0_16 = arith.constant 0 : index
    %c0_17 = arith.constant 0 : index
    %7 = vector.load %arg4[%c0_14, %c0_15, %c0_16, %c0_17] : memref<1x9x9x64xf32, #tpu.memory_space<vmem>>, vector<1x8x8x64xf32>
    %8 = arith.maximumf %6, %7 : vector<1x8x8x64xf32>
    %c0_18 = arith.constant 0 : index
    %c0_19 = arith.constant 0 : index
    %c1_20 = arith.constant 1 : index
    %c0_21 = arith.constant 0 : index
    %9 = vector.load %arg3[%c0_18, %c0_19, %c1_20, %c0_21] : memref<1x9x9x64xf32, #tpu.memory_space<vmem>>, vector<1x8x8x64xf32>
    %10 = arith.maximumf %8, %9 : vector<1x8x8x64xf32>
    %c0_22 = arith.constant 0 : index
    %c1_23 = arith.constant 1 : index
    %c0_24 = arith.constant 0 : index
    %c0_25 = arith.constant 0 : index
    %11 = vector.load %arg1[%c0_22, %c1_23, %c0_24, %c0_25] : memref<1x9x9x64xf32, #tpu.memory_space<vmem>>, vector<1x8x8x64xf32>
    %12 = arith.maximumf %10, %11 : vector<1x8x8x64xf32>
    %c0_26 = arith.constant 0 : index
    %c1_27 = arith.constant 1 : index
    %c0_28 = arith.constant 0 : index
    %c0_29 = arith.constant 0 : index
    %13 = vector.load %arg2[%c0_26, %c1_27, %c0_28, %c0_29] : memref<1x9x9x64xf32, #tpu.memory_space<vmem>>, vector<1x8x8x64xf32>
    %14 = arith.maximumf %12, %13 : vector<1x8x8x64xf32>
    %c0_30 = arith.constant 0 : index
    %c1_31 = arith.constant 1 : index
    %c1_32 = arith.constant 1 : index
    %c0_33 = arith.constant 0 : index
    %15 = vector.load %arg1[%c0_30, %c1_31, %c1_32, %c0_33] : memref<1x9x9x64xf32, #tpu.memory_space<vmem>>, vector<1x8x8x64xf32>
    %16 = arith.maximumf %14, %15 : vector<1x8x8x64xf32>
    %c0_34 = arith.constant 0 : index
    %c0_35 = arith.constant 0 : index
    %c0_36 = arith.constant 0 : index
    %c0_37 = arith.constant 0 : index
    %17 = vector.load %arg5[%c0_34, %c0_35, %c0_36, %c0_37] : memref<1x8x8x64xf32, #tpu.memory_space<vmem>>, vector<1x8x8x64xf32>
    tpu.vector_store %arg5[%c0_34, %c0_35, %c0_36, %c0_37], %16 {strides = array<i32>} : memref<1x8x8x64xf32, #tpu.memory_space<vmem>>, vector<1x8x8x64xf32>,
    return
  }
  func.func @transform_0(%arg0: i32) -> (i32, i32, i32, i32) {
    %c0_i32 = arith.constant 0 : i32
    %c0_i32_0 = arith.constant 0 : i32
    %c0_i32_1 = arith.constant 0 : i32
    %c0_i32_2 = arith.constant 0 : i32
    return %arg0, %c0_i32, %c0_i32_0, %c0_i32_1 : i32, i32, i32, i32
  }
  func.func @transform_1(%arg0: i32) -> (i32, i32, i32, i32) {
    %c0_i32 = arith.constant 0 : i32
    %c0_i32_0 = arith.constant 0 : i32
    %c0_i32_1 = arith.constant 0 : i32
    %c0_i32_2 = arith.constant 0 : i32
    return %arg0, %c0_i32, %c0_i32_0, %c0_i32_1 : i32, i32, i32, i32
  }
  func.func @transform_2(%arg0: i32) -> (i32, i32, i32, i32) {
    %c0_i32 = arith.constant 0 : i32
    %c0_i32_0 = arith.constant 0 : i32
    %c0_i32_1 = arith.constant 0 : i32
    %c0_i32_2 = arith.constant 0 : i32
    return %arg0, %c0_i32, %c0_i32_0, %c0_i32_1 : i32, i32, i32, i32
  }
  func.func @transform_3(%arg0: i32) -> (i32, i32, i32, i32) {
    %c0_i32 = arith.constant 0 : i32
    %c0_i32_0 = arith.constant 0 : i32
    %c0_i32_1 = arith.constant 0 : i32
    %c0_i32_2 = arith.constant 0 : i32
    return %arg0, %c0_i32, %c0_i32_0, %c0_i32_1 : i32, i32, i32, i32
  }
  func.func @transform_4(%arg0: i32) -> (i32, i32, i32, i32) {
    %c0_i32 = arith.constant 0 : i32
    %c0_i32_0 = arith.constant 0 : i32
    %c0_i32_1 = arith.constant 0 : i32
    %c0_i32_2 = arith.constant 0 : i32
    return %arg0, %c0_i32, %c0_i32_0, %c0_i32_1 : i32, i32, i32, i32
  }
}

module attributes {stable_mosaic.version = 11 : i64} {
  func.func @_gemm_kernel(%arg0: i32, %arg1: i32, %arg2: memref<128x128xbf16, #tpu.memory_space<vmem>>, %arg3: memref<128x64xbf16, #tpu.memory_space<vmem>>, %arg4: memref<1x64xf32, #tpu.memory_space<vmem>>, %arg5: memref<128x64xf32, #tpu.memory_space<vmem>>, %arg6: memref<128x64xf32, #tpu.memory_space<vmem>>) attributes {dimension_semantics = [#tpu.dimension_semantics<parallel>, #tpu.dimension_semantics<arbitrary>], iteration_bounds = array<i64: 1, 5>, scalar_prefetch = 0 : i64, scratch_operands = 1 : i64, tpu.core_type = #tpu.core_type<tc>, window_params = [{transform_indices = @transform_0, window_bounds = array<i64: 128, 128>}, {transform_indices = @transform_1, window_bounds = array<i64: 128, 64>}, {pipeline_mode = #tpu.pipeline_mode<synchronous>, transform_indices = @transform_2, window_bounds = array<i64: 1, 64>}, {transform_indices = @transform_3, window_bounds = array<i64: 128, 64>}]} {
    %c0_i32 = arith.constant 0 : i32
    %0 = arith.cmpi eq, %arg1, %c0_i32 : i32
    %1 = arith.extui %0 : i1 to i32
    %c0_i32_0 = arith.constant 0 : i32
    %2 = arith.cmpi ne, %1, %c0_i32_0 : i32
    scf.if %2 {
      %cst_9 = arith.constant 0.000000e+00 : f32
      %12 = vector.broadcast %cst_9 : f32 to vector<128x64xf32>
      %c0_10 = arith.constant 0 : index
      %c0_11 = arith.constant 0 : index
      %13 = vector.load %arg6[%c0_10, %c0_11] : memref<128x64xf32, #tpu.memory_space<vmem>>, vector<128x64xf32>
      tpu.vector_store %arg6[%c0_10, %c0_11], %12 {strides = array<i32>} : memref<128x64xf32, #tpu.memory_space<vmem>>, vector<128x64xf32>,
    } else {
    }
    %c0 = arith.constant 0 : index
    %c0_1 = arith.constant 0 : index
    %3 = vector.load %arg6[%c0, %c0_1] : memref<128x64xf32, #tpu.memory_space<vmem>>, vector<128x64xf32>
    %c0_2 = arith.constant 0 : index
    %c0_3 = arith.constant 0 : index
    %4 = vector.load %arg2[%c0_2, %c0_3] : memref<128x128xbf16, #tpu.memory_space<vmem>>, vector<128x128xbf16>
    %c0_4 = arith.constant 0 : index
    %c0_5 = arith.constant 0 : index
    %5 = vector.load %arg3[%c0_4, %c0_5] : memref<128x64xbf16, #tpu.memory_space<vmem>>, vector<128x64xbf16>
    %cst = arith.constant dense<0.000000e+00> : vector<128x64xf32>
    %6 = tpu.matmul %4, %5, %cst {dimension_numbers = #tpu.dot_dimension_numbers<[1], [0], [0], [1], [0, 0, 1, 1], [], []>} : vector<128x128xbf16>, vector<128x64xbf16>, vector<128x64xf32> -> vector<128x64xf32>
    %7 = arith.addf %3, %6 : vector<128x64xf32>
    %c0_6 = arith.constant 0 : index
    %c0_7 = arith.constant 0 : index
    %8 = vector.load %arg6[%c0_6, %c0_7] : memref<128x64xf32, #tpu.memory_space<vmem>>, vector<128x64xf32>
    tpu.vector_store %arg6[%c0_6, %c0_7], %7 {strides = array<i32>} : memref<128x64xf32, #tpu.memory_space<vmem>>, vector<128x64xf32>,
    %c4_i32 = arith.constant 4 : i32
    %9 = arith.cmpi eq, %arg1, %c4_i32 : i32
    %10 = arith.extui %9 : i1 to i32
    %c0_i32_8 = arith.constant 0 : i32
    %11 = arith.cmpi ne, %10, %c0_i32_8 : i32
    scf.if %11 {
      %c0_9 = arith.constant 0 : index
      %c0_10 = arith.constant 0 : index
      %12 = vector.load %arg6[%c0_9, %c0_10] : memref<128x64xf32, #tpu.memory_space<vmem>>, vector<128x64xf32>
      %c0_11 = arith.constant 0 : index
      %c0_12 = arith.constant 0 : index
      %13 = vector.load %arg4[%c0_11, %c0_12] : memref<1x64xf32, #tpu.memory_space<vmem>>, vector<1x64xf32>
      %14 = vector.broadcast %13 : vector<1x64xf32> to vector<128x64xf32>
      %15 = arith.addf %12, %14 : vector<128x64xf32>
      %cst_13 = arith.constant 0.000000e+00 : f32
      %16 = vector.broadcast %cst_13 : f32 to vector<128x64xf32>
      %17 = arith.maximumf %15, %16 : vector<128x64xf32>
      %c0_14 = arith.constant 0 : index
      %c0_15 = arith.constant 0 : index
      %18 = vector.load %arg5[%c0_14, %c0_15] : memref<128x64xf32, #tpu.memory_space<vmem>>, vector<128x64xf32>
      tpu.vector_store %arg5[%c0_14, %c0_15], %17 {strides = array<i32>} : memref<128x64xf32, #tpu.memory_space<vmem>>, vector<128x64xf32>,
    } else {
    }
    return
  }
  func.func @transform_0(%arg0: i32, %arg1: i32) -> (i32, i32) {
    %c0_i32 = arith.constant 0 : i32
    return %arg0, %arg1 : i32, i32
  }
  func.func @transform_1(%arg0: i32, %arg1: i32) -> (i32, i32) {
    %c0_i32 = arith.constant 0 : i32
    %c0_i32_0 = arith.constant 0 : i32
    return %arg1, %c0_i32 : i32, i32
  }
  func.func @transform_2(%arg0: i32, %arg1: i32) -> (i32, i32) {
    %c0_i32 = arith.constant 0 : i32
    %c0_i32_0 = arith.constant 0 : i32
    %c0_i32_1 = arith.constant 0 : i32
    return %c0_i32, %c0_i32_0 : i32, i32
  }
  func.func @transform_3(%arg0: i32, %arg1: i32) -> (i32, i32) {
    %c0_i32 = arith.constant 0 : i32
    %c0_i32_0 = arith.constant 0 : i32
    return %arg0, %c0_i32 : i32, i32
  }
}

module attributes {stable_mosaic.version = 11 : i64} {
  func.func @_gemm_kernel(%arg0: i32, %arg1: i32, %arg2: memref<128x128xbf16, #tpu.memory_space<vmem>>, %arg3: memref<128x64xbf16, #tpu.memory_space<vmem>>, %arg4: memref<1x64xf32, #tpu.memory_space<vmem>>, %arg5: memref<128x64xf32, #tpu.memory_space<vmem>>, %arg6: memref<128x64xf32, #tpu.memory_space<vmem>>, %arg7: memref<128x64xf32, #tpu.memory_space<vmem>>) attributes {dimension_semantics = [#tpu.dimension_semantics<parallel>, #tpu.dimension_semantics<arbitrary>], iteration_bounds = array<i64: 1, 5>, scalar_prefetch = 0 : i64, scratch_operands = 1 : i64, tpu.core_type = #tpu.core_type<tc>, window_params = [{transform_indices = @transform_0, window_bounds = array<i64: 128, 128>}, {transform_indices = @transform_1, window_bounds = array<i64: 128, 64>}, {pipeline_mode = #tpu.pipeline_mode<synchronous>, transform_indices = @transform_2, window_bounds = array<i64: 1, 64>}, {transform_indices = @transform_3, window_bounds = array<i64: 128, 64>}, {transform_indices = @transform_4, window_bounds = array<i64: 128, 64>}]} {
    %c0_i32 = arith.constant 0 : i32
    %0 = arith.cmpi eq, %arg1, %c0_i32 : i32
    %1 = arith.extui %0 : i1 to i32
    %c0_i32_0 = arith.constant 0 : i32
    %2 = arith.cmpi ne, %1, %c0_i32_0 : i32
    scf.if %2 {
      %cst_9 = arith.constant 0.000000e+00 : f32
      %12 = vector.broadcast %cst_9 : f32 to vector<128x64xf32>
      %c0_10 = arith.constant 0 : index
      %c0_11 = arith.constant 0 : index
      %13 = vector.load %arg7[%c0_10, %c0_11] : memref<128x64xf32, #tpu.memory_space<vmem>>, vector<128x64xf32>
      tpu.vector_store %arg7[%c0_10, %c0_11], %12 {strides = array<i32>} : memref<128x64xf32, #tpu.memory_space<vmem>>, vector<128x64xf32>,
    } else {
    }
    %c0 = arith.constant 0 : index
    %c0_1 = arith.constant 0 : index
    %3 = vector.load %arg7[%c0, %c0_1] : memref<128x64xf32, #tpu.memory_space<vmem>>, vector<128x64xf32>
    %c0_2 = arith.constant 0 : index
    %c0_3 = arith.constant 0 : index
    %4 = vector.load %arg2[%c0_2, %c0_3] : memref<128x128xbf16, #tpu.memory_space<vmem>>, vector<128x128xbf16>
    %c0_4 = arith.constant 0 : index
    %c0_5 = arith.constant 0 : index
    %5 = vector.load %arg3[%c0_4, %c0_5] : memref<128x64xbf16, #tpu.memory_space<vmem>>, vector<128x64xbf16>
    %cst = arith.constant dense<0.000000e+00> : vector<128x64xf32>
    %6 = tpu.matmul %4, %5, %cst {dimension_numbers = #tpu.dot_dimension_numbers<[1], [0], [0], [1], [0, 0, 1, 1], [], []>} : vector<128x128xbf16>, vector<128x64xbf16>, vector<128x64xf32> -> vector<128x64xf32>
    %7 = arith.addf %3, %6 : vector<128x64xf32>
    %c0_6 = arith.constant 0 : index
    %c0_7 = arith.constant 0 : index
    %8 = vector.load %arg7[%c0_6, %c0_7] : memref<128x64xf32, #tpu.memory_space<vmem>>, vector<128x64xf32>
    tpu.vector_store %arg7[%c0_6, %c0_7], %7 {strides = array<i32>} : memref<128x64xf32, #tpu.memory_space<vmem>>, vector<128x64xf32>,
    %c4_i32 = arith.constant 4 : i32
    %9 = arith.cmpi eq, %arg1, %c4_i32 : i32
    %10 = arith.extui %9 : i1 to i32
    %c0_i32_8 = arith.constant 0 : i32
    %11 = arith.cmpi ne, %10, %c0_i32_8 : i32
    scf.if %11 {
      %c0_9 = arith.constant 0 : index
      %c0_10 = arith.constant 0 : index
      %12 = vector.load %arg7[%c0_9, %c0_10] : memref<128x64xf32, #tpu.memory_space<vmem>>, vector<128x64xf32>
      %c0_11 = arith.constant 0 : index
      %c0_12 = arith.constant 0 : index
      %13 = vector.load %arg4[%c0_11, %c0_12] : memref<1x64xf32, #tpu.memory_space<vmem>>, vector<1x64xf32>
      %14 = vector.broadcast %13 : vector<1x64xf32> to vector<128x64xf32>
      %15 = arith.addf %12, %14 : vector<128x64xf32>
      %c0_13 = arith.constant 0 : index
      %c0_14 = arith.constant 0 : index
      %16 = vector.load %arg5[%c0_13, %c0_14] : memref<128x64xf32, #tpu.memory_space<vmem>>, vector<128x64xf32>
      %17 = arith.addf %15, %16 : vector<128x64xf32>
      %cst_15 = arith.constant 0.000000e+00 : f32
      %18 = vector.broadcast %cst_15 : f32 to vector<128x64xf32>
      %19 = arith.maximumf %17, %18 : vector<128x64xf32>
      %c0_16 = arith.constant 0 : index
      %c0_17 = arith.constant 0 : index
      %20 = vector.load %arg6[%c0_16, %c0_17] : memref<128x64xf32, #tpu.memory_space<vmem>>, vector<128x64xf32>
      tpu.vector_store %arg6[%c0_16, %c0_17], %19 {strides = array<i32>} : memref<128x64xf32, #tpu.memory_space<vmem>>, vector<128x64xf32>,
    } else {
    }
    return
  }
  func.func @transform_0(%arg0: i32, %arg1: i32) -> (i32, i32) {
    %c0_i32 = arith.constant 0 : i32
    return %arg0, %arg1 : i32, i32
  }
  func.func @transform_1(%arg0: i32, %arg1: i32) -> (i32, i32) {
    %c0_i32 = arith.constant 0 : i32
    %c0_i32_0 = arith.constant 0 : i32
    return %arg1, %c0_i32 : i32, i32
  }
  func.func @transform_2(%arg0: i32, %arg1: i32) -> (i32, i32) {
    %c0_i32 = arith.constant 0 : i32
    %c0_i32_0 = arith.constant 0 : i32
    %c0_i32_1 = arith.constant 0 : i32
    return %c0_i32, %c0_i32_0 : i32, i32
  }
  func.func @transform_3(%arg0: i32, %arg1: i32) -> (i32, i32) {
    %c0_i32 = arith.constant 0 : i32
    %c0_i32_0 = arith.constant 0 : i32
    return %arg0, %c0_i32 : i32, i32
  }
  func.func @transform_4(%arg0: i32, %arg1: i32) -> (i32, i32) {
    %c0_i32 = arith.constant 0 : i32
    %c0_i32_0 = arith.constant 0 : i32
    return %arg0, %c0_i32 : i32, i32
  }
}

module attributes {stable_mosaic.version = 11 : i64} {
  func.func @_gemm_kernel(%arg0: i32, %arg1: i32, %arg2: memref<32x128xbf16, #tpu.memory_space<vmem>>, %arg3: memref<128x128xbf16, #tpu.memory_space<vmem>>, %arg4: memref<1x128xf32, #tpu.memory_space<vmem>>, %arg5: memref<32x128xf32, #tpu.memory_space<vmem>>, %arg6: memref<32x128xf32, #tpu.memory_space<vmem>>) attributes {dimension_semantics = [#tpu.dimension_semantics<parallel>, #tpu.dimension_semantics<arbitrary>], iteration_bounds = array<i64: 1, 5>, scalar_prefetch = 0 : i64, scratch_operands = 1 : i64, tpu.core_type = #tpu.core_type<tc>, window_params = [{transform_indices = @transform_0, window_bounds = array<i64: 32, 128>}, {transform_indices = @transform_1, window_bounds = array<i64: 128, 128>}, {pipeline_mode = #tpu.pipeline_mode<synchronous>, transform_indices = @transform_2, window_bounds = array<i64: 1, 128>}, {transform_indices = @transform_3, window_bounds = array<i64: 32, 128>}]} {
    %c0_i32 = arith.constant 0 : i32
    %0 = arith.cmpi eq, %arg1, %c0_i32 : i32
    %1 = arith.extui %0 : i1 to i32
    %c0_i32_0 = arith.constant 0 : i32
    %2 = arith.cmpi ne, %1, %c0_i32_0 : i32
    scf.if %2 {
      %cst_9 = arith.constant 0.000000e+00 : f32
      %12 = vector.broadcast %cst_9 : f32 to vector<32x128xf32>
      %c0_10 = arith.constant 0 : index
      %c0_11 = arith.constant 0 : index
      %13 = vector.load %arg6[%c0_10, %c0_11] : memref<32x128xf32, #tpu.memory_space<vmem>>, vector<32x128xf32>
      tpu.vector_store %arg6[%c0_10, %c0_11], %12 {strides = array<i32>} : memref<32x128xf32, #tpu.memory_space<vmem>>, vector<32x128xf32>,
    } else {
    }
    %c0 = arith.constant 0 : index
    %c0_1 = arith.constant 0 : index
    %3 = vector.load %arg6[%c0, %c0_1] : memref<32x128xf32, #tpu.memory_space<vmem>>, vector<32x128xf32>
    %c0_2 = arith.constant 0 : index
    %c0_3 = arith.constant 0 : index
    %4 = vector.load %arg2[%c0_2, %c0_3] : memref<32x128xbf16, #tpu.memory_space<vmem>>, vector<32x128xbf16>
    %c0_4 = arith.constant 0 : index
    %c0_5 = arith.constant 0 : index
    %5 = vector.load %arg3[%c0_4, %c0_5] : memref<128x128xbf16, #tpu.memory_space<vmem>>, vector<128x128xbf16>
    %cst = arith.constant dense<0.000000e+00> : vector<32x128xf32>
    %6 = tpu.matmul %4, %5, %cst {dimension_numbers = #tpu.dot_dimension_numbers<[1], [0], [0], [1], [0, 0, 1, 1], [], []>} : vector<32x128xbf16>, vector<128x128xbf16>, vector<32x128xf32> -> vector<32x128xf32>
    %7 = arith.addf %3, %6 : vector<32x128xf32>
    %c0_6 = arith.constant 0 : index
    %c0_7 = arith.constant 0 : index
    %8 = vector.load %arg6[%c0_6, %c0_7] : memref<32x128xf32, #tpu.memory_space<vmem>>, vector<32x128xf32>
    tpu.vector_store %arg6[%c0_6, %c0_7], %7 {strides = array<i32>} : memref<32x128xf32, #tpu.memory_space<vmem>>, vector<32x128xf32>,
    %c4_i32 = arith.constant 4 : i32
    %9 = arith.cmpi eq, %arg1, %c4_i32 : i32
    %10 = arith.extui %9 : i1 to i32
    %c0_i32_8 = arith.constant 0 : i32
    %11 = arith.cmpi ne, %10, %c0_i32_8 : i32
    scf.if %11 {
      %c0_9 = arith.constant 0 : index
      %c0_10 = arith.constant 0 : index
      %12 = vector.load %arg6[%c0_9, %c0_10] : memref<32x128xf32, #tpu.memory_space<vmem>>, vector<32x128xf32>
      %c0_11 = arith.constant 0 : index
      %c0_12 = arith.constant 0 : index
      %13 = vector.load %arg4[%c0_11, %c0_12] : memref<1x128xf32, #tpu.memory_space<vmem>>, vector<1x128xf32>
      %14 = vector.broadcast %13 : vector<1x128xf32> to vector<32x128xf32>
      %15 = arith.addf %12, %14 : vector<32x128xf32>
      %cst_13 = arith.constant 0.000000e+00 : f32
      %16 = vector.broadcast %cst_13 : f32 to vector<32x128xf32>
      %17 = arith.maximumf %15, %16 : vector<32x128xf32>
      %c0_14 = arith.constant 0 : index
      %c0_15 = arith.constant 0 : index
      %18 = vector.load %arg5[%c0_14, %c0_15] : memref<32x128xf32, #tpu.memory_space<vmem>>, vector<32x128xf32>
      tpu.vector_store %arg5[%c0_14, %c0_15], %17 {strides = array<i32>} : memref<32x128xf32, #tpu.memory_space<vmem>>, vector<32x128xf32>,
    } else {
    }
    return
  }
  func.func @transform_0(%arg0: i32, %arg1: i32) -> (i32, i32) {
    %c0_i32 = arith.constant 0 : i32
    return %arg0, %arg1 : i32, i32
  }
  func.func @transform_1(%arg0: i32, %arg1: i32) -> (i32, i32) {
    %c0_i32 = arith.constant 0 : i32
    %c0_i32_0 = arith.constant 0 : i32
    return %arg1, %c0_i32 : i32, i32
  }
  func.func @transform_2(%arg0: i32, %arg1: i32) -> (i32, i32) {
    %c0_i32 = arith.constant 0 : i32
    %c0_i32_0 = arith.constant 0 : i32
    %c0_i32_1 = arith.constant 0 : i32
    return %c0_i32, %c0_i32_0 : i32, i32
  }
  func.func @transform_3(%arg0: i32, %arg1: i32) -> (i32, i32) {
    %c0_i32 = arith.constant 0 : i32
    %c0_i32_0 = arith.constant 0 : i32
    return %arg0, %c0_i32 : i32, i32
  }
}

module attributes {stable_mosaic.version = 11 : i64} {
  func.func @_gemm_kernel(%arg0: i32, %arg1: i32, %arg2: memref<32x384xbf16, #tpu.memory_space<vmem>>, %arg3: memref<384x128xbf16, #tpu.memory_space<vmem>>, %arg4: memref<1x128xf32, #tpu.memory_space<vmem>>, %arg5: memref<32x64xbf16, #tpu.memory_space<vmem>>, %arg6: memref<64x128xbf16, #tpu.memory_space<vmem>>, %arg7: memref<32x128xf32, #tpu.memory_space<vmem>>, %arg8: memref<32x128xf32, #tpu.memory_space<vmem>>) attributes {dimension_semantics = [#tpu.dimension_semantics<parallel>, #tpu.dimension_semantics<arbitrary>], iteration_bounds = array<i64: 1, 3>, scalar_prefetch = 0 : i64, scratch_operands = 1 : i64, tpu.core_type = #tpu.core_type<tc>, window_params = [{transform_indices = @transform_0, window_bounds = array<i64: 32, 384>}, {transform_indices = @transform_1, window_bounds = array<i64: 384, 128>}, {pipeline_mode = #tpu.pipeline_mode<synchronous>, transform_indices = @transform_2, window_bounds = array<i64: 1, 128>}, {transform_indices = @transform_3, window_bounds = array<i64: 32, 64>}, {pipeline_mode = #tpu.pipeline_mode<synchronous>, transform_indices = @transform_4, window_bounds = array<i64: 64, 128>}, {transform_indices = @transform_5, window_bounds = array<i64: 32, 128>}]} {
    %c0_i32 = arith.constant 0 : i32
    %0 = arith.cmpi eq, %arg1, %c0_i32 : i32
    %1 = arith.extui %0 : i1 to i32
    %c0_i32_0 = arith.constant 0 : i32
    %2 = arith.cmpi ne, %1, %c0_i32_0 : i32
    scf.if %2 {
      %cst_9 = arith.constant 0.000000e+00 : f32
      %12 = vector.broadcast %cst_9 : f32 to vector<32x128xf32>
      %c0_10 = arith.constant 0 : index
      %c0_11 = arith.constant 0 : index
      %13 = vector.load %arg8[%c0_10, %c0_11] : memref<32x128xf32, #tpu.memory_space<vmem>>, vector<32x128xf32>
      tpu.vector_store %arg8[%c0_10, %c0_11], %12 {strides = array<i32>} : memref<32x128xf32, #tpu.memory_space<vmem>>, vector<32x128xf32>,
    } else {
    }
    %c0 = arith.constant 0 : index
    %c0_1 = arith.constant 0 : index
    %3 = vector.load %arg8[%c0, %c0_1] : memref<32x128xf32, #tpu.memory_space<vmem>>, vector<32x128xf32>
    %c0_2 = arith.constant 0 : index
    %c0_3 = arith.constant 0 : index
    %4 = vector.load %arg2[%c0_2, %c0_3] : memref<32x384xbf16, #tpu.memory_space<vmem>>, vector<32x384xbf16>
    %c0_4 = arith.constant 0 : index
    %c0_5 = arith.constant 0 : index
    %5 = vector.load %arg3[%c0_4, %c0_5] : memref<384x128xbf16, #tpu.memory_space<vmem>>, vector<384x128xbf16>
    %cst = arith.constant dense<0.000000e+00> : vector<32x128xf32>
    %6 = tpu.matmul %4, %5, %cst {dimension_numbers = #tpu.dot_dimension_numbers<[1], [0], [0], [1], [0, 0, 1, 1], [], []>} : vector<32x384xbf16>, vector<384x128xbf16>, vector<32x128xf32> -> vector<32x128xf32>
    %7 = arith.addf %3, %6 : vector<32x128xf32>
    %c0_6 = arith.constant 0 : index
    %c0_7 = arith.constant 0 : index
    %8 = vector.load %arg8[%c0_6, %c0_7] : memref<32x128xf32, #tpu.memory_space<vmem>>, vector<32x128xf32>
    tpu.vector_store %arg8[%c0_6, %c0_7], %7 {strides = array<i32>} : memref<32x128xf32, #tpu.memory_space<vmem>>, vector<32x128xf32>,
    %c2_i32 = arith.constant 2 : i32
    %9 = arith.cmpi eq, %arg1, %c2_i32 : i32
    %10 = arith.extui %9 : i1 to i32
    %c0_i32_8 = arith.constant 0 : i32
    %11 = arith.cmpi ne, %10, %c0_i32_8 : i32
    scf.if %11 {
      %c0_9 = arith.constant 0 : index
      %c0_10 = arith.constant 0 : index
      %12 = vector.load %arg8[%c0_9, %c0_10] : memref<32x128xf32, #tpu.memory_space<vmem>>, vector<32x128xf32>
      %c0_11 = arith.constant 0 : index
      %c0_12 = arith.constant 0 : index
      %13 = vector.load %arg4[%c0_11, %c0_12] : memref<1x128xf32, #tpu.memory_space<vmem>>, vector<1x128xf32>
      %14 = vector.broadcast %13 : vector<1x128xf32> to vector<32x128xf32>
      %15 = arith.addf %12, %14 : vector<32x128xf32>
      %c0_13 = arith.constant 0 : index
      %c0_14 = arith.constant 0 : index
      %16 = vector.load %arg5[%c0_13, %c0_14] : memref<32x64xbf16, #tpu.memory_space<vmem>>, vector<32x64xbf16>
      %c0_15 = arith.constant 0 : index
      %c0_16 = arith.constant 0 : index
      %17 = vector.load %arg6[%c0_15, %c0_16] : memref<64x128xbf16, #tpu.memory_space<vmem>>, vector<64x128xbf16>
      %cst_17 = arith.constant dense<0.000000e+00> : vector<32x128xf32>
      %18 = tpu.matmul %16, %17, %cst_17 {dimension_numbers = #tpu.dot_dimension_numbers<[1], [0], [0], [1], [0, 0, 1, 1], [], []>} : vector<32x64xbf16>, vector<64x128xbf16>, vector<32x128xf32> -> vector<32x128xf32>
      %19 = arith.addf %15, %18 : vector<32x128xf32>
      %cst_18 = arith.constant 0.000000e+00 : f32
      %20 = vector.broadcast %cst_18 : f32 to vector<32x128xf32>
      %21 = arith.maximumf %19, %20 : vector<32x128xf32>
      %c0_19 = arith.constant 0 : index
      %c0_20 = arith.constant 0 : index
      %22 = vector.load %arg7[%c0_19, %c0_20] : memref<32x128xf32, #tpu.memory_space<vmem>>, vector<32x128xf32>
      tpu.vector_store %arg7[%c0_19, %c0_20], %21 {strides = array<i32>} : memref<32x128xf32, #tpu.memory_space<vmem>>, vector<32x128xf32>,
    } else {
    }
    return
  }
  func.func @transform_0(%arg0: i32, %arg1: i32) -> (i32, i32) {
    %c0_i32 = arith.constant 0 : i32
    return %arg0, %arg1 : i32, i32
  }
  func.func @transform_1(%arg0: i32, %arg1: i32) -> (i32, i32) {
    %c0_i32 = arith.constant 0 : i32
    %c0_i32_0 = arith.constant 0 : i32
    return %arg1, %c0_i32 : i32, i32
  }
  func.func @transform_2(%arg0: i32, %arg1: i32) -> (i32, i32) {
    %c0_i32 = arith.constant 0 : i32
    %c0_i32_0 = arith.constant 0 : i32
    %c0_i32_1 = arith.constant 0 : i32
    return %c0_i32, %c0_i32_0 : i32, i32
  }
  func.func @transform_3(%arg0: i32, %arg1: i32) -> (i32, i32) {
    %c0_i32 = arith.constant 0 : i32
    %c0_i32_0 = arith.constant 0 : i32
    return %arg0, %c0_i32 : i32, i32
  }
  func.func @transform_4(%arg0: i32, %arg1: i32) -> (i32, i32) {
    %c0_i32 = arith.constant 0 : i32
    %c0_i32_0 = arith.constant 0 : i32
    %c0_i32_1 = arith.constant 0 : i32
    return %c0_i32, %c0_i32_0 : i32, i32
  }
  func.func @transform_5(%arg0: i32, %arg1: i32) -> (i32, i32) {
    %c0_i32 = arith.constant 0 : i32
    %c0_i32_0 = arith.constant 0 : i32
    return %arg0, %c0_i32 : i32, i32
  }
}

module attributes {stable_mosaic.version = 11 : i64} {
  func.func @_gemm_kernel(%arg0: i32, %arg1: i32, %arg2: memref<32x384xbf16, #tpu.memory_space<vmem>>, %arg3: memref<384x128xbf16, #tpu.memory_space<vmem>>, %arg4: memref<1x128xf32, #tpu.memory_space<vmem>>, %arg5: memref<32x128xf32, #tpu.memory_space<vmem>>, %arg6: memref<32x128xf32, #tpu.memory_space<vmem>>, %arg7: memref<32x128xf32, #tpu.memory_space<vmem>>) attributes {dimension_semantics = [#tpu.dimension_semantics<parallel>, #tpu.dimension_semantics<arbitrary>], iteration_bounds = array<i64: 1, 3>, scalar_prefetch = 0 : i64, scratch_operands = 1 : i64, tpu.core_type = #tpu.core_type<tc>, window_params = [{transform_indices = @transform_0, window_bounds = array<i64: 32, 384>}, {transform_indices = @transform_1, window_bounds = array<i64: 384, 128>}, {pipeline_mode = #tpu.pipeline_mode<synchronous>, transform_indices = @transform_2, window_bounds = array<i64: 1, 128>}, {transform_indices = @transform_3, window_bounds = array<i64: 32, 128>}, {transform_indices = @transform_4, window_bounds = array<i64: 32, 128>}]} {
    %c0_i32 = arith.constant 0 : i32
    %0 = arith.cmpi eq, %arg1, %c0_i32 : i32
    %1 = arith.extui %0 : i1 to i32
    %c0_i32_0 = arith.constant 0 : i32
    %2 = arith.cmpi ne, %1, %c0_i32_0 : i32
    scf.if %2 {
      %cst_9 = arith.constant 0.000000e+00 : f32
      %12 = vector.broadcast %cst_9 : f32 to vector<32x128xf32>
      %c0_10 = arith.constant 0 : index
      %c0_11 = arith.constant 0 : index
      %13 = vector.load %arg7[%c0_10, %c0_11] : memref<32x128xf32, #tpu.memory_space<vmem>>, vector<32x128xf32>
      tpu.vector_store %arg7[%c0_10, %c0_11], %12 {strides = array<i32>} : memref<32x128xf32, #tpu.memory_space<vmem>>, vector<32x128xf32>,
    } else {
    }
    %c0 = arith.constant 0 : index
    %c0_1 = arith.constant 0 : index
    %3 = vector.load %arg7[%c0, %c0_1] : memref<32x128xf32, #tpu.memory_space<vmem>>, vector<32x128xf32>
    %c0_2 = arith.constant 0 : index
    %c0_3 = arith.constant 0 : index
    %4 = vector.load %arg2[%c0_2, %c0_3] : memref<32x384xbf16, #tpu.memory_space<vmem>>, vector<32x384xbf16>
    %c0_4 = arith.constant 0 : index
    %c0_5 = arith.constant 0 : index
    %5 = vector.load %arg3[%c0_4, %c0_5] : memref<384x128xbf16, #tpu.memory_space<vmem>>, vector<384x128xbf16>
    %cst = arith.constant dense<0.000000e+00> : vector<32x128xf32>
    %6 = tpu.matmul %4, %5, %cst {dimension_numbers = #tpu.dot_dimension_numbers<[1], [0], [0], [1], [0, 0, 1, 1], [], []>} : vector<32x384xbf16>, vector<384x128xbf16>, vector<32x128xf32> -> vector<32x128xf32>
    %7 = arith.addf %3, %6 : vector<32x128xf32>
    %c0_6 = arith.constant 0 : index
    %c0_7 = arith.constant 0 : index
    %8 = vector.load %arg7[%c0_6, %c0_7] : memref<32x128xf32, #tpu.memory_space<vmem>>, vector<32x128xf32>
    tpu.vector_store %arg7[%c0_6, %c0_7], %7 {strides = array<i32>} : memref<32x128xf32, #tpu.memory_space<vmem>>, vector<32x128xf32>,
    %c2_i32 = arith.constant 2 : i32
    %9 = arith.cmpi eq, %arg1, %c2_i32 : i32
    %10 = arith.extui %9 : i1 to i32
    %c0_i32_8 = arith.constant 0 : i32
    %11 = arith.cmpi ne, %10, %c0_i32_8 : i32
    scf.if %11 {
      %c0_9 = arith.constant 0 : index
      %c0_10 = arith.constant 0 : index
      %12 = vector.load %arg7[%c0_9, %c0_10] : memref<32x128xf32, #tpu.memory_space<vmem>>, vector<32x128xf32>
      %c0_11 = arith.constant 0 : index
      %c0_12 = arith.constant 0 : index
      %13 = vector.load %arg4[%c0_11, %c0_12] : memref<1x128xf32, #tpu.memory_space<vmem>>, vector<1x128xf32>
      %14 = vector.broadcast %13 : vector<1x128xf32> to vector<32x128xf32>
      %15 = arith.addf %12, %14 : vector<32x128xf32>
      %c0_13 = arith.constant 0 : index
      %c0_14 = arith.constant 0 : index
      %16 = vector.load %arg5[%c0_13, %c0_14] : memref<32x128xf32, #tpu.memory_space<vmem>>, vector<32x128xf32>
      %17 = arith.addf %15, %16 : vector<32x128xf32>
      %cst_15 = arith.constant 0.000000e+00 : f32
      %18 = vector.broadcast %cst_15 : f32 to vector<32x128xf32>
      %19 = arith.maximumf %17, %18 : vector<32x128xf32>
      %c0_16 = arith.constant 0 : index
      %c0_17 = arith.constant 0 : index
      %20 = vector.load %arg6[%c0_16, %c0_17] : memref<32x128xf32, #tpu.memory_space<vmem>>, vector<32x128xf32>
      tpu.vector_store %arg6[%c0_16, %c0_17], %19 {strides = array<i32>} : memref<32x128xf32, #tpu.memory_space<vmem>>, vector<32x128xf32>,
    } else {
    }
    return
  }
  func.func @transform_0(%arg0: i32, %arg1: i32) -> (i32, i32) {
    %c0_i32 = arith.constant 0 : i32
    return %arg0, %arg1 : i32, i32
  }
  func.func @transform_1(%arg0: i32, %arg1: i32) -> (i32, i32) {
    %c0_i32 = arith.constant 0 : i32
    %c0_i32_0 = arith.constant 0 : i32
    return %arg1, %c0_i32 : i32, i32
  }
  func.func @transform_2(%arg0: i32, %arg1: i32) -> (i32, i32) {
    %c0_i32 = arith.constant 0 : i32
    %c0_i32_0 = arith.constant 0 : i32
    %c0_i32_1 = arith.constant 0 : i32
    return %c0_i32, %c0_i32_0 : i32, i32
  }
  func.func @transform_3(%arg0: i32, %arg1: i32) -> (i32, i32) {
    %c0_i32 = arith.constant 0 : i32
    %c0_i32_0 = arith.constant 0 : i32
    return %arg0, %c0_i32 : i32, i32
  }
  func.func @transform_4(%arg0: i32, %arg1: i32) -> (i32, i32) {
    %c0_i32 = arith.constant 0 : i32
    %c0_i32_0 = arith.constant 0 : i32
    return %arg0, %c0_i32 : i32, i32
  }
}

module attributes {stable_mosaic.version = 11 : i64} {
  func.func @_gemm_kernel(%arg0: i32, %arg1: i32, %arg2: memref<32x384xbf16, #tpu.memory_space<vmem>>, %arg3: memref<384x128xbf16, #tpu.memory_space<vmem>>, %arg4: memref<1x128xf32, #tpu.memory_space<vmem>>, %arg5: memref<32x128xf32, #tpu.memory_space<vmem>>, %arg6: memref<32x128xf32, #tpu.memory_space<vmem>>) attributes {dimension_semantics = [#tpu.dimension_semantics<parallel>, #tpu.dimension_semantics<arbitrary>], iteration_bounds = array<i64: 1, 3>, scalar_prefetch = 0 : i64, scratch_operands = 1 : i64, tpu.core_type = #tpu.core_type<tc>, window_params = [{transform_indices = @transform_0, window_bounds = array<i64: 32, 384>}, {transform_indices = @transform_1, window_bounds = array<i64: 384, 128>}, {pipeline_mode = #tpu.pipeline_mode<synchronous>, transform_indices = @transform_2, window_bounds = array<i64: 1, 128>}, {transform_indices = @transform_3, window_bounds = array<i64: 32, 128>}]} {
    %c0_i32 = arith.constant 0 : i32
    %0 = arith.cmpi eq, %arg1, %c0_i32 : i32
    %1 = arith.extui %0 : i1 to i32
    %c0_i32_0 = arith.constant 0 : i32
    %2 = arith.cmpi ne, %1, %c0_i32_0 : i32
    scf.if %2 {
      %cst_9 = arith.constant 0.000000e+00 : f32
      %12 = vector.broadcast %cst_9 : f32 to vector<32x128xf32>
      %c0_10 = arith.constant 0 : index
      %c0_11 = arith.constant 0 : index
      %13 = vector.load %arg6[%c0_10, %c0_11] : memref<32x128xf32, #tpu.memory_space<vmem>>, vector<32x128xf32>
      tpu.vector_store %arg6[%c0_10, %c0_11], %12 {strides = array<i32>} : memref<32x128xf32, #tpu.memory_space<vmem>>, vector<32x128xf32>,
    } else {
    }
    %c0 = arith.constant 0 : index
    %c0_1 = arith.constant 0 : index
    %3 = vector.load %arg6[%c0, %c0_1] : memref<32x128xf32, #tpu.memory_space<vmem>>, vector<32x128xf32>
    %c0_2 = arith.constant 0 : index
    %c0_3 = arith.constant 0 : index
    %4 = vector.load %arg2[%c0_2, %c0_3] : memref<32x384xbf16, #tpu.memory_space<vmem>>, vector<32x384xbf16>
    %c0_4 = arith.constant 0 : index
    %c0_5 = arith.constant 0 : index
    %5 = vector.load %arg3[%c0_4, %c0_5] : memref<384x128xbf16, #tpu.memory_space<vmem>>, vector<384x128xbf16>
    %cst = arith.constant dense<0.000000e+00> : vector<32x128xf32>
    %6 = tpu.matmul %4, %5, %cst {dimension_numbers = #tpu.dot_dimension_numbers<[1], [0], [0], [1], [0, 0, 1, 1], [], []>} : vector<32x384xbf16>, vector<384x128xbf16>, vector<32x128xf32> -> vector<32x128xf32>
    %7 = arith.addf %3, %6 : vector<32x128xf32>
    %c0_6 = arith.constant 0 : index
    %c0_7 = arith.constant 0 : index
    %8 = vector.load %arg6[%c0_6, %c0_7] : memref<32x128xf32, #tpu.memory_space<vmem>>, vector<32x128xf32>
    tpu.vector_store %arg6[%c0_6, %c0_7], %7 {strides = array<i32>} : memref<32x128xf32, #tpu.memory_space<vmem>>, vector<32x128xf32>,
    %c2_i32 = arith.constant 2 : i32
    %9 = arith.cmpi eq, %arg1, %c2_i32 : i32
    %10 = arith.extui %9 : i1 to i32
    %c0_i32_8 = arith.constant 0 : i32
    %11 = arith.cmpi ne, %10, %c0_i32_8 : i32
    scf.if %11 {
      %c0_9 = arith.constant 0 : index
      %c0_10 = arith.constant 0 : index
      %12 = vector.load %arg6[%c0_9, %c0_10] : memref<32x128xf32, #tpu.memory_space<vmem>>, vector<32x128xf32>
      %c0_11 = arith.constant 0 : index
      %c0_12 = arith.constant 0 : index
      %13 = vector.load %arg4[%c0_11, %c0_12] : memref<1x128xf32, #tpu.memory_space<vmem>>, vector<1x128xf32>
      %14 = vector.broadcast %13 : vector<1x128xf32> to vector<32x128xf32>
      %15 = arith.addf %12, %14 : vector<32x128xf32>
      %cst_13 = arith.constant 0.000000e+00 : f32
      %16 = vector.broadcast %cst_13 : f32 to vector<32x128xf32>
      %17 = arith.maximumf %15, %16 : vector<32x128xf32>
      %c0_14 = arith.constant 0 : index
      %c0_15 = arith.constant 0 : index
      %18 = vector.load %arg5[%c0_14, %c0_15] : memref<32x128xf32, #tpu.memory_space<vmem>>, vector<32x128xf32>
      tpu.vector_store %arg5[%c0_14, %c0_15], %17 {strides = array<i32>} : memref<32x128xf32, #tpu.memory_space<vmem>>, vector<32x128xf32>,
    } else {
    }
    return
  }
  func.func @transform_0(%arg0: i32, %arg1: i32) -> (i32, i32) {
    %c0_i32 = arith.constant 0 : i32
    return %arg0, %arg1 : i32, i32
  }
  func.func @transform_1(%arg0: i32, %arg1: i32) -> (i32, i32) {
    %c0_i32 = arith.constant 0 : i32
    %c0_i32_0 = arith.constant 0 : i32
    return %arg1, %c0_i32 : i32, i32
  }
  func.func @transform_2(%arg0: i32, %arg1: i32) -> (i32, i32) {
    %c0_i32 = arith.constant 0 : i32
    %c0_i32_0 = arith.constant 0 : i32
    %c0_i32_1 = arith.constant 0 : i32
    return %c0_i32, %c0_i32_0 : i32, i32
  }
  func.func @transform_3(%arg0: i32, %arg1: i32) -> (i32, i32) {
    %c0_i32 = arith.constant 0 : i32
    %c0_i32_0 = arith.constant 0 : i32
    return %arg0, %c0_i32 : i32, i32
  }
}

module attributes {stable_mosaic.version = 11 : i64} {
  func.func @_gemm_kernel(%arg0: i32, %arg1: i32, %arg2: memref<8x384xbf16, #tpu.memory_space<vmem>>, %arg3: memref<384x256xbf16, #tpu.memory_space<vmem>>, %arg4: memref<1x256xf32, #tpu.memory_space<vmem>>, %arg5: memref<8x256xf32, #tpu.memory_space<vmem>>, %arg6: memref<8x256xf32, #tpu.memory_space<vmem>>) attributes {dimension_semantics = [#tpu.dimension_semantics<parallel>, #tpu.dimension_semantics<arbitrary>], iteration_bounds = array<i64: 1, 3>, scalar_prefetch = 0 : i64, scratch_operands = 1 : i64, tpu.core_type = #tpu.core_type<tc>, window_params = [{transform_indices = @transform_0, window_bounds = array<i64: 8, 384>}, {transform_indices = @transform_1, window_bounds = array<i64: 384, 256>}, {pipeline_mode = #tpu.pipeline_mode<synchronous>, transform_indices = @transform_2, window_bounds = array<i64: 1, 256>}, {transform_indices = @transform_3, window_bounds = array<i64: 8, 256>}]} {
    %c0_i32 = arith.constant 0 : i32
    %0 = arith.cmpi eq, %arg1, %c0_i32 : i32
    %1 = arith.extui %0 : i1 to i32
    %c0_i32_0 = arith.constant 0 : i32
    %2 = arith.cmpi ne, %1, %c0_i32_0 : i32
    scf.if %2 {
      %cst_9 = arith.constant 0.000000e+00 : f32
      %12 = vector.broadcast %cst_9 : f32 to vector<8x256xf32>
      %c0_10 = arith.constant 0 : index
      %c0_11 = arith.constant 0 : index
      %13 = vector.load %arg6[%c0_10, %c0_11] : memref<8x256xf32, #tpu.memory_space<vmem>>, vector<8x256xf32>
      tpu.vector_store %arg6[%c0_10, %c0_11], %12 {strides = array<i32>} : memref<8x256xf32, #tpu.memory_space<vmem>>, vector<8x256xf32>,
    } else {
    }
    %c0 = arith.constant 0 : index
    %c0_1 = arith.constant 0 : index
    %3 = vector.load %arg6[%c0, %c0_1] : memref<8x256xf32, #tpu.memory_space<vmem>>, vector<8x256xf32>
    %c0_2 = arith.constant 0 : index
    %c0_3 = arith.constant 0 : index
    %4 = vector.load %arg2[%c0_2, %c0_3] : memref<8x384xbf16, #tpu.memory_space<vmem>>, vector<8x384xbf16>
    %c0_4 = arith.constant 0 : index
    %c0_5 = arith.constant 0 : index
    %5 = vector.load %arg3[%c0_4, %c0_5] : memref<384x256xbf16, #tpu.memory_space<vmem>>, vector<384x256xbf16>
    %cst = arith.constant dense<0.000000e+00> : vector<8x256xf32>
    %6 = tpu.matmul %4, %5, %cst {dimension_numbers = #tpu.dot_dimension_numbers<[1], [0], [0], [1], [0, 0, 1, 1], [], []>} : vector<8x384xbf16>, vector<384x256xbf16>, vector<8x256xf32> -> vector<8x256xf32>
    %7 = arith.addf %3, %6 : vector<8x256xf32>
    %c0_6 = arith.constant 0 : index
    %c0_7 = arith.constant 0 : index
    %8 = vector.load %arg6[%c0_6, %c0_7] : memref<8x256xf32, #tpu.memory_space<vmem>>, vector<8x256xf32>
    tpu.vector_store %arg6[%c0_6, %c0_7], %7 {strides = array<i32>} : memref<8x256xf32, #tpu.memory_space<vmem>>, vector<8x256xf32>,
    %c2_i32 = arith.constant 2 : i32
    %9 = arith.cmpi eq, %arg1, %c2_i32 : i32
    %10 = arith.extui %9 : i1 to i32
    %c0_i32_8 = arith.constant 0 : i32
    %11 = arith.cmpi ne, %10, %c0_i32_8 : i32
    scf.if %11 {
      %c0_9 = arith.constant 0 : index
      %c0_10 = arith.constant 0 : index
      %12 = vector.load %arg6[%c0_9, %c0_10] : memref<8x256xf32, #tpu.memory_space<vmem>>, vector<8x256xf32>
      %c0_11 = arith.constant 0 : index
      %c0_12 = arith.constant 0 : index
      %13 = vector.load %arg4[%c0_11, %c0_12] : memref<1x256xf32, #tpu.memory_space<vmem>>, vector<1x256xf32>
      %14 = vector.broadcast %13 : vector<1x256xf32> to vector<8x256xf32>
      %15 = arith.addf %12, %14 : vector<8x256xf32>
      %cst_13 = arith.constant 0.000000e+00 : f32
      %16 = vector.broadcast %cst_13 : f32 to vector<8x256xf32>
      %17 = arith.maximumf %15, %16 : vector<8x256xf32>
      %c0_14 = arith.constant 0 : index
      %c0_15 = arith.constant 0 : index
      %18 = vector.load %arg5[%c0_14, %c0_15] : memref<8x256xf32, #tpu.memory_space<vmem>>, vector<8x256xf32>
      tpu.vector_store %arg5[%c0_14, %c0_15], %17 {strides = array<i32>} : memref<8x256xf32, #tpu.memory_space<vmem>>, vector<8x256xf32>,
    } else {
    }
    return
  }
  func.func @transform_0(%arg0: i32, %arg1: i32) -> (i32, i32) {
    %c0_i32 = arith.constant 0 : i32
    return %arg0, %arg1 : i32, i32
  }
  func.func @transform_1(%arg0: i32, %arg1: i32) -> (i32, i32) {
    %c0_i32 = arith.constant 0 : i32
    %c0_i32_0 = arith.constant 0 : i32
    return %arg1, %c0_i32 : i32, i32
  }
  func.func @transform_2(%arg0: i32, %arg1: i32) -> (i32, i32) {
    %c0_i32 = arith.constant 0 : i32
    %c0_i32_0 = arith.constant 0 : i32
    %c0_i32_1 = arith.constant 0 : i32
    return %c0_i32, %c0_i32_0 : i32, i32
  }
  func.func @transform_3(%arg0: i32, %arg1: i32) -> (i32, i32) {
    %c0_i32 = arith.constant 0 : i32
    %c0_i32_0 = arith.constant 0 : i32
    return %arg0, %c0_i32 : i32, i32
  }
}

module attributes {stable_mosaic.version = 11 : i64} {
  func.func @_gemm_kernel(%arg0: i32, %arg1: i32, %arg2: memref<8x384xbf16, #tpu.memory_space<vmem>>, %arg3: memref<384x256xbf16, #tpu.memory_space<vmem>>, %arg4: memref<1x256xf32, #tpu.memory_space<vmem>>, %arg5: memref<8x256xf32, #tpu.memory_space<vmem>>, %arg6: memref<8x256xf32, #tpu.memory_space<vmem>>) attributes {dimension_semantics = [#tpu.dimension_semantics<parallel>, #tpu.dimension_semantics<arbitrary>], iteration_bounds = array<i64: 1, 6>, scalar_prefetch = 0 : i64, scratch_operands = 1 : i64, tpu.core_type = #tpu.core_type<tc>, window_params = [{transform_indices = @transform_0, window_bounds = array<i64: 8, 384>}, {transform_indices = @transform_1, window_bounds = array<i64: 384, 256>}, {pipeline_mode = #tpu.pipeline_mode<synchronous>, transform_indices = @transform_2, window_bounds = array<i64: 1, 256>}, {transform_indices = @transform_3, window_bounds = array<i64: 8, 256>}]} {
    %c0_i32 = arith.constant 0 : i32
    %0 = arith.cmpi eq, %arg1, %c0_i32 : i32
    %1 = arith.extui %0 : i1 to i32
    %c0_i32_0 = arith.constant 0 : i32
    %2 = arith.cmpi ne, %1, %c0_i32_0 : i32
    scf.if %2 {
      %cst_9 = arith.constant 0.000000e+00 : f32
      %12 = vector.broadcast %cst_9 : f32 to vector<8x256xf32>
      %c0_10 = arith.constant 0 : index
      %c0_11 = arith.constant 0 : index
      %13 = vector.load %arg6[%c0_10, %c0_11] : memref<8x256xf32, #tpu.memory_space<vmem>>, vector<8x256xf32>
      tpu.vector_store %arg6[%c0_10, %c0_11], %12 {strides = array<i32>} : memref<8x256xf32, #tpu.memory_space<vmem>>, vector<8x256xf32>,
    } else {
    }
    %c0 = arith.constant 0 : index
    %c0_1 = arith.constant 0 : index
    %3 = vector.load %arg6[%c0, %c0_1] : memref<8x256xf32, #tpu.memory_space<vmem>>, vector<8x256xf32>
    %c0_2 = arith.constant 0 : index
    %c0_3 = arith.constant 0 : index
    %4 = vector.load %arg2[%c0_2, %c0_3] : memref<8x384xbf16, #tpu.memory_space<vmem>>, vector<8x384xbf16>
    %c0_4 = arith.constant 0 : index
    %c0_5 = arith.constant 0 : index
    %5 = vector.load %arg3[%c0_4, %c0_5] : memref<384x256xbf16, #tpu.memory_space<vmem>>, vector<384x256xbf16>
    %cst = arith.constant dense<0.000000e+00> : vector<8x256xf32>
    %6 = tpu.matmul %4, %5, %cst {dimension_numbers = #tpu.dot_dimension_numbers<[1], [0], [0], [1], [0, 0, 1, 1], [], []>} : vector<8x384xbf16>, vector<384x256xbf16>, vector<8x256xf32> -> vector<8x256xf32>
    %7 = arith.addf %3, %6 : vector<8x256xf32>
    %c0_6 = arith.constant 0 : index
    %c0_7 = arith.constant 0 : index
    %8 = vector.load %arg6[%c0_6, %c0_7] : memref<8x256xf32, #tpu.memory_space<vmem>>, vector<8x256xf32>
    tpu.vector_store %arg6[%c0_6, %c0_7], %7 {strides = array<i32>} : memref<8x256xf32, #tpu.memory_space<vmem>>, vector<8x256xf32>,
    %c5_i32 = arith.constant 5 : i32
    %9 = arith.cmpi eq, %arg1, %c5_i32 : i32
    %10 = arith.extui %9 : i1 to i32
    %c0_i32_8 = arith.constant 0 : i32
    %11 = arith.cmpi ne, %10, %c0_i32_8 : i32
    scf.if %11 {
      %c0_9 = arith.constant 0 : index
      %c0_10 = arith.constant 0 : index
      %12 = vector.load %arg6[%c0_9, %c0_10] : memref<8x256xf32, #tpu.memory_space<vmem>>, vector<8x256xf32>
      %c0_11 = arith.constant 0 : index
      %c0_12 = arith.constant 0 : index
      %13 = vector.load %arg4[%c0_11, %c0_12] : memref<1x256xf32, #tpu.memory_space<vmem>>, vector<1x256xf32>
      %14 = vector.broadcast %13 : vector<1x256xf32> to vector<8x256xf32>
      %15 = arith.addf %12, %14 : vector<8x256xf32>
      %cst_13 = arith.constant 0.000000e+00 : f32
      %16 = vector.broadcast %cst_13 : f32 to vector<8x256xf32>
      %17 = arith.maximumf %15, %16 : vector<8x256xf32>
      %c0_14 = arith.constant 0 : index
      %c0_15 = arith.constant 0 : index
      %18 = vector.load %arg5[%c0_14, %c0_15] : memref<8x256xf32, #tpu.memory_space<vmem>>, vector<8x256xf32>
      tpu.vector_store %arg5[%c0_14, %c0_15], %17 {strides = array<i32>} : memref<8x256xf32, #tpu.memory_space<vmem>>, vector<8x256xf32>,
    } else {
    }
    return
  }
  func.func @transform_0(%arg0: i32, %arg1: i32) -> (i32, i32) {
    %c0_i32 = arith.constant 0 : i32
    return %arg0, %arg1 : i32, i32
  }
  func.func @transform_1(%arg0: i32, %arg1: i32) -> (i32, i32) {
    %c0_i32 = arith.constant 0 : i32
    %c0_i32_0 = arith.constant 0 : i32
    return %arg1, %c0_i32 : i32, i32
  }
  func.func @transform_2(%arg0: i32, %arg1: i32) -> (i32, i32) {
    %c0_i32 = arith.constant 0 : i32
    %c0_i32_0 = arith.constant 0 : i32
    %c0_i32_1 = arith.constant 0 : i32
    return %c0_i32, %c0_i32_0 : i32, i32
  }
  func.func @transform_3(%arg0: i32, %arg1: i32) -> (i32, i32) {
    %c0_i32 = arith.constant 0 : i32
    %c0_i32_0 = arith.constant 0 : i32
    return %arg0, %c0_i32 : i32, i32
  }
}

module attributes {stable_mosaic.version = 11 : i64} {
  func.func @_gemm_kernel(%arg0: i32, %arg1: i32, %arg2: memref<8x384xbf16, #tpu.memory_space<vmem>>, %arg3: memref<384x256xbf16, #tpu.memory_space<vmem>>, %arg4: memref<1x256xf32, #tpu.memory_space<vmem>>, %arg5: memref<8x128xbf16, #tpu.memory_space<vmem>>, %arg6: memref<128x256xbf16, #tpu.memory_space<vmem>>, %arg7: memref<8x256xf32, #tpu.memory_space<vmem>>, %arg8: memref<8x256xf32, #tpu.memory_space<vmem>>) attributes {dimension_semantics = [#tpu.dimension_semantics<parallel>, #tpu.dimension_semantics<arbitrary>], iteration_bounds = array<i64: 1, 6>, scalar_prefetch = 0 : i64, scratch_operands = 1 : i64, tpu.core_type = #tpu.core_type<tc>, window_params = [{transform_indices = @transform_0, window_bounds = array<i64: 8, 384>}, {transform_indices = @transform_1, window_bounds = array<i64: 384, 256>}, {pipeline_mode = #tpu.pipeline_mode<synchronous>, transform_indices = @transform_2, window_bounds = array<i64: 1, 256>}, {transform_indices = @transform_3, window_bounds = array<i64: 8, 128>}, {pipeline_mode = #tpu.pipeline_mode<synchronous>, transform_indices = @transform_4, window_bounds = array<i64: 128, 256>}, {transform_indices = @transform_5, window_bounds = array<i64: 8, 256>}]} {
    %c0_i32 = arith.constant 0 : i32
    %0 = arith.cmpi eq, %arg1, %c0_i32 : i32
    %1 = arith.extui %0 : i1 to i32
    %c0_i32_0 = arith.constant 0 : i32
    %2 = arith.cmpi ne, %1, %c0_i32_0 : i32
    scf.if %2 {
      %cst_9 = arith.constant 0.000000e+00 : f32
      %12 = vector.broadcast %cst_9 : f32 to vector<8x256xf32>
      %c0_10 = arith.constant 0 : index
      %c0_11 = arith.constant 0 : index
      %13 = vector.load %arg8[%c0_10, %c0_11] : memref<8x256xf32, #tpu.memory_space<vmem>>, vector<8x256xf32>
      tpu.vector_store %arg8[%c0_10, %c0_11], %12 {strides = array<i32>} : memref<8x256xf32, #tpu.memory_space<vmem>>, vector<8x256xf32>,
    } else {
    }
    %c0 = arith.constant 0 : index
    %c0_1 = arith.constant 0 : index
    %3 = vector.load %arg8[%c0, %c0_1] : memref<8x256xf32, #tpu.memory_space<vmem>>, vector<8x256xf32>
    %c0_2 = arith.constant 0 : index
    %c0_3 = arith.constant 0 : index
    %4 = vector.load %arg2[%c0_2, %c0_3] : memref<8x384xbf16, #tpu.memory_space<vmem>>, vector<8x384xbf16>
    %c0_4 = arith.constant 0 : index
    %c0_5 = arith.constant 0 : index
    %5 = vector.load %arg3[%c0_4, %c0_5] : memref<384x256xbf16, #tpu.memory_space<vmem>>, vector<384x256xbf16>
    %cst = arith.constant dense<0.000000e+00> : vector<8x256xf32>
    %6 = tpu.matmul %4, %5, %cst {dimension_numbers = #tpu.dot_dimension_numbers<[1], [0], [0], [1], [0, 0, 1, 1], [], []>} : vector<8x384xbf16>, vector<384x256xbf16>, vector<8x256xf32> -> vector<8x256xf32>
    %7 = arith.addf %3, %6 : vector<8x256xf32>
    %c0_6 = arith.constant 0 : index
    %c0_7 = arith.constant 0 : index
    %8 = vector.load %arg8[%c0_6, %c0_7] : memref<8x256xf32, #tpu.memory_space<vmem>>, vector<8x256xf32>
    tpu.vector_store %arg8[%c0_6, %c0_7], %7 {strides = array<i32>} : memref<8x256xf32, #tpu.memory_space<vmem>>, vector<8x256xf32>,
    %c5_i32 = arith.constant 5 : i32
    %9 = arith.cmpi eq, %arg1, %c5_i32 : i32
    %10 = arith.extui %9 : i1 to i32
    %c0_i32_8 = arith.constant 0 : i32
    %11 = arith.cmpi ne, %10, %c0_i32_8 : i32
    scf.if %11 {
      %c0_9 = arith.constant 0 : index
      %c0_10 = arith.constant 0 : index
      %12 = vector.load %arg8[%c0_9, %c0_10] : memref<8x256xf32, #tpu.memory_space<vmem>>, vector<8x256xf32>
      %c0_11 = arith.constant 0 : index
      %c0_12 = arith.constant 0 : index
      %13 = vector.load %arg4[%c0_11, %c0_12] : memref<1x256xf32, #tpu.memory_space<vmem>>, vector<1x256xf32>
      %14 = vector.broadcast %13 : vector<1x256xf32> to vector<8x256xf32>
      %15 = arith.addf %12, %14 : vector<8x256xf32>
      %c0_13 = arith.constant 0 : index
      %c0_14 = arith.constant 0 : index
      %16 = vector.load %arg5[%c0_13, %c0_14] : memref<8x128xbf16, #tpu.memory_space<vmem>>, vector<8x128xbf16>
      %c0_15 = arith.constant 0 : index
      %c0_16 = arith.constant 0 : index
      %17 = vector.load %arg6[%c0_15, %c0_16] : memref<128x256xbf16, #tpu.memory_space<vmem>>, vector<128x256xbf16>
      %cst_17 = arith.constant dense<0.000000e+00> : vector<8x256xf32>
      %18 = tpu.matmul %16, %17, %cst_17 {dimension_numbers = #tpu.dot_dimension_numbers<[1], [0], [0], [1], [0, 0, 1, 1], [], []>} : vector<8x128xbf16>, vector<128x256xbf16>, vector<8x256xf32> -> vector<8x256xf32>
      %19 = arith.addf %15, %18 : vector<8x256xf32>
      %cst_18 = arith.constant 0.000000e+00 : f32
      %20 = vector.broadcast %cst_18 : f32 to vector<8x256xf32>
      %21 = arith.maximumf %19, %20 : vector<8x256xf32>
      %c0_19 = arith.constant 0 : index
      %c0_20 = arith.constant 0 : index
      %22 = vector.load %arg7[%c0_19, %c0_20] : memref<8x256xf32, #tpu.memory_space<vmem>>, vector<8x256xf32>
      tpu.vector_store %arg7[%c0_19, %c0_20], %21 {strides = array<i32>} : memref<8x256xf32, #tpu.memory_space<vmem>>, vector<8x256xf32>,
    } else {
    }
    return
  }
  func.func @transform_0(%arg0: i32, %arg1: i32) -> (i32, i32) {
    %c0_i32 = arith.constant 0 : i32
    return %arg0, %arg1 : i32, i32
  }
  func.func @transform_1(%arg0: i32, %arg1: i32) -> (i32, i32) {
    %c0_i32 = arith.constant 0 : i32
    %c0_i32_0 = arith.constant 0 : i32
    return %arg1, %c0_i32 : i32, i32
  }
  func.func @transform_2(%arg0: i32, %arg1: i32) -> (i32, i32) {
    %c0_i32 = arith.constant 0 : i32
    %c0_i32_0 = arith.constant 0 : i32
    %c0_i32_1 = arith.constant 0 : i32
    return %c0_i32, %c0_i32_0 : i32, i32
  }
  func.func @transform_3(%arg0: i32, %arg1: i32) -> (i32, i32) {
    %c0_i32 = arith.constant 0 : i32
    %c0_i32_0 = arith.constant 0 : i32
    return %arg0, %c0_i32 : i32, i32
  }
  func.func @transform_4(%arg0: i32, %arg1: i32) -> (i32, i32) {
    %c0_i32 = arith.constant 0 : i32
    %c0_i32_0 = arith.constant 0 : i32
    %c0_i32_1 = arith.constant 0 : i32
    return %c0_i32, %c0_i32_0 : i32, i32
  }
  func.func @transform_5(%arg0: i32, %arg1: i32) -> (i32, i32) {
    %c0_i32 = arith.constant 0 : i32
    %c0_i32_0 = arith.constant 0 : i32
    return %arg0, %c0_i32 : i32, i32
  }
}

module attributes {stable_mosaic.version = 11 : i64} {
  func.func @_gemm_kernel(%arg0: i32, %arg1: i32, %arg2: memref<8x384xbf16, #tpu.memory_space<vmem>>, %arg3: memref<384x256xbf16, #tpu.memory_space<vmem>>, %arg4: memref<1x256xf32, #tpu.memory_space<vmem>>, %arg5: memref<8x256xf32, #tpu.memory_space<vmem>>, %arg6: memref<8x256xf32, #tpu.memory_space<vmem>>, %arg7: memref<8x256xf32, #tpu.memory_space<vmem>>) attributes {dimension_semantics = [#tpu.dimension_semantics<parallel>, #tpu.dimension_semantics<arbitrary>], iteration_bounds = array<i64: 1, 6>, scalar_prefetch = 0 : i64, scratch_operands = 1 : i64, tpu.core_type = #tpu.core_type<tc>, window_params = [{transform_indices = @transform_0, window_bounds = array<i64: 8, 384>}, {transform_indices = @transform_1, window_bounds = array<i64: 384, 256>}, {pipeline_mode = #tpu.pipeline_mode<synchronous>, transform_indices = @transform_2, window_bounds = array<i64: 1, 256>}, {transform_indices = @transform_3, window_bounds = array<i64: 8, 256>}, {transform_indices = @transform_4, window_bounds = array<i64: 8, 256>}]} {
    %c0_i32 = arith.constant 0 : i32
    %0 = arith.cmpi eq, %arg1, %c0_i32 : i32
    %1 = arith.extui %0 : i1 to i32
    %c0_i32_0 = arith.constant 0 : i32
    %2 = arith.cmpi ne, %1, %c0_i32_0 : i32
    scf.if %2 {
      %cst_9 = arith.constant 0.000000e+00 : f32
      %12 = vector.broadcast %cst_9 : f32 to vector<8x256xf32>
      %c0_10 = arith.constant 0 : index
      %c0_11 = arith.constant 0 : index
      %13 = vector.load %arg7[%c0_10, %c0_11] : memref<8x256xf32, #tpu.memory_space<vmem>>, vector<8x256xf32>
      tpu.vector_store %arg7[%c0_10, %c0_11], %12 {strides = array<i32>} : memref<8x256xf32, #tpu.memory_space<vmem>>, vector<8x256xf32>,
    } else {
    }
    %c0 = arith.constant 0 : index
    %c0_1 = arith.constant 0 : index
    %3 = vector.load %arg7[%c0, %c0_1] : memref<8x256xf32, #tpu.memory_space<vmem>>, vector<8x256xf32>
    %c0_2 = arith.constant 0 : index
    %c0_3 = arith.constant 0 : index
    %4 = vector.load %arg2[%c0_2, %c0_3] : memref<8x384xbf16, #tpu.memory_space<vmem>>, vector<8x384xbf16>
    %c0_4 = arith.constant 0 : index
    %c0_5 = arith.constant 0 : index
    %5 = vector.load %arg3[%c0_4, %c0_5] : memref<384x256xbf16, #tpu.memory_space<vmem>>, vector<384x256xbf16>
    %cst = arith.constant dense<0.000000e+00> : vector<8x256xf32>
    %6 = tpu.matmul %4, %5, %cst {dimension_numbers = #tpu.dot_dimension_numbers<[1], [0], [0], [1], [0, 0, 1, 1], [], []>} : vector<8x384xbf16>, vector<384x256xbf16>, vector<8x256xf32> -> vector<8x256xf32>
    %7 = arith.addf %3, %6 : vector<8x256xf32>
    %c0_6 = arith.constant 0 : index
    %c0_7 = arith.constant 0 : index
    %8 = vector.load %arg7[%c0_6, %c0_7] : memref<8x256xf32, #tpu.memory_space<vmem>>, vector<8x256xf32>
    tpu.vector_store %arg7[%c0_6, %c0_7], %7 {strides = array<i32>} : memref<8x256xf32, #tpu.memory_space<vmem>>, vector<8x256xf32>,
    %c5_i32 = arith.constant 5 : i32
    %9 = arith.cmpi eq, %arg1, %c5_i32 : i32
    %10 = arith.extui %9 : i1 to i32
    %c0_i32_8 = arith.constant 0 : i32
    %11 = arith.cmpi ne, %10, %c0_i32_8 : i32
    scf.if %11 {
      %c0_9 = arith.constant 0 : index
      %c0_10 = arith.constant 0 : index
      %12 = vector.load %arg7[%c0_9, %c0_10] : memref<8x256xf32, #tpu.memory_space<vmem>>, vector<8x256xf32>
      %c0_11 = arith.constant 0 : index
      %c0_12 = arith.constant 0 : index
      %13 = vector.load %arg4[%c0_11, %c0_12] : memref<1x256xf32, #tpu.memory_space<vmem>>, vector<1x256xf32>
      %14 = vector.broadcast %13 : vector<1x256xf32> to vector<8x256xf32>
      %15 = arith.addf %12, %14 : vector<8x256xf32>
      %c0_13 = arith.constant 0 : index
      %c0_14 = arith.constant 0 : index
      %16 = vector.load %arg5[%c0_13, %c0_14] : memref<8x256xf32, #tpu.memory_space<vmem>>, vector<8x256xf32>
      %17 = arith.addf %15, %16 : vector<8x256xf32>
      %cst_15 = arith.constant 0.000000e+00 : f32
      %18 = vector.broadcast %cst_15 : f32 to vector<8x256xf32>
      %19 = arith.maximumf %17, %18 : vector<8x256xf32>
      %c0_16 = arith.constant 0 : index
      %c0_17 = arith.constant 0 : index
      %20 = vector.load %arg6[%c0_16, %c0_17] : memref<8x256xf32, #tpu.memory_space<vmem>>, vector<8x256xf32>
      tpu.vector_store %arg6[%c0_16, %c0_17], %19 {strides = array<i32>} : memref<8x256xf32, #tpu.memory_space<vmem>>, vector<8x256xf32>,
    } else {
    }
    return
  }
  func.func @transform_0(%arg0: i32, %arg1: i32) -> (i32, i32) {
    %c0_i32 = arith.constant 0 : i32
    return %arg0, %arg1 : i32, i32
  }
  func.func @transform_1(%arg0: i32, %arg1: i32) -> (i32, i32) {
    %c0_i32 = arith.constant 0 : i32
    %c0_i32_0 = arith.constant 0 : i32
    return %arg1, %c0_i32 : i32, i32
  }
  func.func @transform_2(%arg0: i32, %arg1: i32) -> (i32, i32) {
    %c0_i32 = arith.constant 0 : i32
    %c0_i32_0 = arith.constant 0 : i32
    %c0_i32_1 = arith.constant 0 : i32
    return %c0_i32, %c0_i32_0 : i32, i32
  }
  func.func @transform_3(%arg0: i32, %arg1: i32) -> (i32, i32) {
    %c0_i32 = arith.constant 0 : i32
    %c0_i32_0 = arith.constant 0 : i32
    return %arg0, %c0_i32 : i32, i32
  }
  func.func @transform_4(%arg0: i32, %arg1: i32) -> (i32, i32) {
    %c0_i32 = arith.constant 0 : i32
    %c0_i32_0 = arith.constant 0 : i32
    return %arg0, %c0_i32 : i32, i32
  }
}

module attributes {stable_mosaic.version = 11 : i64} {
  func.func @_gemm_kernel(%arg0: i32, %arg1: i32, %arg2: memref<8x384xbf16, #tpu.memory_space<vmem>>, %arg3: memref<384x512xbf16, #tpu.memory_space<vmem>>, %arg4: memref<1x512xf32, #tpu.memory_space<vmem>>, %arg5: memref<8x512xf32, #tpu.memory_space<vmem>>, %arg6: memref<8x512xf32, #tpu.memory_space<vmem>>) attributes {dimension_semantics = [#tpu.dimension_semantics<parallel>, #tpu.dimension_semantics<arbitrary>], iteration_bounds = array<i64: 1, 6>, scalar_prefetch = 0 : i64, scratch_operands = 1 : i64, tpu.core_type = #tpu.core_type<tc>, window_params = [{transform_indices = @transform_0, window_bounds = array<i64: 8, 384>}, {transform_indices = @transform_1, window_bounds = array<i64: 384, 512>}, {pipeline_mode = #tpu.pipeline_mode<synchronous>, transform_indices = @transform_2, window_bounds = array<i64: 1, 512>}, {transform_indices = @transform_3, window_bounds = array<i64: 8, 512>}]} {
    %c0_i32 = arith.constant 0 : i32
    %0 = arith.cmpi eq, %arg1, %c0_i32 : i32
    %1 = arith.extui %0 : i1 to i32
    %c0_i32_0 = arith.constant 0 : i32
    %2 = arith.cmpi ne, %1, %c0_i32_0 : i32
    scf.if %2 {
      %cst_9 = arith.constant 0.000000e+00 : f32
      %12 = vector.broadcast %cst_9 : f32 to vector<8x512xf32>
      %c0_10 = arith.constant 0 : index
      %c0_11 = arith.constant 0 : index
      %13 = vector.load %arg6[%c0_10, %c0_11] : memref<8x512xf32, #tpu.memory_space<vmem>>, vector<8x512xf32>
      tpu.vector_store %arg6[%c0_10, %c0_11], %12 {strides = array<i32>} : memref<8x512xf32, #tpu.memory_space<vmem>>, vector<8x512xf32>,
    } else {
    }
    %c0 = arith.constant 0 : index
    %c0_1 = arith.constant 0 : index
    %3 = vector.load %arg6[%c0, %c0_1] : memref<8x512xf32, #tpu.memory_space<vmem>>, vector<8x512xf32>
    %c0_2 = arith.constant 0 : index
    %c0_3 = arith.constant 0 : index
    %4 = vector.load %arg2[%c0_2, %c0_3] : memref<8x384xbf16, #tpu.memory_space<vmem>>, vector<8x384xbf16>
    %c0_4 = arith.constant 0 : index
    %c0_5 = arith.constant 0 : index
    %5 = vector.load %arg3[%c0_4, %c0_5] : memref<384x512xbf16, #tpu.memory_space<vmem>>, vector<384x512xbf16>
    %cst = arith.constant dense<0.000000e+00> : vector<8x512xf32>
    %6 = tpu.matmul %4, %5, %cst {dimension_numbers = #tpu.dot_dimension_numbers<[1], [0], [0], [1], [0, 0, 1, 1], [], []>} : vector<8x384xbf16>, vector<384x512xbf16>, vector<8x512xf32> -> vector<8x512xf32>
    %7 = arith.addf %3, %6 : vector<8x512xf32>
    %c0_6 = arith.constant 0 : index
    %c0_7 = arith.constant 0 : index
    %8 = vector.load %arg6[%c0_6, %c0_7] : memref<8x512xf32, #tpu.memory_space<vmem>>, vector<8x512xf32>
    tpu.vector_store %arg6[%c0_6, %c0_7], %7 {strides = array<i32>} : memref<8x512xf32, #tpu.memory_space<vmem>>, vector<8x512xf32>,
    %c5_i32 = arith.constant 5 : i32
    %9 = arith.cmpi eq, %arg1, %c5_i32 : i32
    %10 = arith.extui %9 : i1 to i32
    %c0_i32_8 = arith.constant 0 : i32
    %11 = arith.cmpi ne, %10, %c0_i32_8 : i32
    scf.if %11 {
      %c0_9 = arith.constant 0 : index
      %c0_10 = arith.constant 0 : index
      %12 = vector.load %arg6[%c0_9, %c0_10] : memref<8x512xf32, #tpu.memory_space<vmem>>, vector<8x512xf32>
      %c0_11 = arith.constant 0 : index
      %c0_12 = arith.constant 0 : index
      %13 = vector.load %arg4[%c0_11, %c0_12] : memref<1x512xf32, #tpu.memory_space<vmem>>, vector<1x512xf32>
      %14 = vector.broadcast %13 : vector<1x512xf32> to vector<8x512xf32>
      %15 = arith.addf %12, %14 : vector<8x512xf32>
      %cst_13 = arith.constant 0.000000e+00 : f32
      %16 = vector.broadcast %cst_13 : f32 to vector<8x512xf32>
      %17 = arith.maximumf %15, %16 : vector<8x512xf32>
      %c0_14 = arith.constant 0 : index
      %c0_15 = arith.constant 0 : index
      %18 = vector.load %arg5[%c0_14, %c0_15] : memref<8x512xf32, #tpu.memory_space<vmem>>, vector<8x512xf32>
      tpu.vector_store %arg5[%c0_14, %c0_15], %17 {strides = array<i32>} : memref<8x512xf32, #tpu.memory_space<vmem>>, vector<8x512xf32>,
    } else {
    }
    return
  }
  func.func @transform_0(%arg0: i32, %arg1: i32) -> (i32, i32) {
    %c0_i32 = arith.constant 0 : i32
    return %arg0, %arg1 : i32, i32
  }
  func.func @transform_1(%arg0: i32, %arg1: i32) -> (i32, i32) {
    %c0_i32 = arith.constant 0 : i32
    %c0_i32_0 = arith.constant 0 : i32
    return %arg1, %c0_i32 : i32, i32
  }
  func.func @transform_2(%arg0: i32, %arg1: i32) -> (i32, i32) {
    %c0_i32 = arith.constant 0 : i32
    %c0_i32_0 = arith.constant 0 : i32
    %c0_i32_1 = arith.constant 0 : i32
    return %c0_i32, %c0_i32_0 : i32, i32
  }
  func.func @transform_3(%arg0: i32, %arg1: i32) -> (i32, i32) {
    %c0_i32 = arith.constant 0 : i32
    %c0_i32_0 = arith.constant 0 : i32
    return %arg0, %c0_i32 : i32, i32
  }
}

module attributes {stable_mosaic.version = 11 : i64} {
  func.func @_gemm_kernel(%arg0: i32, %arg1: i32, %arg2: memref<8x512xbf16, #tpu.memory_space<vmem>>, %arg3: memref<512x512xbf16, #tpu.memory_space<vmem>>, %arg4: memref<1x512xf32, #tpu.memory_space<vmem>>, %arg5: memref<8x512xf32, #tpu.memory_space<vmem>>, %arg6: memref<8x512xf32, #tpu.memory_space<vmem>>) attributes {dimension_semantics = [#tpu.dimension_semantics<parallel>, #tpu.dimension_semantics<arbitrary>], iteration_bounds = array<i64: 1, 9>, scalar_prefetch = 0 : i64, scratch_operands = 1 : i64, tpu.core_type = #tpu.core_type<tc>, window_params = [{transform_indices = @transform_0, window_bounds = array<i64: 8, 512>}, {transform_indices = @transform_1, window_bounds = array<i64: 512, 512>}, {pipeline_mode = #tpu.pipeline_mode<synchronous>, transform_indices = @transform_2, window_bounds = array<i64: 1, 512>}, {transform_indices = @transform_3, window_bounds = array<i64: 8, 512>}]} {
    %c0_i32 = arith.constant 0 : i32
    %0 = arith.cmpi eq, %arg1, %c0_i32 : i32
    %1 = arith.extui %0 : i1 to i32
    %c0_i32_0 = arith.constant 0 : i32
    %2 = arith.cmpi ne, %1, %c0_i32_0 : i32
    scf.if %2 {
      %cst_9 = arith.constant 0.000000e+00 : f32
      %12 = vector.broadcast %cst_9 : f32 to vector<8x512xf32>
      %c0_10 = arith.constant 0 : index
      %c0_11 = arith.constant 0 : index
      %13 = vector.load %arg6[%c0_10, %c0_11] : memref<8x512xf32, #tpu.memory_space<vmem>>, vector<8x512xf32>
      tpu.vector_store %arg6[%c0_10, %c0_11], %12 {strides = array<i32>} : memref<8x512xf32, #tpu.memory_space<vmem>>, vector<8x512xf32>,
    } else {
    }
    %c0 = arith.constant 0 : index
    %c0_1 = arith.constant 0 : index
    %3 = vector.load %arg6[%c0, %c0_1] : memref<8x512xf32, #tpu.memory_space<vmem>>, vector<8x512xf32>
    %c0_2 = arith.constant 0 : index
    %c0_3 = arith.constant 0 : index
    %4 = vector.load %arg2[%c0_2, %c0_3] : memref<8x512xbf16, #tpu.memory_space<vmem>>, vector<8x512xbf16>
    %c0_4 = arith.constant 0 : index
    %c0_5 = arith.constant 0 : index
    %5 = vector.load %arg3[%c0_4, %c0_5] : memref<512x512xbf16, #tpu.memory_space<vmem>>, vector<512x512xbf16>
    %cst = arith.constant dense<0.000000e+00> : vector<8x512xf32>
    %6 = tpu.matmul %4, %5, %cst {dimension_numbers = #tpu.dot_dimension_numbers<[1], [0], [0], [1], [0, 0, 1, 1], [], []>} : vector<8x512xbf16>, vector<512x512xbf16>, vector<8x512xf32> -> vector<8x512xf32>
    %7 = arith.addf %3, %6 : vector<8x512xf32>
    %c0_6 = arith.constant 0 : index
    %c0_7 = arith.constant 0 : index
    %8 = vector.load %arg6[%c0_6, %c0_7] : memref<8x512xf32, #tpu.memory_space<vmem>>, vector<8x512xf32>
    tpu.vector_store %arg6[%c0_6, %c0_7], %7 {strides = array<i32>} : memref<8x512xf32, #tpu.memory_space<vmem>>, vector<8x512xf32>,
    %c8_i32 = arith.constant 8 : i32
    %9 = arith.cmpi eq, %arg1, %c8_i32 : i32
    %10 = arith.extui %9 : i1 to i32
    %c0_i32_8 = arith.constant 0 : i32
    %11 = arith.cmpi ne, %10, %c0_i32_8 : i32
    scf.if %11 {
      %c0_9 = arith.constant 0 : index
      %c0_10 = arith.constant 0 : index
      %12 = vector.load %arg6[%c0_9, %c0_10] : memref<8x512xf32, #tpu.memory_space<vmem>>, vector<8x512xf32>
      %c0_11 = arith.constant 0 : index
      %c0_12 = arith.constant 0 : index
      %13 = vector.load %arg4[%c0_11, %c0_12] : memref<1x512xf32, #tpu.memory_space<vmem>>, vector<1x512xf32>
      %14 = vector.broadcast %13 : vector<1x512xf32> to vector<8x512xf32>
      %15 = arith.addf %12, %14 : vector<8x512xf32>
      %cst_13 = arith.constant 0.000000e+00 : f32
      %16 = vector.broadcast %cst_13 : f32 to vector<8x512xf32>
      %17 = arith.maximumf %15, %16 : vector<8x512xf32>
      %c0_14 = arith.constant 0 : index
      %c0_15 = arith.constant 0 : index
      %18 = vector.load %arg5[%c0_14, %c0_15] : memref<8x512xf32, #tpu.memory_space<vmem>>, vector<8x512xf32>
      tpu.vector_store %arg5[%c0_14, %c0_15], %17 {strides = array<i32>} : memref<8x512xf32, #tpu.memory_space<vmem>>, vector<8x512xf32>,
    } else {
    }
    return
  }
  func.func @transform_0(%arg0: i32, %arg1: i32) -> (i32, i32) {
    %c0_i32 = arith.constant 0 : i32
    return %arg0, %arg1 : i32, i32
  }
  func.func @transform_1(%arg0: i32, %arg1: i32) -> (i32, i32) {
    %c0_i32 = arith.constant 0 : i32
    %c0_i32_0 = arith.constant 0 : i32
    return %arg1, %c0_i32 : i32, i32
  }
  func.func @transform_2(%arg0: i32, %arg1: i32) -> (i32, i32) {
    %c0_i32 = arith.constant 0 : i32
    %c0_i32_0 = arith.constant 0 : i32
    %c0_i32_1 = arith.constant 0 : i32
    return %c0_i32, %c0_i32_0 : i32, i32
  }
  func.func @transform_3(%arg0: i32, %arg1: i32) -> (i32, i32) {
    %c0_i32 = arith.constant 0 : i32
    %c0_i32_0 = arith.constant 0 : i32
    return %arg0, %c0_i32 : i32, i32
  }
}

module attributes {stable_mosaic.version = 11 : i64} {
  func.func @_gemm_kernel(%arg0: i32, %arg1: i32, %arg2: memref<8x512xbf16, #tpu.memory_space<vmem>>, %arg3: memref<512x512xbf16, #tpu.memory_space<vmem>>, %arg4: memref<1x512xf32, #tpu.memory_space<vmem>>, %arg5: memref<8x256xbf16, #tpu.memory_space<vmem>>, %arg6: memref<256x512xbf16, #tpu.memory_space<vmem>>, %arg7: memref<8x512xf32, #tpu.memory_space<vmem>>, %arg8: memref<8x512xf32, #tpu.memory_space<vmem>>) attributes {dimension_semantics = [#tpu.dimension_semantics<parallel>, #tpu.dimension_semantics<arbitrary>], iteration_bounds = array<i64: 1, 9>, scalar_prefetch = 0 : i64, scratch_operands = 1 : i64, tpu.core_type = #tpu.core_type<tc>, window_params = [{transform_indices = @transform_0, window_bounds = array<i64: 8, 512>}, {transform_indices = @transform_1, window_bounds = array<i64: 512, 512>}, {pipeline_mode = #tpu.pipeline_mode<synchronous>, transform_indices = @transform_2, window_bounds = array<i64: 1, 512>}, {transform_indices = @transform_3, window_bounds = array<i64: 8, 256>}, {pipeline_mode = #tpu.pipeline_mode<synchronous>, transform_indices = @transform_4, window_bounds = array<i64: 256, 512>}, {transform_indices = @transform_5, window_bounds = array<i64: 8, 512>}]} {
    %c0_i32 = arith.constant 0 : i32
    %0 = arith.cmpi eq, %arg1, %c0_i32 : i32
    %1 = arith.extui %0 : i1 to i32
    %c0_i32_0 = arith.constant 0 : i32
    %2 = arith.cmpi ne, %1, %c0_i32_0 : i32
    scf.if %2 {
      %cst_9 = arith.constant 0.000000e+00 : f32
      %12 = vector.broadcast %cst_9 : f32 to vector<8x512xf32>
      %c0_10 = arith.constant 0 : index
      %c0_11 = arith.constant 0 : index
      %13 = vector.load %arg8[%c0_10, %c0_11] : memref<8x512xf32, #tpu.memory_space<vmem>>, vector<8x512xf32>
      tpu.vector_store %arg8[%c0_10, %c0_11], %12 {strides = array<i32>} : memref<8x512xf32, #tpu.memory_space<vmem>>, vector<8x512xf32>,
    } else {
    }
    %c0 = arith.constant 0 : index
    %c0_1 = arith.constant 0 : index
    %3 = vector.load %arg8[%c0, %c0_1] : memref<8x512xf32, #tpu.memory_space<vmem>>, vector<8x512xf32>
    %c0_2 = arith.constant 0 : index
    %c0_3 = arith.constant 0 : index
    %4 = vector.load %arg2[%c0_2, %c0_3] : memref<8x512xbf16, #tpu.memory_space<vmem>>, vector<8x512xbf16>
    %c0_4 = arith.constant 0 : index
    %c0_5 = arith.constant 0 : index
    %5 = vector.load %arg3[%c0_4, %c0_5] : memref<512x512xbf16, #tpu.memory_space<vmem>>, vector<512x512xbf16>
    %cst = arith.constant dense<0.000000e+00> : vector<8x512xf32>
    %6 = tpu.matmul %4, %5, %cst {dimension_numbers = #tpu.dot_dimension_numbers<[1], [0], [0], [1], [0, 0, 1, 1], [], []>} : vector<8x512xbf16>, vector<512x512xbf16>, vector<8x512xf32> -> vector<8x512xf32>
    %7 = arith.addf %3, %6 : vector<8x512xf32>
    %c0_6 = arith.constant 0 : index
    %c0_7 = arith.constant 0 : index
    %8 = vector.load %arg8[%c0_6, %c0_7] : memref<8x512xf32, #tpu.memory_space<vmem>>, vector<8x512xf32>
    tpu.vector_store %arg8[%c0_6, %c0_7], %7 {strides = array<i32>} : memref<8x512xf32, #tpu.memory_space<vmem>>, vector<8x512xf32>,
    %c8_i32 = arith.constant 8 : i32
    %9 = arith.cmpi eq, %arg1, %c8_i32 : i32
    %10 = arith.extui %9 : i1 to i32
    %c0_i32_8 = arith.constant 0 : i32
    %11 = arith.cmpi ne, %10, %c0_i32_8 : i32
    scf.if %11 {
      %c0_9 = arith.constant 0 : index
      %c0_10 = arith.constant 0 : index
      %12 = vector.load %arg8[%c0_9, %c0_10] : memref<8x512xf32, #tpu.memory_space<vmem>>, vector<8x512xf32>
      %c0_11 = arith.constant 0 : index
      %c0_12 = arith.constant 0 : index
      %13 = vector.load %arg4[%c0_11, %c0_12] : memref<1x512xf32, #tpu.memory_space<vmem>>, vector<1x512xf32>
      %14 = vector.broadcast %13 : vector<1x512xf32> to vector<8x512xf32>
      %15 = arith.addf %12, %14 : vector<8x512xf32>
      %c0_13 = arith.constant 0 : index
      %c0_14 = arith.constant 0 : index
      %16 = vector.load %arg5[%c0_13, %c0_14] : memref<8x256xbf16, #tpu.memory_space<vmem>>, vector<8x256xbf16>
      %c0_15 = arith.constant 0 : index
      %c0_16 = arith.constant 0 : index
      %17 = vector.load %arg6[%c0_15, %c0_16] : memref<256x512xbf16, #tpu.memory_space<vmem>>, vector<256x512xbf16>
      %cst_17 = arith.constant dense<0.000000e+00> : vector<8x512xf32>
      %18 = tpu.matmul %16, %17, %cst_17 {dimension_numbers = #tpu.dot_dimension_numbers<[1], [0], [0], [1], [0, 0, 1, 1], [], []>} : vector<8x256xbf16>, vector<256x512xbf16>, vector<8x512xf32> -> vector<8x512xf32>
      %19 = arith.addf %15, %18 : vector<8x512xf32>
      %cst_18 = arith.constant 0.000000e+00 : f32
      %20 = vector.broadcast %cst_18 : f32 to vector<8x512xf32>
      %21 = arith.maximumf %19, %20 : vector<8x512xf32>
      %c0_19 = arith.constant 0 : index
      %c0_20 = arith.constant 0 : index
      %22 = vector.load %arg7[%c0_19, %c0_20] : memref<8x512xf32, #tpu.memory_space<vmem>>, vector<8x512xf32>
      tpu.vector_store %arg7[%c0_19, %c0_20], %21 {strides = array<i32>} : memref<8x512xf32, #tpu.memory_space<vmem>>, vector<8x512xf32>,
    } else {
    }
    return
  }
  func.func @transform_0(%arg0: i32, %arg1: i32) -> (i32, i32) {
    %c0_i32 = arith.constant 0 : i32
    return %arg0, %arg1 : i32, i32
  }
  func.func @transform_1(%arg0: i32, %arg1: i32) -> (i32, i32) {
    %c0_i32 = arith.constant 0 : i32
    %c0_i32_0 = arith.constant 0 : i32
    return %arg1, %c0_i32 : i32, i32
  }
  func.func @transform_2(%arg0: i32, %arg1: i32) -> (i32, i32) {
    %c0_i32 = arith.constant 0 : i32
    %c0_i32_0 = arith.constant 0 : i32
    %c0_i32_1 = arith.constant 0 : i32
    return %c0_i32, %c0_i32_0 : i32, i32
  }
  func.func @transform_3(%arg0: i32, %arg1: i32) -> (i32, i32) {
    %c0_i32 = arith.constant 0 : i32
    %c0_i32_0 = arith.constant 0 : i32
    return %arg0, %c0_i32 : i32, i32
  }
  func.func @transform_4(%arg0: i32, %arg1: i32) -> (i32, i32) {
    %c0_i32 = arith.constant 0 : i32
    %c0_i32_0 = arith.constant 0 : i32
    %c0_i32_1 = arith.constant 0 : i32
    return %c0_i32, %c0_i32_0 : i32, i32
  }
  func.func @transform_5(%arg0: i32, %arg1: i32) -> (i32, i32) {
    %c0_i32 = arith.constant 0 : i32
    %c0_i32_0 = arith.constant 0 : i32
    return %arg0, %c0_i32 : i32, i32
  }
}

module attributes {stable_mosaic.version = 11 : i64} {
  func.func @_gemm_kernel(%arg0: i32, %arg1: i32, %arg2: memref<8x512xbf16, #tpu.memory_space<vmem>>, %arg3: memref<512x512xbf16, #tpu.memory_space<vmem>>, %arg4: memref<1x512xf32, #tpu.memory_space<vmem>>, %arg5: memref<8x512xf32, #tpu.memory_space<vmem>>, %arg6: memref<8x512xf32, #tpu.memory_space<vmem>>, %arg7: memref<8x512xf32, #tpu.memory_space<vmem>>) attributes {dimension_semantics = [#tpu.dimension_semantics<parallel>, #tpu.dimension_semantics<arbitrary>], iteration_bounds = array<i64: 1, 9>, scalar_prefetch = 0 : i64, scratch_operands = 1 : i64, tpu.core_type = #tpu.core_type<tc>, window_params = [{transform_indices = @transform_0, window_bounds = array<i64: 8, 512>}, {transform_indices = @transform_1, window_bounds = array<i64: 512, 512>}, {pipeline_mode = #tpu.pipeline_mode<synchronous>, transform_indices = @transform_2, window_bounds = array<i64: 1, 512>}, {transform_indices = @transform_3, window_bounds = array<i64: 8, 512>}, {transform_indices = @transform_4, window_bounds = array<i64: 8, 512>}]} {
    %c0_i32 = arith.constant 0 : i32
    %0 = arith.cmpi eq, %arg1, %c0_i32 : i32
    %1 = arith.extui %0 : i1 to i32
    %c0_i32_0 = arith.constant 0 : i32
    %2 = arith.cmpi ne, %1, %c0_i32_0 : i32
    scf.if %2 {
      %cst_9 = arith.constant 0.000000e+00 : f32
      %12 = vector.broadcast %cst_9 : f32 to vector<8x512xf32>
      %c0_10 = arith.constant 0 : index
      %c0_11 = arith.constant 0 : index
      %13 = vector.load %arg7[%c0_10, %c0_11] : memref<8x512xf32, #tpu.memory_space<vmem>>, vector<8x512xf32>
      tpu.vector_store %arg7[%c0_10, %c0_11], %12 {strides = array<i32>} : memref<8x512xf32, #tpu.memory_space<vmem>>, vector<8x512xf32>,
    } else {
    }
    %c0 = arith.constant 0 : index
    %c0_1 = arith.constant 0 : index
    %3 = vector.load %arg7[%c0, %c0_1] : memref<8x512xf32, #tpu.memory_space<vmem>>, vector<8x512xf32>
    %c0_2 = arith.constant 0 : index
    %c0_3 = arith.constant 0 : index
    %4 = vector.load %arg2[%c0_2, %c0_3] : memref<8x512xbf16, #tpu.memory_space<vmem>>, vector<8x512xbf16>
    %c0_4 = arith.constant 0 : index
    %c0_5 = arith.constant 0 : index
    %5 = vector.load %arg3[%c0_4, %c0_5] : memref<512x512xbf16, #tpu.memory_space<vmem>>, vector<512x512xbf16>
    %cst = arith.constant dense<0.000000e+00> : vector<8x512xf32>
    %6 = tpu.matmul %4, %5, %cst {dimension_numbers = #tpu.dot_dimension_numbers<[1], [0], [0], [1], [0, 0, 1, 1], [], []>} : vector<8x512xbf16>, vector<512x512xbf16>, vector<8x512xf32> -> vector<8x512xf32>
    %7 = arith.addf %3, %6 : vector<8x512xf32>
    %c0_6 = arith.constant 0 : index
    %c0_7 = arith.constant 0 : index
    %8 = vector.load %arg7[%c0_6, %c0_7] : memref<8x512xf32, #tpu.memory_space<vmem>>, vector<8x512xf32>
    tpu.vector_store %arg7[%c0_6, %c0_7], %7 {strides = array<i32>} : memref<8x512xf32, #tpu.memory_space<vmem>>, vector<8x512xf32>,
    %c8_i32 = arith.constant 8 : i32
    %9 = arith.cmpi eq, %arg1, %c8_i32 : i32
    %10 = arith.extui %9 : i1 to i32
    %c0_i32_8 = arith.constant 0 : i32
    %11 = arith.cmpi ne, %10, %c0_i32_8 : i32
    scf.if %11 {
      %c0_9 = arith.constant 0 : index
      %c0_10 = arith.constant 0 : index
      %12 = vector.load %arg7[%c0_9, %c0_10] : memref<8x512xf32, #tpu.memory_space<vmem>>, vector<8x512xf32>
      %c0_11 = arith.constant 0 : index
      %c0_12 = arith.constant 0 : index
      %13 = vector.load %arg4[%c0_11, %c0_12] : memref<1x512xf32, #tpu.memory_space<vmem>>, vector<1x512xf32>
      %14 = vector.broadcast %13 : vector<1x512xf32> to vector<8x512xf32>
      %15 = arith.addf %12, %14 : vector<8x512xf32>
      %c0_13 = arith.constant 0 : index
      %c0_14 = arith.constant 0 : index
      %16 = vector.load %arg5[%c0_13, %c0_14] : memref<8x512xf32, #tpu.memory_space<vmem>>, vector<8x512xf32>
      %17 = arith.addf %15, %16 : vector<8x512xf32>
      %cst_15 = arith.constant 0.000000e+00 : f32
      %18 = vector.broadcast %cst_15 : f32 to vector<8x512xf32>
      %19 = arith.maximumf %17, %18 : vector<8x512xf32>
      %c0_16 = arith.constant 0 : index
      %c0_17 = arith.constant 0 : index
      %20 = vector.load %arg6[%c0_16, %c0_17] : memref<8x512xf32, #tpu.memory_space<vmem>>, vector<8x512xf32>
      tpu.vector_store %arg6[%c0_16, %c0_17], %19 {strides = array<i32>} : memref<8x512xf32, #tpu.memory_space<vmem>>, vector<8x512xf32>,
    } else {
    }
    return
  }
  func.func @transform_0(%arg0: i32, %arg1: i32) -> (i32, i32) {
    %c0_i32 = arith.constant 0 : i32
    return %arg0, %arg1 : i32, i32
  }
  func.func @transform_1(%arg0: i32, %arg1: i32) -> (i32, i32) {
    %c0_i32 = arith.constant 0 : i32
    %c0_i32_0 = arith.constant 0 : i32
    return %arg1, %c0_i32 : i32, i32
  }
  func.func @transform_2(%arg0: i32, %arg1: i32) -> (i32, i32) {
    %c0_i32 = arith.constant 0 : i32
    %c0_i32_0 = arith.constant 0 : i32
    %c0_i32_1 = arith.constant 0 : i32
    return %c0_i32, %c0_i32_0 : i32, i32
  }
  func.func @transform_3(%arg0: i32, %arg1: i32) -> (i32, i32) {
    %c0_i32 = arith.constant 0 : i32
    %c0_i32_0 = arith.constant 0 : i32
    return %arg0, %c0_i32 : i32, i32
  }
  func.func @transform_4(%arg0: i32, %arg1: i32) -> (i32, i32) {
    %c0_i32 = arith.constant 0 : i32
    %c0_i32_0 = arith.constant 0 : i32
    return %arg0, %c0_i32 : i32, i32
  }
}

module attributes {stable_mosaic.version = 11 : i64} {
  func.func @_global_maxpool_kernel(%arg0: memref<2x1x512xf32, #tpu.memory_space<vmem>>, %arg1: memref<2x512xf32, #tpu.memory_space<vmem>>) attributes {dimension_semantics = [], scalar_prefetch = 0 : i64, scratch_operands = 0 : i64, tpu.core_type = #tpu.core_type<tc>} {
    %c0 = arith.constant 0 : index
    %c0_0 = arith.constant 0 : index
    %c0_1 = arith.constant 0 : index
    %0 = vector.load %arg0[%c0, %c0_0, %c0_1] : memref<2x1x512xf32, #tpu.memory_space<vmem>>, vector<2x1x512xf32>
    %cst = arith.constant dense<0xFF800000> : vector<2x512xf32>
    %1 = vector.multi_reduction <maximumf>, %0, %cst [1] : vector<2x1x512xf32> to vector<2x512xf32>
    %c0_2 = arith.constant 0 : index
    %c0_3 = arith.constant 0 : index
    %2 = vector.load %arg1[%c0_2, %c0_3] : memref<2x512xf32, #tpu.memory_space<vmem>>, vector<2x512xf32>
    tpu.vector_store %arg1[%c0_2, %c0_3], %1 {strides = array<i32>} : memref<2x512xf32, #tpu.memory_space<vmem>>, vector<2x512xf32>,
    return
  }
}

module attributes {stable_mosaic.version = 11 : i64} {
  func.func @_gemm_kernel(%arg0: i32, %arg1: i32, %arg2: memref<8x512xbf16, #tpu.memory_space<vmem>>, %arg3: memref<512x512xbf16, #tpu.memory_space<vmem>>, %arg4: memref<1x512xf32, #tpu.memory_space<vmem>>, %arg5: memref<8x512xf32, #tpu.memory_space<vmem>>, %arg6: memref<8x512xf32, #tpu.memory_space<vmem>>) attributes {dimension_semantics = [#tpu.dimension_semantics<parallel>, #tpu.dimension_semantics<arbitrary>], iteration_bounds = array<i64: 1, 1>, scalar_prefetch = 0 : i64, scratch_operands = 1 : i64, tpu.core_type = #tpu.core_type<tc>, window_params = [{transform_indices = @transform_0, window_bounds = array<i64: 8, 512>}, {transform_indices = @transform_1, window_bounds = array<i64: 512, 512>}, {pipeline_mode = #tpu.pipeline_mode<synchronous>, transform_indices = @transform_2, window_bounds = array<i64: 1, 512>}, {transform_indices = @transform_3, window_bounds = array<i64: 8, 512>}]} {
    %c0_i32 = arith.constant 0 : i32
    %0 = arith.cmpi eq, %arg1, %c0_i32 : i32
    %1 = arith.extui %0 : i1 to i32
    %c0_i32_0 = arith.constant 0 : i32
    %2 = arith.cmpi ne, %1, %c0_i32_0 : i32
    scf.if %2 {
      %cst_10 = arith.constant 0.000000e+00 : f32
      %12 = vector.broadcast %cst_10 : f32 to vector<8x512xf32>
      %c0_11 = arith.constant 0 : index
      %c0_12 = arith.constant 0 : index
      %13 = vector.load %arg6[%c0_11, %c0_12] : memref<8x512xf32, #tpu.memory_space<vmem>>, vector<8x512xf32>
      tpu.vector_store %arg6[%c0_11, %c0_12], %12 {strides = array<i32>} : memref<8x512xf32, #tpu.memory_space<vmem>>, vector<8x512xf32>,
    } else {
    }
    %c0 = arith.constant 0 : index
    %c0_1 = arith.constant 0 : index
    %3 = vector.load %arg6[%c0, %c0_1] : memref<8x512xf32, #tpu.memory_space<vmem>>, vector<8x512xf32>
    %c0_2 = arith.constant 0 : index
    %c0_3 = arith.constant 0 : index
    %4 = vector.load %arg2[%c0_2, %c0_3] : memref<8x512xbf16, #tpu.memory_space<vmem>>, vector<8x512xbf16>
    %c0_4 = arith.constant 0 : index
    %c0_5 = arith.constant 0 : index
    %5 = vector.load %arg3[%c0_4, %c0_5] : memref<512x512xbf16, #tpu.memory_space<vmem>>, vector<512x512xbf16>
    %cst = arith.constant dense<0.000000e+00> : vector<8x512xf32>
    %6 = tpu.matmul %4, %5, %cst {dimension_numbers = #tpu.dot_dimension_numbers<[1], [0], [0], [1], [0, 0, 1, 1], [], []>} : vector<8x512xbf16>, vector<512x512xbf16>, vector<8x512xf32> -> vector<8x512xf32>
    %7 = arith.addf %3, %6 : vector<8x512xf32>
    %c0_6 = arith.constant 0 : index
    %c0_7 = arith.constant 0 : index
    %8 = vector.load %arg6[%c0_6, %c0_7] : memref<8x512xf32, #tpu.memory_space<vmem>>, vector<8x512xf32>
    tpu.vector_store %arg6[%c0_6, %c0_7], %7 {strides = array<i32>} : memref<8x512xf32, #tpu.memory_space<vmem>>, vector<8x512xf32>,
    %c0_i32_8 = arith.constant 0 : i32
    %9 = arith.cmpi eq, %arg1, %c0_i32_8 : i32
    %10 = arith.extui %9 : i1 to i32
    %c0_i32_9 = arith.constant 0 : i32
    %11 = arith.cmpi ne, %10, %c0_i32_9 : i32
    scf.if %11 {
      %c0_10 = arith.constant 0 : index
      %c0_11 = arith.constant 0 : index
      %12 = vector.load %arg6[%c0_10, %c0_11] : memref<8x512xf32, #tpu.memory_space<vmem>>, vector<8x512xf32>
      %c0_12 = arith.constant 0 : index
      %c0_13 = arith.constant 0 : index
      %13 = vector.load %arg4[%c0_12, %c0_13] : memref<1x512xf32, #tpu.memory_space<vmem>>, vector<1x512xf32>
      %14 = vector.broadcast %13 : vector<1x512xf32> to vector<8x512xf32>
      %15 = arith.addf %12, %14 : vector<8x512xf32>
      %cst_14 = arith.constant 0.000000e+00 : f32
      %16 = vector.broadcast %cst_14 : f32 to vector<8x512xf32>
      %17 = arith.maximumf %15, %16 : vector<8x512xf32>
      %c0_15 = arith.constant 0 : index
      %c0_16 = arith.constant 0 : index
      %18 = vector.load %arg5[%c0_15, %c0_16] : memref<8x512xf32, #tpu.memory_space<vmem>>, vector<8x512xf32>
      tpu.vector_store %arg5[%c0_15, %c0_16], %17 {strides = array<i32>} : memref<8x512xf32, #tpu.memory_space<vmem>>, vector<8x512xf32>,
    } else {
    }
    return
  }
  func.func @transform_0(%arg0: i32, %arg1: i32) -> (i32, i32) {
    %c0_i32 = arith.constant 0 : i32
    return %arg0, %arg1 : i32, i32
  }
  func.func @transform_1(%arg0: i32, %arg1: i32) -> (i32, i32) {
    %c0_i32 = arith.constant 0 : i32
    %c0_i32_0 = arith.constant 0 : i32
    return %arg1, %c0_i32 : i32, i32
  }
  func.func @transform_2(%arg0: i32, %arg1: i32) -> (i32, i32) {
    %c0_i32 = arith.constant 0 : i32
    %c0_i32_0 = arith.constant 0 : i32
    %c0_i32_1 = arith.constant 0 : i32
    return %c0_i32, %c0_i32_0 : i32, i32
  }
  func.func @transform_3(%arg0: i32, %arg1: i32) -> (i32, i32) {
    %c0_i32 = arith.constant 0 : i32
    %c0_i32_0 = arith.constant 0 : i32
    return %arg0, %c0_i32 : i32, i32
  }
}

module attributes {stable_mosaic.version = 11 : i64} {
  func.func @_gemm_kernel(%arg0: i32, %arg1: i32, %arg2: memref<8x512xbf16, #tpu.memory_space<vmem>>, %arg3: memref<512x264xbf16, #tpu.memory_space<vmem>>, %arg4: memref<1x264xf32, #tpu.memory_space<vmem>>, %arg5: memref<8x264xf32, #tpu.memory_space<vmem>>, %arg6: memref<8x264xf32, #tpu.memory_space<vmem>>) attributes {dimension_semantics = [#tpu.dimension_semantics<parallel>, #tpu.dimension_semantics<arbitrary>], iteration_bounds = array<i64: 1, 1>, scalar_prefetch = 0 : i64, scratch_operands = 1 : i64, tpu.core_type = #tpu.core_type<tc>, window_params = [{transform_indices = @transform_0, window_bounds = array<i64: 8, 512>}, {transform_indices = @transform_1, window_bounds = array<i64: 512, 264>}, {pipeline_mode = #tpu.pipeline_mode<synchronous>, transform_indices = @transform_2, window_bounds = array<i64: 1, 264>}, {transform_indices = @transform_3, window_bounds = array<i64: 8, 264>}]} {
    %c0_i32 = arith.constant 0 : i32
    %0 = arith.cmpi eq, %arg1, %c0_i32 : i32
    %1 = arith.extui %0 : i1 to i32
    %c0_i32_0 = arith.constant 0 : i32
    %2 = arith.cmpi ne, %1, %c0_i32_0 : i32
    scf.if %2 {
      %cst_10 = arith.constant 0.000000e+00 : f32
      %12 = vector.broadcast %cst_10 : f32 to vector<8x264xf32>
      %c0_11 = arith.constant 0 : index
      %c0_12 = arith.constant 0 : index
      %13 = vector.load %arg6[%c0_11, %c0_12] : memref<8x264xf32, #tpu.memory_space<vmem>>, vector<8x264xf32>
      tpu.vector_store %arg6[%c0_11, %c0_12], %12 {strides = array<i32>} : memref<8x264xf32, #tpu.memory_space<vmem>>, vector<8x264xf32>,
    } else {
    }
    %c0 = arith.constant 0 : index
    %c0_1 = arith.constant 0 : index
    %3 = vector.load %arg6[%c0, %c0_1] : memref<8x264xf32, #tpu.memory_space<vmem>>, vector<8x264xf32>
    %c0_2 = arith.constant 0 : index
    %c0_3 = arith.constant 0 : index
    %4 = vector.load %arg2[%c0_2, %c0_3] : memref<8x512xbf16, #tpu.memory_space<vmem>>, vector<8x512xbf16>
    %c0_4 = arith.constant 0 : index
    %c0_5 = arith.constant 0 : index
    %5 = vector.load %arg3[%c0_4, %c0_5] : memref<512x264xbf16, #tpu.memory_space<vmem>>, vector<512x264xbf16>
    %cst = arith.constant dense<0.000000e+00> : vector<8x264xf32>
    %6 = tpu.matmul %4, %5, %cst {dimension_numbers = #tpu.dot_dimension_numbers<[1], [0], [0], [1], [0, 0, 1, 1], [], []>} : vector<8x512xbf16>, vector<512x264xbf16>, vector<8x264xf32> -> vector<8x264xf32>
    %7 = arith.addf %3, %6 : vector<8x264xf32>
    %c0_6 = arith.constant 0 : index
    %c0_7 = arith.constant 0 : index
    %8 = vector.load %arg6[%c0_6, %c0_7] : memref<8x264xf32, #tpu.memory_space<vmem>>, vector<8x264xf32>
    tpu.vector_store %arg6[%c0_6, %c0_7], %7 {strides = array<i32>} : memref<8x264xf32, #tpu.memory_space<vmem>>, vector<8x264xf32>,
    %c0_i32_8 = arith.constant 0 : i32
    %9 = arith.cmpi eq, %arg1, %c0_i32_8 : i32
    %10 = arith.extui %9 : i1 to i32
    %c0_i32_9 = arith.constant 0 : i32
    %11 = arith.cmpi ne, %10, %c0_i32_9 : i32
    scf.if %11 {
      %c0_10 = arith.constant 0 : index
      %c0_11 = arith.constant 0 : index
      %12 = vector.load %arg6[%c0_10, %c0_11] : memref<8x264xf32, #tpu.memory_space<vmem>>, vector<8x264xf32>
      %c0_12 = arith.constant 0 : index
      %c0_13 = arith.constant 0 : index
      %13 = vector.load %arg4[%c0_12, %c0_13] : memref<1x264xf32, #tpu.memory_space<vmem>>, vector<1x264xf32>
      %14 = vector.broadcast %13 : vector<1x264xf32> to vector<8x264xf32>
      %15 = arith.addf %12, %14 : vector<8x264xf32>
      %c0_14 = arith.constant 0 : index
      %c0_15 = arith.constant 0 : index
      %16 = vector.load %arg5[%c0_14, %c0_15] : memref<8x264xf32, #tpu.memory_space<vmem>>, vector<8x264xf32>
      tpu.vector_store %arg5[%c0_14, %c0_15], %15 {strides = array<i32>} : memref<8x264xf32, #tpu.memory_space<vmem>>, vector<8x264xf32>,
    } else {
    }
    return
  }
  func.func @transform_0(%arg0: i32, %arg1: i32) -> (i32, i32) {
    %c0_i32 = arith.constant 0 : i32
    return %arg0, %arg1 : i32, i32
  }
  func.func @transform_1(%arg0: i32, %arg1: i32) -> (i32, i32) {
    %c0_i32 = arith.constant 0 : i32
    %c0_i32_0 = arith.constant 0 : i32
    return %arg1, %c0_i32 : i32, i32
  }
  func.func @transform_2(%arg0: i32, %arg1: i32) -> (i32, i32) {
    %c0_i32 = arith.constant 0 : i32
    %c0_i32_0 = arith.constant 0 : i32
    %c0_i32_1 = arith.constant 0 : i32
    return %c0_i32, %c0_i32_0 : i32, i32
  }
  func.func @transform_3(%arg0: i32, %arg1: i32) -> (i32, i32) {
    %c0_i32 = arith.constant 0 : i32
    %c0_i32_0 = arith.constant 0 : i32
    return %arg0, %c0_i32 : i32, i32
  }
}

</mosaic_0001>

<bundles_post_ra>
// kernel: _forward.39
= control target key start
LH: loop header
LB: loop body
LE: loop exit
PB: predicated region body
PF: predicated region fallthrough
CT: control target
= control target key end

     0   :  { %v24_v0 = vlaneseq  ;;  %v524_v4 = vmov 1983009808   ;;  %vm146_vm0 = vcmask 1041408   ;;  %s848_s0 = inlined_call_operand.vmem [shape: f32[2,3072], index: 0, kind: input, shape index: {}]   ;;  %s849_s1 = inlined_call_operand.vmem [shape: f32[2,3072], index: 1, kind: output, shape index: {}]  }
   0x1   :  { %v539_v1 = vld [vmem:[%s848_s0] sm:$0xff]  ;;  %v544_v2 = vld [vmem:[%s848_s0 + $0x8] sm:$0xff]  ;;  %v549_v3 = vld [vmem:[%s848_s0 + $0x10] sm:$0xff]  ;;  %v22_v5 = vunpack.c.l.s4 %v524_v4 }
   0x2   :  { %v554_v6 = vld [vmem:[%s848_s0 + $0x18] sm:$0xff]  ;;  %v556_v7 = vshrl.u32 %v24_v0, 7  ;;  %v561_v8 = vld [vmem:[%s848_s0 + $0x20] sm:$0xff]  ;;  %v566_v9 = vld [vmem:[%s848_s0 + $0x28] sm:$0xff]  ;;  %v20_v10 = vcombine.high %v539_v1, %v539_v1  ;;  %v37_v12 = vcombine.high %v544_v2, %v544_v2  ;;  %v54_v13 = vcombine.high %v549_v3, %v549_v3 }
   0x3   :  { %v23_v11 = vunpack.c.0.s8 %v22_v5  ;;  %v71_v14 = vcombine.high %v554_v6, %v554_v6  ;;  %v88_v16 = vcombine.high %v561_v8, %v561_v8  ;;  %v105_v17 = vcombine.high %v566_v9, %v566_v9 }
   0x5   :  { %v577_v15 = vsub.s32 %v23_v11, %v556_v7 }
   0x7   :  { %v585_v18 = vrot.slane %v539_v1, %v577_v15  ;;  %v588_v19 = vrot.slane %v20_v10, %v577_v15  ;;  %v592_v20 = vrot.slane %v544_v2, %v577_v15  ;;  %v595_v21 = vrot.slane %v37_v12, %v577_v15 }
   0x8   :  { %v599_v22 = vrot.slane %v549_v3, %v577_v15  ;;  %v602_v23 = vrot.slane %v54_v13, %v577_v15  ;;  %v606_v24 = vrot.slane %v554_v6, %v577_v15  ;;  %v609_v25 = vrot.slane %v71_v14, %v577_v15 }
   0x9   :  { %v613_v26 = vcombine.high %v585_v18, %v585_v18  ;;  %v617_v27 = vcombine.high %v588_v19, %v588_v19  ;;  %v621_v28 = vcombine.high %v592_v20, %v592_v20  ;;  %v625_v29 = vcombine.high %v595_v21, %v595_v21 }
   0xa   :  { %v629_v30 = vcombine.high %v599_v22, %v599_v22  ;;  %v633_v31 = vcombine.high %v602_v23, %v602_v23  ;;  %v637_v32 = vcombine.high %v606_v24, %v606_v24  ;;  %v641_v33 = vcombine.high %v609_v25, %v609_v25 }
   0xb   :  { %v645_v34 = vrot.slane %v561_v8, %v577_v15  ;;  %v648_v35 = vrot.slane %v88_v16, %v577_v15  ;;  %v652_v36 = vrot.slane %v566_v9, %v577_v15  ;;  %v655_v37 = vrot.slane %v105_v17, %v577_v15 }
   0xc   :  { %v147_v38 = vsel %vm146_vm0, %v585_v18, -inf  ;;  %v148_v39 = vsel %vm146_vm0, %v613_v26, -inf  ;;  %v149_v40 = vsel %vm146_vm0, %v588_v19, -inf  ;;  %v150_v41 = vsel %vm146_vm0, %v617_v27, -inf }
   0xd   :  { %v667_v42 = vcombine.high %v645_v34, %v645_v34  ;;  %v671_v43 = vcombine.high %v648_v35, %v648_v35  ;;  %v675_v44 = vcombine.high %v652_v36, %v652_v36  ;;  %v679_v45 = vcombine.high %v655_v37, %v655_v37 }
   0xe   :  { %v151_v46 = vsel %vm146_vm0, %v592_v20, -inf  ;;  %v153_v47 = vsel %vm146_vm0, %v621_v28, -inf  ;;  %v155_v48 = vsel %vm146_vm0, %v595_v21, -inf  ;;  %v157_v49 = vsel %vm146_vm0, %v625_v29, -inf }
   0xf   :  { %v152_v50 = vmax.f32 %v147_v38, %v151_v46  ;;  %v154_v51 = vmax.f32 %v148_v39, %v153_v47  ;;  %v156_v52 = vmax.f32 %v149_v40, %v155_v48  ;;  %v158_v53 = vmax.f32 %v150_v41, %v157_v49 }
  0x10   :  { %v159_v54 = vsel %vm146_vm0, %v599_v22, -inf  ;;  %v161_v55 = vsel %vm146_vm0, %v629_v30, -inf  ;;  %v163_v56 = vsel %vm146_vm0, %v602_v23, -inf  ;;  %v165_v57 = vsel %vm146_vm0, %v633_v31, -inf }
  0x11   :  { %v160_v58 = vmax.f32 %v152_v50, %v159_v54  ;;  %v162_v59 = vmax.f32 %v154_v51, %v161_v55  ;;  %v164_v60 = vmax.f32 %v156_v52, %v163_v56  ;;  %v166_v61 = vmax.f32 %v158_v53, %v165_v57 }
  0x12   :  { %v167_v62 = vsel %vm146_vm0, %v606_v24, -inf  ;;  %v169_v63 = vsel %vm146_vm0, %v637_v32, -inf  ;;  %v171_v0 = vsel %vm146_vm0, %v609_v25, -inf  ;;  %v173_v4 = vsel %vm146_vm0, %v641_v33, -inf }
  0x13   :  { %v168_v5 = vmax.f32 %v160_v58, %v167_v62  ;;  %v170_v10 = vmax.f32 %v162_v59, %v169_v63  ;;  %v172_v11 = vmax.f32 %v164_v60, %v171_v0  ;;  %v174_v12 = vmax.f32 %v166_v61, %v173_v4 }
  0x14   :  { %v175_v13 = vsel %vm146_vm0, %v645_v34, -inf  ;;  %v177_v14 = vsel %vm146_vm0, %v667_v42, -inf  ;;  %v179_v16 = vsel %vm146_vm0, %v648_v35, -inf  ;;  %v181_v17 = vsel %vm146_vm0, %v671_v43, -inf }
  0x15   :  { %v176_v38 = vmax.f32 %v168_v5, %v175_v13  ;;  %v178_v39 = vmax.f32 %v170_v10, %v177_v14  ;;  %v180_v40 = vmax.f32 %v172_v11, %v179_v16  ;;  %v182_v41 = vmax.f32 %v174_v12, %v181_v17 }
  0x16   :  { %v183_v46 = vsel %vm146_vm0, %v652_v36, -inf  ;;  %v185_v47 = vsel %vm146_vm0, %v675_v44, -inf  ;;  %v187_v48 = vsel %vm146_vm0, %v655_v37, -inf  ;;  %v189_v49 = vsel %vm146_vm0, %v679_v45, -inf }
  0x17   :  { %v184_v50 = vmax.f32 %v176_v38, %v183_v46  ;;  %v186_v51 = vmax.f32 %v178_v39, %v185_v47  ;;  %v188_v52 = vmax.f32 %v180_v40, %v187_v48  ;;  %v190_v53 = vmax.f32 %v182_v41, %v189_v49 }
  0x18   :  { %v525_v57 = vmov 269488144  }
  0x19   :  { %v191_v54 = vmax.f32 %v184_v50, %v186_v51  ;;  %v192_v55 = vmax.f32 %v188_v52, %v190_v53  ;;  %v200_v58 = vunpack.c.l.s4 %v525_v57 }
  0x1b   :  { %v193_v56 = vmax.f32 %v191_v54, %v192_v55  ;;  %v201_v59 = vunpack.c.0.s8 %v200_v58 }
  0x1d   :  { %194 = vmax.xlane.f32.xlu0 %v193_v56  ;;  %v204_v60 = vsub.s32 %v201_v59, %v556_v7 }
  0xaa   :  { %v722_v61 = vpop.xlane.xlu0 %194 }
  0xab   :  { %vm196_vm1 = vcmp.ne.f32.partialorder %v722_v61, 0.0 }
  0xac   :  { %v197_v62 = vsel %vm196_vm1, %v722_v61, 1.0 }
  0xad   :  { %v205_v63 = vrot.slane %v197_v62, %v204_v60 }
  0xaf   :  { %522 = vrcp.f32 %v205_v63 }
  0xb9   :  { %v523_v0 = vpop.eup %522 }
  0xba   :  { %v208_v4 = vmul.f32 %v523_v0, %v539_v1  ;;  %v209_v5 = vmul.f32 %v523_v0, %v544_v2  ;;  %v210_v10 = vmul.f32 %v523_v0, %v549_v3  ;;  %v211_v11 = vmul.f32 %v523_v0, %v554_v6 }
  0xbb   :  { %v212_v7 = vmul.f32 %v523_v0, %v561_v8  ;;  %v213_v12 = vmul.f32 %v523_v0, %v566_v9 }
  0xbc   :  { %v222_v13 = vcombine.high %v208_v4, %v208_v4  ;;  %v229_v14 = vrot.slane %v208_v4, %v577_v15  ;;  %v239_v16 = vcombine.high %v209_v5, %v209_v5  ;;  %v246_v17 = vrot.slane %v209_v5, %v577_v15 }
  0xbd   :  { %v256_v38 = vcombine.high %v210_v10, %v210_v10  ;;  %v263_v39 = vrot.slane %v210_v10, %v577_v15  ;;  %v273_v1 = vcombine.high %v211_v11, %v211_v11  ;;  %v280_v2 = vrot.slane %v211_v11, %v577_v15 }
  0xbe   :  { %v236_v3 = vrot.slane %v222_v13, %v577_v15  ;;  %v237_v40 = vcombine.high %v229_v14, %v229_v14  ;;  %v253_v6 = vrot.slane %v239_v16, %v577_v15  ;;  %v254_v8 = vcombine.high %v246_v17, %v246_v17 }
  0xbf   :  { %v270_v9 = vrot.slane %v256_v38, %v577_v15  ;;  %v271_v41 = vcombine.high %v263_v39, %v263_v39  ;;  %v287_v46 = vrot.slane %v273_v1, %v577_v15  ;;  %v288_v47 = vcombine.high %v280_v2, %v280_v2 }
  0xc0   :  { %v238_v48 = vcombine.high %v236_v3, %v236_v3  ;;  %v255_v49 = vcombine.high %v253_v6, %v253_v6  ;;  %v290_v50 = vcombine.high %v212_v7, %v212_v7  ;;  %v297_v51 = vrot.slane %v212_v7, %v577_v15 }
  0xc1   :  { %v272_v52 = vcombine.high %v270_v9, %v270_v9  ;;  %v289_v53 = vcombine.high %v287_v46, %v287_v46  ;;  %v307_v54 = vcombine.high %v213_v12, %v213_v12  ;;  %v314_v55 = vrot.slane %v213_v12, %v577_v15 }
  0xc2   :  { %v304_v56 = vrot.slane %v290_v50, %v577_v15  ;;  %v305_v57 = vcombine.high %v297_v51, %v297_v51  ;;  %v348_v58 = vsel %vm196_vm1, %v229_v14, %v585_v18  ;;  %v349_v59 = vsel %vm196_vm1, %v237_v40, %v613_v26 }
  0xc3   :  { %v321_v60 = vrot.slane %v307_v54, %v577_v15  ;;  %v322_v62 = vcombine.high %v314_v55, %v314_v55  ;;  %v350_v63 = vsel %vm196_vm1, %v236_v3, %v588_v19  ;;  %v351_v0 = vsel %vm196_vm1, %v238_v48, %v617_v27 }
  0xc4   :  { %v306_v4 = vcombine.high %v304_v56, %v304_v56  ;;  %v352_v18 = vsel %vm196_vm1, %v246_v17, %v592_v20  ;;  %v353_v26 = vsel %vm196_vm1, %v254_v8, %v621_v28  ;;  %v354_v5 = vsel %vm196_vm1, %v253_v6, %v595_v21 }
  0xc5   :  { %v323_v10 = vcombine.high %v321_v60, %v321_v60  ;;  %v355_v19 = vsel %vm196_vm1, %v255_v49, %v625_v29  ;;  %v356_v27 = vsel %vm196_vm1, %v263_v39, %v599_v22  ;;  %v357_v20 = vsel %vm196_vm1, %v271_v41, %v629_v30 }
  0xc6   :  { %v358_v28 = vsel %vm196_vm1, %v270_v9, %v602_v23  ;;  %v359_v21 = vsel %vm196_vm1, %v272_v52, %v633_v31  ;;  %v360_v29 = vsel %vm196_vm1, %v280_v2, %v606_v24  ;;  %v361_v22 = vsel %vm196_vm1, %v288_v47, %v637_v32 }
  0xc7   :  { %v362_v30 = vsel %vm196_vm1, %v287_v46, %v609_v25  ;;  %v363_v23 = vsel %vm196_vm1, %v289_v53, %v641_v33  ;;  %v364_v31 = vsel %vm196_vm1, %v297_v51, %v645_v34  ;;  %v365_v24 = vsel %vm196_vm1, %v305_v57, %v667_v42 }
  0xc8   :  { %v366_v32 = vsel %vm196_vm1, %v304_v56, %v648_v35  ;;  %v367_v25 = vsel %vm196_vm1, %v306_v4, %v671_v43  ;;  %v368_v33 = vsel %vm196_vm1, %v314_v55, %v652_v36  ;;  %v369_v34 = vsel %vm196_vm1, %v322_v62, %v675_v44 }
  0xc9   :  { %v370_v42 = vsel %vm196_vm1, %v321_v60, %v655_v37  ;;  %v371_v35 = vsel %vm196_vm1, %v323_v10, %v679_v45  ;;  %v396_v11 = vcombine.low %v348_v58, %v349_v59  ;;  %v397_v7 = vcombine.low %v350_v63, %v351_v0 }
  0xca   :  { %v413_v12 = vcombine.low %v352_v18, %v353_v26  ;;  %v414_v43 = vcombine.low %v354_v5, %v355_v19  ;;  %v430_v13 = vcombine.low %v356_v27, %v357_v20  ;;  %v431_v14 = vcombine.low %v358_v28, %v359_v21 }
  0xcb   :  { %v404_v36 = vrot.slane %v396_v11, %v577_v15  ;;  %v411_v16 = vrot.slane %v397_v7, %v577_v15  ;;  %v447_v17 = vcombine.low %v360_v29, %v361_v22  ;;  %v448_v44 = vcombine.low %v362_v30, %v363_v23 }
  0xcc   :  { %v421_v38 = vrot.slane %v413_v12, %v577_v15  ;;  %v428_v37 = vrot.slane %v414_v43, %v577_v15  ;;  %v438_v39 = vrot.slane %v430_v13, %v577_v15  ;;  %v445_v45 = vrot.slane %v431_v14, %v577_v15 }
  0xcd   :  { %v412_v61 = vcombine.low %v404_v36, %v411_v16  ;;  %v455_v1 = vrot.slane %v447_v17, %v577_v15  ;;  %v462_v2 = vrot.slane %v448_v44, %v577_v15  ;;  %v464_v3 = vcombine.low %v364_v31, %v365_v24 }
  0xce   :  { %v429_v40 = vcombine.low %v421_v38, %v428_v37  ;;  %v446_v6 = vcombine.low %v438_v39, %v445_v45  ;;  %v465_v8 = vcombine.low %v366_v32, %v367_v25  ;;  %v481_v9 = vcombine.low %v368_v33, %v369_v34 }
  0xcf   :  { %v463_v41 = vcombine.low %v455_v1, %v462_v2  ;;  %v482_v46 = vcombine.low %v370_v42, %v371_v35  ;;  %504 = vst [vmem:[%s849_s1] sm:$0xff] %v412_v61  ;;  %v472_v47 = vrot.slane %v464_v3, %v577_v15 }
  0xd0   :  { %v479_v48 = vrot.slane %v465_v8, %v577_v15  ;;  %505 = vst [vmem:[%s849_s1 + $0x8] sm:$0xff] %v429_v40  ;;  %506 = vst [vmem:[%s849_s1 + $0x10] sm:$0xff] %v446_v6  ;;  %v489_v49 = vrot.slane %v481_v9, %v577_v15 }
  0xd1   :  { %v496_v50 = vrot.slane %v482_v46, %v577_v15  ;;  %507 = vst [vmem:[%s849_s1 + $0x18] sm:$0xff] %v463_v41 }
  0xd2   :  { %v480_v51 = vcombine.low %v472_v47, %v479_v48 }
  0xd3   :  { %v497_v52 = vcombine.low %v489_v49, %v496_v50 }
  0xd4   :  { %508 = vst [vmem:[%s849_s1 + $0x20] sm:$0xff] %v480_v51 }
  0xd5   :  { %509 = vst [vmem:[%s849_s1 + $0x28] sm:$0xff] %v497_v52 }

// kernel: _forward.41
= control target key start
LH: loop header
LB: loop body
LE: loop exit
PB: predicated region body
PF: predicated region fallthrough
CT: control target
= control target key end

     0   :  { %s576_s15 = smov 0   ;;  %s723_s0 = inlined_call_operand.vmem [shape: f32[2,9,9,64], index: 0, kind: input, shape index: {}]   ;;  %s724_s1 = inlined_call_operand.vmem [shape: f32[2,9,9,64], index: 1, kind: input, shape index: {}]   ;;  %s725_s2 = inlined_call_operand.vmem [shape: f32[2,9,9,64], index: 2, kind: input, shape index: {}]   ;;  %s726_s3 = inlined_call_operand.vmem [shape: f32[2,9,9,64], index: 3, kind: input, shape index: {}]   ;;  %s727_s4 = inlined_call_operand.vmem [shape: f32[2,8,8,64], index: 4, kind: output, shape index: {}]  }
   0x1 LB: > { %s496_s16 = sadd.s32 4294967295, %s549_s15   ;;  %p500_p0 = scmp.ge.s32.totalorder %s549_s15, 1  ;;  %s549_s15 = sphi %s576_s15, %s14_s15  }
   0x2   : > { %p192_p1 = scmp.lt.s32.totalorder %s549_s15, 3 }
   0x4   : > { %p193_p2 = pnand %p500_p0, %p192_p1 }
   0x5   : > { %p233_p3 = scmp.lt.s32.totalorder (!%p193_p2), %s496_s16, 1  ;;  %vm396_vm0 = vcmask (!%p193_p2), 523264  }
   0x6   : > { %196 = sbr.rel (%p193_p2) target bundleno = 52 (0x34), region = 36 }
   0xd   : > { %s729_s16 = smov (!%p233_p3, %s496_s16), 1 }
   0xe   : > { %s534_s17 = smul.u32 144, %s729_s16  ;;  %s533_s30 = sshll.u32 %s729_s16, 6 }
   0xf   : > { %s677_s7 = scalar_lea.vmem %s727_s4, %s533_s30 }
  0x10   : > { %s590_s20 = scalar_lea.vmem %s723_s0, %s534_s17  ;;  %s595_s23 = scalar_lea.vmem %s724_s1, %s534_s17 }
  0x11   : > { %s600_s26 = scalar_lea.vmem %s725_s2, %s534_s17  ;;  %s605_s29 = scalar_lea.vmem %s726_s3, %s534_s17  ;;  %v258_v0 = vld [vmem:[%s590_s20] sm:$0xff]  ;;  %v507_v5 = vld [vmem:[%s590_s20 + $0x10] sm:$0xff] }
  0x12   : > { %v266_v1 = vld [vmem:[%s595_s23] sm:$0xff]  ;;  %v613_v6 = vld [vmem:[%s595_s23 + $0x10] sm:$0xff] }
  0x13   : > { %v282_v2 = vld [vmem:[%s590_s20 + $0x1] sm:$0xff]  ;;  %v274_v3 = vmax.f32 %v258_v0, %v266_v1  ;;  %v616_v7 = vld [vmem:[%s590_s20 + $0x11] sm:$0xff]  ;;  %v275_v10 = vmax.f32 %v507_v5, %v613_v6 }
  0x14   : > { %v298_v4 = vld [vmem:[%s600_s26] sm:$0xff]  ;;  %v299_v11 = vld [vmem:[%s600_s26 + $0x10] sm:$0xff] }
  0x15   : > { %v290_v8 = vmax.f32 %v274_v3, %v282_v2  ;;  %v314_v9 = vld [vmem:[%s605_s29] sm:$0xff]  ;;  %v291_v17 = vmax.f32 %v275_v10, %v616_v7  ;;  %v315_v18 = vld [vmem:[%s605_s29 + $0x10] sm:$0xff] }
  0x16   : > { %v508_v12 = vld [vmem:[%s590_s20 + $0x20] sm:$0xff]  ;;  %v509_v21 = vld [vmem:[%s590_s20 + $0x30] sm:$0xff] }
  0x17   : > { %v623_v13 = vld [vmem:[%s595_s23 + $0x20] sm:$0xff]  ;;  %v306_v15 = vmax.f32 %v290_v8, %v298_v4  ;;  %v635_v22 = vld [vmem:[%s595_s23 + $0x30] sm:$0xff]  ;;  %v307_v25 = vmax.f32 %v291_v17, %v299_v11 }
  0x18   : > { %v626_v14 = vld [vmem:[%s590_s20 + $0x21] sm:$0xff]  ;;  %v276_v19 = vmax.f32 %v508_v12, %v623_v13  ;;  %v638_v23 = vld [vmem:[%s590_s20 + $0x31] sm:$0xff]  ;;  %v277_v29 = vmax.f32 %v509_v21, %v635_v22 }
  0x19   : > { %v330_v16 = vld [vmem:[%s600_s26 + $0x1] sm:$0xff]  ;;  %v322_v24 = vmax.f32 %v306_v15, %v314_v9  ;;  %v331_v26 = vld [vmem:[%s600_s26 + $0x11] sm:$0xff]  ;;  %v323_v34 = vmax.f32 %v307_v25, %v315_v18 }
  0x1a   : > { %v300_v20 = vld [vmem:[%s600_s26 + $0x20] sm:$0xff]  ;;  %v292_v27 = vmax.f32 %v276_v19, %v626_v14  ;;  %v301_v30 = vld [vmem:[%s600_s26 + $0x30] sm:$0xff]  ;;  %v293_v37 = vmax.f32 %v277_v29, %v638_v23 }
  0x1b   : > { %v316_v28 = vld [vmem:[%s605_s29 + $0x20] sm:$0xff]  ;;  %v338_v33 = vmax.f32 %v322_v24, %v330_v16  ;;  %v317_v39 = vld [vmem:[%s605_s29 + $0x30] sm:$0xff]  ;;  %v339_v44 = vmax.f32 %v323_v34, %v331_v26 }
  0x1c   : > { %v510_v31 = vld [vmem:[%s590_s20 + $0x40] sm:$0xff]  ;;  %v308_v35 = vmax.f32 %v292_v27, %v300_v20  ;;  %v511_v41 = vld [vmem:[%s590_s20 + $0x50] sm:$0xff]  ;;  %v309_v46 = vmax.f32 %v293_v37, %v301_v30 }
  0x1d   : > { %v647_v32 = vld [vmem:[%s595_s23 + $0x40] sm:$0xff]  ;;  %v658_v42 = vld [vmem:[%s595_s23 + $0x50] sm:$0xff]  ;;  %v355_v43 = vmax.f32 %v338_v33, %v507_v5  ;;  %v356_v55 = vmax.f32 %v339_v44, %v508_v12 }
  0x1e   : > { %v332_v36 = vld [vmem:[%s600_s26 + $0x21] sm:$0xff]  ;;  %v278_v40 = vmax.f32 %v510_v31, %v647_v32  ;;  %v324_v45 = vmax.f32 %v308_v35, %v316_v28  ;;  %v527_v48 = vld [vmem:[%s590_s20 + $0x51] sm:$0xff]  ;;  %v279_v51 = vmax.f32 %v511_v41, %v658_v42  ;;  %v325_v57 = vmax.f32 %v309_v46, %v317_v39 }
  0x1f   : > { %v652_v38 = vld [vmem:[%s590_s20 + $0x41] sm:$0xff]  ;;  %v333_v49 = vld [vmem:[%s600_s26 + $0x31] sm:$0xff]  ;;  %v372_v54 = vmax.f32 %v355_v43, %v613_v6  ;;  %v373_v4 = vmax.f32 %v356_v55, %v623_v13 }
  0x20   : > { %v302_v47 = vld [vmem:[%s600_s26 + $0x40] sm:$0xff]  ;;  %v294_v50 = vmax.f32 %v278_v40, %v652_v38  ;;  %v340_v56 = vmax.f32 %v324_v45, %v332_v36  ;;  %v303_v59 = vld [vmem:[%s600_s26 + $0x50] sm:$0xff]  ;;  %v295_v63 = vmax.f32 %v279_v51, %v527_v48  ;;  %v341_v6 = vmax.f32 %v325_v57, %v333_v49 }
  0x21   : > { %v512_v52 = vld [vmem:[%s590_s20 + $0x60] sm:$0xff]  ;;  %v513_v1 = vld [vmem:[%s590_s20 + $0x70] sm:$0xff]  ;;  %v388_v3 = vmax.f32 %v372_v54, %v616_v7  ;;  %v389_v7 = vmax.f32 %v373_v4, %v626_v14 }
  0x22   : > { %v668_v53 = vld [vmem:[%s595_s23 + $0x60] sm:$0xff]  ;;  %v310_v61 = vmax.f32 %v294_v50, %v302_v47  ;;  %v521_v2 = vld [vmem:[%s595_s23 + $0x70] sm:$0xff]  ;;  %v357_v5 = vmax.f32 %v340_v56, %v509_v21  ;;  %v311_v12 = vmax.f32 %v295_v63, %v303_v59  ;;  %v358_v13 = vmax.f32 %v341_v6, %v510_v31 }
  0x23   : > { %v318_v58 = vld [vmem:[%s605_s29 + $0x40] sm:$0xff]  ;;  %v280_v0 = vmax.f32 %v512_v52, %v668_v53  ;;  %v319_v8 = vld [vmem:[%s605_s29 + $0x50] sm:$0xff]  ;;  %v281_v16 = vmax.f32 %v513_v1, %v521_v2  ;;  %397 = vst.msk [vmem:[%s677_s7] sm:$0xff] %vm396_vm0, %v388_v3  ;;  %398 = vst.msk [vmem:[%s677_s7 + $0x8] sm:$0xff] %vm396_vm0, %v389_v7 }
  0x24   : > { %v528_v60 = vld [vmem:[%s590_s20 + $0x61] sm:$0xff]  ;;  %v529_v10 = vld [vmem:[%s590_s20 + $0x71] sm:$0xff]  ;;  %v326_v11 = vmax.f32 %v310_v61, %v318_v58  ;;  %v374_v17 = vmax.f32 %v357_v5, %v635_v22  ;;  %v327_v24 = vmax.f32 %v311_v12, %v319_v8  ;;  %v375_v14 = vmax.f32 %v358_v13, %v647_v32 }
  0x25   : > { %v334_v62 = vld [vmem:[%s600_s26 + $0x41] sm:$0xff]  ;;  %v296_v15 = vmax.f32 %v280_v0, %v528_v60  ;;  %v335_v18 = vld [vmem:[%s600_s26 + $0x51] sm:$0xff]  ;;  %v297_v26 = vmax.f32 %v281_v16, %v529_v10 }
  0x26   : > { %v304_v9 = vld [vmem:[%s600_s26 + $0x60] sm:$0xff]  ;;  %v305_v20 = vld [vmem:[%s600_s26 + $0x70] sm:$0xff]  ;;  %v342_v21 = vmax.f32 %v326_v11, %v334_v62  ;;  %v390_v27 = vmax.f32 %v374_v17, %v638_v23  ;;  %v343_v30 = vmax.f32 %v327_v24, %v335_v18  ;;  %v391_v34 = vmax.f32 %v375_v14, %v652_v38 }
  0x27   : > { %v320_v19 = vld [vmem:[%s605_s29 + $0x60] sm:$0xff]  ;;  %v312_v25 = vmax.f32 %v296_v15, %v304_v9  ;;  %v321_v22 = vld [vmem:[%s605_s29 + $0x70] sm:$0xff]  ;;  %v313_v33 = vmax.f32 %v297_v26, %v305_v20 }
  0x28   : > { %v336_v28 = vld [vmem:[%s600_s26 + $0x61] sm:$0xff]  ;;  %v359_v29 = vmax.f32 %v342_v21, %v511_v41  ;;  %399 = vst.msk [vmem:[%s677_s7 + $0x10] sm:$0xff] %vm396_vm0, %v390_v27  ;;  %v337_v35 = vld [vmem:[%s600_s26 + $0x71] sm:$0xff]  ;;  %v360_v23 = vmax.f32 %v343_v30, %v512_v52  ;;  %400 = vst.msk [vmem:[%s677_s7 + $0x18] sm:$0xff] %vm396_vm0, %v391_v34 }
  0x29   : > { %v328_v31 = vmax.f32 %v312_v25, %v320_v19  ;;  %v329_v32 = vmax.f32 %v313_v33, %v321_v22  ;;  %v514_v39 = vld [vmem:[%s590_s20 + $0x80] sm:$0xff] }
  0x2a   : > { %v376_v36 = vmax.f32 %v359_v29, %v658_v42  ;;  %v377_v41 = vmax.f32 %v360_v23, %v668_v53  ;;  %v522_v45 = vld [vmem:[%s595_s23 + $0x80] sm:$0xff] }
  0x2b   : > { %v344_v37 = vmax.f32 %v328_v31, %v336_v28  ;;  %v345_v44 = vmax.f32 %v329_v32, %v337_v35  ;;  %v530_v47 = vld [vmem:[%s590_s20 + $0x81] sm:$0xff] }
  0x2c   : > { %v392_v40 = vmax.f32 %v376_v36, %v527_v48  ;;  %v393_v38 = vmax.f32 %v377_v41, %v528_v60 }
  0x2d   : > { %v361_v43 = vmax.f32 %v344_v37, %v513_v1  ;;  %v362_v42 = vmax.f32 %v345_v44, %v514_v39 }
  0x2e   : > { %401 = vst.msk [vmem:[%s677_s7 + $0x20] sm:$0xff] %vm396_vm0, %v392_v40  ;;  %402 = vst.msk [vmem:[%s677_s7 + $0x28] sm:$0xff] %vm396_vm0, %v393_v38 }
  0x2f   : > { %v378_v46 = vmax.f32 %v361_v43, %v521_v2  ;;  %v379_v50 = vmax.f32 %v362_v42, %v522_v45 }
  0x31   : > { %v394_v49 = vmax.f32 %v378_v46, %v529_v10  ;;  %v395_v51 = vmax.f32 %v379_v50, %v530_v47 }
  0x33   : > { %403 = vst.msk [vmem:[%s677_s7 + $0x30] sm:$0xff] %vm396_vm0, %v394_v49  ;;  %404 = vst.msk [vmem:[%s677_s7 + $0x38] sm:$0xff] %vm396_vm0, %v395_v51 }
  0x34 PF: > { %s14_s15 = sadd.s32 1, %s549_s15  }
  0x35   : > { %p11_p4 = scmp.ge.s32.totalorder %s14_s15, 4  }
  0x37   :  { %13 = sbr.rel (!%p11_p4) target bundleno = 1 (0x1), region = 77 }

// kernel: _forward.40
= control target key start
LH: loop header
LB: loop body
LE: loop exit
PB: predicated region body
PF: predicated region fallthrough
CT: control target
= control target key end

     0   :  { %s1392_s12 = smov 0   ;;  %s1394_s13 = smov 0   ;;  %s1681_s0 = inlined_call_operand.vmem [shape: bf16[512,256], index: 0, kind: input, shape index: {}]   ;;  %s1682_s1 = inlined_call_operand.vmem [shape: bf16[256,64], index: 1, kind: input, shape index: {}]   ;;  %s1683_s2 = inlined_call_operand.vmem [shape: f32[1,64], index: 2, kind: input, shape index: {}]   ;;  %s1684_s3 = inlined_call_operand.vmem [shape: f32[512,64], index: 3, kind: output, shape index: {}]  }
   0x1   :  { %s1396_s14 = smov 0  }
   0x2 LB: > { %s25_s15 = sadd.s32 1, %s1365_s13  ;;  %p1072_p0 = scmp.ge.s32.totalorder %s1369_s14, 1  ;;  %s1369_s14 = sphi %s1396_s14, %s13_s14   ;;  %s1365_s13 = sphi %s1394_s13, %s1686_s13   ;;  %s1361_s12 = sphi %s1392_s12, %s1685_s12  }
   0x3   : > { %p27_p1 = scmp.ge.s32.totalorder %s25_s15, 2  ;;  %p169_p2 = scmp.lt.s32.totalorder %s1369_s14, 3 }
   0x5   : > { %s1688_s15 = smov (%p27_p1, %s25_s15), 0  ;;  %p170_p3 = pnand %p1072_p0, %p169_p2 }
   0x6   : > { %v1283_v0 = vld [vmem:[%s1682_s1 + $0x40] sm:$0xff] (!%p170_p3)   ;;  %s1073_s18 = sshll.u32 (!%p170_p3), %s1361_s12, 5  ;;  %v1285_v2 = vld [vmem:[%s1682_s1 + $0x48] sm:$0xff] (!%p170_p3)   ;;  %v1287_v4 = vld [vmem:[%s1682_s1 + $0x50] sm:$0xff] (!%p170_p3)   ;;  %vm232_vm0 = vcmask (!%p170_p3), 523264   ;;  %v1371_v48 = vmov (!%p170_p3), 0.0  }
   0x7   : > { %173 = sbr.rel (%p170_p3) target bundleno = 328 (0x148), region = 32  ;;  %v1284_v1 = vld [vmem:[%s1682_s1] sm:$0xff] (!%p170_p3)   ;;  %1130 = vmatprep.subr.bf16.mxu0 (!%p170_p3), %v1283_v0  ;;  %1242 = vmatprep.subr.bf16.mxu1 (!%p170_p3), %v1283_v0  ;;  %v1286_v3 = vld [vmem:[%s1682_s1 + $0x8] sm:$0xff] (!%p170_p3)   ;;  %p205_p4 = scmp.lt.s32.totalorder (!%p170_p3), %s1073_s18, 63  ;;  %v1288_v5 = vld [vmem:[%s1682_s1 + $0x10] sm:$0xff] (!%p170_p3)   ;;  %233 = vst.msk [vmem:[#allocation2] sm:$0xff] (!%p170_p3), %vm232_vm0, %v1371_v48 }
   0x8   : > { %1131 = vmatpush3.bf16.msra.mxu0 (!%p170_p3), %v1284_v1  ;;  %1250 = vmatpush3.bf16.msra.mxu1 (!%p170_p3), %v1284_v1  ;;  %v1289_v6 = vld [vmem:[%s1682_s1 + $0x58] sm:$0xff] (!%p170_p3)   ;;  %v1291_v8 = vld [vmem:[%s1682_s1 + $0x60] sm:$0xff] (!%p170_p3)   ;;  %v1293_v10 = vld [vmem:[%s1682_s1 + $0x68] sm:$0xff] (!%p170_p3)   ;;  %234 = vst.msk [vmem:[#allocation2 + $0x8] sm:$0xff] (!%p170_p3), %vm232_vm0, %v1371_v48 }
   0x9   : > { %1132 = vmatprep.subr.bf16.mxu0 (!%p170_p3), %v1285_v2  ;;  %1243 = vmatprep.subr.bf16.mxu1 (!%p170_p3), %v1285_v2  ;;  %v1290_v7 = vld [vmem:[%s1682_s1 + $0x18] sm:$0xff] (!%p170_p3)   ;;  %v1292_v9 = vld [vmem:[%s1682_s1 + $0x20] sm:$0xff] (!%p170_p3)   ;;  %v1294_v13 = vld [vmem:[%s1682_s1 + $0x28] sm:$0xff] (!%p170_p3)   ;;  %235 = vst.msk [vmem:[#allocation2 + $0x10] sm:$0xff] (!%p170_p3), %vm232_vm0, %v1371_v48 }
   0xa   : > { %v1295_v14 = vld [vmem:[%s1682_s1 + $0x70] sm:$0xff] (!%p170_p3)   ;;  %v1297_v16 = vld [vmem:[%s1682_s1 + $0x78] sm:$0xff] (!%p170_p3)   ;;  %236 = vst.msk [vmem:[#allocation2 + $0x18] sm:$0xff] (!%p170_p3), %vm232_vm0, %v1371_v48  ;;  %237 = vst.msk [vmem:[#allocation2 + $0x20] sm:$0xff] (!%p170_p3), %vm232_vm0, %v1371_v48 }
   0xb   : > { %v1296_v15 = vld [vmem:[%s1682_s1 + $0x30] sm:$0xff] (!%p170_p3)   ;;  %v1298_v17 = vld [vmem:[%s1682_s1 + $0x38] sm:$0xff] (!%p170_p3)   ;;  %238 = vst.msk [vmem:[#allocation2 + $0x28] sm:$0xff] (!%p170_p3), %vm232_vm0, %v1371_v48  ;;  %239 = vst.msk [vmem:[#allocation2 + $0x30] sm:$0xff] (!%p170_p3), %vm232_vm0, %v1371_v48 }
   0xc   : > { %1133 = vmatpush3.bf16.msra.mxu0 (!%p170_p3), %v1286_v3  ;;  %1251 = vmatpush3.bf16.msra.mxu1 (!%p170_p3), %v1286_v3  ;;  %240 = vst.msk [vmem:[#allocation2 + $0x38] sm:$0xff] (!%p170_p3), %vm232_vm0, %v1371_v48  ;;  %241 = vst.msk [vmem:[#allocation2 + $0x40] sm:$0xff] (!%p170_p3), %vm232_vm0, %v1371_v48 }
   0xd   : > { %1134 = vmatprep.subr.bf16.mxu0 (!%p170_p3), %v1287_v4  ;;  %1244 = vmatprep.subr.bf16.mxu1 (!%p170_p3), %v1287_v4  ;;  %242 = vst.msk [vmem:[#allocation2 + $0x48] sm:$0xff] (!%p170_p3), %vm232_vm0, %v1371_v48  ;;  %243 = vst.msk [vmem:[#allocation2 + $0x50] sm:$0xff] (!%p170_p3), %vm232_vm0, %v1371_v48 }
   0xe   : > { %s1690_s18 = smov (!%p205_p4, %s1073_s18), 63  ;;  %244 = vst.msk [vmem:[#allocation2 + $0x58] sm:$0xff] %vm232_vm0, %v1371_v48  ;;  %245 = vst.msk [vmem:[#allocation2 + $0x60] sm:$0xff] %vm232_vm0, %v1371_v48  ;;  %v265_v51 = vld [vmem:[#allocation2] sm:$0xff] }
   0xf   : > { %s1129_s6 = sshll.u32 %s1690_s18, 3  ;;  %246 = vst.msk [vmem:[#allocation2 + $0x68] sm:$0xff] %vm232_vm0, %v1371_v48  ;;  %247 = vst.msk [vmem:[#allocation2 + $0x70] sm:$0xff] %vm232_vm0, %v1371_v48  ;;  %v266_v59 = vld [vmem:[#allocation2 + $0x8] sm:$0xff] }
  0x10   : > { %1135 = vmatpush3.bf16.msra.mxu0 %v1288_v5  ;;  %1252 = vmatpush3.bf16.msra.mxu1 %v1288_v5  ;;  %s1445_s11 = scalar_lea.vmem %s1681_s0, %s1129_s6  ;;  %248 = vst.msk [vmem:[#allocation2 + $0x78] sm:$0xff] %vm232_vm0, %v1371_v48  ;;  %249 = vst.msk [vmem:[#allocation2 + $0x80] sm:$0xff] %vm232_vm0, %v1371_v48  ;;  %s1550_s8 = scalar_lea.vmem %s1684_s3, %s1129_s6 }
  0x11   : > { %1136 = vmatprep.subr.bf16.mxu0 %v1289_v6  ;;  %1245 = vmatprep.subr.bf16.mxu1 %v1289_v6  ;;  %v1301_v11 = vld [vmem:[%s1445_s11 + $0x4] ss:$8 sps:$4 sm:$0xff]   ;;  %v1299_v18 = vld [vmem:[%s1445_s11] ss:$8 sps:$4 sm:$0xff]   ;;  %v1305_v20 = vld [vmem:[%s1445_s11 + $0x14] ss:$8 sps:$4 sm:$0xff]  }
  0x12   : > { %v1304_v12 = vld [vmem:[%s1445_s11 + $0x84] ss:$8 sps:$4 sm:$0xff]   ;;  %649 = vmatprep.mubr.bf16.mxu0 %v1301_v11  ;;  %v1302_v19 = vld [vmem:[%s1445_s11 + $0x80] ss:$8 sps:$4 sm:$0xff]   ;;  %v1307_v21 = vld [vmem:[%s1445_s11 + $0x94] ss:$8 sps:$4 sm:$0xff]  }
  0x13   : > { %713 = vmatprep.mubr.bf16.mxu1 %v1304_v12  ;;  %v1309_v22 = vld [vmem:[%s1445_s11 + $0x10] ss:$8 sps:$4 sm:$0xff]   ;;  %v1311_v24 = vld [vmem:[%s1445_s11 + $0x24] ss:$8 sps:$4 sm:$0xff]   ;;  %v1315_v26 = vld [vmem:[%s1445_s11 + $0x20] ss:$8 sps:$4 sm:$0xff]  }
  0x14   : > { %1137 = vmatpush3.bf16.msra.mxu0 %v1290_v7  ;;  %1253 = vmatpush3.bf16.msra.mxu1 %v1290_v7  ;;  %v1310_v23 = vld [vmem:[%s1445_s11 + $0x90] ss:$8 sps:$4 sm:$0xff]   ;;  %v1313_v25 = vld [vmem:[%s1445_s11 + $0xa4] ss:$8 sps:$4 sm:$0xff]   ;;  %v1316_v27 = vld [vmem:[%s1445_s11 + $0xa0] ss:$8 sps:$4 sm:$0xff]  }
  0x15   : > { %1138 = vmatprep.subr.bf16.mxu0 %v1291_v8  ;;  %1246 = vmatprep.subr.bf16.mxu1 %v1291_v8  ;;  %v1317_v28 = vld [vmem:[%s1445_s11 + $0x34] ss:$8 sps:$4 sm:$0xff]   ;;  %v1321_v30 = vld [vmem:[%s1445_s11 + $0x30] ss:$8 sps:$4 sm:$0xff]   ;;  %v1323_v32 = vld [vmem:[%s1445_s11 + $0x44] ss:$8 sps:$4 sm:$0xff]  }
  0x16   : > { %v1319_v29 = vld [vmem:[%s1445_s11 + $0xb4] ss:$8 sps:$4 sm:$0xff]   ;;  %v1322_v31 = vld [vmem:[%s1445_s11 + $0xb0] ss:$8 sps:$4 sm:$0xff]   ;;  %v1325_v33 = vld [vmem:[%s1445_s11 + $0xc4] ss:$8 sps:$4 sm:$0xff]  }
  0x17   : > { %v1327_v34 = vld [vmem:[%s1445_s11 + $0x40] ss:$8 sps:$4 sm:$0xff]   ;;  %v1329_v36 = vld [vmem:[%s1445_s11 + $0x54] ss:$8 sps:$4 sm:$0xff]   ;;  %v1333_v38 = vld [vmem:[%s1445_s11 + $0x50] ss:$8 sps:$4 sm:$0xff]  }
  0x18   : > { %1139 = vmatpush3.bf16.msra.mxu0 %v1292_v9  ;;  %1254 = vmatpush3.bf16.msra.mxu1 %v1292_v9  ;;  %v1328_v35 = vld [vmem:[%s1445_s11 + $0xc0] ss:$8 sps:$4 sm:$0xff]   ;;  %v1331_v37 = vld [vmem:[%s1445_s11 + $0xd4] ss:$8 sps:$4 sm:$0xff]   ;;  %v1334_v39 = vld [vmem:[%s1445_s11 + $0xd0] ss:$8 sps:$4 sm:$0xff]  }
  0x19   : > { %1140 = vmatprep.subr.bf16.mxu0 %v1293_v10  ;;  %1247 = vmatprep.subr.bf16.mxu1 %v1293_v10  ;;  %v1335_v40 = vld [vmem:[%s1445_s11 + $0x64] ss:$8 sps:$4 sm:$0xff]   ;;  %v1339_v42 = vld [vmem:[%s1445_s11 + $0x60] ss:$8 sps:$4 sm:$0xff]   ;;  %v1341_v44 = vld [vmem:[%s1445_s11 + $0x74] ss:$8 sps:$4 sm:$0xff]  }
  0x1a   : > { %v1337_v41 = vld [vmem:[%s1445_s11 + $0xe4] ss:$8 sps:$4 sm:$0xff]   ;;  %v1340_v43 = vld [vmem:[%s1445_s11 + $0xe0] ss:$8 sps:$4 sm:$0xff]   ;;  %v1343_v45 = vld [vmem:[%s1445_s11 + $0xf4] ss:$8 sps:$4 sm:$0xff]  }
  0x1b   : > { %v1345_v46 = vld [vmem:[%s1445_s11 + $0x70] ss:$8 sps:$4 sm:$0xff]   ;;  %250 = vst.msk [vmem:[#allocation2 + $0x88] sm:$0xff] %vm232_vm0, %v1371_v48  ;;  %251 = vst.msk [vmem:[#allocation2 + $0x90] sm:$0xff] %vm232_vm0, %v1371_v48  ;;  %v281_v53 = vld [vmem:[#allocation2 + $0x80] sm:$0xff] }
  0x1c   : > { %1141 = vmatpush3.bf16.msra.mxu0 %v1294_v13  ;;  %1255 = vmatpush3.bf16.msra.mxu1 %v1294_v13  ;;  %v1346_v47 = vld [vmem:[%s1445_s11 + $0xf0] ss:$8 sps:$4 sm:$0xff]   ;;  %252 = vst.msk [vmem:[#allocation2 + $0x98] sm:$0xff] %vm232_vm0, %v1371_v48  ;;  %253 = vst.msk [vmem:[#allocation2 + $0xa0] sm:$0xff] %vm232_vm0, %v1371_v48 }
  0x1d   : > { %1142 = vmatprep.subr.bf16.mxu0 %v1295_v14  ;;  %1248 = vmatprep.subr.bf16.mxu1 %v1295_v14  ;;  %254 = vst.msk [vmem:[#allocation2 + $0xa8] sm:$0xff] %vm232_vm0, %v1371_v48  ;;  %255 = vst.msk [vmem:[#allocation2 + $0xb0] sm:$0xff] %vm232_vm0, %v1371_v48  ;;  %v267_v7 = vld [vmem:[#allocation2 + $0x10] sm:$0xff] }
  0x1e   : > { %256 = vst.msk [vmem:[#allocation2 + $0xb8] sm:$0xff] %vm232_vm0, %v1371_v48  ;;  %257 = vst.msk [vmem:[#allocation2 + $0xc0] sm:$0xff] %vm232_vm0, %v1371_v48 }
  0x1f   : > { %258 = vst.msk [vmem:[#allocation2 + $0xc8] sm:$0xff] %vm232_vm0, %v1371_v48  ;;  %259 = vst.msk [vmem:[#allocation2 + $0xd0] sm:$0xff] %vm232_vm0, %v1371_v48 }
  0x20   : > { %1143 = vmatpush3.bf16.msra.mxu0 %v1296_v15  ;;  %1256 = vmatpush3.bf16.msra.mxu1 %v1296_v15  ;;  %260 = vst.msk [vmem:[#allocation2 + $0xd8] sm:$0xff] %vm232_vm0, %v1371_v48  ;;  %261 = vst.msk [vmem:[#allocation2 + $0xe0] sm:$0xff] %vm232_vm0, %v1371_v48  ;;  %v1539_v15 = vld [vmem:[%s1683_s2] ss:$0 sm:$0xff] }
  0x21   : > { %1144 = vmatprep.subr.bf16.mxu0 %v1297_v16  ;;  %1249 = vmatprep.subr.bf16.mxu1 %v1297_v16  ;;  %262 = vst.msk [vmem:[#allocation2 + $0xe8] sm:$0xff] %vm232_vm0, %v1371_v48  ;;  %263 = vst.msk [vmem:[#allocation2 + $0xf0] sm:$0xff] %vm232_vm0, %v1371_v48  ;;  %v268_v16 = vld [vmem:[#allocation2 + $0x18] sm:$0xff] }
  0x22   : > { %264 = vst.msk [vmem:[#allocation2 + $0xf8] sm:$0xff] %vm232_vm0, %v1371_v48  ;;  %v282_v61 = vld [vmem:[#allocation2 + $0x88] sm:$0xff]  ;;  %v283_v9 = vld [vmem:[#allocation2 + $0x90] sm:$0xff] }
  0x23   : > { %v270_v48 = vld [vmem:[#allocation2 + $0x28] sm:$0xff] }
  0x24   : > { %1145 = vmatpush3.bf16.msra.mxu0 %v1298_v17  ;;  %1257 = vmatpush3.bf16.msra.mxu1 %v1298_v17 }
  0x27   : > { %650 = vmatmul.mubr.bf16.vlgmr.msra.gmra.mrb[0].mxu0 %v1299_v18  ;;  %714 = vmatmul.mubr.bf16.vlgmr.msra.gmra.mrb[0].mxu1 %v1302_v19  ;;  %v284_v18 = vld [vmem:[#allocation2 + $0x98] sm:$0xff] }
  0x28   : > { %657 = vmatprep.mubr.bf16.mxu0 %v1305_v20  ;;  %721 = vmatprep.mubr.bf16.mxu1 %v1307_v21 }
  0x2f   : > { %658 = vmatmul.mubr.bf16.gmra.mrb[4].mxu0 %v1309_v22  ;;  %722 = vmatmul.mubr.bf16.gmra.mrb[4].mxu1 %v1310_v23 }
  0x30   : > { %665 = vmatprep.mubr.bf16.mxu0 %v1311_v24  ;;  %729 = vmatprep.mubr.bf16.mxu1 %v1313_v25 }
  0x37   : > { %666 = vmatmul.mubr.bf16.gmra.mrb[8].mxu0 %v1315_v26  ;;  %730 = vmatmul.mubr.bf16.gmra.mrb[8].mxu1 %v1316_v27 }
  0x38   : > { %673 = vmatprep.mubr.bf16.mxu0 %v1317_v28  ;;  %737 = vmatprep.mubr.bf16.mxu1 %v1319_v29 }
  0x3f   : > { %674 = vmatmul.mubr.bf16.gmra.mrb[12].mxu0 %v1321_v30  ;;  %738 = vmatmul.mubr.bf16.gmra.mrb[12].mxu1 %v1322_v31 }
  0x40   : > { %681 = vmatprep.mubr.bf16.mxu0 %v1323_v32  ;;  %745 = vmatprep.mubr.bf16.mxu1 %v1325_v33 }
  0x47   : > { %682 = vmatmul.mubr.bf16.gmra.mrb[16].mxu0 %v1327_v34  ;;  %746 = vmatmul.mubr.bf16.gmra.mrb[16].mxu1 %v1328_v35 }
  0x48   : > { %689 = vmatprep.mubr.bf16.mxu0 %v1329_v36  ;;  %753 = vmatprep.mubr.bf16.mxu1 %v1331_v37 }
  0x4f   : > { %690 = vmatmul.mubr.bf16.gmra.mrb[20].mxu0 %v1333_v38  ;;  %754 = vmatmul.mubr.bf16.gmra.mrb[20].mxu1 %v1334_v39  ;;  %v269_v38 = vld [vmem:[#allocation2 + $0x20] sm:$0xff] }
  0x50   : > { %697 = vmatprep.mubr.bf16.mxu0 %v1335_v40  ;;  %761 = vmatprep.mubr.bf16.mxu1 %v1337_v41  ;;  %v285_v40 = vld [vmem:[#allocation2 + $0xa0] sm:$0xff] }
  0x57   : > { %698 = vmatmul.mubr.bf16.gmra.mrb[24].mxu0 %v1339_v42  ;;  %762 = vmatmul.mubr.bf16.gmra.mrb[24].mxu1 %v1340_v43 }
  0x58   : > { %705 = vmatprep.mubr.bf16.mxu0 %v1341_v44  ;;  %769 = vmatprep.mubr.bf16.mxu1 %v1343_v45 }
  0x5f   : > { %706 = vmatmul.mubr.bf16.gmra.mrb[28].mxu0 %v1345_v46  ;;  %770 = vmatmul.mubr.bf16.gmra.mrb[28].mxu1 %v1346_v47 }
  0xfa   : > { %v1146_v49 = vpop.f32.mrb[0].mxu0  ;;  %v1194_v50 = vpop.f32.mrb[0].mxu1 }
  0xfb   : > { %v1147_v52 = vpop.f32.mrb[1].mxu0  ;;  %v1195_v54 = vpop.f32.mrb[1].mxu1 }
  0xfc   : > { %v1148_v55 = vadd.f32 %v1147_v52, %v1146_v49  ;;  %v1196_v56 = vadd.f32 %v1195_v54, %v1194_v50  ;;  %v1149_v57 = vpop.f32.mrb[2].mxu0  ;;  %v1197_v58 = vpop.f32.mrb[2].mxu1  ;;  %v286_v50 = vld [vmem:[#allocation2 + $0xa8] sm:$0xff] }
  0xfd   : > { %v1150_v60 = vpop.f32.mrb[3].mxu0  ;;  %v1198_v62 = vpop.f32.mrb[3].mxu1 }
  0xfe   : > { %v778_v63 = vadd.f32 %v1148_v55, %v265_v51  ;;  %v794_v0 = vadd.f32 %v1196_v56, %v281_v53  ;;  %v1151_v1 = vadd.f32 %v1150_v60, %v1149_v57  ;;  %v1199_v2 = vadd.f32 %v1198_v62, %v1197_v58 }
 0x100   : > { %811 = vst.msk [vmem:[#allocation2] sm:$0xff] %vm232_vm0, %v778_v63  ;;  %827 = vst.msk [vmem:[#allocation2 + $0x80] sm:$0xff] %vm232_vm0, %v794_v0  ;;  %v779_v3 = vadd.f32 %v1151_v1, %v266_v59  ;;  %v795_v4 = vadd.f32 %v1199_v2, %v282_v61 }
 0x102   : > { %812 = vst.msk [vmem:[#allocation2 + $0x8] sm:$0xff] %vm232_vm0, %v779_v3  ;;  %828 = vst.msk [vmem:[#allocation2 + $0x88] sm:$0xff] %vm232_vm0, %v795_v4  ;;  %v1152_v5 = vpop.f32.mrb[4].mxu0  ;;  %v1200_v6 = vpop.f32.mrb[4].mxu1 }
 0x103   : > { %v1153_v8 = vpop.f32.mrb[5].mxu0  ;;  %v1201_v10 = vpop.f32.mrb[5].mxu1 }
 0x104   : > { %v1154_v11 = vadd.f32 %v1153_v8, %v1152_v5  ;;  %v1202_v12 = vadd.f32 %v1201_v10, %v1200_v6  ;;  %v1155_v13 = vpop.f32.mrb[6].mxu0  ;;  %v1203_v14 = vpop.f32.mrb[6].mxu1  ;;  %v271_v6 = vld [vmem:[#allocation2 + $0x30] sm:$0xff] }
 0x105   : > { %v1156_v17 = vpop.f32.mrb[7].mxu0  ;;  %v1204_v19 = vpop.f32.mrb[7].mxu1  ;;  %v287_v8 = vld [vmem:[#allocation2 + $0xb0] sm:$0xff] }
 0x106   : > { %v780_v20 = vadd.f32 %v1154_v11, %v267_v7  ;;  %v796_v21 = vadd.f32 %v1202_v12, %v283_v9  ;;  %v1157_v22 = vadd.f32 %v1156_v17, %v1155_v13  ;;  %v1205_v23 = vadd.f32 %v1204_v19, %v1203_v14  ;;  %v272_v17 = vld [vmem:[#allocation2 + $0x38] sm:$0xff] }
 0x107   : > { %v846_v24 = vld [vmem:[#allocation2] sm:$0xff]  ;;  %v288_v19 = vld [vmem:[#allocation2 + $0xb8] sm:$0xff] }
 0x108   : > { %v862_v25 = vld [vmem:[#allocation2 + $0x80] sm:$0xff]  ;;  %v885_v26 = vadd.f32 %v1539_v15, %v846_v24  ;;  %813 = vst.msk [vmem:[#allocation2 + $0x10] sm:$0xff] %vm232_vm0, %v780_v20  ;;  %829 = vst.msk [vmem:[#allocation2 + $0x90] sm:$0xff] %vm232_vm0, %v796_v21  ;;  %v781_v28 = vadd.f32 %v1157_v22, %v268_v16  ;;  %v797_v29 = vadd.f32 %v1205_v23, %v284_v18 }
 0x109   : > { %v901_v27 = vadd.f32 %v1539_v15, %v862_v25  ;;  %v847_v30 = vld [vmem:[#allocation2 + $0x8] sm:$0xff] }
 0x10a   : > { %v863_v31 = vld [vmem:[#allocation2 + $0x88] sm:$0xff]  ;;  %v917_v32 = vmax.f32 %v885_v26, 0.0  ;;  %v886_v34 = vadd.f32 %v1539_v15, %v847_v30  ;;  %814 = vst.msk [vmem:[#allocation2 + $0x18] sm:$0xff] %vm232_vm0, %v781_v28  ;;  %830 = vst.msk [vmem:[#allocation2 + $0x98] sm:$0xff] %vm232_vm0, %v797_v29  ;;  %v1158_v36 = vpop.f32.mrb[8].mxu0  ;;  %v1206_v37 = vpop.f32.mrb[8].mxu1 }
 0x10b   : > { %v933_v33 = vmax.f32 %v901_v27, 0.0  ;;  %v902_v35 = vadd.f32 %v1539_v15, %v863_v31  ;;  %v1159_v39 = vpop.f32.mrb[9].mxu0  ;;  %v1207_v41 = vpop.f32.mrb[9].mxu1 }
 0x10c   : > { %949 = vst.msk [vmem:[%s1550_s8] sm:$0xff] %vm232_vm0, %v917_v32  ;;  %v918_v42 = vmax.f32 %v886_v34, 0.0  ;;  %v1160_v44 = vadd.f32 %v1159_v39, %v1158_v36  ;;  %v1208_v45 = vadd.f32 %v1207_v41, %v1206_v37  ;;  %v1161_v46 = vpop.f32.mrb[10].mxu0  ;;  %v1209_v47 = vpop.f32.mrb[10].mxu1  ;;  %v273_v39 = vld [vmem:[#allocation2 + $0x40] sm:$0xff] }
 0x10d   : > { %965 = vst.msk [vmem:[%s1550_s8 + $0x80] sm:$0xff] %vm232_vm0, %v933_v33  ;;  %v934_v43 = vmax.f32 %v902_v35, 0.0  ;;  %v1162_v49 = vpop.f32.mrb[11].mxu0  ;;  %v1210_v51 = vpop.f32.mrb[11].mxu1  ;;  %v289_v41 = vld [vmem:[#allocation2 + $0xc0] sm:$0xff] }
 0x10e   : > { %950 = vst.msk [vmem:[%s1550_s8 + $0x8] sm:$0xff] %vm232_vm0, %v918_v42  ;;  %v782_v52 = vadd.f32 %v1160_v44, %v269_v38  ;;  %v798_v53 = vadd.f32 %v1208_v45, %v285_v40  ;;  %v1163_v54 = vadd.f32 %v1162_v49, %v1161_v46  ;;  %v1211_v55 = vadd.f32 %v1210_v51, %v1209_v47  ;;  %v274_v49 = vld [vmem:[#allocation2 + $0x48] sm:$0xff] }
 0x10f   : > { %966 = vst.msk [vmem:[%s1550_s8 + $0x88] sm:$0xff] %vm232_vm0, %v934_v43  ;;  %v848_v56 = vld [vmem:[#allocation2 + $0x10] sm:$0xff]  ;;  %v290_v51 = vld [vmem:[#allocation2 + $0xc8] sm:$0xff] }
 0x110   : > { %v864_v57 = vld [vmem:[#allocation2 + $0x90] sm:$0xff]  ;;  %v887_v58 = vadd.f32 %v1539_v15, %v848_v56  ;;  %815 = vst.msk [vmem:[#allocation2 + $0x20] sm:$0xff] %vm232_vm0, %v782_v52  ;;  %831 = vst.msk [vmem:[#allocation2 + $0xa0] sm:$0xff] %vm232_vm0, %v798_v53  ;;  %v783_v60 = vadd.f32 %v1163_v54, %v270_v48  ;;  %v799_v61 = vadd.f32 %v1211_v55, %v286_v50 }
 0x111   : > { %v903_v59 = vadd.f32 %v1539_v15, %v864_v57  ;;  %v849_v62 = vld [vmem:[#allocation2 + $0x18] sm:$0xff] }
 0x112   : > { %v865_v63 = vld [vmem:[#allocation2 + $0x98] sm:$0xff]  ;;  %v919_v0 = vmax.f32 %v887_v58, 0.0  ;;  %v888_v2 = vadd.f32 %v1539_v15, %v849_v62  ;;  %816 = vst.msk [vmem:[#allocation2 + $0x28] sm:$0xff] %vm232_vm0, %v783_v60  ;;  %832 = vst.msk [vmem:[#allocation2 + $0xa8] sm:$0xff] %vm232_vm0, %v799_v61  ;;  %v1164_v4 = vpop.f32.mrb[12].mxu0  ;;  %v1212_v5 = vpop.f32.mrb[12].mxu1 }
 0x113   : > { %v935_v1 = vmax.f32 %v903_v59, 0.0  ;;  %v904_v3 = vadd.f32 %v1539_v15, %v865_v63  ;;  %v1165_v7 = vpop.f32.mrb[13].mxu0  ;;  %v1213_v9 = vpop.f32.mrb[13].mxu1 }
 0x114   : > { %951 = vst.msk [vmem:[%s1550_s8 + $0x10] sm:$0xff] %vm232_vm0, %v919_v0  ;;  %v920_v10 = vmax.f32 %v888_v2, 0.0  ;;  %v1166_v12 = vadd.f32 %v1165_v7, %v1164_v4  ;;  %v1214_v13 = vadd.f32 %v1213_v9, %v1212_v5  ;;  %v1167_v14 = vpop.f32.mrb[14].mxu0  ;;  %v1215_v16 = vpop.f32.mrb[14].mxu1  ;;  %v275_v7 = vld [vmem:[#allocation2 + $0x50] sm:$0xff] }
 0x115   : > { %967 = vst.msk [vmem:[%s1550_s8 + $0x90] sm:$0xff] %vm232_vm0, %v935_v1  ;;  %v936_v11 = vmax.f32 %v904_v3, 0.0  ;;  %v1168_v18 = vpop.f32.mrb[15].mxu0  ;;  %v1216_v20 = vpop.f32.mrb[15].mxu1  ;;  %v291_v9 = vld [vmem:[#allocation2 + $0xd0] sm:$0xff] }
 0x116   : > { %952 = vst.msk [vmem:[%s1550_s8 + $0x18] sm:$0xff] %vm232_vm0, %v920_v10  ;;  %v784_v21 = vadd.f32 %v1166_v12, %v271_v6  ;;  %v800_v22 = vadd.f32 %v1214_v13, %v287_v8  ;;  %v1169_v23 = vadd.f32 %v1168_v18, %v1167_v14  ;;  %v1217_v24 = vadd.f32 %v1216_v20, %v1215_v16  ;;  %v276_v18 = vld [vmem:[#allocation2 + $0x58] sm:$0xff] }
 0x117   : > { %968 = vst.msk [vmem:[%s1550_s8 + $0x98] sm:$0xff] %vm232_vm0, %v936_v11  ;;  %v850_v25 = vld [vmem:[#allocation2 + $0x20] sm:$0xff]  ;;  %v292_v20 = vld [vmem:[#allocation2 + $0xd8] sm:$0xff] }
 0x118   : > { %v866_v26 = vld [vmem:[#allocation2 + $0xa0] sm:$0xff]  ;;  %v889_v27 = vadd.f32 %v1539_v15, %v850_v25  ;;  %817 = vst.msk [vmem:[#allocation2 + $0x30] sm:$0xff] %vm232_vm0, %v784_v21  ;;  %833 = vst.msk [vmem:[#allocation2 + $0xb0] sm:$0xff] %vm232_vm0, %v800_v22  ;;  %v785_v29 = vadd.f32 %v1169_v23, %v272_v17  ;;  %v801_v30 = vadd.f32 %v1217_v24, %v288_v19 }
 0x119   : > { %v905_v28 = vadd.f32 %v1539_v15, %v866_v26  ;;  %v851_v31 = vld [vmem:[#allocation2 + $0x28] sm:$0xff] }
 0x11a   : > { %v867_v32 = vld [vmem:[#allocation2 + $0xa8] sm:$0xff]  ;;  %v921_v33 = vmax.f32 %v889_v27, 0.0  ;;  %v890_v35 = vadd.f32 %v1539_v15, %v851_v31  ;;  %818 = vst.msk [vmem:[#allocation2 + $0x38] sm:$0xff] %vm232_vm0, %v785_v29  ;;  %834 = vst.msk [vmem:[#allocation2 + $0xb8] sm:$0xff] %vm232_vm0, %v801_v30  ;;  %v1170_v37 = vpop.f32.mrb[16].mxu0  ;;  %v1218_v38 = vpop.f32.mrb[16].mxu1 }
 0x11b   : > { %v937_v34 = vmax.f32 %v905_v28, 0.0  ;;  %v906_v36 = vadd.f32 %v1539_v15, %v867_v32  ;;  %v1171_v40 = vpop.f32.mrb[17].mxu0  ;;  %v1219_v42 = vpop.f32.mrb[17].mxu1 }
 0x11c   : > { %953 = vst.msk [vmem:[%s1550_s8 + $0x20] sm:$0xff] %vm232_vm0, %v921_v33  ;;  %v922_v43 = vmax.f32 %v890_v35, 0.0  ;;  %v1172_v45 = vadd.f32 %v1171_v40, %v1170_v37  ;;  %v1220_v46 = vadd.f32 %v1219_v42, %v1218_v38  ;;  %v1173_v47 = vpop.f32.mrb[18].mxu0  ;;  %v1221_v48 = vpop.f32.mrb[18].mxu1  ;;  %v277_v40 = vld [vmem:[#allocation2 + $0x60] sm:$0xff] }
 0x11d   : > { %969 = vst.msk [vmem:[%s1550_s8 + $0xa0] sm:$0xff] %vm232_vm0, %v937_v34  ;;  %v938_v44 = vmax.f32 %v906_v36, 0.0  ;;  %v1174_v50 = vpop.f32.mrb[19].mxu0  ;;  %v1222_v52 = vpop.f32.mrb[19].mxu1  ;;  %v293_v42 = vld [vmem:[#allocation2 + $0xe0] sm:$0xff] }
 0x11e   : > { %954 = vst.msk [vmem:[%s1550_s8 + $0x28] sm:$0xff] %vm232_vm0, %v922_v43  ;;  %v786_v53 = vadd.f32 %v1172_v45, %v273_v39  ;;  %v802_v54 = vadd.f32 %v1220_v46, %v289_v41  ;;  %v1175_v55 = vadd.f32 %v1174_v50, %v1173_v47  ;;  %v1223_v56 = vadd.f32 %v1222_v52, %v1221_v48  ;;  %v278_v50 = vld [vmem:[#allocation2 + $0x68] sm:$0xff] }
 0x11f   : > { %970 = vst.msk [vmem:[%s1550_s8 + $0xa8] sm:$0xff] %vm232_vm0, %v938_v44  ;;  %v852_v57 = vld [vmem:[#allocation2 + $0x30] sm:$0xff]  ;;  %v294_v52 = vld [vmem:[#allocation2 + $0xe8] sm:$0xff] }
 0x120   : > { %v868_v58 = vld [vmem:[#allocation2 + $0xb0] sm:$0xff]  ;;  %v891_v59 = vadd.f32 %v1539_v15, %v852_v57  ;;  %819 = vst.msk [vmem:[#allocation2 + $0x40] sm:$0xff] %vm232_vm0, %v786_v53  ;;  %835 = vst.msk [vmem:[#allocation2 + $0xc0] sm:$0xff] %vm232_vm0, %v802_v54  ;;  %v787_v61 = vadd.f32 %v1175_v55, %v274_v49  ;;  %v803_v62 = vadd.f32 %v1223_v56, %v290_v51 }
 0x121   : > { %v907_v60 = vadd.f32 %v1539_v15, %v868_v58  ;;  %v853_v63 = vld [vmem:[#allocation2 + $0x38] sm:$0xff] }
 0x122   : > { %v869_v0 = vld [vmem:[#allocation2 + $0xb8] sm:$0xff]  ;;  %v923_v1 = vmax.f32 %v891_v59, 0.0  ;;  %v892_v3 = vadd.f32 %v1539_v15, %v853_v63  ;;  %820 = vst.msk [vmem:[#allocation2 + $0x48] sm:$0xff] %vm232_vm0, %v787_v61  ;;  %836 = vst.msk [vmem:[#allocation2 + $0xc8] sm:$0xff] %vm232_vm0, %v803_v62  ;;  %v1176_v5 = vpop.f32.mrb[20].mxu0  ;;  %v1224_v6 = vpop.f32.mrb[20].mxu1 }
 0x123   : > { %v939_v2 = vmax.f32 %v907_v60, 0.0  ;;  %v908_v4 = vadd.f32 %v1539_v15, %v869_v0  ;;  %v1177_v8 = vpop.f32.mrb[21].mxu0  ;;  %v1225_v10 = vpop.f32.mrb[21].mxu1 }
 0x124   : > { %955 = vst.msk [vmem:[%s1550_s8 + $0x30] sm:$0xff] %vm232_vm0, %v923_v1  ;;  %v924_v11 = vmax.f32 %v892_v3, 0.0  ;;  %v1178_v13 = vadd.f32 %v1177_v8, %v1176_v5  ;;  %v1226_v14 = vadd.f32 %v1225_v10, %v1224_v6  ;;  %v1179_v16 = vpop.f32.mrb[22].mxu0  ;;  %v1227_v17 = vpop.f32.mrb[22].mxu1  ;;  %v279_v8 = vld [vmem:[#allocation2 + $0x70] sm:$0xff] }
 0x125   : > { %971 = vst.msk [vmem:[%s1550_s8 + $0xb0] sm:$0xff] %vm232_vm0, %v939_v2  ;;  %v940_v12 = vmax.f32 %v908_v4, 0.0  ;;  %v1180_v19 = vpop.f32.mrb[23].mxu0  ;;  %v1228_v21 = vpop.f32.mrb[23].mxu1  ;;  %v295_v10 = vld [vmem:[#allocation2 + $0xf0] sm:$0xff] }
 0x126   : > { %956 = vst.msk [vmem:[%s1550_s8 + $0x38] sm:$0xff] %vm232_vm0, %v924_v11  ;;  %v788_v22 = vadd.f32 %v1178_v13, %v275_v7  ;;  %v804_v23 = vadd.f32 %v1226_v14, %v291_v9  ;;  %v1181_v24 = vadd.f32 %v1180_v19, %v1179_v16  ;;  %v1229_v25 = vadd.f32 %v1228_v21, %v1227_v17  ;;  %v280_v19 = vld [vmem:[#allocation2 + $0x78] sm:$0xff] }
 0x127   : > { %972 = vst.msk [vmem:[%s1550_s8 + $0xb8] sm:$0xff] %vm232_vm0, %v940_v12  ;;  %v854_v26 = vld [vmem:[#allocation2 + $0x40] sm:$0xff]  ;;  %v296_v21 = vld [vmem:[#allocation2 + $0xf8] sm:$0xff] }
 0x128   : > { %v870_v27 = vld [vmem:[#allocation2 + $0xc0] sm:$0xff]  ;;  %v893_v28 = vadd.f32 %v1539_v15, %v854_v26  ;;  %821 = vst.msk [vmem:[#allocation2 + $0x50] sm:$0xff] %vm232_vm0, %v788_v22  ;;  %837 = vst.msk [vmem:[#allocation2 + $0xd0] sm:$0xff] %vm232_vm0, %v804_v23  ;;  %v789_v30 = vadd.f32 %v1181_v24, %v276_v18  ;;  %v805_v31 = vadd.f32 %v1229_v25, %v292_v20 }
 0x129   : > { %v909_v29 = vadd.f32 %v1539_v15, %v870_v27  ;;  %v855_v32 = vld [vmem:[#allocation2 + $0x48] sm:$0xff] }
 0x12a   : > { %v871_v33 = vld [vmem:[#allocation2 + $0xc8] sm:$0xff]  ;;  %v925_v34 = vmax.f32 %v893_v28, 0.0  ;;  %v894_v36 = vadd.f32 %v1539_v15, %v855_v32  ;;  %822 = vst.msk [vmem:[#allocation2 + $0x58] sm:$0xff] %vm232_vm0, %v789_v30  ;;  %838 = vst.msk [vmem:[#allocation2 + $0xd8] sm:$0xff] %vm232_vm0, %v805_v31  ;;  %v1182_v38 = vpop.f32.mrb[24].mxu0  ;;  %v1230_v39 = vpop.f32.mrb[24].mxu1 }
 0x12b   : > { %v941_v35 = vmax.f32 %v909_v29, 0.0  ;;  %v910_v37 = vadd.f32 %v1539_v15, %v871_v33  ;;  %v1183_v41 = vpop.f32.mrb[25].mxu0  ;;  %v1231_v43 = vpop.f32.mrb[25].mxu1 }
 0x12c   : > { %957 = vst.msk [vmem:[%s1550_s8 + $0x40] sm:$0xff] %vm232_vm0, %v925_v34  ;;  %v926_v44 = vmax.f32 %v894_v36, 0.0  ;;  %v1184_v46 = vadd.f32 %v1183_v41, %v1182_v38  ;;  %v1232_v47 = vadd.f32 %v1231_v43, %v1230_v39  ;;  %v1185_v48 = vpop.f32.mrb[26].mxu0  ;;  %v1233_v49 = vpop.f32.mrb[26].mxu1 }
 0x12d   : > { %973 = vst.msk [vmem:[%s1550_s8 + $0xc0] sm:$0xff] %vm232_vm0, %v941_v35  ;;  %v942_v45 = vmax.f32 %v910_v37, 0.0  ;;  %v1186_v51 = vpop.f32.mrb[27].mxu0  ;;  %v1234_v53 = vpop.f32.mrb[27].mxu1 }
 0x12e   : > { %958 = vst.msk [vmem:[%s1550_s8 + $0x48] sm:$0xff] %vm232_vm0, %v926_v44  ;;  %v790_v54 = vadd.f32 %v1184_v46, %v277_v40  ;;  %v806_v55 = vadd.f32 %v1232_v47, %v293_v42  ;;  %v1187_v56 = vadd.f32 %v1186_v51, %v1185_v48  ;;  %v1235_v57 = vadd.f32 %v1234_v53, %v1233_v49 }
 0x12f   : > { %974 = vst.msk [vmem:[%s1550_s8 + $0xc8] sm:$0xff] %vm232_vm0, %v942_v45  ;;  %v856_v58 = vld [vmem:[#allocation2 + $0x50] sm:$0xff] }
 0x130   : > { %v872_v59 = vld [vmem:[#allocation2 + $0xd0] sm:$0xff]  ;;  %v895_v60 = vadd.f32 %v1539_v15, %v856_v58  ;;  %823 = vst.msk [vmem:[#allocation2 + $0x60] sm:$0xff] %vm232_vm0, %v790_v54  ;;  %839 = vst.msk [vmem:[#allocation2 + $0xe0] sm:$0xff] %vm232_vm0, %v806_v55  ;;  %v791_v62 = vadd.f32 %v1187_v56, %v278_v50  ;;  %v807_v63 = vadd.f32 %v1235_v57, %v294_v52 }
 0x131   : > { %v911_v61 = vadd.f32 %v1539_v15, %v872_v59  ;;  %v857_v0 = vld [vmem:[#allocation2 + $0x58] sm:$0xff] }
 0x132   : > { %v873_v1 = vld [vmem:[#allocation2 + $0xd8] sm:$0xff]  ;;  %v927_v2 = vmax.f32 %v895_v60, 0.0  ;;  %v896_v4 = vadd.f32 %v1539_v15, %v857_v0  ;;  %824 = vst.msk [vmem:[#allocation2 + $0x68] sm:$0xff] %vm232_vm0, %v791_v62  ;;  %840 = vst.msk [vmem:[#allocation2 + $0xe8] sm:$0xff] %vm232_vm0, %v807_v63  ;;  %v1188_v6 = vpop.f32.mrb[28].mxu0  ;;  %v1236_v7 = vpop.f32.mrb[28].mxu1 }
 0x133   : > { %v943_v3 = vmax.f32 %v911_v61, 0.0  ;;  %v912_v5 = vadd.f32 %v1539_v15, %v873_v1  ;;  %v1189_v9 = vpop.f32.mrb[29].mxu0  ;;  %v1237_v11 = vpop.f32.mrb[29].mxu1 }
 0x134   : > { %959 = vst.msk [vmem:[%s1550_s8 + $0x50] sm:$0xff] %vm232_vm0, %v927_v2  ;;  %v928_v12 = vmax.f32 %v896_v4, 0.0  ;;  %v1190_v14 = vadd.f32 %v1189_v9, %v1188_v6  ;;  %v1238_v16 = vadd.f32 %v1237_v11, %v1236_v7  ;;  %v1191_v17 = vpop.f32.mrb[30].mxu0  ;;  %v1239_v18 = vpop.f32.mrb[30].mxu1 }
 0x135   : > { %975 = vst.msk [vmem:[%s1550_s8 + $0xd0] sm:$0xff] %vm232_vm0, %v943_v3  ;;  %v944_v13 = vmax.f32 %v912_v5, 0.0  ;;  %v1192_v20 = vpop.f32.mrb[31].mxu0  ;;  %v1240_v22 = vpop.f32.mrb[31].mxu1 }
 0x136   : > { %960 = vst.msk [vmem:[%s1550_s8 + $0x58] sm:$0xff] %vm232_vm0, %v928_v12  ;;  %v792_v23 = vadd.f32 %v1190_v14, %v279_v8  ;;  %v808_v24 = vadd.f32 %v1238_v16, %v295_v10  ;;  %v1193_v25 = vadd.f32 %v1192_v20, %v1191_v17  ;;  %v1241_v26 = vadd.f32 %v1240_v22, %v1239_v18 }
 0x137   : > { %976 = vst.msk [vmem:[%s1550_s8 + $0xd8] sm:$0xff] %vm232_vm0, %v944_v13  ;;  %v858_v27 = vld [vmem:[#allocation2 + $0x60] sm:$0xff] }
 0x138   : > { %v874_v28 = vld [vmem:[#allocation2 + $0xe0] sm:$0xff]  ;;  %v897_v29 = vadd.f32 %v1539_v15, %v858_v27  ;;  %825 = vst.msk [vmem:[#allocation2 + $0x70] sm:$0xff] %vm232_vm0, %v792_v23  ;;  %841 = vst.msk [vmem:[#allocation2 + $0xf0] sm:$0xff] %vm232_vm0, %v808_v24  ;;  %v793_v31 = vadd.f32 %v1193_v25, %v280_v19  ;;  %v809_v32 = vadd.f32 %v1241_v26, %v296_v21 }
 0x139   : > { %v913_v30 = vadd.f32 %v1539_v15, %v874_v28  ;;  %v859_v33 = vld [vmem:[#allocation2 + $0x68] sm:$0xff] }
 0x13a   : > { %v875_v34 = vld [vmem:[#allocation2 + $0xe8] sm:$0xff]  ;;  %v929_v35 = vmax.f32 %v897_v29, 0.0  ;;  %v898_v37 = vadd.f32 %v1539_v15, %v859_v33  ;;  %826 = vst.msk [vmem:[#allocation2 + $0x78] sm:$0xff] %vm232_vm0, %v793_v31  ;;  %842 = vst.msk [vmem:[#allocation2 + $0xf8] sm:$0xff] %vm232_vm0, %v809_v32 }
 0x13b   : > { %v945_v36 = vmax.f32 %v913_v30, 0.0  ;;  %v914_v38 = vadd.f32 %v1539_v15, %v875_v34 }
 0x13c   : > { %961 = vst.msk [vmem:[%s1550_s8 + $0x60] sm:$0xff] %vm232_vm0, %v929_v35  ;;  %v930_v39 = vmax.f32 %v898_v37, 0.0 }
 0x13d   : > { %977 = vst.msk [vmem:[%s1550_s8 + $0xe0] sm:$0xff] %vm232_vm0, %v945_v36  ;;  %v946_v40 = vmax.f32 %v914_v38, 0.0 }
 0x13e   : > { %962 = vst.msk [vmem:[%s1550_s8 + $0x68] sm:$0xff] %vm232_vm0, %v930_v39 }
 0x13f   : > { %978 = vst.msk [vmem:[%s1550_s8 + $0xe8] sm:$0xff] %vm232_vm0, %v946_v40  ;;  %v860_v41 = vld [vmem:[#allocation2 + $0x70] sm:$0xff] }
 0x140   : > { %v876_v42 = vld [vmem:[#allocation2 + $0xf0] sm:$0xff]  ;;  %v899_v43 = vadd.f32 %v1539_v15, %v860_v41 }
 0x141   : > { %v915_v44 = vadd.f32 %v1539_v15, %v876_v42  ;;  %v861_v45 = vld [vmem:[#allocation2 + $0x78] sm:$0xff] }
 0x142   : > { %v877_v46 = vld [vmem:[#allocation2 + $0xf8] sm:$0xff]  ;;  %v931_v47 = vmax.f32 %v899_v43, 0.0  ;;  %v900_v49 = vadd.f32 %v1539_v15, %v861_v45 }
 0x143   : > { %v947_v48 = vmax.f32 %v915_v44, 0.0  ;;  %v916_v50 = vadd.f32 %v1539_v15, %v877_v46 }
 0x144   : > { %963 = vst.msk [vmem:[%s1550_s8 + $0x70] sm:$0xff] %vm232_vm0, %v931_v47  ;;  %v932_v51 = vmax.f32 %v900_v49, 0.0 }
 0x145   : > { %979 = vst.msk [vmem:[%s1550_s8 + $0xf0] sm:$0xff] %vm232_vm0, %v947_v48  ;;  %v948_v52 = vmax.f32 %v916_v50, 0.0 }
 0x146   : > { %964 = vst.msk [vmem:[%s1550_s8 + $0x78] sm:$0xff] %vm232_vm0, %v932_v51 }
 0x147   : > { %980 = vst.msk [vmem:[%s1550_s8 + $0xf8] sm:$0xff] %vm232_vm0, %v948_v52 }
 0x148 PF: > { %s13_s14 = sadd.s32 1, %s1369_s14   ;;  %s1685_s12 = smov %s1365_s13 }
 0x149   : > { %p10_p5 = scmp.ge.s32.totalorder %s13_s14, 4   ;;  %s1686_s13 = smov %s1688_s15 }
 0x14b   :  { %12 = sbr.rel (!%p10_p5) target bundleno = 2 (0x2), region = 73 }

// kernel: _forward.42
= control target key start
LH: loop header
LB: loop body
LE: loop exit
PB: predicated region body
PF: predicated region fallthrough
CT: control target
= control target key end

     0   :  { %s980_s12 = smov 0   ;;  %s982_s13 = smov 0   ;;  %s1184_s0 = inlined_call_operand.vmem [shape: bf16[128,640], index: 0, kind: input, shape index: {}]   ;;  %s1185_s1 = inlined_call_operand.vmem [shape: bf16[640,64], index: 1, kind: input, shape index: {}]   ;;  %s1186_s2 = inlined_call_operand.vmem [shape: f32[1,64], index: 2, kind: input, shape index: {}]   ;;  %s1187_s3 = inlined_call_operand.vmem [shape: f32[128,64], index: 3, kind: output, shape index: {}]  }
   0x1   :  { %s984_s14 = smov 0   ;;  %s986_s15 = smov 0  }
   0x2   :  { %s988_s16 = smov 0  }
   0x3 LB: > { %s22_s17 = sadd.s32 1, %s953_s15  ;;  %p41_p1 = scmp.ne.s32.totalorder %s945_s13, %s941_s12  ;;  %s957_s16 = sphi %s988_s16, %s13_s16   ;;  %s953_s15 = sphi %s986_s15, %s1191_s15   ;;  %s949_s14 = sphi %s984_s14, %s1190_s14   ;;  %s945_s13 = sphi %s982_s13, %s1189_s13   ;;  %s941_s12 = sphi %s980_s12, %s1188_s12  }
   0x4   : > { %p23_p0 = scmp.ge.s32.totalorder %s22_s17, 5  ;;  %p42_p2 = scmp.eq.s32.totalorder %s957_s16, 0 }
   0x5   : > { %s34_s19 = sadd.s32 1, %s945_s13  ;;  %p768_p5 = scmp.ge.s32.totalorder %s957_s16, 5 }
   0x6   : > { %s1193_s17 = smov (%p23_p0, %s22_s17), 0  ;;  %p43_p3 = por %p42_p2, %p41_p1 }
   0x7   : > { %s30_s18 = ssub.s32 %s953_s15, %s1193_s17  ;;  %143 = sbr.rel (%p768_p5) target bundleno = 28 (0x1c), region = 20 }
   0x8   : > { %p32_p4 = scmp.eq.s32.totalorder %s30_s18, 0 }
   0xa   : > { %s1015_s20 = scalar_select %p32_p4, %s945_s13, %s34_s19  }
   0xe   : > { %146 = sbr.rel (!%p43_p3) target bundleno = 28 (0x1c), region = 24  ;;  %s148_s21 = sand.u32 (%p43_p3), 1, %s945_s13  }
   0xf   : > { %s770_s22 = sshll.u32 (%p43_p3), %s953_s15, 2  ;;  %s769_s23 = sshll.u32 (%p43_p3), %s148_s21, 6 }
  0x10   : > { %s1023_s26 = scalar_lea.vmem (%p43_p3), %s1184_s0, %s770_s22  ;;  %s150_s27 = scalar_lea.vmem (%p43_p3), [#allocation3], %s769_s23 }
  0x11   : > { %v171_v0 = vld [vmem:[%s1023_s26] sm:$0xf] (%p43_p3)  ;;  %v173_v1 = vld [vmem:[%s1023_s26 + $0x14] sm:$0xf] (%p43_p3)  ;;  %v175_v2 = vld [vmem:[%s1023_s26 + $0x28] sm:$0xf] (%p43_p3) }
  0x12   : > { %172 = vst [vmem:[%s150_s27] sm:$0xf] (%p43_p3), %v171_v0  ;;  %174 = vst [vmem:[%s150_s27 + $0x4] sm:$0xf] (%p43_p3), %v173_v1  ;;  %v177_v3 = vld [vmem:[%s1023_s26 + $0x3c] sm:$0xf] (%p43_p3) }
  0x13   : > { %v179_v4 = vld [vmem:[%s1023_s26 + $0x50] sm:$0xf] (%p43_p3)  ;;  %176 = vst [vmem:[%s150_s27 + $0x8] sm:$0xf] (%p43_p3), %v175_v2  ;;  %178 = vst [vmem:[%s150_s27 + $0xc] sm:$0xf] (%p43_p3), %v177_v3 }
  0x14   : > { %180 = vst [vmem:[%s150_s27 + $0x10] sm:$0xf] (%p43_p3), %v179_v4  ;;  %v181_v5 = vld [vmem:[%s1023_s26 + $0x64] sm:$0xf] (%p43_p3)  ;;  %v183_v6 = vld [vmem:[%s1023_s26 + $0x78] sm:$0xf] (%p43_p3) }
  0x15   : > { %v185_v7 = vld [vmem:[%s1023_s26 + $0x8c] sm:$0xf]  ;;  %182 = vst [vmem:[%s150_s27 + $0x14] sm:$0xf] %v181_v5  ;;  %184 = vst [vmem:[%s150_s27 + $0x18] sm:$0xf] %v183_v6 }
  0x16   : > { %186 = vst [vmem:[%s150_s27 + $0x1c] sm:$0xf] %v185_v7  ;;  %v187_v8 = vld [vmem:[%s1023_s26 + $0xa0] sm:$0xf]  ;;  %v189_v9 = vld [vmem:[%s1023_s26 + $0xb4] sm:$0xf] }
  0x17   : > { %v191_v10 = vld [vmem:[%s1023_s26 + $0xc8] sm:$0xf]  ;;  %188 = vst [vmem:[%s150_s27 + $0x20] sm:$0xf] %v187_v8  ;;  %190 = vst [vmem:[%s150_s27 + $0x24] sm:$0xf] %v189_v9 }
  0x18   : > { %192 = vst [vmem:[%s150_s27 + $0x28] sm:$0xf] %v191_v10  ;;  %v193_v11 = vld [vmem:[%s1023_s26 + $0xdc] sm:$0xf]  ;;  %v195_v12 = vld [vmem:[%s1023_s26 + $0xf0] sm:$0xf] }
  0x19   : > { %v197_v13 = vld [vmem:[%s1023_s26 + $0x104] sm:$0xf]  ;;  %194 = vst [vmem:[%s150_s27 + $0x2c] sm:$0xf] %v193_v11  ;;  %196 = vst [vmem:[%s150_s27 + $0x30] sm:$0xf] %v195_v12 }
  0x1a   : > { %198 = vst [vmem:[%s150_s27 + $0x34] sm:$0xf] %v197_v13  ;;  %v199_v14 = vld [vmem:[%s1023_s26 + $0x118] sm:$0xf]  ;;  %v201_v15 = vld [vmem:[%s1023_s26 + $0x12c] sm:$0xf] }
  0x1b   : > { %200 = vst [vmem:[%s150_s27 + $0x38] sm:$0xf] %v199_v14  ;;  %202 = vst [vmem:[%s150_s27 + $0x3c] sm:$0xf] %v201_v15 }
  0x1c PF: > { %p771_p6 = scmp.ge.s32.totalorder %s957_s16, 1  ;;  %p265_p7 = scmp.lt.s32.totalorder %s957_s16, 6 }
  0x1e   : > { %p266_p8 = pnand %p771_p6, %p265_p7 }
  0x1f   : > { %s272_s28 = sand.u32 (!%p266_p8), 1, %s941_s12   ;;  %s773_s29 = sshll.u32 (!%p266_p8), %s949_s14, 4 }
  0x20   : > { %269 = sbr.rel (%p266_p8) target bundleno = 321 (0x141), region = 69  ;;  %s772_s30 = sshll.u32 (!%p266_p8), %s272_s28, 6 }
  0x21   : > { %p302_p9 = scmp.lt.s32.totalorder (!%p266_p8), %s773_s29, 79  ;;  %s1050_s8 = scalar_lea.vmem (!%p266_p8), [#allocation3], %s772_s30 }
  0x22   : > { %p775_p10 = scmp.ne.s32.totalorder (!%p266_p8), %s949_s14, 0 }
  0x27   : > { %s1195_s29 = smov (!%p302_p9, %s773_s29), 79  ;;  %317 = sbr.rel (%p775_p10) target bundleno = 49 (0x31), region = 77 }
  0x28   : > { %s774_s4 = sshll.u32 %s1195_s29, 2  ;;  %vm318_vm0 = vcmask (!%p775_p10), 523264   ;;  %v959_v16 = vmov (!%p775_p10), 0.0  }
  0x29   : > { %s1048_s7 = scalar_lea.vmem %s1185_s1, %s774_s4  ;;  %319 = vst.msk [vmem:[#allocation2] sm:$0xff] (!%p775_p10), %vm318_vm0, %v959_v16  ;;  %320 = vst.msk [vmem:[#allocation2 + $0x8] sm:$0xff] (!%p775_p10), %vm318_vm0, %v959_v16 }
  0x2a   : > { %321 = vst.msk [vmem:[#allocation2 + $0x10] sm:$0xff] (!%p775_p10), %vm318_vm0, %v959_v16  ;;  %322 = vst.msk [vmem:[#allocation2 + $0x18] sm:$0xff] (!%p775_p10), %vm318_vm0, %v959_v16 }
  0x2b   : > { %323 = vst.msk [vmem:[#allocation2 + $0x20] sm:$0xff] (!%p775_p10), %vm318_vm0, %v959_v16  ;;  %324 = vst.msk [vmem:[#allocation2 + $0x28] sm:$0xff] (!%p775_p10), %vm318_vm0, %v959_v16 }
  0x2c   : > { %325 = vst.msk [vmem:[#allocation2 + $0x30] sm:$0xff] (!%p775_p10), %vm318_vm0, %v959_v16  ;;  %326 = vst.msk [vmem:[#allocation2 + $0x38] sm:$0xff] (!%p775_p10), %vm318_vm0, %v959_v16 }
  0x2d   : > { %327 = vst.msk [vmem:[#allocation2 + $0x40] sm:$0xff] (!%p775_p10), %vm318_vm0, %v959_v16  ;;  %328 = vst.msk [vmem:[#allocation2 + $0x48] sm:$0xff] (!%p775_p10), %vm318_vm0, %v959_v16 }
  0x2e   : > { %329 = vst.msk [vmem:[#allocation2 + $0x50] sm:$0xff] %vm318_vm0, %v959_v16  ;;  %330 = vst.msk [vmem:[#allocation2 + $0x58] sm:$0xff] %vm318_vm0, %v959_v16 }
  0x2f   : > { %331 = vst.msk [vmem:[#allocation2 + $0x60] sm:$0xff] %vm318_vm0, %v959_v16  ;;  %332 = vst.msk [vmem:[#allocation2 + $0x68] sm:$0xff] %vm318_vm0, %v959_v16 }
  0x30   : > { %333 = vst.msk [vmem:[#allocation2 + $0x70] sm:$0xff] %vm318_vm0, %v959_v16  ;;  %334 = vst.msk [vmem:[#allocation2 + $0x78] sm:$0xff] %vm318_vm0, %v959_v16 }
  0x31 PF: > { %v903_v17 = vld [vmem:[%s1048_s7] sm:$0xff]   ;;  %v904_v18 = vld [vmem:[%s1048_s7 + $0x8] sm:$0xff]   ;;  %v905_v19 = vld [vmem:[%s1048_s7 + $0x10] sm:$0xff]   ;;  %vm592_vm1 = vcmask 523264   ;;  %p792_p11 = scmp.ne.s32.totalorder %s949_s14, 4 }
  0x32   : > { %814 = vmatprep.subr.bf16.mxu0 %v903_v17  ;;  %846 = vmatprep.subr.bf16.mxu1 %v903_v17  ;;  %v906_v20 = vld [vmem:[%s1048_s7 + $0x18] sm:$0xff]   ;;  %v911_v21 = vld [vmem:[%s1050_s8] sm:$0xff]   ;;  %v908_v24 = vld [vmem:[%s1048_s7 + $0x28] sm:$0xff]  }
  0x33   : > { %815 = vmatpush3.bf16.msra.mxu0 %v903_v17  ;;  %854 = vmatpush3.bf16.msra.mxu1 %v903_v17  ;;  %v912_v22 = vld [vmem:[%s1050_s8 + $0x20] sm:$0xff]   ;;  %v909_v25 = vld [vmem:[%s1048_s7 + $0x30] sm:$0xff]   ;;  %v910_v26 = vld [vmem:[%s1048_s7 + $0x38] sm:$0xff]  }
  0x34   : > { %816 = vmatprep.subr.bf16.mxu0 %v904_v18  ;;  %847 = vmatprep.subr.bf16.mxu1 %v904_v18  ;;  %v907_v23 = vld [vmem:[%s1048_s7 + $0x20] sm:$0xff]   ;;  %v913_v27 = vld [vmem:[%s1050_s8 + $0x8] sm:$0xff]   ;;  %v915_v29 = vld [vmem:[%s1050_s8 + $0x10] sm:$0xff]  }
  0x35   : > { %830 = vmatprep.mubr.bf16.mxu0 %v911_v21  ;;  %838 = vmatprep.mubr.bf16.mxu1 %v912_v22  ;;  %v914_v28 = vld [vmem:[%s1050_s8 + $0x28] sm:$0xff]   ;;  %v916_v30 = vld [vmem:[%s1050_s8 + $0x30] sm:$0xff]   ;;  %v917_v31 = vld [vmem:[%s1050_s8 + $0x18] sm:$0xff]  }
  0x36   : > { %v918_v32 = vld [vmem:[%s1050_s8 + $0x38] sm:$0xff]   ;;  %v337_v33 = vld [vmem:[#allocation2 + $0x10] sm:$0xff]  ;;  %v335_v35 = vld [vmem:[#allocation2] sm:$0xff] }
  0x37   : > { %817 = vmatpush3.bf16.msra.mxu0 %v904_v18  ;;  %855 = vmatpush3.bf16.msra.mxu1 %v904_v18  ;;  %v345_v34 = vld [vmem:[#allocation2 + $0x50] sm:$0xff]  ;;  %v343_v36 = vld [vmem:[#allocation2 + $0x40] sm:$0xff]  ;;  %v338_v39 = vld [vmem:[#allocation2 + $0x18] sm:$0xff] }
  0x38   : > { %818 = vmatprep.subr.bf16.mxu0 %v905_v19  ;;  %848 = vmatprep.subr.bf16.mxu1 %v905_v19  ;;  %v346_v40 = vld [vmem:[#allocation2 + $0x58] sm:$0xff]  ;;  %v336_v45 = vld [vmem:[#allocation2 + $0x8] sm:$0xff]  ;;  %v341_v57 = vld [vmem:[#allocation2 + $0x30] sm:$0xff] }
  0x39   : > { %v344_v46 = vld [vmem:[#allocation2 + $0x48] sm:$0xff]  ;;  %v349_v58 = vld [vmem:[#allocation2 + $0x70] sm:$0xff]  ;;  %v339_v59 = vld [vmem:[#allocation2 + $0x20] sm:$0xff] }
  0x3a   : > { %v347_v60 = vld [vmem:[#allocation2 + $0x60] sm:$0xff]  ;;  %v342_v63 = vld [vmem:[#allocation2 + $0x38] sm:$0xff]  ;;  %v340_v5 = vld [vmem:[#allocation2 + $0x28] sm:$0xff] }
  0x3b   : > { %819 = vmatpush3.bf16.msra.mxu0 %v905_v19  ;;  %856 = vmatpush3.bf16.msra.mxu1 %v905_v19  ;;  %v350_v0 = vld [vmem:[#allocation2 + $0x78] sm:$0xff]  ;;  %v348_v6 = vld [vmem:[#allocation2 + $0x68] sm:$0xff]  ;;  %v793_v18 = vld [vmem:[%s1186_s2] ss:$0 sm:$0xff] (!%p792_p11) }
  0x3c   : > { %820 = vmatprep.subr.bf16.mxu0 %v906_v20  ;;  %849 = vmatprep.subr.bf16.mxu1 %v906_v20 }
  0x3f   : > { %821 = vmatpush3.bf16.msra.mxu0 %v906_v20  ;;  %857 = vmatpush3.bf16.msra.mxu1 %v906_v20 }
  0x40   : > { %822 = vmatprep.subr.bf16.mxu0 %v907_v23  ;;  %850 = vmatprep.subr.bf16.mxu1 %v907_v23 }
  0x43   : > { %823 = vmatpush3.bf16.msra.mxu0 %v907_v23  ;;  %858 = vmatpush3.bf16.msra.mxu1 %v907_v23 }
  0x44   : > { %824 = vmatprep.subr.bf16.mxu0 %v908_v24  ;;  %851 = vmatprep.subr.bf16.mxu1 %v908_v24 }
  0x47   : > { %825 = vmatpush3.bf16.msra.mxu0 %v908_v24  ;;  %859 = vmatpush3.bf16.msra.mxu1 %v908_v24 }
  0x48   : > { %826 = vmatprep.subr.bf16.mxu0 %v909_v25  ;;  %852 = vmatprep.subr.bf16.mxu1 %v909_v25 }
  0x4b   : > { %827 = vmatpush3.bf16.msra.mxu0 %v909_v25  ;;  %860 = vmatpush3.bf16.msra.mxu1 %v909_v25 }
  0x4c   : > { %828 = vmatprep.subr.bf16.mxu0 %v910_v26  ;;  %853 = vmatprep.subr.bf16.mxu1 %v910_v26 }
  0x4f   : > { %829 = vmatpush3.bf16.msra.mxu0 %v910_v26  ;;  %861 = vmatpush3.bf16.msra.mxu1 %v910_v26 }
  0x52   : > { %831 = vmatmul.mubr.bf16.vlgmr.msra.gmra.mrb[0].mxu0 %v913_v27  ;;  %839 = vmatmul.mubr.bf16.vlgmr.msra.gmra.mrb[0].mxu1 %v914_v28 }
  0x53   : > { %834 = vmatprep.mubr.bf16.mxu0 %v915_v29  ;;  %842 = vmatprep.mubr.bf16.mxu1 %v916_v30 }
  0x5a   : > { %835 = vmatmul.mubr.bf16.gmra.mrb[4].mxu0 %v917_v31  ;;  %843 = vmatmul.mubr.bf16.gmra.mrb[4].mxu1 %v918_v32 }
 0x125   : > { %v832_v37 = vpop.f32.mrb[0].mxu0  ;;  %v840_v38 = vpop.f32.mrb[0].mxu1 }
 0x126   : > { %v578_v41 = vadd.f32 %v832_v37, %v337_v33  ;;  %v586_v42 = vadd.f32 %v840_v38, %v345_v34  ;;  %v513_v43 = vpop.f32.mrb[1].mxu0  ;;  %v545_v44 = vpop.f32.mrb[1].mxu1 }
 0x127   : > { %v576_v47 = vadd.f32 %v513_v43, %v335_v35  ;;  %v584_v48 = vadd.f32 %v545_v44, %v343_v36  ;;  %v833_v49 = vpop.f32.mrb[2].mxu0  ;;  %v841_v50 = vpop.f32.mrb[2].mxu1 }
 0x128   : > { %595 = vst.msk [vmem:[#allocation2 + $0x10] sm:$0xff] %vm592_vm1, %v578_v41  ;;  %603 = vst.msk [vmem:[#allocation2 + $0x50] sm:$0xff] %vm592_vm1, %v586_v42  ;;  %v579_v51 = vadd.f32 %v833_v49, %v338_v39  ;;  %v587_v52 = vadd.f32 %v841_v50, %v346_v40  ;;  %v516_v53 = vpop.f32.mrb[3].mxu0  ;;  %v548_v54 = vpop.f32.mrb[3].mxu1 }
 0x129   : > { %593 = vst.msk [vmem:[#allocation2] sm:$0xff] %vm592_vm1, %v576_v47  ;;  %601 = vst.msk [vmem:[#allocation2 + $0x40] sm:$0xff] %vm592_vm1, %v584_v48  ;;  %v577_v55 = vadd.f32 %v516_v53, %v336_v45  ;;  %v585_v56 = vadd.f32 %v548_v54, %v344_v46 }
 0x12a   : > { %596 = vst.msk [vmem:[#allocation2 + $0x18] sm:$0xff] %vm592_vm1, %v579_v51  ;;  %604 = vst.msk [vmem:[#allocation2 + $0x58] sm:$0xff] %vm592_vm1, %v587_v52 }
 0x12b   : > { %594 = vst.msk [vmem:[#allocation2 + $0x8] sm:$0xff] %vm592_vm1, %v577_v55  ;;  %602 = vst.msk [vmem:[#allocation2 + $0x48] sm:$0xff] %vm592_vm1, %v585_v56 }
 0x12d   : > { %v836_v61 = vpop.f32.mrb[4].mxu0  ;;  %v844_v62 = vpop.f32.mrb[4].mxu1  ;;  %612 = sbr.rel (%p792_p11) target bundleno = 321 (0x141), region = 81 }
 0x12e   : > { %v582_v1 = vadd.f32 %v836_v61, %v341_v57  ;;  %v590_v2 = vadd.f32 %v844_v62, %v349_v58  ;;  %v529_v3 = vpop.f32.mrb[5].mxu0  ;;  %v561_v4 = vpop.f32.mrb[5].mxu1 }
 0x12f   : > { %v580_v7 = vadd.f32 %v529_v3, %v339_v59  ;;  %v588_v8 = vadd.f32 %v561_v4, %v347_v60  ;;  %v837_v9 = vpop.f32.mrb[6].mxu0  ;;  %v845_v10 = vpop.f32.mrb[6].mxu1  ;;  %v615_v22 = vld [vmem:[#allocation2 + $0x10] sm:$0xff] (!%p792_p11) }
 0x130   : > { %599 = vst.msk [vmem:[#allocation2 + $0x30] sm:$0xff] %vm592_vm1, %v582_v1  ;;  %607 = vst.msk [vmem:[#allocation2 + $0x70] sm:$0xff] %vm592_vm1, %v590_v2  ;;  %v583_v11 = vadd.f32 %v837_v9, %v342_v63  ;;  %v591_v12 = vadd.f32 %v845_v10, %v350_v0  ;;  %v532_v13 = vpop.f32.mrb[7].mxu0  ;;  %v564_v14 = vpop.f32.mrb[7].mxu1  ;;  %v613_v17 = vld [vmem:[#allocation2] sm:$0xff] (!%p792_p11)  ;;  %v638_v25 = vadd.f32 (!%p792_p11), %v793_v18, %v615_v22  ;;  %v623_v37 = vld [vmem:[#allocation2 + $0x50] sm:$0xff] (!%p792_p11) }
 0x131   : > { %597 = vst.msk [vmem:[#allocation2 + $0x20] sm:$0xff] %vm592_vm1, %v580_v7  ;;  %605 = vst.msk [vmem:[#allocation2 + $0x60] sm:$0xff] %vm592_vm1, %v588_v8  ;;  %v581_v15 = vadd.f32 %v532_v13, %v340_v5  ;;  %v589_v16 = vadd.f32 %v564_v14, %v348_v6  ;;  %v636_v20 = vadd.f32 (!%p792_p11), %v793_v18, %v613_v17  ;;  %v616_v23 = vld [vmem:[#allocation2 + $0x18] sm:$0xff] (!%p792_p11)  ;;  %v621_v35 = vld [vmem:[#allocation2 + $0x40] sm:$0xff] (!%p792_p11) }
 0x132   : > { %600 = vst.msk [vmem:[#allocation2 + $0x38] sm:$0xff] %vm592_vm1, %v583_v11  ;;  %608 = vst.msk [vmem:[#allocation2 + $0x78] sm:$0xff] %vm592_vm1, %v591_v12  ;;  %v614_v19 = vld [vmem:[#allocation2 + $0x8] sm:$0xff] (!%p792_p11)  ;;  %v639_v26 = vadd.f32 (!%p792_p11), %v793_v18, %v616_v23  ;;  %v654_v38 = vmax.f32 (!%p792_p11), %v638_v25, 0.0  ;;  %v624_v42 = vld [vmem:[#allocation2 + $0x58] sm:$0xff] (!%p792_p11)  ;;  %v644_v47 = vadd.f32 (!%p792_p11), %v793_v18, %v621_v35  ;;  %v646_v52 = vadd.f32 (!%p792_p11), %v793_v18, %v623_v37 }
 0x133   : > { %598 = vst.msk [vmem:[#allocation2 + $0x28] sm:$0xff] %vm592_vm1, %v581_v15  ;;  %606 = vst.msk [vmem:[#allocation2 + $0x68] sm:$0xff] %vm592_vm1, %v589_v16  ;;  %v637_v21 = vadd.f32 (!%p792_p11), %v793_v18, %v614_v19  ;;  %v652_v31 = vmax.f32 (!%p792_p11), %v636_v20, 0.0  ;;  %v622_v36 = vld [vmem:[#allocation2 + $0x48] sm:$0xff] (!%p792_p11)  ;;  %v647_v53 = vadd.f32 (!%p792_p11), %v793_v18, %v624_v42 }
 0x134   : > { %v655_v39 = vmax.f32 %v639_v26, 0.0  ;;  %v645_v48 = vadd.f32 %v793_v18, %v622_v36  ;;  %670 = vst.msk [vmem:[%s1187_s3 + $0x10] sm:$0xff] %vm592_vm1, %v654_v38  ;;  %v660_v55 = vmax.f32 %v644_v47, 0.0  ;;  %v662_v59 = vmax.f32 %v646_v52, 0.0 }
 0x135   : > { %v653_v32 = vmax.f32 %v637_v21, 0.0  ;;  %668 = vst.msk [vmem:[%s1187_s3] sm:$0xff] %vm592_vm1, %v652_v31  ;;  %v663_v60 = vmax.f32 %v647_v53, 0.0 }
 0x136   : > { %671 = vst.msk [vmem:[%s1187_s3 + $0x18] sm:$0xff] %vm592_vm1, %v655_v39  ;;  %v661_v56 = vmax.f32 %v645_v48, 0.0  ;;  %676 = vst.msk [vmem:[%s1187_s3 + $0x40] sm:$0xff] %vm592_vm1, %v660_v55 }
 0x137   : > { %v619_v29 = vld [vmem:[#allocation2 + $0x30] sm:$0xff]  ;;  %669 = vst.msk [vmem:[%s1187_s3 + $0x8] sm:$0xff] %vm592_vm1, %v653_v32  ;;  %678 = vst.msk [vmem:[%s1187_s3 + $0x50] sm:$0xff] %vm592_vm1, %v662_v59 }
 0x138   : > { %v617_v24 = vld [vmem:[#allocation2 + $0x20] sm:$0xff]  ;;  %v642_v34 = vadd.f32 %v793_v18, %v619_v29  ;;  %v627_v49 = vld [vmem:[#allocation2 + $0x70] sm:$0xff]  ;;  %677 = vst.msk [vmem:[%s1187_s3 + $0x48] sm:$0xff] %vm592_vm1, %v661_v56  ;;  %679 = vst.msk [vmem:[%s1187_s3 + $0x58] sm:$0xff] %vm592_vm1, %v663_v60 }
 0x139   : > { %v640_v27 = vadd.f32 %v793_v18, %v617_v24  ;;  %v620_v30 = vld [vmem:[#allocation2 + $0x38] sm:$0xff]  ;;  %v625_v43 = vld [vmem:[#allocation2 + $0x60] sm:$0xff]  ;;  %v650_v58 = vadd.f32 %v793_v18, %v627_v49 }
 0x13a   : > { %v618_v28 = vld [vmem:[#allocation2 + $0x28] sm:$0xff]  ;;  %v643_v41 = vadd.f32 %v793_v18, %v620_v30  ;;  %v658_v46 = vmax.f32 %v642_v34, 0.0  ;;  %v628_v50 = vld [vmem:[#allocation2 + $0x78] sm:$0xff]  ;;  %v648_v54 = vadd.f32 %v793_v18, %v625_v43 }
 0x13b   : > { %v641_v33 = vadd.f32 %v793_v18, %v618_v28  ;;  %v656_v40 = vmax.f32 %v640_v27, 0.0  ;;  %v626_v44 = vld [vmem:[#allocation2 + $0x68] sm:$0xff]  ;;  %v651_v62 = vadd.f32 %v793_v18, %v628_v50  ;;  %v666_v0 = vmax.f32 %v650_v58, 0.0 }
 0x13c   : > { %v659_v51 = vmax.f32 %v643_v41, 0.0  ;;  %674 = vst.msk [vmem:[%s1187_s3 + $0x30] sm:$0xff] %vm592_vm1, %v658_v46  ;;  %v649_v57 = vadd.f32 %v793_v18, %v626_v44  ;;  %v664_v61 = vmax.f32 %v648_v54, 0.0 }
 0x13d   : > { %v657_v45 = vmax.f32 %v641_v33, 0.0  ;;  %672 = vst.msk [vmem:[%s1187_s3 + $0x20] sm:$0xff] %vm592_vm1, %v656_v40  ;;  %v667_v1 = vmax.f32 %v651_v62, 0.0  ;;  %682 = vst.msk [vmem:[%s1187_s3 + $0x70] sm:$0xff] %vm592_vm1, %v666_v0 }
 0x13e   : > { %675 = vst.msk [vmem:[%s1187_s3 + $0x38] sm:$0xff] %vm592_vm1, %v659_v51  ;;  %v665_v63 = vmax.f32 %v649_v57, 0.0  ;;  %680 = vst.msk [vmem:[%s1187_s3 + $0x60] sm:$0xff] %vm592_vm1, %v664_v61 }
 0x13f   : > { %673 = vst.msk [vmem:[%s1187_s3 + $0x28] sm:$0xff] %vm592_vm1, %v657_v45  ;;  %683 = vst.msk [vmem:[%s1187_s3 + $0x78] sm:$0xff] %vm592_vm1, %v667_v1 }
 0x140   : > { %681 = vst.msk [vmem:[%s1187_s3 + $0x68] sm:$0xff] %vm592_vm1, %v665_v63 }
 0x141 PF: > { %s13_s16 = sadd.s32 1, %s957_s16   ;;  %s1188_s12 = smov %s945_s13 }
 0x142   : > { %p10_p12 = scmp.ge.s32.totalorder %s13_s16, 7   ;;  %s1189_s13 = smov %s1015_s20 }
 0x143   : > { %s1190_s14 = smov %s953_s15  ;;  %s1191_s15 = smov %s1193_s17 }
 0x144   :  { %12 = sbr.rel (!%p10_p12) target bundleno = 3 (0x3), region = 119 }

// kernel: _forward.43
= control target key start
LH: loop header
LB: loop body
LE: loop exit
PB: predicated region body
PF: predicated region fallthrough
CT: control target
= control target key end

     0   :  { %s1082_s15 = smov 0   ;;  %s1084_s16 = smov 0   ;;  %s1352_s0 = inlined_call_operand.vmem [shape: bf16[128,640], index: 0, kind: input, shape index: {}]   ;;  %s1353_s1 = inlined_call_operand.vmem [shape: bf16[640,64], index: 1, kind: input, shape index: {}]   ;;  %s1354_s2 = inlined_call_operand.vmem [shape: f32[1,64], index: 2, kind: input, shape index: {}]   ;;  %s1355_s3 = inlined_call_operand.vmem [shape: f32[128,64], index: 3, kind: input, shape index: {}]   ;;  %s1356_s4 = inlined_call_operand.vmem [shape: f32[128,64], index: 4, kind: output, shape index: {}]  }
   0x1   :  { %s1086_s17 = smov 0   ;;  %s1088_s18 = smov 0  }
   0x2   :  { %s1090_s19 = smov 0  }
   0x3 LB: > { %s23_s20 = sadd.s32 1, %s1050_s18  ;;  %p42_p1 = scmp.ne.s32.totalorder %s1042_s16, %s1038_s15  ;;  %s1054_s19 = sphi %s1090_s19, %s14_s19   ;;  %s1050_s18 = sphi %s1088_s18, %s1360_s18   ;;  %s1046_s17 = sphi %s1086_s17, %s1359_s17   ;;  %s1042_s16 = sphi %s1084_s16, %s1358_s16   ;;  %s1038_s15 = sphi %s1082_s15, %s1357_s15  }
   0x4   : > { %p24_p0 = scmp.ge.s32.totalorder %s23_s20, 5  ;;  %p43_p2 = scmp.eq.s32.totalorder %s1054_s19, 0 }
   0x5   : > { %s35_s22 = sadd.s32 1, %s1042_s16  ;;  %p865_p5 = scmp.ge.s32.totalorder %s1054_s19, 5 }
   0x6   : > { %s1362_s20 = smov (%p24_p0, %s23_s20), 0  ;;  %p44_p3 = por %p43_p2, %p42_p1 }
   0x7   : > { %s31_s21 = ssub.s32 %s1050_s18, %s1362_s20  ;;  %179 = sbr.rel (%p865_p5) target bundleno = 28 (0x1c), region = 24 }
   0x8   : > { %p33_p4 = scmp.eq.s32.totalorder %s31_s21, 0 }
   0xa   : > { %s1117_s23 = scalar_select %p33_p4, %s1042_s16, %s35_s22  }
   0xe   : > { %182 = sbr.rel (!%p44_p3) target bundleno = 28 (0x1c), region = 28  ;;  %s184_s24 = sand.u32 (%p44_p3), 1, %s1042_s16  }
   0xf   : > { %s867_s25 = sshll.u32 (%p44_p3), %s1050_s18, 2  ;;  %s866_s26 = sshll.u32 (%p44_p3), %s184_s24, 6 }
  0x10   : > { %s1125_s29 = scalar_lea.vmem (%p44_p3), %s1352_s0, %s867_s25  ;;  %s186_s30 = scalar_lea.vmem (%p44_p3), [#allocation3], %s866_s26 }
  0x11   : > { %v207_v0 = vld [vmem:[%s1125_s29] sm:$0xf] (%p44_p3)  ;;  %v209_v1 = vld [vmem:[%s1125_s29 + $0x14] sm:$0xf] (%p44_p3)  ;;  %v211_v2 = vld [vmem:[%s1125_s29 + $0x28] sm:$0xf] (%p44_p3) }
  0x12   : > { %208 = vst [vmem:[%s186_s30] sm:$0xf] (%p44_p3), %v207_v0  ;;  %210 = vst [vmem:[%s186_s30 + $0x4] sm:$0xf] (%p44_p3), %v209_v1  ;;  %v213_v3 = vld [vmem:[%s1125_s29 + $0x3c] sm:$0xf] (%p44_p3) }
  0x13   : > { %v215_v4 = vld [vmem:[%s1125_s29 + $0x50] sm:$0xf] (%p44_p3)  ;;  %212 = vst [vmem:[%s186_s30 + $0x8] sm:$0xf] (%p44_p3), %v211_v2  ;;  %214 = vst [vmem:[%s186_s30 + $0xc] sm:$0xf] (%p44_p3), %v213_v3 }
  0x14   : > { %216 = vst [vmem:[%s186_s30 + $0x10] sm:$0xf] (%p44_p3), %v215_v4  ;;  %v217_v5 = vld [vmem:[%s1125_s29 + $0x64] sm:$0xf] (%p44_p3)  ;;  %v219_v6 = vld [vmem:[%s1125_s29 + $0x78] sm:$0xf] (%p44_p3) }
  0x15   : > { %v221_v7 = vld [vmem:[%s1125_s29 + $0x8c] sm:$0xf]  ;;  %218 = vst [vmem:[%s186_s30 + $0x14] sm:$0xf] %v217_v5  ;;  %220 = vst [vmem:[%s186_s30 + $0x18] sm:$0xf] %v219_v6 }
  0x16   : > { %222 = vst [vmem:[%s186_s30 + $0x1c] sm:$0xf] %v221_v7  ;;  %v223_v8 = vld [vmem:[%s1125_s29 + $0xa0] sm:$0xf]  ;;  %v225_v9 = vld [vmem:[%s1125_s29 + $0xb4] sm:$0xf] }
  0x17   : > { %v227_v10 = vld [vmem:[%s1125_s29 + $0xc8] sm:$0xf]  ;;  %224 = vst [vmem:[%s186_s30 + $0x20] sm:$0xf] %v223_v8  ;;  %226 = vst [vmem:[%s186_s30 + $0x24] sm:$0xf] %v225_v9 }
  0x18   : > { %228 = vst [vmem:[%s186_s30 + $0x28] sm:$0xf] %v227_v10  ;;  %v229_v11 = vld [vmem:[%s1125_s29 + $0xdc] sm:$0xf]  ;;  %v231_v12 = vld [vmem:[%s1125_s29 + $0xf0] sm:$0xf] }
  0x19   : > { %v233_v13 = vld [vmem:[%s1125_s29 + $0x104] sm:$0xf]  ;;  %230 = vst [vmem:[%s186_s30 + $0x2c] sm:$0xf] %v229_v11  ;;  %232 = vst [vmem:[%s186_s30 + $0x30] sm:$0xf] %v231_v12 }
  0x1a   : > { %234 = vst [vmem:[%s186_s30 + $0x34] sm:$0xf] %v233_v13  ;;  %v235_v14 = vld [vmem:[%s1125_s29 + $0x118] sm:$0xf]  ;;  %v237_v15 = vld [vmem:[%s1125_s29 + $0x12c] sm:$0xf] }
  0x1b   : > { %236 = vst [vmem:[%s186_s30 + $0x38] sm:$0xf] %v235_v14  ;;  %238 = vst [vmem:[%s186_s30 + $0x3c] sm:$0xf] %v237_v15 }
  0x1c PF: > { %p868_p6 = scmp.ge.s32.totalorder %s1054_s19, 1  ;;  %p301_p7 = scmp.lt.s32.totalorder %s1054_s19, 6 }
  0x1e   : > { %p302_p8 = pnand %p868_p6, %p301_p7 }
  0x1f   : > { %s308_s5 = sand.u32 (!%p302_p8), 1, %s1038_s15   ;;  %s870_s6 = sshll.u32 (!%p302_p8), %s1046_s17, 4 }
  0x20   : > { %305 = sbr.rel (%p302_p8) target bundleno = 323 (0x143), region = 73  ;;  %s869_s7 = sshll.u32 (!%p302_p8), %s308_s5, 6 }
  0x21   : > { %p345_p9 = scmp.lt.s32.totalorder (!%p302_p8), %s870_s6, 79  ;;  %s1152_s12 = scalar_lea.vmem (!%p302_p8), [#allocation3], %s869_s7 }
  0x22   : > { %p872_p10 = scmp.ne.s32.totalorder (!%p302_p8), %s1046_s17, 0 }
  0x27   : > { %s1364_s6 = smov (!%p345_p9, %s870_s6), 79  ;;  %366 = sbr.rel (%p872_p10) target bundleno = 49 (0x31), region = 81 }
  0x28   : > { %s871_s8 = sshll.u32 %s1364_s6, 2  ;;  %vm367_vm0 = vcmask (!%p872_p10), 523264   ;;  %v1056_v16 = vmov (!%p872_p10), 0.0  }
  0x29   : > { %s1150_s11 = scalar_lea.vmem %s1353_s1, %s871_s8  ;;  %368 = vst.msk [vmem:[#allocation2] sm:$0xff] (!%p872_p10), %vm367_vm0, %v1056_v16  ;;  %369 = vst.msk [vmem:[#allocation2 + $0x8] sm:$0xff] (!%p872_p10), %vm367_vm0, %v1056_v16 }
  0x2a   : > { %370 = vst.msk [vmem:[#allocation2 + $0x10] sm:$0xff] (!%p872_p10), %vm367_vm0, %v1056_v16  ;;  %371 = vst.msk [vmem:[#allocation2 + $0x18] sm:$0xff] (!%p872_p10), %vm367_vm0, %v1056_v16 }
  0x2b   : > { %372 = vst.msk [vmem:[#allocation2 + $0x20] sm:$0xff] (!%p872_p10), %vm367_vm0, %v1056_v16  ;;  %373 = vst.msk [vmem:[#allocation2 + $0x28] sm:$0xff] (!%p872_p10), %vm367_vm0, %v1056_v16 }
  0x2c   : > { %374 = vst.msk [vmem:[#allocation2 + $0x30] sm:$0xff] (!%p872_p10), %vm367_vm0, %v1056_v16  ;;  %375 = vst.msk [vmem:[#allocation2 + $0x38] sm:$0xff] (!%p872_p10), %vm367_vm0, %v1056_v16 }
  0x2d   : > { %376 = vst.msk [vmem:[#allocation2 + $0x40] sm:$0xff] (!%p872_p10), %vm367_vm0, %v1056_v16  ;;  %377 = vst.msk [vmem:[#allocation2 + $0x48] sm:$0xff] (!%p872_p10), %vm367_vm0, %v1056_v16 }
  0x2e   : > { %378 = vst.msk [vmem:[#allocation2 + $0x50] sm:$0xff] %vm367_vm0, %v1056_v16  ;;  %379 = vst.msk [vmem:[#allocation2 + $0x58] sm:$0xff] %vm367_vm0, %v1056_v16 }
  0x2f   : > { %380 = vst.msk [vmem:[#allocation2 + $0x60] sm:$0xff] %vm367_vm0, %v1056_v16  ;;  %381 = vst.msk [vmem:[#allocation2 + $0x68] sm:$0xff] %vm367_vm0, %v1056_v16 }
  0x30   : > { %382 = vst.msk [vmem:[#allocation2 + $0x70] sm:$0xff] %vm367_vm0, %v1056_v16  ;;  %383 = vst.msk [vmem:[#allocation2 + $0x78] sm:$0xff] %vm367_vm0, %v1056_v16 }
  0x31 PF: > { %v1000_v17 = vld [vmem:[%s1150_s11] sm:$0xff]   ;;  %v1001_v18 = vld [vmem:[%s1150_s11 + $0x8] sm:$0xff]   ;;  %v1002_v19 = vld [vmem:[%s1150_s11 + $0x10] sm:$0xff]   ;;  %vm641_vm1 = vcmask 523264   ;;  %p889_p11 = scmp.ne.s32.totalorder %s1046_s17, 4 }
  0x32   : > { %911 = vmatprep.subr.bf16.mxu0 %v1000_v17  ;;  %943 = vmatprep.subr.bf16.mxu1 %v1000_v17  ;;  %v1003_v20 = vld [vmem:[%s1150_s11 + $0x18] sm:$0xff]   ;;  %v1008_v21 = vld [vmem:[%s1152_s12] sm:$0xff]   ;;  %v1005_v24 = vld [vmem:[%s1150_s11 + $0x28] sm:$0xff]  }
  0x33   : > { %912 = vmatpush3.bf16.msra.mxu0 %v1000_v17  ;;  %951 = vmatpush3.bf16.msra.mxu1 %v1000_v17  ;;  %v1009_v22 = vld [vmem:[%s1152_s12 + $0x20] sm:$0xff]   ;;  %v1006_v25 = vld [vmem:[%s1150_s11 + $0x30] sm:$0xff]   ;;  %v1007_v26 = vld [vmem:[%s1150_s11 + $0x38] sm:$0xff]  }
  0x34   : > { %913 = vmatprep.subr.bf16.mxu0 %v1001_v18  ;;  %944 = vmatprep.subr.bf16.mxu1 %v1001_v18  ;;  %v1004_v23 = vld [vmem:[%s1150_s11 + $0x20] sm:$0xff]   ;;  %v1010_v27 = vld [vmem:[%s1152_s12 + $0x8] sm:$0xff]   ;;  %v1012_v29 = vld [vmem:[%s1152_s12 + $0x10] sm:$0xff]  }
  0x35   : > { %927 = vmatprep.mubr.bf16.mxu0 %v1008_v21  ;;  %935 = vmatprep.mubr.bf16.mxu1 %v1009_v22  ;;  %v1011_v28 = vld [vmem:[%s1152_s12 + $0x28] sm:$0xff]   ;;  %v1013_v30 = vld [vmem:[%s1152_s12 + $0x30] sm:$0xff]   ;;  %v1014_v31 = vld [vmem:[%s1152_s12 + $0x18] sm:$0xff]  }
  0x36   : > { %v1015_v32 = vld [vmem:[%s1152_s12 + $0x38] sm:$0xff]   ;;  %v386_v33 = vld [vmem:[#allocation2 + $0x10] sm:$0xff]  ;;  %v384_v35 = vld [vmem:[#allocation2] sm:$0xff] }
  0x37   : > { %914 = vmatpush3.bf16.msra.mxu0 %v1001_v18  ;;  %952 = vmatpush3.bf16.msra.mxu1 %v1001_v18  ;;  %v394_v34 = vld [vmem:[#allocation2 + $0x50] sm:$0xff]  ;;  %v392_v36 = vld [vmem:[#allocation2 + $0x40] sm:$0xff]  ;;  %v387_v39 = vld [vmem:[#allocation2 + $0x18] sm:$0xff] }
  0x38   : > { %915 = vmatprep.subr.bf16.mxu0 %v1002_v19  ;;  %945 = vmatprep.subr.bf16.mxu1 %v1002_v19  ;;  %v395_v40 = vld [vmem:[#allocation2 + $0x58] sm:$0xff]  ;;  %v385_v45 = vld [vmem:[#allocation2 + $0x8] sm:$0xff]  ;;  %v390_v57 = vld [vmem:[#allocation2 + $0x30] sm:$0xff] }
  0x39   : > { %v393_v46 = vld [vmem:[#allocation2 + $0x48] sm:$0xff]  ;;  %v398_v58 = vld [vmem:[#allocation2 + $0x70] sm:$0xff]  ;;  %v388_v59 = vld [vmem:[#allocation2 + $0x20] sm:$0xff] }
  0x3a   : > { %v396_v60 = vld [vmem:[#allocation2 + $0x60] sm:$0xff]  ;;  %v391_v63 = vld [vmem:[#allocation2 + $0x38] sm:$0xff]  ;;  %v389_v5 = vld [vmem:[#allocation2 + $0x28] sm:$0xff] }
  0x3b   : > { %916 = vmatpush3.bf16.msra.mxu0 %v1002_v19  ;;  %953 = vmatpush3.bf16.msra.mxu1 %v1002_v19  ;;  %v399_v0 = vld [vmem:[#allocation2 + $0x78] sm:$0xff]  ;;  %v397_v6 = vld [vmem:[#allocation2 + $0x68] sm:$0xff]  ;;  %v1207_v18 = vld [vmem:[%s1354_s2] ss:$0 sm:$0xff] (!%p889_p11) }
  0x3c   : > { %917 = vmatprep.subr.bf16.mxu0 %v1003_v20  ;;  %946 = vmatprep.subr.bf16.mxu1 %v1003_v20  ;;  %v701_v19 = vld [vmem:[%s1355_s3] sm:$0xff] (!%p889_p11)  ;;  %v702_v22 = vld [vmem:[%s1355_s3 + $0x8] sm:$0xff] (!%p889_p11) }
  0x3f   : > { %918 = vmatpush3.bf16.msra.mxu0 %v1003_v20  ;;  %954 = vmatpush3.bf16.msra.mxu1 %v1003_v20 }
  0x40   : > { %919 = vmatprep.subr.bf16.mxu0 %v1004_v23  ;;  %947 = vmatprep.subr.bf16.mxu1 %v1004_v23 }
  0x43   : > { %920 = vmatpush3.bf16.msra.mxu0 %v1004_v23  ;;  %955 = vmatpush3.bf16.msra.mxu1 %v1004_v23 }
  0x44   : > { %921 = vmatprep.subr.bf16.mxu0 %v1005_v24  ;;  %948 = vmatprep.subr.bf16.mxu1 %v1005_v24 }
  0x47   : > { %922 = vmatpush3.bf16.msra.mxu0 %v1005_v24  ;;  %956 = vmatpush3.bf16.msra.mxu1 %v1005_v24 }
  0x48   : > { %923 = vmatprep.subr.bf16.mxu0 %v1006_v25  ;;  %949 = vmatprep.subr.bf16.mxu1 %v1006_v25 }
  0x4b   : > { %924 = vmatpush3.bf16.msra.mxu0 %v1006_v25  ;;  %957 = vmatpush3.bf16.msra.mxu1 %v1006_v25 }
  0x4c   : > { %925 = vmatprep.subr.bf16.mxu0 %v1007_v26  ;;  %950 = vmatprep.subr.bf16.mxu1 %v1007_v26 }
  0x4f   : > { %926 = vmatpush3.bf16.msra.mxu0 %v1007_v26  ;;  %958 = vmatpush3.bf16.msra.mxu1 %v1007_v26  ;;  %v703_v26 = vld [vmem:[%s1355_s3 + $0x10] sm:$0xff] (!%p889_p11) }
  0x52   : > { %928 = vmatmul.mubr.bf16.vlgmr.msra.gmra.mrb[0].mxu0 %v1010_v27  ;;  %936 = vmatmul.mubr.bf16.vlgmr.msra.gmra.mrb[0].mxu1 %v1011_v28  ;;  %v704_v28 = vld [vmem:[%s1355_s3 + $0x18] sm:$0xff] (!%p889_p11) }
  0x53   : > { %931 = vmatprep.mubr.bf16.mxu0 %v1012_v29  ;;  %939 = vmatprep.mubr.bf16.mxu1 %v1013_v30 }
  0x5a   : > { %932 = vmatmul.mubr.bf16.gmra.mrb[4].mxu0 %v1014_v31  ;;  %940 = vmatmul.mubr.bf16.gmra.mrb[4].mxu1 %v1015_v32  ;;  %v705_v32 = vld [vmem:[%s1355_s3 + $0x20] sm:$0xff] (!%p889_p11) }
 0x125   : > { %v929_v37 = vpop.f32.mrb[0].mxu0  ;;  %v937_v38 = vpop.f32.mrb[0].mxu1 }
 0x126   : > { %v627_v41 = vadd.f32 %v929_v37, %v386_v33  ;;  %v635_v42 = vadd.f32 %v937_v38, %v394_v34  ;;  %v562_v43 = vpop.f32.mrb[1].mxu0  ;;  %v594_v44 = vpop.f32.mrb[1].mxu1  ;;  %v706_v38 = vld [vmem:[%s1355_s3 + $0x28] sm:$0xff] (!%p889_p11) }
 0x127   : > { %v625_v47 = vadd.f32 %v562_v43, %v384_v35  ;;  %v633_v48 = vadd.f32 %v594_v44, %v392_v36  ;;  %v930_v49 = vpop.f32.mrb[2].mxu0  ;;  %v938_v50 = vpop.f32.mrb[2].mxu1 }
 0x128   : > { %644 = vst.msk [vmem:[#allocation2 + $0x10] sm:$0xff] %vm641_vm1, %v627_v41  ;;  %652 = vst.msk [vmem:[#allocation2 + $0x50] sm:$0xff] %vm641_vm1, %v635_v42  ;;  %v628_v51 = vadd.f32 %v930_v49, %v387_v39  ;;  %v636_v52 = vadd.f32 %v938_v50, %v395_v40  ;;  %v565_v53 = vpop.f32.mrb[3].mxu0  ;;  %v597_v54 = vpop.f32.mrb[3].mxu1  ;;  %v707_v40 = vld [vmem:[%s1355_s3 + $0x30] sm:$0xff] (!%p889_p11) }
 0x129   : > { %642 = vst.msk [vmem:[#allocation2] sm:$0xff] %vm641_vm1, %v625_v47  ;;  %650 = vst.msk [vmem:[#allocation2 + $0x40] sm:$0xff] %vm641_vm1, %v633_v48  ;;  %v626_v55 = vadd.f32 %v565_v53, %v385_v45  ;;  %v634_v56 = vadd.f32 %v597_v54, %v393_v46  ;;  %v708_v45 = vld [vmem:[%s1355_s3 + $0x38] sm:$0xff] (!%p889_p11)  ;;  %v710_v53 = vld [vmem:[%s1355_s3 + $0x48] sm:$0xff] (!%p889_p11) }
 0x12a   : > { %645 = vst.msk [vmem:[#allocation2 + $0x18] sm:$0xff] %vm641_vm1, %v628_v51  ;;  %653 = vst.msk [vmem:[#allocation2 + $0x58] sm:$0xff] %vm641_vm1, %v636_v52  ;;  %v709_v51 = vld [vmem:[%s1355_s3 + $0x40] sm:$0xff] (!%p889_p11) }
 0x12b   : > { %643 = vst.msk [vmem:[#allocation2 + $0x8] sm:$0xff] %vm641_vm1, %v626_v55  ;;  %651 = vst.msk [vmem:[#allocation2 + $0x48] sm:$0xff] %vm641_vm1, %v634_v56 }
 0x12d   : > { %v933_v61 = vpop.f32.mrb[4].mxu0  ;;  %v941_v62 = vpop.f32.mrb[4].mxu1  ;;  %661 = sbr.rel (%p889_p11) target bundleno = 323 (0x143), region = 85 }
 0x12e   : > { %v631_v1 = vadd.f32 %v933_v61, %v390_v57  ;;  %v639_v2 = vadd.f32 %v941_v62, %v398_v58  ;;  %v578_v3 = vpop.f32.mrb[5].mxu0  ;;  %v610_v4 = vpop.f32.mrb[5].mxu1 }
 0x12f   : > { %v629_v7 = vadd.f32 %v578_v3, %v388_v59  ;;  %v637_v8 = vadd.f32 %v610_v4, %v396_v60  ;;  %v934_v9 = vpop.f32.mrb[6].mxu0  ;;  %v942_v10 = vpop.f32.mrb[6].mxu1  ;;  %v664_v23 = vld [vmem:[#allocation2 + $0x10] sm:$0xff] (!%p889_p11)  ;;  %v713_v3 = vld [vmem:[%s1355_s3 + $0x60] sm:$0xff] (!%p889_p11) }
 0x130   : > { %648 = vst.msk [vmem:[#allocation2 + $0x30] sm:$0xff] %vm641_vm1, %v631_v1  ;;  %656 = vst.msk [vmem:[#allocation2 + $0x70] sm:$0xff] %vm641_vm1, %v639_v2  ;;  %v632_v11 = vadd.f32 %v934_v9, %v391_v63  ;;  %v640_v12 = vadd.f32 %v942_v10, %v399_v0  ;;  %v581_v13 = vpop.f32.mrb[7].mxu0  ;;  %v613_v14 = vpop.f32.mrb[7].mxu1  ;;  %v662_v17 = vld [vmem:[#allocation2] sm:$0xff] (!%p889_p11)  ;;  %v687_v25 = vadd.f32 (!%p889_p11), %v1207_v18, %v664_v23  ;;  %v672_v58 = vld [vmem:[#allocation2 + $0x50] sm:$0xff] (!%p889_p11) }
 0x131   : > { %646 = vst.msk [vmem:[#allocation2 + $0x20] sm:$0xff] %vm641_vm1, %v629_v7  ;;  %654 = vst.msk [vmem:[#allocation2 + $0x60] sm:$0xff] %vm641_vm1, %v637_v8  ;;  %v630_v15 = vadd.f32 %v581_v13, %v389_v5  ;;  %v638_v16 = vadd.f32 %v613_v14, %v397_v6  ;;  %v685_v20 = vadd.f32 (!%p889_p11), %v1207_v18, %v662_v17  ;;  %v665_v27 = vld [vmem:[#allocation2 + $0x18] sm:$0xff] (!%p889_p11)  ;;  %v670_v46 = vld [vmem:[#allocation2 + $0x40] sm:$0xff] (!%p889_p11) }
 0x132   : > { %649 = vst.msk [vmem:[#allocation2 + $0x38] sm:$0xff] %vm641_vm1, %v632_v11  ;;  %657 = vst.msk [vmem:[#allocation2 + $0x78] sm:$0xff] %vm641_vm1, %v640_v12  ;;  %v663_v21 = vld [vmem:[#allocation2 + $0x8] sm:$0xff] (!%p889_p11)  ;;  %v688_v30 = vadd.f32 (!%p889_p11), %v1207_v18, %v665_v27  ;;  %v719_v35 = vadd.f32 (!%p889_p11), %v703_v26, %v687_v25  ;;  %v693_v57 = vadd.f32 (!%p889_p11), %v1207_v18, %v670_v46  ;;  %v711_v59 = vld [vmem:[%s1355_s3 + $0x50] sm:$0xff] (!%p889_p11) }
 0x133   : > { %647 = vst.msk [vmem:[#allocation2 + $0x28] sm:$0xff] %vm641_vm1, %v630_v15  ;;  %655 = vst.msk [vmem:[#allocation2 + $0x68] sm:$0xff] %vm641_vm1, %v638_v16  ;;  %v686_v24 = vadd.f32 (!%p889_p11), %v1207_v18, %v663_v21  ;;  %v717_v29 = vadd.f32 (!%p889_p11), %v701_v19, %v685_v20  ;;  %v671_v52 = vld [vmem:[#allocation2 + $0x48] sm:$0xff] (!%p889_p11)  ;;  %v673_v60 = vld [vmem:[#allocation2 + $0x58] sm:$0xff] (!%p889_p11)  ;;  %v695_v0 = vadd.f32 (!%p889_p11), %v1207_v18, %v672_v58 }
 0x134   : > { %v720_v42 = vadd.f32 %v704_v28, %v688_v30  ;;  %v735_v48 = vmax.f32 %v719_v35, 0.0  ;;  %v694_v63 = vadd.f32 %v1207_v18, %v671_v52  ;;  %v712_v1 = vld [vmem:[%s1355_s3 + $0x58] sm:$0xff]  ;;  %v725_v6 = vadd.f32 %v709_v51, %v693_v57  ;;  %v714_v9 = vld [vmem:[%s1355_s3 + $0x68] sm:$0xff]  ;;  %v715_v15 = vld [vmem:[%s1355_s3 + $0x70] sm:$0xff] }
 0x135   : > { %v718_v34 = vadd.f32 %v702_v22, %v686_v24  ;;  %v733_v41 = vmax.f32 %v717_v29, 0.0  ;;  %v696_v7 = vadd.f32 %v1207_v18, %v673_v60  ;;  %v727_v12 = vadd.f32 %v711_v59, %v695_v0  ;;  %v716_v26 = vld [vmem:[%s1355_s3 + $0x78] sm:$0xff] }
 0x136   : > { %v736_v54 = vmax.f32 %v720_v42, 0.0  ;;  %751 = vst.msk [vmem:[%s1356_s4 + $0x10] sm:$0xff] %vm641_vm1, %v735_v48  ;;  %v726_v11 = vadd.f32 %v710_v53, %v694_v63  ;;  %v741_v19 = vmax.f32 %v725_v6, 0.0 }
 0x137   : > { %v668_v39 = vld [vmem:[#allocation2 + $0x30] sm:$0xff]  ;;  %v734_v47 = vmax.f32 %v718_v34, 0.0  ;;  %749 = vst.msk [vmem:[%s1356_s4] sm:$0xff] %vm641_vm1, %v733_v41  ;;  %v728_v20 = vadd.f32 %v712_v1, %v696_v7  ;;  %v743_v23 = vmax.f32 %v727_v12, 0.0 }
 0x138   : > { %v666_v31 = vld [vmem:[#allocation2 + $0x20] sm:$0xff]  ;;  %v691_v43 = vadd.f32 %v1207_v18, %v668_v39  ;;  %752 = vst.msk [vmem:[%s1356_s4 + $0x18] sm:$0xff] %vm641_vm1, %v736_v54  ;;  %v676_v10 = vld [vmem:[#allocation2 + $0x70] sm:$0xff]  ;;  %v742_v22 = vmax.f32 %v726_v11, 0.0  ;;  %757 = vst.msk [vmem:[%s1356_s4 + $0x40] sm:$0xff] %vm641_vm1, %v741_v19 }
 0x139   : > { %v689_v36 = vadd.f32 %v1207_v18, %v666_v31  ;;  %v669_v44 = vld [vmem:[#allocation2 + $0x38] sm:$0xff]  ;;  %750 = vst.msk [vmem:[%s1356_s4 + $0x8] sm:$0xff] %vm641_vm1, %v734_v47  ;;  %v674_v2 = vld [vmem:[#allocation2 + $0x60] sm:$0xff]  ;;  %v699_v21 = vadd.f32 %v1207_v18, %v676_v10  ;;  %v744_v27 = vmax.f32 %v728_v20, 0.0  ;;  %759 = vst.msk [vmem:[%s1356_s4 + $0x50] sm:$0xff] %vm641_vm1, %v743_v23 }
 0x13a   : > { %v667_v33 = vld [vmem:[#allocation2 + $0x28] sm:$0xff]  ;;  %v723_v55 = vadd.f32 %v707_v40, %v691_v43  ;;  %v692_v56 = vadd.f32 %v1207_v18, %v669_v44  ;;  %v697_v13 = vadd.f32 %v1207_v18, %v674_v2  ;;  %v677_v16 = vld [vmem:[#allocation2 + $0x78] sm:$0xff]  ;;  %758 = vst.msk [vmem:[%s1356_s4 + $0x48] sm:$0xff] %vm641_vm1, %v742_v22 }
 0x13b   : > { %v690_v37 = vadd.f32 %v1207_v18, %v667_v33  ;;  %v721_v49 = vadd.f32 %v705_v32, %v689_v36  ;;  %v675_v8 = vld [vmem:[#allocation2 + $0x68] sm:$0xff]  ;;  %v731_v28 = vadd.f32 %v715_v15, %v699_v21  ;;  %v700_v29 = vadd.f32 %v1207_v18, %v677_v16  ;;  %760 = vst.msk [vmem:[%s1356_s4 + $0x58] sm:$0xff] %vm641_vm1, %v744_v27 }
 0x13c   : > { %v739_v4 = vmax.f32 %v723_v55, 0.0  ;;  %v724_v5 = vadd.f32 %v708_v45, %v692_v56  ;;  %v698_v14 = vadd.f32 %v1207_v18, %v675_v8  ;;  %v729_v24 = vadd.f32 %v713_v3, %v697_v13 }
 0x13d   : > { %v722_v50 = vadd.f32 %v706_v38, %v690_v37  ;;  %v737_v61 = vmax.f32 %v721_v49, 0.0  ;;  %v747_v32 = vmax.f32 %v731_v28, 0.0  ;;  %v732_v33 = vadd.f32 %v716_v26, %v700_v29 }
 0x13e   : > { %755 = vst.msk [vmem:[%s1356_s4 + $0x30] sm:$0xff] %vm641_vm1, %v739_v4  ;;  %v740_v17 = vmax.f32 %v724_v5, 0.0  ;;  %v730_v25 = vadd.f32 %v714_v9, %v698_v14  ;;  %v745_v30 = vmax.f32 %v729_v24, 0.0 }
 0x13f   : > { %v738_v62 = vmax.f32 %v722_v50, 0.0  ;;  %753 = vst.msk [vmem:[%s1356_s4 + $0x20] sm:$0xff] %vm641_vm1, %v737_v61  ;;  %763 = vst.msk [vmem:[%s1356_s4 + $0x70] sm:$0xff] %vm641_vm1, %v747_v32  ;;  %v748_v18 = vmax.f32 %v732_v33, 0.0 }
 0x140   : > { %756 = vst.msk [vmem:[%s1356_s4 + $0x38] sm:$0xff] %vm641_vm1, %v740_v17  ;;  %v746_v31 = vmax.f32 %v730_v25, 0.0  ;;  %761 = vst.msk [vmem:[%s1356_s4 + $0x60] sm:$0xff] %vm641_vm1, %v745_v30 }
 0x141   : > { %754 = vst.msk [vmem:[%s1356_s4 + $0x28] sm:$0xff] %vm641_vm1, %v738_v62  ;;  %764 = vst.msk [vmem:[%s1356_s4 + $0x78] sm:$0xff] %vm641_vm1, %v748_v18 }
 0x142   : > { %762 = vst.msk [vmem:[%s1356_s4 + $0x68] sm:$0xff] %vm641_vm1, %v746_v31 }
 0x143 PF: > { %s14_s19 = sadd.s32 1, %s1054_s19   ;;  %s1357_s15 = smov %s1042_s16 }
 0x144   : > { %p11_p12 = scmp.ge.s32.totalorder %s14_s19, 7   ;;  %s1358_s16 = smov %s1117_s23 }
 0x145   : > { %s1359_s17 = smov %s1050_s18  ;;  %s1360_s18 = smov %s1362_s20 }
 0x146   :  { %13 = sbr.rel (!%p11_p12) target bundleno = 3 (0x3), region = 126 }

// kernel: _forward.48
= control target key start
LH: loop header
LB: loop body
LE: loop exit
PB: predicated region body
PF: predicated region fallthrough
CT: control target
= control target key end

     0   :  { %s692_s12 = smov 0   ;;  %s694_s13 = smov 0   ;;  %s791_s0 = inlined_call_operand.vmem [shape: bf16[32,640], index: 0, kind: input, shape index: {}]   ;;  %s792_s1 = inlined_call_operand.vmem [shape: bf16[640,128], index: 1, kind: input, shape index: {}]   ;;  %s793_s2 = inlined_call_operand.vmem [shape: f32[1,128], index: 2, kind: input, shape index: {}]   ;;  %s794_s3 = inlined_call_operand.vmem [shape: f32[32,128], index: 3, kind: output, shape index: {}]  }
   0x1   :  { %s696_s14 = smov 0   ;;  %s698_s15 = smov 0  }
   0x2   :  { %s700_s16 = smov 0  }
   0x3 LB: > { %s22_s17 = sadd.s32 1, %s665_s15  ;;  %p41_p1 = scmp.ne.s32.totalorder %s657_s13, %s653_s12  ;;  %s669_s16 = sphi %s700_s16, %s13_s16   ;;  %s665_s15 = sphi %s698_s15, %s798_s15   ;;  %s661_s14 = sphi %s696_s14, %s797_s14   ;;  %s657_s13 = sphi %s694_s13, %s796_s13   ;;  %s653_s12 = sphi %s692_s12, %s795_s12  }
   0x4   : > { %p23_p0 = scmp.ge.s32.totalorder %s22_s17, 5  ;;  %p42_p2 = scmp.eq.s32.totalorder %s669_s16, 0 }
   0x5   : > { %s34_s19 = sadd.s32 1, %s657_s13  ;;  %p526_p5 = scmp.ge.s32.totalorder %s669_s16, 5 }
   0x6   : > { %s800_s17 = smov (%p23_p0, %s22_s17), 0  ;;  %p43_p3 = por %p42_p2, %p41_p1 }
   0x7   : > { %s30_s18 = ssub.s32 %s665_s15, %s800_s17  ;;  %143 = sbr.rel (%p526_p5) target bundleno = 21 (0x15), region = 20 }
   0x8   : > { %p32_p4 = scmp.eq.s32.totalorder %s30_s18, 0 }
   0xa   : > { %s727_s20 = scalar_select %p32_p4, %s657_s13, %s34_s19  }
   0xe   : > { %146 = sbr.rel (!%p43_p3) target bundleno = 21 (0x15), region = 24  ;;  %s148_s21 = sand.u32 (%p43_p3), 1, %s657_s13  }
   0xf   : > { %s528_s22 = sshll.u32 (%p43_p3), %s665_s15, 2  ;;  %s527_s23 = sshll.u32 (%p43_p3), %s148_s21, 4 }
  0x10   : > { %s155_s26 = scalar_lea.vmem (%p43_p3), %s791_s0, %s528_s22  ;;  %s150_s27 = scalar_lea.vmem (%p43_p3), [#allocation3], %s527_s23 }
  0x11   : > { %v171_v0 = vld [vmem:[%s155_s26] sm:$0xf] (%p43_p3)  ;;  %v173_v1 = vld [vmem:[%s155_s26 + $0x14] sm:$0xf] (%p43_p3)  ;;  %v175_v2 = vld [vmem:[%s155_s26 + $0x28] sm:$0xf] (%p43_p3) }
  0x12   : > { %172 = vst [vmem:[%s150_s27] sm:$0xf] (%p43_p3), %v171_v0  ;;  %174 = vst [vmem:[%s150_s27 + $0x4] sm:$0xf] (%p43_p3), %v173_v1  ;;  %v177_v3 = vld [vmem:[%s155_s26 + $0x3c] sm:$0xf] (%p43_p3) }
  0x13   : > { %176 = vst [vmem:[%s150_s27 + $0x8] sm:$0xf] (%p43_p3), %v175_v2  ;;  %178 = vst [vmem:[%s150_s27 + $0xc] sm:$0xf] (%p43_p3), %v177_v3 }
  0x15 PF: > { %p529_p6 = scmp.ge.s32.totalorder %s669_s16, 1  ;;  %p217_p7 = scmp.lt.s32.totalorder %s669_s16, 6 }
  0x17   : > { %p218_p8 = pnand %p529_p6, %p217_p7 }
  0x18   : > { %s224_s28 = sand.u32 (!%p218_p8), 1, %s653_s12   ;;  %s531_s29 = sshll.u32 (!%p218_p8), %s661_s14, 4 }
  0x19   : > { %221 = sbr.rel (%p218_p8) target bundleno = 302 (0x12e), region = 69  ;;  %s739_s30 = sshll.u32 (!%p218_p8), %s224_s28, 4 }
  0x1a   : > { %p254_p9 = scmp.lt.s32.totalorder (!%p218_p8), %s531_s29, 79  ;;  %s226_s8 = scalar_lea.vmem (!%p218_p8), [#allocation3], %s739_s30 }
  0x1b   : > { %p533_p10 = scmp.ne.s32.totalorder (!%p218_p8), %s661_s14, 0 }
  0x20   : > { %s802_s29 = smov (!%p254_p9, %s531_s29), 79  ;;  %269 = sbr.rel (%p533_p10) target bundleno = 39 (0x27), region = 77 }
  0x21   : > { %s532_s4 = sshll.u32 %s802_s29, 2  ;;  %v671_v4 = vmov (!%p533_p10), 0.0  }
  0x22   : > { %s744_s7 = scalar_lea.vmem %s792_s1, %s532_s4  ;;  %270 = vst [vmem:[#allocation2] sm:$0xff] (!%p533_p10), %v671_v4  ;;  %271 = vst [vmem:[#allocation2 + $0x8] sm:$0xff] (!%p533_p10), %v671_v4 }
  0x23   : > { %272 = vst [vmem:[#allocation2 + $0x10] sm:$0xff] (!%p533_p10), %v671_v4  ;;  %273 = vst [vmem:[#allocation2 + $0x18] sm:$0xff] (!%p533_p10), %v671_v4 }
  0x27 PF: > { %v621_v5 = vld [vmem:[%s744_s7] sm:$0xff]   ;;  %v622_v6 = vld [vmem:[%s744_s7 + $0x8] sm:$0xff]   ;;  %v623_v7 = vld [vmem:[%s744_s7 + $0x10] sm:$0xff]   ;;  %p544_p11 = scmp.ne.s32.totalorder %s661_s14, 4 }
  0x28   : > { %560 = vmatprep.subr.bf16.mxu0 %v621_v5  ;;  %v624_v8 = vld [vmem:[%s744_s7 + $0x18] sm:$0xff]   ;;  %v629_v9 = vld [vmem:[%s226_s8] sm:$0xff]   ;;  %v626_v11 = vld [vmem:[%s744_s7 + $0x28] sm:$0xff]  }
  0x29   : > { %561 = vmatpush3.bf16.msra.mxu0 %v621_v5  ;;  %576 = vmatprep.mubr.bf16.mxu0 %v629_v9  ;;  %v625_v10 = vld [vmem:[%s744_s7 + $0x20] sm:$0xff]   ;;  %v627_v12 = vld [vmem:[%s744_s7 + $0x30] sm:$0xff]   ;;  %v628_v13 = vld [vmem:[%s744_s7 + $0x38] sm:$0xff]  }
  0x2a   : > { %562 = vmatprep.subr.bf16.mxu0 %v622_v6  ;;  %v630_v14 = vld [vmem:[%s226_s8 + $0x8] sm:$0xff]   ;;  %v276_v15 = vld [vmem:[#allocation2 + $0x10] sm:$0xff]  ;;  %v274_v16 = vld [vmem:[#allocation2] sm:$0xff] }
  0x2b   : > { %v277_v18 = vld [vmem:[#allocation2 + $0x18] sm:$0xff]  ;;  %v275_v21 = vld [vmem:[#allocation2 + $0x8] sm:$0xff]  ;;  %v545_v28 = vld [vmem:[%s793_s2] ss:$0 sm:$0xff] (!%p544_p11) }
  0x2d   : > { %563 = vmatpush3.bf16.msra.mxu0 %v622_v6 }
  0x2e   : > { %564 = vmatprep.subr.bf16.mxu0 %v623_v7 }
  0x31   : > { %565 = vmatpush3.bf16.msra.mxu0 %v623_v7 }
  0x32   : > { %566 = vmatprep.subr.bf16.mxu0 %v624_v8 }
  0x35   : > { %567 = vmatpush3.bf16.msra.mxu0 %v624_v8 }
  0x36   : > { %568 = vmatprep.subr.bf16.mxu0 %v625_v10 }
  0x39   : > { %569 = vmatpush3.bf16.msra.mxu0 %v625_v10 }
  0x3a   : > { %570 = vmatprep.subr.bf16.mxu0 %v626_v11 }
  0x3d   : > { %571 = vmatpush3.bf16.msra.mxu0 %v626_v11 }
  0x3e   : > { %572 = vmatprep.subr.bf16.mxu0 %v627_v12 }
  0x41   : > { %573 = vmatpush3.bf16.msra.mxu0 %v627_v12 }
  0x42   : > { %574 = vmatprep.subr.bf16.mxu0 %v628_v13 }
  0x45   : > { %575 = vmatpush3.bf16.msra.mxu0 %v628_v13 }
  0x48   : > { %577 = vmatmul.mubr.bf16.vlgmr.msra.gmra.mrb[0].mxu0 %v630_v14 }
 0x11b   : > { %v578_v17 = vpop.f32.mrb[0].mxu0  ;;  %418 = sbr.rel (%p544_p11) target bundleno = 302 (0x12e), region = 81 }
 0x11c   : > { %v409_v19 = vadd.f32 %v578_v17, %v276_v15  ;;  %v392_v20 = vpop.f32.mrb[1].mxu0 }
 0x11d   : > { %v407_v22 = vadd.f32 %v392_v20, %v274_v16  ;;  %v579_v23 = vpop.f32.mrb[2].mxu0 }
 0x11e   : > { %413 = vst [vmem:[#allocation2 + $0x10] sm:$0xff] %v409_v19  ;;  %v410_v24 = vadd.f32 %v579_v23, %v277_v18  ;;  %v395_v25 = vpop.f32.mrb[3].mxu0 }
 0x11f   : > { %411 = vst [vmem:[#allocation2] sm:$0xff] %v407_v22  ;;  %v408_v26 = vadd.f32 %v395_v25, %v275_v21 }
 0x120   : > { %414 = vst [vmem:[#allocation2 + $0x18] sm:$0xff] %v410_v24 }
 0x121   : > { %412 = vst [vmem:[#allocation2 + $0x8] sm:$0xff] %v408_v26 }
 0x125   : > { %v421_v32 = vld [vmem:[#allocation2 + $0x10] sm:$0xff] }
 0x126   : > { %v419_v27 = vld [vmem:[#allocation2] sm:$0xff]  ;;  %v432_v34 = vadd.f32 %v545_v28, %v421_v32 }
 0x127   : > { %v430_v30 = vadd.f32 %v545_v28, %v419_v27  ;;  %v422_v33 = vld [vmem:[#allocation2 + $0x18] sm:$0xff] }
 0x128   : > { %v420_v29 = vld [vmem:[#allocation2 + $0x8] sm:$0xff]  ;;  %v433_v35 = vadd.f32 %v545_v28, %v422_v33  ;;  %v436_v38 = vmax.f32 %v432_v34, 0.0 }
 0x129   : > { %v431_v31 = vadd.f32 %v545_v28, %v420_v29  ;;  %v434_v36 = vmax.f32 %v430_v30, 0.0 }
 0x12a   : > { %v437_v39 = vmax.f32 %v433_v35, 0.0  ;;  %440 = vst [vmem:[%s794_s3 + $0x10] sm:$0xff] %v436_v38 }
 0x12b   : > { %v435_v37 = vmax.f32 %v431_v31, 0.0  ;;  %438 = vst [vmem:[%s794_s3] sm:$0xff] %v434_v36 }
 0x12c   : > { %441 = vst [vmem:[%s794_s3 + $0x18] sm:$0xff] %v437_v39 }
 0x12d   : > { %439 = vst [vmem:[%s794_s3 + $0x8] sm:$0xff] %v435_v37 }
 0x12e PF: > { %s13_s16 = sadd.s32 1, %s669_s16   ;;  %s795_s12 = smov %s657_s13 }
 0x12f   : > { %p10_p12 = scmp.ge.s32.totalorder %s13_s16, 7   ;;  %s796_s13 = smov %s727_s20 }
 0x130   : > { %s797_s14 = smov %s665_s15  ;;  %s798_s15 = smov %s800_s17 }
 0x131   :  { %12 = sbr.rel (!%p10_p12) target bundleno = 3 (0x3), region = 119 }

// kernel: _forward.49
= control target key start
LH: loop header
LB: loop body
LE: loop exit
PB: predicated region body
PF: predicated region fallthrough
CT: control target
= control target key end

     0   :  { %s1207_s18 = smov 0   ;;  %s1209_s19 = smov 0   ;;  %s1341_s0 = inlined_call_operand.vmem [shape: bf16[32,1152], index: 0, kind: input, shape index: {}]   ;;  %s1342_s1 = inlined_call_operand.vmem [shape: bf16[1152,128], index: 1, kind: input, shape index: {}]   ;;  %s1343_s2 = inlined_call_operand.vmem [shape: f32[1,128], index: 2, kind: input, shape index: {}]   ;;  %s1344_s3 = inlined_call_operand.vmem [shape: bf16[32,64], index: 3, kind: input, shape index: {}]   ;;  %s1345_s4 = inlined_call_operand.vmem [shape: bf16[64,128], index: 4, kind: input, shape index: {}]   ;;  %s1346_s5 = inlined_call_operand.vmem [shape: f32[32,128], index: 5, kind: output, shape index: {}]  }
   0x1   :  { %s1211_s20 = smov 0   ;;  %s1213_s21 = smov 0  }
   0x2   :  { %s1215_s22 = smov 0  }
   0x3 LB: > { %s24_s23 = sadd.s32 1, %s1170_s21  ;;  %p43_p1 = scmp.ne.s32.totalorder %s1162_s19, %s1158_s18  ;;  %s1174_s22 = sphi %s1215_s22, %s15_s22   ;;  %s1170_s21 = sphi %s1213_s21, %s1350_s21   ;;  %s1166_s20 = sphi %s1211_s20, %s1349_s20   ;;  %s1162_s19 = sphi %s1209_s19, %s1348_s19   ;;  %s1158_s18 = sphi %s1207_s18, %s1347_s18  }
   0x4   : > { %p25_p0 = scmp.ge.s32.totalorder %s24_s23, 3  ;;  %p44_p2 = scmp.eq.s32.totalorder %s1174_s22, 0 }
   0x5   : > { %s36_s25 = sadd.s32 1, %s1162_s19  ;;  %p921_p5 = scmp.ge.s32.totalorder %s1174_s22, 3 }
   0x6   : > { %s1352_s23 = smov (%p25_p0, %s24_s23), 0  ;;  %p45_p3 = por %p44_p2, %p43_p1 }
   0x7   : > { %s32_s24 = ssub.s32 %s1170_s21, %s1352_s23  ;;  %204 = sbr.rel (%p921_p5) target bundleno = 23 (0x17), region = 28 }
   0x8   : > { %p34_p4 = scmp.eq.s32.totalorder %s32_s24, 0 }
   0xa   : > { %s1242_s26 = scalar_select %p34_p4, %s1162_s19, %s36_s25  }
   0xe   : > { %207 = sbr.rel (!%p45_p3) target bundleno = 23 (0x17), region = 32  ;;  %s209_s27 = sand.u32 (%p45_p3), 1, %s1162_s19  }
   0xf   : > { %s978_s28 = smul.u32 (%p45_p3), 12, %s1170_s21 }
  0x10   : > { %s1055_s29 = smul.u32 (%p45_p3), 48, %s209_s27 }
  0x11   : > { %s217_s7 = scalar_lea.vmem (%p45_p3), %s1341_s0, %s978_s28 }
  0x12   : > { %v232_v0 = vld [vmem:[%s217_s7] sm:$0xff] (%p45_p3)  ;;  %v236_v2 = vld [vmem:[%s217_s7 + $0x48] sm:$0xff] (%p45_p3)  ;;  %s211_s8 = scalar_lea.vmem (%p45_p3), [#allocation3], %s1055_s29  ;;  %v927_v6 = vld [vmem:[%s217_s7 + $0x50] sm:$0xf] (%p45_p3) }
  0x13   : > { %v234_v1 = vld [vmem:[%s217_s7 + $0x24] sm:$0xff] (%p45_p3)  ;;  %233 = vst [vmem:[%s211_s8] sm:$0xff] (%p45_p3), %v232_v0  ;;  %237 = vst [vmem:[%s211_s8 + $0x18] sm:$0xff] (%p45_p3), %v236_v2  ;;  %v238_v3 = vld [vmem:[%s217_s7 + $0x6c] sm:$0xff] (%p45_p3) }
  0x14   : > { %235 = vst [vmem:[%s211_s8 + $0xc] sm:$0xff] (%p45_p3), %v234_v1  ;;  %v923_v4 = vld [vmem:[%s217_s7 + $0x8] sm:$0xf] (%p45_p3)  ;;  %v925_v5 = vld [vmem:[%s217_s7 + $0x2c] sm:$0xf] (%p45_p3)  ;;  %239 = vst [vmem:[%s211_s8 + $0x24] sm:$0xff] (%p45_p3), %v238_v3 }
  0x15   : > { %924 = vst [vmem:[%s211_s8 + $0x8] sm:$0xf] %v923_v4  ;;  %926 = vst [vmem:[%s211_s8 + $0x14] sm:$0xf] %v925_v5  ;;  %v929_v7 = vld [vmem:[%s217_s7 + $0x74] sm:$0xf] }
  0x16   : > { %928 = vst [vmem:[%s211_s8 + $0x20] sm:$0xf] %v927_v6  ;;  %930 = vst [vmem:[%s211_s8 + $0x2c] sm:$0xf] %v929_v7 }
  0x17 PF: > { %p931_p6 = scmp.ge.s32.totalorder %s1174_s22, 1  ;;  %p268_p7 = scmp.lt.s32.totalorder %s1174_s22, 4 }
  0x19   : > { %p269_p8 = pnand %p931_p6, %p268_p7 }
  0x1a   : > { %s275_s9 = sand.u32 (!%p269_p8), 1, %s1158_s18   ;;  %s314_s10 = smul.u32 (!%p269_p8), 48, %s1166_s20 }
  0x1b   : > { %272 = sbr.rel (%p269_p8) target bundleno = 508 (0x1fc), region = 62  ;;  %p933_p10 = scmp.ne.s32.totalorder (!%p269_p8), %s1166_s20, 0 }
  0x1c   : > { %s1056_s11 = smul.u32 (!%p269_p8), 48, %s275_s9  ;;  %p315_p9 = scmp.lt.s32.totalorder (!%p269_p8), %s314_s10, 143 }
  0x1e   : > { %s1259_s16 = scalar_lea.vmem (!%p269_p8), [#allocation3], %s1056_s11 }
  0x22   : > { %s1354_s10 = smov (!%p315_p9, %s314_s10), 143  ;;  %336 = sbr.rel (%p933_p10) target bundleno = 41 (0x29), region = 70 }
  0x23   : > { %s932_s12 = sshll.u32 %s1354_s10, 2  ;;  %v1176_v8 = vmov (!%p933_p10), 0.0  }
  0x24   : > { %s1257_s15 = scalar_lea.vmem %s1342_s1, %s932_s12  ;;  %337 = vst [vmem:[#allocation2] sm:$0xff] (!%p933_p10), %v1176_v8  ;;  %338 = vst [vmem:[#allocation2 + $0x8] sm:$0xff] (!%p933_p10), %v1176_v8 }
  0x25   : > { %339 = vst [vmem:[#allocation2 + $0x10] sm:$0xff] (!%p933_p10), %v1176_v8  ;;  %340 = vst [vmem:[#allocation2 + $0x18] sm:$0xff] (!%p933_p10), %v1176_v8 }
  0x29 PF: > { %v1098_v9 = vld [vmem:[%s1257_s15 + $0x40] sm:$0xff]   ;;  %v1101_v12 = vld [vmem:[%s1257_s15 + $0x48] sm:$0xff]   ;;  %v1104_v15 = vld [vmem:[%s1257_s15 + $0x50] sm:$0xff]   ;;  %p964_p11 = scmp.ne.s32.totalorder %s1166_s20, 2 }
  0x2a   : > { %v1099_v10 = vld [vmem:[%s1257_s15] sm:$0xff]   ;;  %979 = vmatprep.subr.bf16.mxu0 %v1098_v9  ;;  %v1102_v13 = vld [vmem:[%s1257_s15 + $0x8] sm:$0xff]   ;;  %v1105_v16 = vld [vmem:[%s1257_s15 + $0x10] sm:$0xff]   ;;  %vm748_vm0 = vcmask (!%p964_p11), 523264  }
  0x2b   : > { %v1100_v11 = vld [vmem:[%s1257_s15 + $0x80] sm:$0xff]   ;;  %980 = vmatpush3.bf16.msra.mxu0 %v1099_v10  ;;  %v1103_v14 = vld [vmem:[%s1257_s15 + $0x88] sm:$0xff]   ;;  %v1106_v17 = vld [vmem:[%s1257_s15 + $0x90] sm:$0xff]  }
  0x2c   : > { %1023 = vmatprep.subr.bf16.mxu1 %v1100_v11  ;;  %981 = vmatprep.subr.bf16.mxu0 %v1101_v12  ;;  %v1107_v18 = vld [vmem:[%s1257_s15 + $0x58] sm:$0xff]   ;;  %v1110_v21 = vld [vmem:[%s1257_s15 + $0x60] sm:$0xff]   ;;  %v1113_v24 = vld [vmem:[%s1257_s15 + $0x68] sm:$0xff]  }
  0x2d   : > { %1024 = vmatpush3.bf16.msra.mxu1 %v1100_v11  ;;  %v1108_v19 = vld [vmem:[%s1257_s15 + $0x18] sm:$0xff]   ;;  %v1112_v22 = vld [vmem:[%s1257_s15 + $0xa0] sm:$0xff]   ;;  %v1115_v25 = vld [vmem:[%s1257_s15 + $0xa8] sm:$0xff]  }
  0x2e   : > { %1025 = vmatprep.subr.bf16.mxu1 %v1103_v14  ;;  %v1109_v20 = vld [vmem:[%s1257_s15 + $0x98] sm:$0xff]   ;;  %v1111_v23 = vld [vmem:[%s1257_s15 + $0x20] sm:$0xff]   ;;  %v1114_v26 = vld [vmem:[%s1257_s15 + $0x28] sm:$0xff]  }
  0x2f   : > { %982 = vmatpush3.bf16.msra.mxu0 %v1102_v13  ;;  %v1116_v27 = vld [vmem:[%s1257_s15 + $0x70] sm:$0xff]   ;;  %v1119_v30 = vld [vmem:[%s1257_s15 + $0x78] sm:$0xff]   ;;  %v341_v45 = vld [vmem:[#allocation2] sm:$0xff] }
  0x30   : > { %983 = vmatprep.subr.bf16.mxu0 %v1104_v15  ;;  %v1117_v28 = vld [vmem:[%s1257_s15 + $0x30] sm:$0xff]   ;;  %v1121_v31 = vld [vmem:[%s1257_s15 + $0xb8] sm:$0xff]   ;;  %v342_v50 = vld [vmem:[#allocation2 + $0x8] sm:$0xff] }
  0x31   : > { %1026 = vmatpush3.bf16.msra.mxu1 %v1103_v14  ;;  %v1118_v29 = vld [vmem:[%s1257_s15 + $0xb0] sm:$0xff]   ;;  %v1120_v34 = vld [vmem:[%s1257_s15 + $0x38] sm:$0xff]   ;;  %v1130_v3 = vld [vmem:[%s1345_s4] sm:$0xff] (!%p964_p11)  }
  0x32   : > { %1027 = vmatprep.subr.bf16.mxu1 %v1106_v17  ;;  %v1124_v32 = vld [vmem:[%s1259_s16 + $0x4] ss:$12 sps:$4 sm:$0xff]   ;;  %v1125_v33 = vld [vmem:[%s1259_s16 + $0x8] ss:$12 sps:$4 sm:$0xff]   ;;  %v1122_v35 = vld [vmem:[%s1259_s16] ss:$12 sps:$4 sm:$0xff]  }
  0x33   : > { %984 = vmatpush3.bf16.msra.mxu0 %v1105_v16  ;;  %609 = vmatprep.mubr.bf16.mxu0 %v1124_v32  ;;  %v1127_v36 = vld [vmem:[%s1259_s16 + $0x1c] ss:$12 sps:$4 sm:$0xff]   ;;  %v1126_v37 = vld [vmem:[%s1259_s16 + $0x20] ss:$12 sps:$4 sm:$0xff]   ;;  %v1129_v38 = vld [vmem:[%s1259_s16 + $0x18] ss:$12 sps:$4 sm:$0xff]  }
  0x34   : > { %985 = vmatprep.subr.bf16.mxu0 %v1107_v18  ;;  %1039 = vmatprep.mubr.bf16.mxu1 %v1125_v33  ;;  %v343_v59 = vld [vmem:[#allocation2 + $0x10] sm:$0xff]  ;;  %v344_v63 = vld [vmem:[#allocation2 + $0x18] sm:$0xff]  ;;  %v1131_v4 = vld [vmem:[%s1345_s4 + $0x8] sm:$0xff] (!%p964_p11)  }
  0x35   : > { %1028 = vmatpush3.bf16.msra.mxu1 %v1106_v17  ;;  %v1132_v5 = vld [vmem:[%s1345_s4 + $0x10] sm:$0xff] (!%p964_p11)   ;;  %v1134_v6 = vld [vmem:[%s1344_s3] sm:$0xff] (!%p964_p11)   ;;  %v1133_v7 = vld [vmem:[%s1345_s4 + $0x18] sm:$0xff] (!%p964_p11)  }
  0x36   : > { %1029 = vmatprep.subr.bf16.mxu1 %v1109_v20  ;;  %v1135_v8 = vld [vmem:[%s1344_s3 + $0x8] sm:$0xff] (!%p964_p11)   ;;  %v965_v10 = vld [vmem:[%s1343_s2] ss:$0 sm:$0xff] (!%p964_p11) }
  0x37   : > { %986 = vmatpush3.bf16.msra.mxu0 %v1108_v19 }
  0x38   : > { %987 = vmatprep.subr.bf16.mxu0 %v1110_v21 }
  0x39   : > { %1030 = vmatpush3.bf16.msra.mxu1 %v1109_v20 }
  0x3a   : > { %1031 = vmatprep.subr.bf16.mxu1 %v1112_v22 }
  0x3b   : > { %988 = vmatpush3.bf16.msra.mxu0 %v1111_v23 }
  0x3c   : > { %989 = vmatprep.subr.bf16.mxu0 %v1113_v24 }
  0x3d   : > { %1032 = vmatpush3.bf16.msra.mxu1 %v1112_v22 }
  0x3e   : > { %1033 = vmatprep.subr.bf16.mxu1 %v1115_v25 }
  0x3f   : > { %990 = vmatpush3.bf16.msra.mxu0 %v1114_v26 }
  0x40   : > { %991 = vmatprep.subr.bf16.mxu0 %v1116_v27 }
  0x41   : > { %1034 = vmatpush3.bf16.msra.mxu1 %v1115_v25 }
  0x42   : > { %1035 = vmatprep.subr.bf16.mxu1 %v1118_v29 }
  0x43   : > { %992 = vmatpush3.bf16.msra.mxu0 %v1117_v28 }
  0x44   : > { %993 = vmatprep.subr.bf16.mxu0 %v1119_v30 }
  0x45   : > { %1036 = vmatpush3.bf16.msra.mxu1 %v1118_v29 }
  0x46   : > { %1037 = vmatprep.subr.bf16.mxu1 %v1121_v31 }
  0x47   : > { %994 = vmatpush3.bf16.msra.mxu0 %v1120_v34 }
  0x48   : > { %1043 = vmatprep.subr.bf16.mxu0 (!%p964_p11), %v1130_v3 }
  0x49   : > { %1038 = vmatpush3.bf16.msra.mxu1 %v1121_v31 }
  0x4a   : > { %610 = vmatmul.mubr.bf16.vlgmr.msra.gmra.mrb[0].mxu0 %v1122_v35 }
  0x4b   : > { %617 = vmatprep.mubr.bf16.mxu0 %v1127_v36  ;;  %1044 = vmatpush3.bf16.msra.mxu0 (!%p964_p11), %v1130_v3 }
  0x4c   : > { %1040 = vmatmul.mubr.bf16.vlgmr.msra.gmra.mrb[0].mxu1 %v1126_v37  ;;  %1045 = vmatprep.subr.bf16.mxu0 (!%p964_p11), %v1131_v4 }
  0x4f   : > { %1046 = vmatpush3.bf16.msra.mxu0 (!%p964_p11), %v1131_v4 }
  0x50   : > { %1047 = vmatprep.subr.bf16.mxu0 (!%p964_p11), %v1132_v5 }
  0x52   : > { %618 = vmatmul.mubr.bf16.gmra.mrb[4].mxu0 %v1129_v38 }
  0x53   : > { %1051 = vmatprep.mubr.msk.bf16.mxu0 (!%p964_p11), %vm748_vm0, %v1134_v6  ;;  %1048 = vmatpush3.bf16.msra.mxu0 (!%p964_p11), %v1132_v5 }
  0x54   : > { %1049 = vmatprep.subr.bf16.mxu0 (!%p964_p11), %v1133_v7 }
  0x57   : > { %1050 = vmatpush3.bf16.msra.mxu0 (!%p964_p11), %v1133_v7 }
 0x11d   : > { %v995_v39 = vpop.f32.mrb[0].mxu0 }
 0x11e   : > { %v996_v40 = vpop.f32.mrb[1].mxu0 }
 0x11f   : > { %v997_v41 = vadd.f32 %v996_v40, %v995_v39  ;;  %v998_v42 = vpop.f32.mrb[2].mxu0  ;;  %v1041_v43 = vpop.f32.mrb[0].mxu1 }
 0x120   : > { %v999_v44 = vpop.f32.mrb[3].mxu0  ;;  %v660_v46 = vpop.f32.mrb[1].mxu1  ;;  %1052 = vmatmul.mubr.msk.bf16.vlgmr.msra.gmra.mrb[0].mxu0 (!%p964_p11), %vm748_vm0, %v1135_v8 }
 0x121   : > { %v1000_v47 = vadd.f32 %v999_v44, %v998_v42  ;;  %v661_v48 = vadd.f32 %v997_v41, %v660_v46  ;;  %v1042_v49 = vpop.f32.mrb[2].mxu1 }
 0x122   : > { %v663_v51 = vpop.f32.mrb[3].mxu1 }
 0x123   : > { %v675_v52 = vadd.f32 %v661_v48, %v341_v45  ;;  %v664_v53 = vadd.f32 %v1000_v47, %v663_v51 }
 0x125   : > { %679 = vst [vmem:[#allocation2] sm:$0xff] %v675_v52  ;;  %v676_v54 = vadd.f32 %v664_v53, %v342_v50  ;;  %v1001_v55 = vpop.f32.mrb[4].mxu0 }
 0x126   : > { %v1002_v56 = vpop.f32.mrb[5].mxu0 }
 0x127   : > { %680 = vst [vmem:[#allocation2 + $0x8] sm:$0xff] %v676_v54  ;;  %v1003_v57 = vadd.f32 %v1002_v56, %v1001_v55  ;;  %v1004_v58 = vpop.f32.mrb[6].mxu0 }
 0x128   : > { %v1005_v60 = vpop.f32.mrb[7].mxu0 }
 0x129   : > { %v669_v61 = vadd.f32 %v1041_v43, %v1003_v57  ;;  %v1006_v62 = vadd.f32 %v1005_v60, %v1004_v58  ;;  %686 = sbr.rel (%p964_p11) target bundleno = 508 (0x1fc), region = 74 }
 0x12b   : > { %v677_v0 = vadd.f32 %v669_v61, %v343_v59  ;;  %v672_v1 = vadd.f32 %v1042_v49, %v1006_v62 }
 0x12c   : > { %v687_v11 = vld [vmem:[#allocation2] sm:$0xff] (!%p964_p11) }
 0x12d   : > { %681 = vst [vmem:[#allocation2 + $0x10] sm:$0xff] %v677_v0  ;;  %v678_v2 = vadd.f32 %v672_v1, %v344_v63  ;;  %v698_v15 = vadd.f32 (!%p964_p11), %v965_v10, %v687_v11 }
 0x12e   : > { %v688_v14 = vld [vmem:[#allocation2 + $0x8] sm:$0xff] (!%p964_p11) }
 0x12f   : > { %682 = vst [vmem:[#allocation2 + $0x18] sm:$0xff] %v678_v2  ;;  %v699_v18 = vadd.f32 (!%p964_p11), %v965_v10, %v688_v14 }
 0x134   : > { %v689_v9 = vld [vmem:[#allocation2 + $0x10] sm:$0xff] }
 0x135   : > { %v700_v13 = vadd.f32 %v965_v10, %v689_v9 }
 0x136   : > { %v690_v12 = vld [vmem:[#allocation2 + $0x18] sm:$0xff] }
 0x137   : > { %v701_v16 = vadd.f32 %v965_v10, %v690_v12 }
 0x1f3   : > { %v1053_v17 = vpop.f32.mrb[0].mxu0 }
 0x1f4   : > { %v806_v19 = vadd.f32 %v1053_v17, %v700_v13  ;;  %v789_v20 = vpop.f32.mrb[1].mxu0 }
 0x1f5   : > { %v804_v21 = vadd.f32 %v789_v20, %v698_v15  ;;  %v1054_v22 = vpop.f32.mrb[2].mxu0 }
 0x1f6   : > { %v810_v23 = vmax.f32 %v806_v19, 0.0  ;;  %v807_v24 = vadd.f32 %v1054_v22, %v701_v16  ;;  %v792_v25 = vpop.f32.mrb[3].mxu0 }
 0x1f7   : > { %v808_v26 = vmax.f32 %v804_v21, 0.0  ;;  %v805_v27 = vadd.f32 %v792_v25, %v699_v18 }
 0x1f8   : > { %814 = vst [vmem:[%s1346_s5 + $0x10] sm:$0xff] %v810_v23  ;;  %v811_v28 = vmax.f32 %v807_v24, 0.0 }
 0x1f9   : > { %812 = vst [vmem:[%s1346_s5] sm:$0xff] %v808_v26  ;;  %v809_v29 = vmax.f32 %v805_v27, 0.0 }
 0x1fa   : > { %815 = vst [vmem:[%s1346_s5 + $0x18] sm:$0xff] %v811_v28 }
 0x1fb   : > { %813 = vst [vmem:[%s1346_s5 + $0x8] sm:$0xff] %v809_v29 }
 0x1fc PF: > { %s15_s22 = sadd.s32 1, %s1174_s22   ;;  %s1347_s18 = smov %s1162_s19 }
 0x1fd   : > { %p12_p12 = scmp.ge.s32.totalorder %s15_s22, 5   ;;  %s1348_s19 = smov %s1242_s26 }
 0x1fe   : > { %s1349_s20 = smov %s1170_s21  ;;  %s1350_s21 = smov %s1352_s23 }
 0x1ff   :  { %14 = sbr.rel (!%p12_p12) target bundleno = 3 (0x3), region = 121 }

// kernel: _forward.51
= control target key start
LH: loop header
LB: loop body
LE: loop exit
PB: predicated region body
PF: predicated region fallthrough
CT: control target
= control target key end

     0   :  { %s1045_s15 = smov 0   ;;  %s1047_s16 = smov 0   ;;  %s1173_s0 = inlined_call_operand.vmem [shape: bf16[32,1152], index: 0, kind: input, shape index: {}]   ;;  %s1174_s1 = inlined_call_operand.vmem [shape: bf16[1152,128], index: 1, kind: input, shape index: {}]   ;;  %s1175_s2 = inlined_call_operand.vmem [shape: f32[1,128], index: 2, kind: input, shape index: {}]   ;;  %s1176_s3 = inlined_call_operand.vmem [shape: f32[32,128], index: 3, kind: input, shape index: {}]   ;;  %s1177_s4 = inlined_call_operand.vmem [shape: f32[32,128], index: 4, kind: output, shape index: {}]  }
   0x1   :  { %s1049_s17 = smov 0   ;;  %s1051_s18 = smov 0  }
   0x2   :  { %s1053_s19 = smov 0  }
   0x3 LB: > { %s23_s20 = sadd.s32 1, %s1013_s18  ;;  %p42_p1 = scmp.ne.s32.totalorder %s1005_s16, %s1001_s15  ;;  %s1017_s19 = sphi %s1053_s19, %s14_s19   ;;  %s1013_s18 = sphi %s1051_s18, %s1181_s18   ;;  %s1009_s17 = sphi %s1049_s17, %s1180_s17   ;;  %s1005_s16 = sphi %s1047_s16, %s1179_s16   ;;  %s1001_s15 = sphi %s1045_s15, %s1178_s15  }
   0x4   : > { %p24_p0 = scmp.ge.s32.totalorder %s23_s20, 3  ;;  %p43_p2 = scmp.eq.s32.totalorder %s1017_s19, 0 }
   0x5   : > { %s35_s22 = sadd.s32 1, %s1005_s16  ;;  %p796_p5 = scmp.ge.s32.totalorder %s1017_s19, 3 }
   0x6   : > { %s1183_s20 = smov (%p24_p0, %s23_s20), 0  ;;  %p44_p3 = por %p43_p2, %p42_p1 }
   0x7   : > { %s31_s21 = ssub.s32 %s1013_s18, %s1183_s20  ;;  %179 = sbr.rel (%p796_p5) target bundleno = 23 (0x17), region = 24 }
   0x8   : > { %p33_p4 = scmp.eq.s32.totalorder %s31_s21, 0 }
   0xa   : > { %s1080_s23 = scalar_select %p33_p4, %s1005_s16, %s35_s22  }
   0xe   : > { %182 = sbr.rel (!%p44_p3) target bundleno = 23 (0x17), region = 28  ;;  %s184_s24 = sand.u32 (%p44_p3), 1, %s1005_s16  }
   0xf   : > { %s845_s25 = smul.u32 (%p44_p3), 12, %s1013_s18 }
  0x10   : > { %s904_s26 = smul.u32 (%p44_p3), 48, %s184_s24 }
  0x11   : > { %s192_s29 = scalar_lea.vmem (%p44_p3), %s1173_s0, %s845_s25 }
  0x12   : > { %v207_v0 = vld [vmem:[%s192_s29] sm:$0xff] (%p44_p3)  ;;  %v211_v2 = vld [vmem:[%s192_s29 + $0x48] sm:$0xff] (%p44_p3)  ;;  %s186_s30 = scalar_lea.vmem (%p44_p3), [#allocation3], %s904_s26  ;;  %v802_v6 = vld [vmem:[%s192_s29 + $0x50] sm:$0xf] (%p44_p3) }
  0x13   : > { %v209_v1 = vld [vmem:[%s192_s29 + $0x24] sm:$0xff] (%p44_p3)  ;;  %208 = vst [vmem:[%s186_s30] sm:$0xff] (%p44_p3), %v207_v0  ;;  %212 = vst [vmem:[%s186_s30 + $0x18] sm:$0xff] (%p44_p3), %v211_v2  ;;  %v213_v3 = vld [vmem:[%s192_s29 + $0x6c] sm:$0xff] (%p44_p3) }
  0x14   : > { %210 = vst [vmem:[%s186_s30 + $0xc] sm:$0xff] (%p44_p3), %v209_v1  ;;  %v798_v4 = vld [vmem:[%s192_s29 + $0x8] sm:$0xf] (%p44_p3)  ;;  %v800_v5 = vld [vmem:[%s192_s29 + $0x2c] sm:$0xf] (%p44_p3)  ;;  %214 = vst [vmem:[%s186_s30 + $0x24] sm:$0xff] (%p44_p3), %v213_v3 }
  0x15   : > { %799 = vst [vmem:[%s186_s30 + $0x8] sm:$0xf] %v798_v4  ;;  %801 = vst [vmem:[%s186_s30 + $0x14] sm:$0xf] %v800_v5  ;;  %v804_v7 = vld [vmem:[%s192_s29 + $0x74] sm:$0xf] }
  0x16   : > { %803 = vst [vmem:[%s186_s30 + $0x20] sm:$0xf] %v802_v6  ;;  %805 = vst [vmem:[%s186_s30 + $0x2c] sm:$0xf] %v804_v7 }
  0x17 PF: > { %p806_p6 = scmp.ge.s32.totalorder %s1017_s19, 1  ;;  %p243_p7 = scmp.lt.s32.totalorder %s1017_s19, 4 }
  0x19   : > { %p244_p8 = pnand %p806_p6, %p243_p7 }
  0x1a   : > { %s250_s5 = sand.u32 (!%p244_p8), 1, %s1001_s15   ;;  %s287_s6 = smul.u32 (!%p244_p8), 48, %s1009_s17 }
  0x1b   : > { %247 = sbr.rel (%p244_p8) target bundleno = 318 (0x13e), region = 58  ;;  %p808_p10 = scmp.ne.s32.totalorder (!%p244_p8), %s1009_s17, 0 }
  0x1c   : > { %s905_s7 = smul.u32 (!%p244_p8), 48, %s250_s5  ;;  %p288_p9 = scmp.lt.s32.totalorder (!%p244_p8), %s287_s6, 143 }
  0x1e   : > { %s1097_s12 = scalar_lea.vmem (!%p244_p8), [#allocation3], %s905_s7 }
  0x22   : > { %s1185_s6 = smov (!%p288_p9, %s287_s6), 143  ;;  %309 = sbr.rel (%p808_p10) target bundleno = 41 (0x29), region = 66 }
  0x23   : > { %s807_s8 = sshll.u32 %s1185_s6, 2  ;;  %v1019_v8 = vmov (!%p808_p10), 0.0  }
  0x24   : > { %s1095_s11 = scalar_lea.vmem %s1174_s1, %s807_s8  ;;  %310 = vst [vmem:[#allocation2] sm:$0xff] (!%p808_p10), %v1019_v8  ;;  %311 = vst [vmem:[#allocation2 + $0x8] sm:$0xff] (!%p808_p10), %v1019_v8 }
  0x25   : > { %312 = vst [vmem:[#allocation2 + $0x10] sm:$0xff] (!%p808_p10), %v1019_v8  ;;  %313 = vst [vmem:[#allocation2 + $0x18] sm:$0xff] (!%p808_p10), %v1019_v8 }
  0x29 PF: > { %v947_v9 = vld [vmem:[%s1095_s11 + $0x40] sm:$0xff]   ;;  %v950_v12 = vld [vmem:[%s1095_s11 + $0x48] sm:$0xff]   ;;  %v953_v15 = vld [vmem:[%s1095_s11 + $0x50] sm:$0xff]   ;;  %p839_p11 = scmp.ne.s32.totalorder %s1009_s17, 2 }
  0x2a   : > { %v948_v10 = vld [vmem:[%s1095_s11] sm:$0xff]   ;;  %846 = vmatprep.subr.bf16.mxu0 %v947_v9  ;;  %v951_v13 = vld [vmem:[%s1095_s11 + $0x8] sm:$0xff]   ;;  %v954_v16 = vld [vmem:[%s1095_s11 + $0x10] sm:$0xff]  }
  0x2b   : > { %v949_v11 = vld [vmem:[%s1095_s11 + $0x80] sm:$0xff]   ;;  %847 = vmatpush3.bf16.msra.mxu0 %v948_v10  ;;  %v952_v14 = vld [vmem:[%s1095_s11 + $0x88] sm:$0xff]   ;;  %v955_v17 = vld [vmem:[%s1095_s11 + $0x90] sm:$0xff]  }
  0x2c   : > { %884 = vmatprep.subr.bf16.mxu1 %v949_v11  ;;  %848 = vmatprep.subr.bf16.mxu0 %v950_v12  ;;  %v956_v18 = vld [vmem:[%s1095_s11 + $0x58] sm:$0xff]   ;;  %v959_v21 = vld [vmem:[%s1095_s11 + $0x60] sm:$0xff]   ;;  %v962_v24 = vld [vmem:[%s1095_s11 + $0x68] sm:$0xff]  }
  0x2d   : > { %885 = vmatpush3.bf16.msra.mxu1 %v949_v11  ;;  %v957_v19 = vld [vmem:[%s1095_s11 + $0x18] sm:$0xff]   ;;  %v961_v22 = vld [vmem:[%s1095_s11 + $0xa0] sm:$0xff]   ;;  %v964_v25 = vld [vmem:[%s1095_s11 + $0xa8] sm:$0xff]  }
  0x2e   : > { %886 = vmatprep.subr.bf16.mxu1 %v952_v14  ;;  %v958_v20 = vld [vmem:[%s1095_s11 + $0x98] sm:$0xff]   ;;  %v960_v23 = vld [vmem:[%s1095_s11 + $0x20] sm:$0xff]   ;;  %v963_v26 = vld [vmem:[%s1095_s11 + $0x28] sm:$0xff]  }
  0x2f   : > { %849 = vmatpush3.bf16.msra.mxu0 %v951_v13  ;;  %v965_v27 = vld [vmem:[%s1095_s11 + $0x70] sm:$0xff]   ;;  %v968_v30 = vld [vmem:[%s1095_s11 + $0x78] sm:$0xff]   ;;  %v314_v45 = vld [vmem:[#allocation2] sm:$0xff] }
  0x30   : > { %850 = vmatprep.subr.bf16.mxu0 %v953_v15  ;;  %v966_v28 = vld [vmem:[%s1095_s11 + $0x30] sm:$0xff]   ;;  %v970_v31 = vld [vmem:[%s1095_s11 + $0xb8] sm:$0xff]   ;;  %v315_v50 = vld [vmem:[#allocation2 + $0x8] sm:$0xff] }
  0x31   : > { %887 = vmatpush3.bf16.msra.mxu1 %v952_v14  ;;  %v967_v29 = vld [vmem:[%s1095_s11 + $0xb0] sm:$0xff]   ;;  %v969_v34 = vld [vmem:[%s1095_s11 + $0x38] sm:$0xff]   ;;  %v840_v4 = vld [vmem:[%s1175_s2] ss:$0 sm:$0xff] (!%p839_p11) }
  0x32   : > { %888 = vmatprep.subr.bf16.mxu1 %v955_v17  ;;  %v973_v32 = vld [vmem:[%s1097_s12 + $0x4] ss:$12 sps:$4 sm:$0xff]   ;;  %v974_v33 = vld [vmem:[%s1097_s12 + $0x8] ss:$12 sps:$4 sm:$0xff]   ;;  %v971_v35 = vld [vmem:[%s1097_s12] ss:$12 sps:$4 sm:$0xff]  }
  0x33   : > { %851 = vmatpush3.bf16.msra.mxu0 %v954_v16  ;;  %582 = vmatprep.mubr.bf16.mxu0 %v973_v32  ;;  %v976_v36 = vld [vmem:[%s1097_s12 + $0x1c] ss:$12 sps:$4 sm:$0xff]   ;;  %v975_v37 = vld [vmem:[%s1097_s12 + $0x20] ss:$12 sps:$4 sm:$0xff]   ;;  %v978_v38 = vld [vmem:[%s1097_s12 + $0x18] ss:$12 sps:$4 sm:$0xff]  }
  0x34   : > { %852 = vmatprep.subr.bf16.mxu0 %v956_v18  ;;  %900 = vmatprep.mubr.bf16.mxu1 %v974_v33  ;;  %v316_v59 = vld [vmem:[#allocation2 + $0x10] sm:$0xff]  ;;  %v317_v63 = vld [vmem:[#allocation2 + $0x18] sm:$0xff]  ;;  %v675_v5 = vld [vmem:[%s1176_s3] sm:$0xff] (!%p839_p11) }
  0x35   : > { %889 = vmatpush3.bf16.msra.mxu1 %v955_v17  ;;  %v676_v8 = vld [vmem:[%s1176_s3 + $0x8] sm:$0xff] (!%p839_p11)  ;;  %v677_v12 = vld [vmem:[%s1176_s3 + $0x10] sm:$0xff] (!%p839_p11)  ;;  %v678_v14 = vld [vmem:[%s1176_s3 + $0x18] sm:$0xff] (!%p839_p11) }
  0x36   : > { %890 = vmatprep.subr.bf16.mxu1 %v958_v20 }
  0x37   : > { %853 = vmatpush3.bf16.msra.mxu0 %v957_v19 }
  0x38   : > { %854 = vmatprep.subr.bf16.mxu0 %v959_v21 }
  0x39   : > { %891 = vmatpush3.bf16.msra.mxu1 %v958_v20 }
  0x3a   : > { %892 = vmatprep.subr.bf16.mxu1 %v961_v22 }
  0x3b   : > { %855 = vmatpush3.bf16.msra.mxu0 %v960_v23 }
  0x3c   : > { %856 = vmatprep.subr.bf16.mxu0 %v962_v24 }
  0x3d   : > { %893 = vmatpush3.bf16.msra.mxu1 %v961_v22 }
  0x3e   : > { %894 = vmatprep.subr.bf16.mxu1 %v964_v25 }
  0x3f   : > { %857 = vmatpush3.bf16.msra.mxu0 %v963_v26 }
  0x40   : > { %858 = vmatprep.subr.bf16.mxu0 %v965_v27 }
  0x41   : > { %895 = vmatpush3.bf16.msra.mxu1 %v964_v25 }
  0x42   : > { %896 = vmatprep.subr.bf16.mxu1 %v967_v29 }
  0x43   : > { %859 = vmatpush3.bf16.msra.mxu0 %v966_v28 }
  0x44   : > { %860 = vmatprep.subr.bf16.mxu0 %v968_v30 }
  0x45   : > { %897 = vmatpush3.bf16.msra.mxu1 %v967_v29 }
  0x46   : > { %898 = vmatprep.subr.bf16.mxu1 %v970_v31 }
  0x47   : > { %861 = vmatpush3.bf16.msra.mxu0 %v969_v34 }
  0x49   : > { %899 = vmatpush3.bf16.msra.mxu1 %v970_v31 }
  0x4a   : > { %583 = vmatmul.mubr.bf16.vlgmr.msra.gmra.mrb[0].mxu0 %v971_v35 }
  0x4b   : > { %590 = vmatprep.mubr.bf16.mxu0 %v976_v36 }
  0x4c   : > { %901 = vmatmul.mubr.bf16.vlgmr.msra.gmra.mrb[0].mxu1 %v975_v37 }
  0x52   : > { %591 = vmatmul.mubr.bf16.gmra.mrb[4].mxu0 %v978_v38 }
 0x11d   : > { %v862_v39 = vpop.f32.mrb[0].mxu0 }
 0x11e   : > { %v863_v40 = vpop.f32.mrb[1].mxu0 }
 0x11f   : > { %v864_v41 = vadd.f32 %v863_v40, %v862_v39  ;;  %v865_v42 = vpop.f32.mrb[2].mxu0  ;;  %v902_v43 = vpop.f32.mrb[0].mxu1 }
 0x120   : > { %v866_v44 = vpop.f32.mrb[3].mxu0  ;;  %v633_v46 = vpop.f32.mrb[1].mxu1 }
 0x121   : > { %v867_v47 = vadd.f32 %v866_v44, %v865_v42  ;;  %v634_v48 = vadd.f32 %v864_v41, %v633_v46  ;;  %v903_v49 = vpop.f32.mrb[2].mxu1 }
 0x122   : > { %v636_v51 = vpop.f32.mrb[3].mxu1 }
 0x123   : > { %v648_v52 = vadd.f32 %v634_v48, %v314_v45  ;;  %v637_v53 = vadd.f32 %v867_v47, %v636_v51 }
 0x125   : > { %652 = vst [vmem:[#allocation2] sm:$0xff] %v648_v52  ;;  %v649_v54 = vadd.f32 %v637_v53, %v315_v50  ;;  %v868_v55 = vpop.f32.mrb[4].mxu0 }
 0x126   : > { %v869_v56 = vpop.f32.mrb[5].mxu0 }
 0x127   : > { %653 = vst [vmem:[#allocation2 + $0x8] sm:$0xff] %v649_v54  ;;  %v870_v57 = vadd.f32 %v869_v56, %v868_v55  ;;  %v871_v58 = vpop.f32.mrb[6].mxu0 }
 0x128   : > { %v872_v60 = vpop.f32.mrb[7].mxu0 }
 0x129   : > { %v642_v61 = vadd.f32 %v902_v43, %v870_v57  ;;  %v873_v62 = vadd.f32 %v872_v60, %v871_v58  ;;  %659 = sbr.rel (%p839_p11) target bundleno = 318 (0x13e), region = 70 }
 0x12b   : > { %v650_v0 = vadd.f32 %v642_v61, %v316_v59  ;;  %v645_v1 = vadd.f32 %v903_v49, %v873_v62 }
 0x12c   : > { %v660_v3 = vld [vmem:[#allocation2] sm:$0xff] (!%p839_p11) }
 0x12d   : > { %654 = vst [vmem:[#allocation2 + $0x10] sm:$0xff] %v650_v0  ;;  %v651_v2 = vadd.f32 %v645_v1, %v317_v63  ;;  %v671_v6 = vadd.f32 (!%p839_p11), %v840_v4, %v660_v3 }
 0x12e   : > { %v661_v7 = vld [vmem:[#allocation2 + $0x8] sm:$0xff] (!%p839_p11) }
 0x12f   : > { %655 = vst [vmem:[#allocation2 + $0x18] sm:$0xff] %v651_v2  ;;  %v672_v10 = vadd.f32 (!%p839_p11), %v840_v4, %v661_v7  ;;  %v679_v15 = vadd.f32 (!%p839_p11), %v675_v5, %v671_v6 }
 0x131   : > { %v680_v17 = vadd.f32 %v676_v8, %v672_v10  ;;  %v683_v19 = vmax.f32 %v679_v15, 0.0 }
 0x133   : > { %v684_v21 = vmax.f32 %v680_v17, 0.0  ;;  %687 = vst [vmem:[%s1177_s4] sm:$0xff] %v683_v19 }
 0x134   : > { %v662_v9 = vld [vmem:[#allocation2 + $0x10] sm:$0xff] }
 0x135   : > { %v673_v11 = vadd.f32 %v840_v4, %v662_v9  ;;  %688 = vst [vmem:[%s1177_s4 + $0x8] sm:$0xff] %v684_v21 }
 0x136   : > { %v663_v13 = vld [vmem:[#allocation2 + $0x18] sm:$0xff] }
 0x137   : > { %v674_v16 = vadd.f32 %v840_v4, %v663_v13  ;;  %v681_v18 = vadd.f32 %v677_v12, %v673_v11 }
 0x139   : > { %v682_v20 = vadd.f32 %v678_v14, %v674_v16  ;;  %v685_v22 = vmax.f32 %v681_v18, 0.0 }
 0x13b   : > { %v686_v23 = vmax.f32 %v682_v20, 0.0  ;;  %689 = vst [vmem:[%s1177_s4 + $0x10] sm:$0xff] %v685_v22 }
 0x13d   : > { %690 = vst [vmem:[%s1177_s4 + $0x18] sm:$0xff] %v686_v23 }
 0x13e PF: > { %s14_s19 = sadd.s32 1, %s1017_s19   ;;  %s1178_s15 = smov %s1005_s16 }
 0x13f   : > { %p11_p12 = scmp.ge.s32.totalorder %s14_s19, 5   ;;  %s1179_s16 = smov %s1080_s23 }
 0x140   : > { %s1180_s17 = smov %s1013_s18  ;;  %s1181_s18 = smov %s1183_s20 }
 0x141   :  { %13 = sbr.rel (!%p11_p12) target bundleno = 3 (0x3), region = 117 }

// kernel: _forward.50
= control target key start
LH: loop header
LB: loop body
LE: loop exit
PB: predicated region body
PF: predicated region fallthrough
CT: control target
= control target key end

     0   :  { %s967_s12 = smov 0   ;;  %s969_s13 = smov 0   ;;  %s1083_s0 = inlined_call_operand.vmem [shape: bf16[32,1152], index: 0, kind: input, shape index: {}]   ;;  %s1084_s1 = inlined_call_operand.vmem [shape: bf16[1152,128], index: 1, kind: input, shape index: {}]   ;;  %s1085_s2 = inlined_call_operand.vmem [shape: f32[1,128], index: 2, kind: input, shape index: {}]   ;;  %s1086_s3 = inlined_call_operand.vmem [shape: f32[32,128], index: 3, kind: output, shape index: {}]  }
   0x1   :  { %s971_s14 = smov 0   ;;  %s973_s15 = smov 0  }
   0x2   :  { %s975_s16 = smov 0  }
   0x3 LB: > { %s22_s17 = sadd.s32 1, %s940_s15  ;;  %p41_p1 = scmp.ne.s32.totalorder %s932_s13, %s928_s12  ;;  %s944_s16 = sphi %s975_s16, %s13_s16   ;;  %s940_s15 = sphi %s973_s15, %s1090_s15   ;;  %s936_s14 = sphi %s971_s14, %s1089_s14   ;;  %s932_s13 = sphi %s969_s13, %s1088_s13   ;;  %s928_s12 = sphi %s967_s12, %s1087_s12  }
   0x4   : > { %p23_p0 = scmp.ge.s32.totalorder %s22_s17, 3  ;;  %p42_p2 = scmp.eq.s32.totalorder %s944_s16, 0 }
   0x5   : > { %s34_s19 = sadd.s32 1, %s932_s13  ;;  %p723_p5 = scmp.ge.s32.totalorder %s944_s16, 3 }
   0x6   : > { %s1092_s17 = smov (%p23_p0, %s22_s17), 0  ;;  %p43_p3 = por %p42_p2, %p41_p1 }
   0x7   : > { %s30_s18 = ssub.s32 %s940_s15, %s1092_s17  ;;  %143 = sbr.rel (%p723_p5) target bundleno = 23 (0x17), region = 20 }
   0x8   : > { %p32_p4 = scmp.eq.s32.totalorder %s30_s18, 0 }
   0xa   : > { %s1002_s20 = scalar_select %p32_p4, %s932_s13, %s34_s19  }
   0xe   : > { %146 = sbr.rel (!%p43_p3) target bundleno = 23 (0x17), region = 24  ;;  %s148_s21 = sand.u32 (%p43_p3), 1, %s932_s13  }
   0xf   : > { %s772_s22 = smul.u32 (%p43_p3), 12, %s940_s15 }
  0x10   : > { %s831_s23 = smul.u32 (%p43_p3), 48, %s148_s21 }
  0x11   : > { %s156_s26 = scalar_lea.vmem (%p43_p3), %s1083_s0, %s772_s22 }
  0x12   : > { %v171_v0 = vld [vmem:[%s156_s26] sm:$0xff] (%p43_p3)  ;;  %v175_v2 = vld [vmem:[%s156_s26 + $0x48] sm:$0xff] (%p43_p3)  ;;  %s150_s27 = scalar_lea.vmem (%p43_p3), [#allocation3], %s831_s23  ;;  %v729_v6 = vld [vmem:[%s156_s26 + $0x50] sm:$0xf] (%p43_p3) }
  0x13   : > { %v173_v1 = vld [vmem:[%s156_s26 + $0x24] sm:$0xff] (%p43_p3)  ;;  %172 = vst [vmem:[%s150_s27] sm:$0xff] (%p43_p3), %v171_v0  ;;  %176 = vst [vmem:[%s150_s27 + $0x18] sm:$0xff] (%p43_p3), %v175_v2  ;;  %v177_v3 = vld [vmem:[%s156_s26 + $0x6c] sm:$0xff] (%p43_p3) }
  0x14   : > { %174 = vst [vmem:[%s150_s27 + $0xc] sm:$0xff] (%p43_p3), %v173_v1  ;;  %v725_v4 = vld [vmem:[%s156_s26 + $0x8] sm:$0xf] (%p43_p3)  ;;  %v727_v5 = vld [vmem:[%s156_s26 + $0x2c] sm:$0xf] (%p43_p3)  ;;  %178 = vst [vmem:[%s150_s27 + $0x24] sm:$0xff] (%p43_p3), %v177_v3 }
  0x15   : > { %726 = vst [vmem:[%s150_s27 + $0x8] sm:$0xf] %v725_v4  ;;  %728 = vst [vmem:[%s150_s27 + $0x14] sm:$0xf] %v727_v5  ;;  %v731_v7 = vld [vmem:[%s156_s26 + $0x74] sm:$0xf] }
  0x16   : > { %730 = vst [vmem:[%s150_s27 + $0x20] sm:$0xf] %v729_v6  ;;  %732 = vst [vmem:[%s150_s27 + $0x2c] sm:$0xf] %v731_v7 }
  0x17 PF: > { %p733_p6 = scmp.ge.s32.totalorder %s944_s16, 1  ;;  %p207_p7 = scmp.lt.s32.totalorder %s944_s16, 4 }
  0x19   : > { %p208_p8 = pnand %p733_p6, %p207_p7 }
  0x1a   : > { %s214_s28 = sand.u32 (!%p208_p8), 1, %s928_s12   ;;  %s244_s29 = smul.u32 (!%p208_p8), 48, %s936_s14 }
  0x1b   : > { %211 = sbr.rel (%p208_p8) target bundleno = 316 (0x13c), region = 54  ;;  %p735_p10 = scmp.ne.s32.totalorder (!%p208_p8), %s936_s14, 0 }
  0x1c   : > { %s832_s30 = smul.u32 (!%p208_p8), 48, %s214_s28  ;;  %p245_p9 = scmp.lt.s32.totalorder (!%p208_p8), %s244_s29, 143 }
  0x1e   : > { %s1019_s8 = scalar_lea.vmem (!%p208_p8), [#allocation3], %s832_s30 }
  0x22   : > { %s1094_s29 = smov (!%p245_p9, %s244_s29), 143  ;;  %260 = sbr.rel (%p735_p10) target bundleno = 41 (0x29), region = 62 }
  0x23   : > { %s734_s4 = sshll.u32 %s1094_s29, 2  ;;  %v946_v8 = vmov (!%p735_p10), 0.0  }
  0x24   : > { %s1017_s7 = scalar_lea.vmem %s1084_s1, %s734_s4  ;;  %261 = vst [vmem:[#allocation2] sm:$0xff] (!%p735_p10), %v946_v8  ;;  %262 = vst [vmem:[#allocation2 + $0x8] sm:$0xff] (!%p735_p10), %v946_v8 }
  0x25   : > { %263 = vst [vmem:[#allocation2 + $0x10] sm:$0xff] (!%p735_p10), %v946_v8  ;;  %264 = vst [vmem:[#allocation2 + $0x18] sm:$0xff] (!%p735_p10), %v946_v8 }
  0x29 PF: > { %v874_v9 = vld [vmem:[%s1017_s7 + $0x40] sm:$0xff]   ;;  %v877_v12 = vld [vmem:[%s1017_s7 + $0x48] sm:$0xff]   ;;  %v880_v15 = vld [vmem:[%s1017_s7 + $0x50] sm:$0xff]   ;;  %p766_p11 = scmp.ne.s32.totalorder %s936_s14, 2 }
  0x2a   : > { %v875_v10 = vld [vmem:[%s1017_s7] sm:$0xff]   ;;  %773 = vmatprep.subr.bf16.mxu0 %v874_v9  ;;  %v878_v13 = vld [vmem:[%s1017_s7 + $0x8] sm:$0xff]   ;;  %v881_v16 = vld [vmem:[%s1017_s7 + $0x10] sm:$0xff]  }
  0x2b   : > { %v876_v11 = vld [vmem:[%s1017_s7 + $0x80] sm:$0xff]   ;;  %774 = vmatpush3.bf16.msra.mxu0 %v875_v10  ;;  %v879_v14 = vld [vmem:[%s1017_s7 + $0x88] sm:$0xff]   ;;  %v882_v17 = vld [vmem:[%s1017_s7 + $0x90] sm:$0xff]  }
  0x2c   : > { %811 = vmatprep.subr.bf16.mxu1 %v876_v11  ;;  %775 = vmatprep.subr.bf16.mxu0 %v877_v12  ;;  %v883_v18 = vld [vmem:[%s1017_s7 + $0x58] sm:$0xff]   ;;  %v886_v21 = vld [vmem:[%s1017_s7 + $0x60] sm:$0xff]   ;;  %v889_v24 = vld [vmem:[%s1017_s7 + $0x68] sm:$0xff]  }
  0x2d   : > { %812 = vmatpush3.bf16.msra.mxu1 %v876_v11  ;;  %v884_v19 = vld [vmem:[%s1017_s7 + $0x18] sm:$0xff]   ;;  %v888_v22 = vld [vmem:[%s1017_s7 + $0xa0] sm:$0xff]   ;;  %v891_v25 = vld [vmem:[%s1017_s7 + $0xa8] sm:$0xff]  }
  0x2e   : > { %813 = vmatprep.subr.bf16.mxu1 %v879_v14  ;;  %v885_v20 = vld [vmem:[%s1017_s7 + $0x98] sm:$0xff]   ;;  %v887_v23 = vld [vmem:[%s1017_s7 + $0x20] sm:$0xff]   ;;  %v890_v26 = vld [vmem:[%s1017_s7 + $0x28] sm:$0xff]  }
  0x2f   : > { %776 = vmatpush3.bf16.msra.mxu0 %v878_v13  ;;  %v892_v27 = vld [vmem:[%s1017_s7 + $0x70] sm:$0xff]   ;;  %v895_v30 = vld [vmem:[%s1017_s7 + $0x78] sm:$0xff]   ;;  %v265_v45 = vld [vmem:[#allocation2] sm:$0xff] }
  0x30   : > { %777 = vmatprep.subr.bf16.mxu0 %v880_v15  ;;  %v893_v28 = vld [vmem:[%s1017_s7 + $0x30] sm:$0xff]   ;;  %v897_v31 = vld [vmem:[%s1017_s7 + $0xb8] sm:$0xff]   ;;  %v266_v50 = vld [vmem:[#allocation2 + $0x8] sm:$0xff] }
  0x31   : > { %814 = vmatpush3.bf16.msra.mxu1 %v879_v14  ;;  %v894_v29 = vld [vmem:[%s1017_s7 + $0xb0] sm:$0xff]   ;;  %v896_v34 = vld [vmem:[%s1017_s7 + $0x38] sm:$0xff]   ;;  %v767_v4 = vld [vmem:[%s1085_s2] ss:$0 sm:$0xff] (!%p766_p11) }
  0x32   : > { %815 = vmatprep.subr.bf16.mxu1 %v882_v17  ;;  %v900_v32 = vld [vmem:[%s1019_s8 + $0x4] ss:$12 sps:$4 sm:$0xff]   ;;  %v901_v33 = vld [vmem:[%s1019_s8 + $0x8] ss:$12 sps:$4 sm:$0xff]   ;;  %v898_v35 = vld [vmem:[%s1019_s8] ss:$12 sps:$4 sm:$0xff]  }
  0x33   : > { %778 = vmatpush3.bf16.msra.mxu0 %v881_v16  ;;  %533 = vmatprep.mubr.bf16.mxu0 %v900_v32  ;;  %v903_v36 = vld [vmem:[%s1019_s8 + $0x1c] ss:$12 sps:$4 sm:$0xff]   ;;  %v902_v37 = vld [vmem:[%s1019_s8 + $0x20] ss:$12 sps:$4 sm:$0xff]   ;;  %v905_v38 = vld [vmem:[%s1019_s8 + $0x18] ss:$12 sps:$4 sm:$0xff]  }
  0x34   : > { %779 = vmatprep.subr.bf16.mxu0 %v883_v18  ;;  %827 = vmatprep.mubr.bf16.mxu1 %v901_v33  ;;  %v267_v59 = vld [vmem:[#allocation2 + $0x10] sm:$0xff]  ;;  %v268_v63 = vld [vmem:[#allocation2 + $0x18] sm:$0xff] }
  0x35   : > { %816 = vmatpush3.bf16.msra.mxu1 %v882_v17 }
  0x36   : > { %817 = vmatprep.subr.bf16.mxu1 %v885_v20 }
  0x37   : > { %780 = vmatpush3.bf16.msra.mxu0 %v884_v19 }
  0x38   : > { %781 = vmatprep.subr.bf16.mxu0 %v886_v21 }
  0x39   : > { %818 = vmatpush3.bf16.msra.mxu1 %v885_v20 }
  0x3a   : > { %819 = vmatprep.subr.bf16.mxu1 %v888_v22 }
  0x3b   : > { %782 = vmatpush3.bf16.msra.mxu0 %v887_v23 }
  0x3c   : > { %783 = vmatprep.subr.bf16.mxu0 %v889_v24 }
  0x3d   : > { %820 = vmatpush3.bf16.msra.mxu1 %v888_v22 }
  0x3e   : > { %821 = vmatprep.subr.bf16.mxu1 %v891_v25 }
  0x3f   : > { %784 = vmatpush3.bf16.msra.mxu0 %v890_v26 }
  0x40   : > { %785 = vmatprep.subr.bf16.mxu0 %v892_v27 }
  0x41   : > { %822 = vmatpush3.bf16.msra.mxu1 %v891_v25 }
  0x42   : > { %823 = vmatprep.subr.bf16.mxu1 %v894_v29 }
  0x43   : > { %786 = vmatpush3.bf16.msra.mxu0 %v893_v28 }
  0x44   : > { %787 = vmatprep.subr.bf16.mxu0 %v895_v30 }
  0x45   : > { %824 = vmatpush3.bf16.msra.mxu1 %v894_v29 }
  0x46   : > { %825 = vmatprep.subr.bf16.mxu1 %v897_v31 }
  0x47   : > { %788 = vmatpush3.bf16.msra.mxu0 %v896_v34 }
  0x49   : > { %826 = vmatpush3.bf16.msra.mxu1 %v897_v31 }
  0x4a   : > { %534 = vmatmul.mubr.bf16.vlgmr.msra.gmra.mrb[0].mxu0 %v898_v35 }
  0x4b   : > { %541 = vmatprep.mubr.bf16.mxu0 %v903_v36 }
  0x4c   : > { %828 = vmatmul.mubr.bf16.vlgmr.msra.gmra.mrb[0].mxu1 %v902_v37 }
  0x52   : > { %542 = vmatmul.mubr.bf16.gmra.mrb[4].mxu0 %v905_v38 }
 0x11d   : > { %v789_v39 = vpop.f32.mrb[0].mxu0 }
 0x11e   : > { %v790_v40 = vpop.f32.mrb[1].mxu0 }
 0x11f   : > { %v791_v41 = vadd.f32 %v790_v40, %v789_v39  ;;  %v792_v42 = vpop.f32.mrb[2].mxu0  ;;  %v829_v43 = vpop.f32.mrb[0].mxu1 }
 0x120   : > { %v793_v44 = vpop.f32.mrb[3].mxu0  ;;  %v584_v46 = vpop.f32.mrb[1].mxu1 }
 0x121   : > { %v794_v47 = vadd.f32 %v793_v44, %v792_v42  ;;  %v585_v48 = vadd.f32 %v791_v41, %v584_v46  ;;  %v830_v49 = vpop.f32.mrb[2].mxu1 }
 0x122   : > { %v587_v51 = vpop.f32.mrb[3].mxu1 }
 0x123   : > { %v599_v52 = vadd.f32 %v585_v48, %v265_v45  ;;  %v588_v53 = vadd.f32 %v794_v47, %v587_v51 }
 0x125   : > { %603 = vst [vmem:[#allocation2] sm:$0xff] %v599_v52  ;;  %v600_v54 = vadd.f32 %v588_v53, %v266_v50  ;;  %v795_v55 = vpop.f32.mrb[4].mxu0 }
 0x126   : > { %v796_v56 = vpop.f32.mrb[5].mxu0 }
 0x127   : > { %604 = vst [vmem:[#allocation2 + $0x8] sm:$0xff] %v600_v54  ;;  %v797_v57 = vadd.f32 %v796_v56, %v795_v55  ;;  %v798_v58 = vpop.f32.mrb[6].mxu0 }
 0x128   : > { %v799_v60 = vpop.f32.mrb[7].mxu0 }
 0x129   : > { %v593_v61 = vadd.f32 %v829_v43, %v797_v57  ;;  %v800_v62 = vadd.f32 %v799_v60, %v798_v58  ;;  %610 = sbr.rel (%p766_p11) target bundleno = 316 (0x13c), region = 66 }
 0x12b   : > { %v601_v0 = vadd.f32 %v593_v61, %v267_v59  ;;  %v596_v1 = vadd.f32 %v830_v49, %v800_v62 }
 0x12c   : > { %v611_v3 = vld [vmem:[#allocation2] sm:$0xff] (!%p766_p11) }
 0x12d   : > { %605 = vst [vmem:[#allocation2 + $0x10] sm:$0xff] %v601_v0  ;;  %v602_v2 = vadd.f32 %v596_v1, %v268_v63  ;;  %v622_v6 = vadd.f32 (!%p766_p11), %v767_v4, %v611_v3 }
 0x12e   : > { %v612_v5 = vld [vmem:[#allocation2 + $0x8] sm:$0xff] (!%p766_p11) }
 0x12f   : > { %606 = vst [vmem:[#allocation2 + $0x18] sm:$0xff] %v602_v2  ;;  %v623_v7 = vadd.f32 (!%p766_p11), %v767_v4, %v612_v5  ;;  %v626_v12 = vmax.f32 (!%p766_p11), %v622_v6, 0.0 }
 0x131   : > { %v627_v13 = vmax.f32 %v623_v7, 0.0  ;;  %630 = vst [vmem:[%s1086_s3] sm:$0xff] %v626_v12 }
 0x133   : > { %631 = vst [vmem:[%s1086_s3 + $0x8] sm:$0xff] %v627_v13 }
 0x134   : > { %v613_v8 = vld [vmem:[#allocation2 + $0x10] sm:$0xff] }
 0x135   : > { %v624_v10 = vadd.f32 %v767_v4, %v613_v8 }
 0x136   : > { %v614_v9 = vld [vmem:[#allocation2 + $0x18] sm:$0xff] }
 0x137   : > { %v625_v11 = vadd.f32 %v767_v4, %v614_v9  ;;  %v628_v14 = vmax.f32 %v624_v10, 0.0 }
 0x139   : > { %v629_v15 = vmax.f32 %v625_v11, 0.0  ;;  %632 = vst [vmem:[%s1086_s3 + $0x10] sm:$0xff] %v628_v14 }
 0x13b   : > { %633 = vst [vmem:[%s1086_s3 + $0x18] sm:$0xff] %v629_v15 }
 0x13c PF: > { %s13_s16 = sadd.s32 1, %s944_s16   ;;  %s1087_s12 = smov %s932_s13 }
 0x13d   : > { %p10_p12 = scmp.ge.s32.totalorder %s13_s16, 5   ;;  %s1088_s13 = smov %s1002_s20 }
 0x13e   : > { %s1089_s14 = smov %s940_s15  ;;  %s1090_s15 = smov %s1092_s17 }
 0x13f   :  { %12 = sbr.rel (!%p10_p12) target bundleno = 3 (0x3), region = 110 }

// kernel: _forward.56
= control target key start
LH: loop header
LB: loop body
LE: loop exit
PB: predicated region body
PF: predicated region fallthrough
CT: control target
= control target key end

     0   :  { %s934_s12 = smov 0   ;;  %s936_s13 = smov 0   ;;  %s1036_s0 = inlined_call_operand.vmem [shape: bf16[8,1152], index: 0, kind: input, shape index: {}]   ;;  %s1037_s1 = inlined_call_operand.vmem [shape: bf16[1152,256], index: 1, kind: input, shape index: {}]   ;;  %s1038_s2 = inlined_call_operand.vmem [shape: f32[1,256], index: 2, kind: input, shape index: {}]   ;;  %s1039_s3 = inlined_call_operand.vmem [shape: f32[8,256], index: 3, kind: output, shape index: {}]  }
   0x1   :  { %s938_s14 = smov 0  }
   0x2 LB: > { %s22_s15 = sadd.s32 1, %s906_s13  ;;  %p726_p0 = scmp.ge.s32.totalorder %s910_s14, 1  ;;  %s910_s14 = sphi %s938_s14, %s13_s14   ;;  %s906_s13 = sphi %s936_s13, %s1041_s13   ;;  %s902_s12 = sphi %s934_s12, %s1040_s12  }
   0x3   : > { %p23_p1 = scmp.ge.s32.totalorder %s22_s15, 3  ;;  %p168_p2 = scmp.lt.s32.totalorder %s910_s14, 4 }
   0x5   : > { %s1043_s15 = smov (%p23_p1, %s22_s15), 0  ;;  %p169_p3 = pnand %p726_p0, %p168_p2 }
   0x6   : > { %s202_s16 = smul.u32 (!%p169_p3), 3, %s902_s12  ;;  %p730_p6 = scmp.ne.s32.totalorder (!%p169_p3), %s902_s12, 0 }
   0x7   : > { %172 = sbr.rel (%p169_p3) target bundleno = 319 (0x13f), region = 32 }
   0x8   : > { %s212_s17 = smul.u32 (!%p169_p3), 48, %s902_s12  ;;  %p205_p4 = scmp.lt.s32.totalorder (!%p169_p3), %s202_s16, 8 }
   0xa   : > { %p213_p5 = scmp.lt.s32.totalorder (!%p169_p3), %s212_s17, 143 }
   0xe   : > { %s1045_s16 = smov (!%p205_p4, %s202_s16), 8  ;;  %s1047_s17 = smov (!%p213_p5, %s212_s17), 143 }
   0xf   : > { %s727_s18 = sshll.u32 %s1045_s16, 2  ;;  %s786_s22 = sshll.u32 %s1047_s17, 3  ;;  %v912_v0 = vmov (!%p730_p6), 0.0  }
  0x10   : > { %s959_s21 = scalar_lea.vmem %s1036_s0, %s727_s18  ;;  %s964_s25 = scalar_lea.vmem %s1037_s1, %s786_s22  ;;  %229 = vst [vmem:[#allocation2] sm:$0xff] (!%p730_p6), %v912_v0  ;;  %230 = vst [vmem:[#allocation2 + $0x8] sm:$0xff] (!%p730_p6), %v912_v0 }
  0x11   : > { %228 = sbr.rel (%p730_p6) target bundleno = 24 (0x18), region = 36 }
  0x18 PF: > { %v813_v1 = vld [vmem:[%s964_s25 + $0x4] ss:$8 sps:$4 sm:$0xff]   ;;  %v815_v2 = vld [vmem:[%s964_s25] ss:$8 sps:$4 sm:$0xff]   ;;  %v913_v3 = vmov 0   ;;  %p782_p7 = scmp.ne.s32.totalorder %s902_s12, 2 }
  0x19   : > { %607 = vmatprep.mubr.bf16.mxu1 %v913_v3  ;;  %534 = vmatprep.subr.bf16.mxu0 %v813_v1  ;;  %v816_v4 = vld [vmem:[%s964_s25 + $0x14] ss:$8 sps:$4 sm:$0xff]   ;;  %v818_v5 = vld [vmem:[%s964_s25 + $0x10] ss:$8 sps:$4 sm:$0xff]   ;;  %v819_v6 = vld [vmem:[%s964_s25 + $0x24] ss:$8 sps:$4 sm:$0xff]  }
  0x1a   : > { %535 = vmatpush1.bf16.msra.mxu0 %v815_v2  ;;  %v821_v7 = vld [vmem:[%s964_s25 + $0x20] ss:$8 sps:$4 sm:$0xff]   ;;  %v822_v8 = vld [vmem:[%s964_s25 + $0x34] ss:$8 sps:$4 sm:$0xff]   ;;  %v824_v9 = vld [vmem:[%s964_s25 + $0x30] ss:$8 sps:$4 sm:$0xff]  }
  0x1b   : > { %536 = vmatprep.subr.bf16.mxu0 %v816_v4  ;;  %v837_v10 = vld [vmem:[%s964_s25 + $0x104] ss:$8 sps:$4 sm:$0xff]   ;;  %v839_v11 = vld [vmem:[%s964_s25 + $0x100] ss:$8 sps:$4 sm:$0xff]   ;;  %v843_v13 = vld [vmem:[%s964_s25 + $0x114] ss:$8 sps:$4 sm:$0xff]   ;;  %v628_v4 = vlaneseq (!%p782_p7) }
  0x1c   : > { %v825_v12 = vld [vmem:[%s964_s25 + $0x44] ss:$8 sps:$4 sm:$0xff]   ;;  %575 = vmatprep.subr.bf16.mxu1 %v837_v10  ;;  %v845_v14 = vld [vmem:[%s964_s25 + $0x110] ss:$8 sps:$4 sm:$0xff]   ;;  %v827_v15 = vld [vmem:[%s964_s25 + $0x40] ss:$8 sps:$4 sm:$0xff]  }
  0x1d   : > { %576 = vmatpush1.bf16.msra.mxu1 %v839_v11  ;;  %v828_v16 = vld [vmem:[%s964_s25 + $0x54] ss:$8 sps:$4 sm:$0xff]   ;;  %v849_v17 = vld [vmem:[%s964_s25 + $0x124] ss:$8 sps:$4 sm:$0xff]   ;;  %v851_v18 = vld [vmem:[%s964_s25 + $0x120] ss:$8 sps:$4 sm:$0xff]  }
  0x1e   : > { %537 = vmatpush1.bf16.msra.mxu0 %v818_v5  ;;  %577 = vmatprep.subr.bf16.mxu1 %v843_v13  ;;  %v830_v19 = vld [vmem:[%s964_s25 + $0x50] ss:$8 sps:$4 sm:$0xff]   ;;  %v855_v20 = vld [vmem:[%s964_s25 + $0x134] ss:$8 sps:$4 sm:$0xff]   ;;  %v831_v21 = vld [vmem:[%s964_s25 + $0x64] ss:$8 sps:$4 sm:$0xff]  }
  0x1f   : > { %538 = vmatprep.subr.bf16.mxu0 %v819_v6  ;;  %v857_v22 = vld [vmem:[%s964_s25 + $0x130] ss:$8 sps:$4 sm:$0xff]   ;;  %v833_v23 = vld [vmem:[%s964_s25 + $0x60] ss:$8 sps:$4 sm:$0xff]   ;;  %v861_v24 = vld [vmem:[%s964_s25 + $0x144] ss:$8 sps:$4 sm:$0xff]  }
  0x20   : > { %v834_v25 = vld [vmem:[%s964_s25 + $0x74] ss:$8 sps:$4 sm:$0xff]   ;;  %v863_v26 = vld [vmem:[%s964_s25 + $0x140] ss:$8 sps:$4 sm:$0xff]   ;;  %v836_v27 = vld [vmem:[%s964_s25 + $0x70] ss:$8 sps:$4 sm:$0xff]  }
  0x21   : > { %578 = vmatpush1.bf16.msra.mxu1 %v845_v14  ;;  %v867_v28 = vld [vmem:[%s964_s25 + $0x154] ss:$8 sps:$4 sm:$0xff]   ;;  %v840_v29 = vld [vmem:[%s964_s25 + $0x84] ss:$8 sps:$4 sm:$0xff]   ;;  %v869_v30 = vld [vmem:[%s964_s25 + $0x150] ss:$8 sps:$4 sm:$0xff]  }
  0x22   : > { %539 = vmatpush1.bf16.msra.mxu0 %v821_v7  ;;  %579 = vmatprep.subr.bf16.mxu1 %v849_v17  ;;  %v842_v31 = vld [vmem:[%s964_s25 + $0x80] ss:$8 sps:$4 sm:$0xff]   ;;  %v873_v32 = vld [vmem:[%s964_s25 + $0x164] ss:$8 sps:$4 sm:$0xff]   ;;  %v846_v33 = vld [vmem:[%s964_s25 + $0x94] ss:$8 sps:$4 sm:$0xff]  }
  0x23   : > { %540 = vmatprep.subr.bf16.mxu0 %v822_v8  ;;  %v233_v34 = vld [vmem:[%s959_s21] sm:$0xff]  ;;  %v848_v37 = vld [vmem:[%s964_s25 + $0x90] ss:$8 sps:$4 sm:$0xff]   ;;  %v879_v38 = vld [vmem:[%s964_s25 + $0x174] ss:$8 sps:$4 sm:$0xff]   ;;  %v629_v5 = vshrl.u32 (!%p782_p7), %v628_v4, 7 }
  0x24   : > { %v732_v35 = vcombine.high %v233_v34, %v233_v34  ;;  %v875_v36 = vld [vmem:[%s964_s25 + $0x160] ss:$8 sps:$4 sm:$0xff]   ;;  %v852_v39 = vld [vmem:[%s964_s25 + $0xa4] ss:$8 sps:$4 sm:$0xff]   ;;  %v881_v40 = vld [vmem:[%s964_s25 + $0x170] ss:$8 sps:$4 sm:$0xff]   ;;  %v731_v53 = vcombine.low %v233_v34, %v233_v34 }
  0x25   : > { %580 = vmatpush1.bf16.msra.mxu1 %v851_v18  ;;  %v854_v41 = vld [vmem:[%s964_s25 + $0xa0] ss:$8 sps:$4 sm:$0xff]   ;;  %v858_v42 = vld [vmem:[%s964_s25 + $0xb4] ss:$8 sps:$4 sm:$0xff]   ;;  %v860_v44 = vld [vmem:[%s964_s25 + $0xb0] ss:$8 sps:$4 sm:$0xff]  }
  0x26   : > { %541 = vmatpush1.bf16.msra.mxu0 %v824_v9  ;;  %581 = vmatprep.subr.bf16.mxu1 %v855_v20  ;;  %v885_v43 = vld [vmem:[%s959_s21 + $0x8] ss:$0 sps:$4 sm:$0xff]   ;;  %v864_v45 = vld [vmem:[%s964_s25 + $0xc4] ss:$8 sps:$4 sm:$0xff]   ;;  %v870_v47 = vld [vmem:[%s964_s25 + $0xd4] ss:$8 sps:$4 sm:$0xff]  }
  0x27   : > { %542 = vmatprep.subr.bf16.mxu0 %v825_v12  ;;  %566 = vmatprep.mubr.bf16.mxu0 %v732_v35  ;;  %v866_v46 = vld [vmem:[%s964_s25 + $0xc0] ss:$8 sps:$4 sm:$0xff]   ;;  %v872_v48 = vld [vmem:[%s964_s25 + $0xd0] ss:$8 sps:$4 sm:$0xff]   ;;  %v876_v49 = vld [vmem:[%s964_s25 + $0xe4] ss:$8 sps:$4 sm:$0xff]  }
  0x28   : > { %v878_v50 = vld [vmem:[%s964_s25 + $0xe0] ss:$8 sps:$4 sm:$0xff]   ;;  %v882_v51 = vld [vmem:[%s964_s25 + $0xf4] ss:$8 sps:$4 sm:$0xff]   ;;  %v884_v52 = vld [vmem:[%s964_s25 + $0xf0] ss:$8 sps:$4 sm:$0xff]  }
  0x29   : > { %582 = vmatpush1.bf16.msra.mxu1 %v857_v22  ;;  %v231_v58 = vld [vmem:[#allocation2] sm:$0xff]  ;;  %v232_v61 = vld [vmem:[#allocation2 + $0x8] sm:$0xff]  ;;  %v630_v7 = vsub.s32 (!%p782_p7), 0, %v629_v5  ;;  %v634_v8 = vsub.s32 (!%p782_p7), 1, %v629_v5 }
  0x2a   : > { %543 = vmatpush1.bf16.msra.mxu0 %v827_v15  ;;  %583 = vmatprep.subr.bf16.mxu1 %v861_v24  ;;  %v626_v6 = vld [vmem:[%s1038_s2] sm:$0x3] (!%p782_p7) }
  0x2b   : > { %544 = vmatprep.subr.bf16.mxu0 %v828_v16  ;;  %v631_v11 = vrot.slane (!%p782_p7), %v626_v6, %v630_v7  ;;  %v635_v12 = vrot.slane (!%p782_p7), %v626_v6, %v634_v8 }
  0x2d   : > { %584 = vmatpush1.bf16.msra.mxu1 %v863_v26 }
  0x2e   : > { %545 = vmatpush1.bf16.msra.mxu0 %v830_v19  ;;  %585 = vmatprep.subr.bf16.mxu1 %v867_v28 }
  0x2f   : > { %546 = vmatprep.subr.bf16.mxu0 %v831_v21 }
  0x31   : > { %586 = vmatpush1.bf16.msra.mxu1 %v869_v30 }
  0x32   : > { %547 = vmatpush1.bf16.msra.mxu0 %v833_v23  ;;  %587 = vmatprep.subr.bf16.mxu1 %v873_v32 }
  0x33   : > { %548 = vmatprep.subr.bf16.mxu0 %v834_v25 }
  0x35   : > { %588 = vmatpush1.bf16.msra.mxu1 %v875_v36 }
  0x36   : > { %549 = vmatpush1.bf16.msra.mxu0 %v836_v27  ;;  %589 = vmatprep.subr.bf16.mxu1 %v879_v38 }
  0x37   : > { %550 = vmatprep.subr.bf16.mxu0 %v840_v29 }
  0x39   : > { %590 = vmatpush1.bf16.msra.mxu1 %v881_v40 }
  0x3a   : > { %551 = vmatpush1.bf16.msra.mxu0 %v842_v31 }
  0x3b   : > { %552 = vmatprep.subr.bf16.mxu0 %v846_v33 }
  0x3c   : > { %608 = vmatmul.mubr.bf16.vlgmr.msra.gmra.mrb[0].mxu1 %v885_v43 }
  0x3e   : > { %553 = vmatpush1.bf16.msra.mxu0 %v848_v37 }
  0x3f   : > { %554 = vmatprep.subr.bf16.mxu0 %v852_v39 }
  0x42   : > { %555 = vmatpush1.bf16.msra.mxu0 %v854_v41 }
  0x43   : > { %556 = vmatprep.subr.bf16.mxu0 %v858_v42 }
  0x46   : > { %557 = vmatpush1.bf16.msra.mxu0 %v860_v44 }
  0x47   : > { %558 = vmatprep.subr.bf16.mxu0 %v864_v45 }
  0x4a   : > { %559 = vmatpush1.bf16.msra.mxu0 %v866_v46 }
  0x4b   : > { %560 = vmatprep.subr.bf16.mxu0 %v870_v47 }
  0x4e   : > { %561 = vmatpush1.bf16.msra.mxu0 %v872_v48 }
  0x4f   : > { %562 = vmatprep.subr.bf16.mxu0 %v876_v49 }
  0x52   : > { %563 = vmatpush1.bf16.msra.mxu0 %v878_v50 }
  0x53   : > { %564 = vmatprep.subr.bf16.mxu0 %v882_v51 }
  0x56   : > { %565 = vmatpush1.bf16.msra.mxu0 %v884_v52 }
  0x59   : > { %567 = vmatmul.mubr.bf16.vlgmr.msra.gmra.mrb[0].mxu0 %v731_v53 }
 0x10f   : > { %v609_v54 = vpop.f32.mrb[0].mxu1 }
 0x110   : > { %v611_v55 = vpop.f32.mrb[1].mxu1 }
 0x111   : > { %v613_v56 = vpop.f32.mrb[2].mxu1 }
 0x112   : > { %v614_v57 = vpop.f32.mrb[3].mxu1 }
 0x12c   : > { %v568_v59 = vpop.f32.mrb[0].mxu0  ;;  %623 = sbr.rel (%p782_p7) target bundleno = 319 (0x13f), region = 40 }
 0x12d   : > { %v610_v60 = vadd.f32 %v609_v54, %v568_v59  ;;  %v570_v62 = vpop.f32.mrb[1].mxu0 }
 0x12e   : > { %v612_v63 = vadd.f32 %v611_v55, %v570_v62  ;;  %v572_v0 = vpop.f32.mrb[2].mxu0 }
 0x12f   : > { %v616_v1 = vadd.f32 %v610_v60, %v231_v58  ;;  %v573_v2 = vpop.f32.mrb[3].mxu0 }
 0x130   : > { %v617_v3 = vadd.f32 %v612_v63, %v232_v61 }
 0x131   : > { %618 = vst [vmem:[#allocation2] sm:$0xff] %v616_v1 }
 0x132   : > { %619 = vst [vmem:[#allocation2 + $0x8] sm:$0xff] %v617_v3 }
 0x138   : > { %v624_v9 = vld [vmem:[#allocation2] sm:$0xff] }
 0x139   : > { %v625_v10 = vld [vmem:[#allocation2 + $0x8] sm:$0xff]  ;;  %v638_v13 = vadd.f32 %v631_v11, %v624_v9 }
 0x13a   : > { %v639_v14 = vadd.f32 %v635_v12, %v625_v10 }
 0x13b   : > { %v640_v15 = vmax.f32 %v638_v13, 0.0 }
 0x13c   : > { %v641_v16 = vmax.f32 %v639_v14, 0.0 }
 0x13d   : > { %642 = vst [vmem:[%s1039_s3] sm:$0xff] %v640_v15 }
 0x13e   : > { %643 = vst [vmem:[%s1039_s3 + $0x8] sm:$0xff] %v641_v16 }
 0x13f PF: > { %s13_s14 = sadd.s32 1, %s910_s14   ;;  %s1040_s12 = smov %s906_s13 }
 0x140   : > { %p10_p8 = scmp.ge.s32.totalorder %s13_s14, 5   ;;  %s1041_s13 = smov %s1043_s15 }
 0x142   :  { %12 = sbr.rel (!%p10_p8) target bundleno = 2 (0x2), region = 73 }

// kernel: _forward.58
= control target key start
LH: loop header
LB: loop body
LE: loop exit
PB: predicated region body
PF: predicated region fallthrough
CT: control target
= control target key end

     0   :  { %s934_s12 = smov 0   ;;  %s936_s13 = smov 0   ;;  %s1036_s0 = inlined_call_operand.vmem [shape: bf16[8,2304], index: 0, kind: input, shape index: {}]   ;;  %s1037_s1 = inlined_call_operand.vmem [shape: bf16[2304,256], index: 1, kind: input, shape index: {}]   ;;  %s1038_s2 = inlined_call_operand.vmem [shape: f32[1,256], index: 2, kind: input, shape index: {}]   ;;  %s1039_s3 = inlined_call_operand.vmem [shape: f32[8,256], index: 3, kind: output, shape index: {}]  }
   0x1   :  { %s938_s14 = smov 0  }
   0x2 LB: > { %s22_s15 = sadd.s32 1, %s906_s13  ;;  %p726_p0 = scmp.ge.s32.totalorder %s910_s14, 1  ;;  %s910_s14 = sphi %s938_s14, %s13_s14   ;;  %s906_s13 = sphi %s936_s13, %s1041_s13   ;;  %s902_s12 = sphi %s934_s12, %s1040_s12  }
   0x3   : > { %p23_p1 = scmp.ge.s32.totalorder %s22_s15, 6  ;;  %p168_p2 = scmp.lt.s32.totalorder %s910_s14, 7 }
   0x5   : > { %s1043_s15 = smov (%p23_p1, %s22_s15), 0  ;;  %p169_p3 = pnand %p726_p0, %p168_p2 }
   0x6   : > { %s202_s16 = smul.u32 (!%p169_p3), 3, %s902_s12  ;;  %p730_p6 = scmp.ne.s32.totalorder (!%p169_p3), %s902_s12, 0 }
   0x7   : > { %172 = sbr.rel (%p169_p3) target bundleno = 319 (0x13f), region = 32 }
   0x8   : > { %s212_s17 = smul.u32 (!%p169_p3), 48, %s902_s12  ;;  %p205_p4 = scmp.lt.s32.totalorder (!%p169_p3), %s202_s16, 17 }
   0xa   : > { %p213_p5 = scmp.lt.s32.totalorder (!%p169_p3), %s212_s17, 287 }
   0xe   : > { %s1045_s16 = smov (!%p205_p4, %s202_s16), 17  ;;  %s1047_s17 = smov (!%p213_p5, %s212_s17), 287 }
   0xf   : > { %s727_s18 = sshll.u32 %s1045_s16, 2  ;;  %s786_s22 = sshll.u32 %s1047_s17, 3  ;;  %v912_v0 = vmov (!%p730_p6), 0.0  }
  0x10   : > { %s959_s21 = scalar_lea.vmem %s1036_s0, %s727_s18  ;;  %s964_s25 = scalar_lea.vmem %s1037_s1, %s786_s22  ;;  %229 = vst [vmem:[#allocation2] sm:$0xff] (!%p730_p6), %v912_v0  ;;  %230 = vst [vmem:[#allocation2 + $0x8] sm:$0xff] (!%p730_p6), %v912_v0 }
  0x11   : > { %228 = sbr.rel (%p730_p6) target bundleno = 24 (0x18), region = 36 }
  0x18 PF: > { %v813_v1 = vld [vmem:[%s964_s25 + $0x4] ss:$8 sps:$4 sm:$0xff]   ;;  %v815_v2 = vld [vmem:[%s964_s25] ss:$8 sps:$4 sm:$0xff]   ;;  %v913_v3 = vmov 0   ;;  %p782_p7 = scmp.ne.s32.totalorder %s902_s12, 5 }
  0x19   : > { %607 = vmatprep.mubr.bf16.mxu1 %v913_v3  ;;  %534 = vmatprep.subr.bf16.mxu0 %v813_v1  ;;  %v816_v4 = vld [vmem:[%s964_s25 + $0x14] ss:$8 sps:$4 sm:$0xff]   ;;  %v818_v5 = vld [vmem:[%s964_s25 + $0x10] ss:$8 sps:$4 sm:$0xff]   ;;  %v819_v6 = vld [vmem:[%s964_s25 + $0x24] ss:$8 sps:$4 sm:$0xff]  }
  0x1a   : > { %535 = vmatpush1.bf16.msra.mxu0 %v815_v2  ;;  %v821_v7 = vld [vmem:[%s964_s25 + $0x20] ss:$8 sps:$4 sm:$0xff]   ;;  %v822_v8 = vld [vmem:[%s964_s25 + $0x34] ss:$8 sps:$4 sm:$0xff]   ;;  %v824_v9 = vld [vmem:[%s964_s25 + $0x30] ss:$8 sps:$4 sm:$0xff]  }
  0x1b   : > { %536 = vmatprep.subr.bf16.mxu0 %v816_v4  ;;  %v837_v10 = vld [vmem:[%s964_s25 + $0x104] ss:$8 sps:$4 sm:$0xff]   ;;  %v839_v11 = vld [vmem:[%s964_s25 + $0x100] ss:$8 sps:$4 sm:$0xff]   ;;  %v843_v13 = vld [vmem:[%s964_s25 + $0x114] ss:$8 sps:$4 sm:$0xff]   ;;  %v628_v4 = vlaneseq (!%p782_p7) }
  0x1c   : > { %v825_v12 = vld [vmem:[%s964_s25 + $0x44] ss:$8 sps:$4 sm:$0xff]   ;;  %575 = vmatprep.subr.bf16.mxu1 %v837_v10  ;;  %v845_v14 = vld [vmem:[%s964_s25 + $0x110] ss:$8 sps:$4 sm:$0xff]   ;;  %v827_v15 = vld [vmem:[%s964_s25 + $0x40] ss:$8 sps:$4 sm:$0xff]  }
  0x1d   : > { %576 = vmatpush1.bf16.msra.mxu1 %v839_v11  ;;  %v828_v16 = vld [vmem:[%s964_s25 + $0x54] ss:$8 sps:$4 sm:$0xff]   ;;  %v849_v17 = vld [vmem:[%s964_s25 + $0x124] ss:$8 sps:$4 sm:$0xff]   ;;  %v851_v18 = vld [vmem:[%s964_s25 + $0x120] ss:$8 sps:$4 sm:$0xff]  }
  0x1e   : > { %537 = vmatpush1.bf16.msra.mxu0 %v818_v5  ;;  %577 = vmatprep.subr.bf16.mxu1 %v843_v13  ;;  %v830_v19 = vld [vmem:[%s964_s25 + $0x50] ss:$8 sps:$4 sm:$0xff]   ;;  %v855_v20 = vld [vmem:[%s964_s25 + $0x134] ss:$8 sps:$4 sm:$0xff]   ;;  %v831_v21 = vld [vmem:[%s964_s25 + $0x64] ss:$8 sps:$4 sm:$0xff]  }
  0x1f   : > { %538 = vmatprep.subr.bf16.mxu0 %v819_v6  ;;  %v857_v22 = vld [vmem:[%s964_s25 + $0x130] ss:$8 sps:$4 sm:$0xff]   ;;  %v833_v23 = vld [vmem:[%s964_s25 + $0x60] ss:$8 sps:$4 sm:$0xff]   ;;  %v861_v24 = vld [vmem:[%s964_s25 + $0x144] ss:$8 sps:$4 sm:$0xff]  }
  0x20   : > { %v834_v25 = vld [vmem:[%s964_s25 + $0x74] ss:$8 sps:$4 sm:$0xff]   ;;  %v863_v26 = vld [vmem:[%s964_s25 + $0x140] ss:$8 sps:$4 sm:$0xff]   ;;  %v836_v27 = vld [vmem:[%s964_s25 + $0x70] ss:$8 sps:$4 sm:$0xff]  }
  0x21   : > { %578 = vmatpush1.bf16.msra.mxu1 %v845_v14  ;;  %v867_v28 = vld [vmem:[%s964_s25 + $0x154] ss:$8 sps:$4 sm:$0xff]   ;;  %v840_v29 = vld [vmem:[%s964_s25 + $0x84] ss:$8 sps:$4 sm:$0xff]   ;;  %v869_v30 = vld [vmem:[%s964_s25 + $0x150] ss:$8 sps:$4 sm:$0xff]  }
  0x22   : > { %539 = vmatpush1.bf16.msra.mxu0 %v821_v7  ;;  %579 = vmatprep.subr.bf16.mxu1 %v849_v17  ;;  %v842_v31 = vld [vmem:[%s964_s25 + $0x80] ss:$8 sps:$4 sm:$0xff]   ;;  %v873_v32 = vld [vmem:[%s964_s25 + $0x164] ss:$8 sps:$4 sm:$0xff]   ;;  %v846_v33 = vld [vmem:[%s964_s25 + $0x94] ss:$8 sps:$4 sm:$0xff]  }
  0x23   : > { %540 = vmatprep.subr.bf16.mxu0 %v822_v8  ;;  %v233_v34 = vld [vmem:[%s959_s21] sm:$0xff]  ;;  %v848_v37 = vld [vmem:[%s964_s25 + $0x90] ss:$8 sps:$4 sm:$0xff]   ;;  %v879_v38 = vld [vmem:[%s964_s25 + $0x174] ss:$8 sps:$4 sm:$0xff]   ;;  %v629_v5 = vshrl.u32 (!%p782_p7), %v628_v4, 7 }
  0x24   : > { %v732_v35 = vcombine.high %v233_v34, %v233_v34  ;;  %v875_v36 = vld [vmem:[%s964_s25 + $0x160] ss:$8 sps:$4 sm:$0xff]   ;;  %v852_v39 = vld [vmem:[%s964_s25 + $0xa4] ss:$8 sps:$4 sm:$0xff]   ;;  %v881_v40 = vld [vmem:[%s964_s25 + $0x170] ss:$8 sps:$4 sm:$0xff]   ;;  %v731_v53 = vcombine.low %v233_v34, %v233_v34 }
  0x25   : > { %580 = vmatpush1.bf16.msra.mxu1 %v851_v18  ;;  %v854_v41 = vld [vmem:[%s964_s25 + $0xa0] ss:$8 sps:$4 sm:$0xff]   ;;  %v858_v42 = vld [vmem:[%s964_s25 + $0xb4] ss:$8 sps:$4 sm:$0xff]   ;;  %v860_v44 = vld [vmem:[%s964_s25 + $0xb0] ss:$8 sps:$4 sm:$0xff]  }
  0x26   : > { %541 = vmatpush1.bf16.msra.mxu0 %v824_v9  ;;  %581 = vmatprep.subr.bf16.mxu1 %v855_v20  ;;  %v885_v43 = vld [vmem:[%s959_s21 + $0x8] ss:$0 sps:$4 sm:$0xff]   ;;  %v864_v45 = vld [vmem:[%s964_s25 + $0xc4] ss:$8 sps:$4 sm:$0xff]   ;;  %v870_v47 = vld [vmem:[%s964_s25 + $0xd4] ss:$8 sps:$4 sm:$0xff]  }
  0x27   : > { %542 = vmatprep.subr.bf16.mxu0 %v825_v12  ;;  %566 = vmatprep.mubr.bf16.mxu0 %v732_v35  ;;  %v866_v46 = vld [vmem:[%s964_s25 + $0xc0] ss:$8 sps:$4 sm:$0xff]   ;;  %v872_v48 = vld [vmem:[%s964_s25 + $0xd0] ss:$8 sps:$4 sm:$0xff]   ;;  %v876_v49 = vld [vmem:[%s964_s25 + $0xe4] ss:$8 sps:$4 sm:$0xff]  }
  0x28   : > { %v878_v50 = vld [vmem:[%s964_s25 + $0xe0] ss:$8 sps:$4 sm:$0xff]   ;;  %v882_v51 = vld [vmem:[%s964_s25 + $0xf4] ss:$8 sps:$4 sm:$0xff]   ;;  %v884_v52 = vld [vmem:[%s964_s25 + $0xf0] ss:$8 sps:$4 sm:$0xff]  }
  0x29   : > { %582 = vmatpush1.bf16.msra.mxu1 %v857_v22  ;;  %v231_v58 = vld [vmem:[#allocation2] sm:$0xff]  ;;  %v232_v61 = vld [vmem:[#allocation2 + $0x8] sm:$0xff]  ;;  %v630_v7 = vsub.s32 (!%p782_p7), 0, %v629_v5  ;;  %v634_v8 = vsub.s32 (!%p782_p7), 1, %v629_v5 }
  0x2a   : > { %543 = vmatpush1.bf16.msra.mxu0 %v827_v15  ;;  %583 = vmatprep.subr.bf16.mxu1 %v861_v24  ;;  %v626_v6 = vld [vmem:[%s1038_s2] sm:$0x3] (!%p782_p7) }
  0x2b   : > { %544 = vmatprep.subr.bf16.mxu0 %v828_v16  ;;  %v631_v11 = vrot.slane (!%p782_p7), %v626_v6, %v630_v7  ;;  %v635_v12 = vrot.slane (!%p782_p7), %v626_v6, %v634_v8 }
  0x2d   : > { %584 = vmatpush1.bf16.msra.mxu1 %v863_v26 }
  0x2e   : > { %545 = vmatpush1.bf16.msra.mxu0 %v830_v19  ;;  %585 = vmatprep.subr.bf16.mxu1 %v867_v28 }
  0x2f   : > { %546 = vmatprep.subr.bf16.mxu0 %v831_v21 }
  0x31   : > { %586 = vmatpush1.bf16.msra.mxu1 %v869_v30 }
  0x32   : > { %547 = vmatpush1.bf16.msra.mxu0 %v833_v23  ;;  %587 = vmatprep.subr.bf16.mxu1 %v873_v32 }
  0x33   : > { %548 = vmatprep.subr.bf16.mxu0 %v834_v25 }
  0x35   : > { %588 = vmatpush1.bf16.msra.mxu1 %v875_v36 }
  0x36   : > { %549 = vmatpush1.bf16.msra.mxu0 %v836_v27  ;;  %589 = vmatprep.subr.bf16.mxu1 %v879_v38 }
  0x37   : > { %550 = vmatprep.subr.bf16.mxu0 %v840_v29 }
  0x39   : > { %590 = vmatpush1.bf16.msra.mxu1 %v881_v40 }
  0x3a   : > { %551 = vmatpush1.bf16.msra.mxu0 %v842_v31 }
  0x3b   : > { %552 = vmatprep.subr.bf16.mxu0 %v846_v33 }
  0x3c   : > { %608 = vmatmul.mubr.bf16.vlgmr.msra.gmra.mrb[0].mxu1 %v885_v43 }
  0x3e   : > { %553 = vmatpush1.bf16.msra.mxu0 %v848_v37 }
  0x3f   : > { %554 = vmatprep.subr.bf16.mxu0 %v852_v39 }
  0x42   : > { %555 = vmatpush1.bf16.msra.mxu0 %v854_v41 }
  0x43   : > { %556 = vmatprep.subr.bf16.mxu0 %v858_v42 }
  0x46   : > { %557 = vmatpush1.bf16.msra.mxu0 %v860_v44 }
  0x47   : > { %558 = vmatprep.subr.bf16.mxu0 %v864_v45 }
  0x4a   : > { %559 = vmatpush1.bf16.msra.mxu0 %v866_v46 }
  0x4b   : > { %560 = vmatprep.subr.bf16.mxu0 %v870_v47 }
  0x4e   : > { %561 = vmatpush1.bf16.msra.mxu0 %v872_v48 }
  0x4f   : > { %562 = vmatprep.subr.bf16.mxu0 %v876_v49 }
  0x52   : > { %563 = vmatpush1.bf16.msra.mxu0 %v878_v50 }
  0x53   : > { %564 = vmatprep.subr.bf16.mxu0 %v882_v51 }
  0x56   : > { %565 = vmatpush1.bf16.msra.mxu0 %v884_v52 }
  0x59   : > { %567 = vmatmul.mubr.bf16.vlgmr.msra.gmra.mrb[0].mxu0 %v731_v53 }
 0x10f   : > { %v609_v54 = vpop.f32.mrb[0].mxu1 }
 0x110   : > { %v611_v55 = vpop.f32.mrb[1].mxu1 }
 0x111   : > { %v613_v56 = vpop.f32.mrb[2].mxu1 }
 0x112   : > { %v614_v57 = vpop.f32.mrb[3].mxu1 }
 0x12c   : > { %v568_v59 = vpop.f32.mrb[0].mxu0  ;;  %623 = sbr.rel (%p782_p7) target bundleno = 319 (0x13f), region = 40 }
 0x12d   : > { %v610_v60 = vadd.f32 %v609_v54, %v568_v59  ;;  %v570_v62 = vpop.f32.mrb[1].mxu0 }
 0x12e   : > { %v612_v63 = vadd.f32 %v611_v55, %v570_v62  ;;  %v572_v0 = vpop.f32.mrb[2].mxu0 }
 0x12f   : > { %v616_v1 = vadd.f32 %v610_v60, %v231_v58  ;;  %v573_v2 = vpop.f32.mrb[3].mxu0 }
 0x130   : > { %v617_v3 = vadd.f32 %v612_v63, %v232_v61 }
 0x131   : > { %618 = vst [vmem:[#allocation2] sm:$0xff] %v616_v1 }
 0x132   : > { %619 = vst [vmem:[#allocation2 + $0x8] sm:$0xff] %v617_v3 }
 0x138   : > { %v624_v9 = vld [vmem:[#allocation2] sm:$0xff] }
 0x139   : > { %v625_v10 = vld [vmem:[#allocation2 + $0x8] sm:$0xff]  ;;  %v638_v13 = vadd.f32 %v631_v11, %v624_v9 }
 0x13a   : > { %v639_v14 = vadd.f32 %v635_v12, %v625_v10 }
 0x13b   : > { %v640_v15 = vmax.f32 %v638_v13, 0.0 }
 0x13c   : > { %v641_v16 = vmax.f32 %v639_v14, 0.0 }
 0x13d   : > { %642 = vst [vmem:[%s1039_s3] sm:$0xff] %v640_v15 }
 0x13e   : > { %643 = vst [vmem:[%s1039_s3 + $0x8] sm:$0xff] %v641_v16 }
 0x13f PF: > { %s13_s14 = sadd.s32 1, %s910_s14   ;;  %s1040_s12 = smov %s906_s13 }
 0x140   : > { %p10_p8 = scmp.ge.s32.totalorder %s13_s14, 8   ;;  %s1041_s13 = smov %s1043_s15 }
 0x142   :  { %12 = sbr.rel (!%p10_p8) target bundleno = 2 (0x2), region = 73 }

// kernel: _forward.57
= control target key start
LH: loop header
LB: loop body
LE: loop exit
PB: predicated region body
PF: predicated region fallthrough
CT: control target
= control target key end

     0   :  { %s1213_s18 = smov 0   ;;  %s1215_s19 = smov 0   ;;  %s1366_s0 = inlined_call_operand.vmem [shape: bf16[8,2304], index: 0, kind: input, shape index: {}]   ;;  %s1367_s1 = inlined_call_operand.vmem [shape: bf16[2304,256], index: 1, kind: input, shape index: {}]   ;;  %s1368_s2 = inlined_call_operand.vmem [shape: f32[1,256], index: 2, kind: input, shape index: {}]   ;;  %s1369_s3 = inlined_call_operand.vmem [shape: bf16[8,128], index: 3, kind: input, shape index: {}]   ;;  %s1370_s4 = inlined_call_operand.vmem [shape: bf16[128,256], index: 4, kind: input, shape index: {}]   ;;  %s1371_s5 = inlined_call_operand.vmem [shape: f32[8,256], index: 5, kind: output, shape index: {}]  }
   0x1   :  { %s1217_s20 = smov 0  }
   0x2 LB: > { %s24_s21 = sadd.s32 1, %s1174_s19  ;;  %p953_p0 = scmp.ge.s32.totalorder %s1178_s20, 1  ;;  %s1178_s20 = sphi %s1217_s20, %s15_s20   ;;  %s1174_s19 = sphi %s1215_s19, %s1373_s19   ;;  %s1170_s18 = sphi %s1213_s18, %s1372_s18  }
   0x3   : > { %p25_p1 = scmp.ge.s32.totalorder %s24_s21, 6  ;;  %p227_p2 = scmp.lt.s32.totalorder %s1178_s20, 7 }
   0x5   : > { %s1375_s21 = smov (%p25_p1, %s24_s21), 0  ;;  %p228_p3 = pnand %p953_p0, %p227_p2 }
   0x6   : > { %s269_s22 = smul.u32 (!%p228_p3), 3, %s1170_s18  ;;  %p957_p6 = scmp.ne.s32.totalorder (!%p228_p3), %s1170_s18, 0 }
   0x7   : > { %231 = sbr.rel (%p228_p3) target bundleno = 521 (0x209), region = 40 }
   0x8   : > { %s279_s23 = smul.u32 (!%p228_p3), 48, %s1170_s18  ;;  %p272_p4 = scmp.lt.s32.totalorder (!%p228_p3), %s269_s22, 17 }
   0xa   : > { %p280_p5 = scmp.lt.s32.totalorder (!%p228_p3), %s279_s23, 287 }
   0xe   : > { %s1377_s22 = smov (!%p272_p4, %s269_s22), 17  ;;  %s1379_s23 = smov (!%p280_p5, %s279_s23), 287 }
   0xf   : > { %s954_s24 = sshll.u32 %s1377_s22, 2  ;;  %s1029_s28 = sshll.u32 %s1379_s23, 3  ;;  %v1180_v0 = vmov (!%p957_p6), 0.0  }
  0x10   : > { %s1238_s27 = scalar_lea.vmem %s1366_s0, %s954_s24  ;;  %s1243_s6 = scalar_lea.vmem %s1367_s1, %s1029_s28  ;;  %300 = vst [vmem:[#allocation2] sm:$0xff] (!%p957_p6), %v1180_v0  ;;  %301 = vst [vmem:[#allocation2 + $0x8] sm:$0xff] (!%p957_p6), %v1180_v0 }
  0x11   : > { %299 = sbr.rel (%p957_p6) target bundleno = 24 (0x18), region = 44 }
  0x18 PF: > { %v1057_v1 = vld [vmem:[%s1243_s6 + $0x4] ss:$8 sps:$4 sm:$0xff]   ;;  %v1059_v2 = vld [vmem:[%s1243_s6] ss:$8 sps:$4 sm:$0xff]   ;;  %v1181_v3 = vmov 0   ;;  %p1009_p7 = scmp.ne.s32.totalorder %s1170_s18, 5 }
  0x19   : > { %678 = vmatprep.mubr.bf16.mxu1 %v1181_v3  ;;  %605 = vmatprep.subr.bf16.mxu0 %v1057_v1  ;;  %v1060_v4 = vld [vmem:[%s1243_s6 + $0x14] ss:$8 sps:$4 sm:$0xff]   ;;  %v1062_v5 = vld [vmem:[%s1243_s6 + $0x10] ss:$8 sps:$4 sm:$0xff]   ;;  %v1063_v6 = vld [vmem:[%s1243_s6 + $0x24] ss:$8 sps:$4 sm:$0xff]  }
  0x1a   : > { %606 = vmatpush1.bf16.msra.mxu0 %v1059_v2  ;;  %v1065_v7 = vld [vmem:[%s1243_s6 + $0x20] ss:$8 sps:$4 sm:$0xff]   ;;  %v1066_v8 = vld [vmem:[%s1243_s6 + $0x34] ss:$8 sps:$4 sm:$0xff]   ;;  %v1068_v9 = vld [vmem:[%s1243_s6 + $0x30] ss:$8 sps:$4 sm:$0xff]  }
  0x1b   : > { %607 = vmatprep.subr.bf16.mxu0 %v1060_v4  ;;  %v1081_v10 = vld [vmem:[%s1243_s6 + $0x104] ss:$8 sps:$4 sm:$0xff]   ;;  %v1083_v11 = vld [vmem:[%s1243_s6 + $0x100] ss:$8 sps:$4 sm:$0xff]   ;;  %v1087_v13 = vld [vmem:[%s1243_s6 + $0x114] ss:$8 sps:$4 sm:$0xff]  }
  0x1c   : > { %v1069_v12 = vld [vmem:[%s1243_s6 + $0x44] ss:$8 sps:$4 sm:$0xff]   ;;  %646 = vmatprep.subr.bf16.mxu1 %v1081_v10  ;;  %v1089_v14 = vld [vmem:[%s1243_s6 + $0x110] ss:$8 sps:$4 sm:$0xff]   ;;  %v1071_v15 = vld [vmem:[%s1243_s6 + $0x40] ss:$8 sps:$4 sm:$0xff]  }
  0x1d   : > { %647 = vmatpush1.bf16.msra.mxu1 %v1083_v11  ;;  %v1072_v16 = vld [vmem:[%s1243_s6 + $0x54] ss:$8 sps:$4 sm:$0xff]   ;;  %v1093_v17 = vld [vmem:[%s1243_s6 + $0x124] ss:$8 sps:$4 sm:$0xff]   ;;  %v1095_v18 = vld [vmem:[%s1243_s6 + $0x120] ss:$8 sps:$4 sm:$0xff]  }
  0x1e   : > { %608 = vmatpush1.bf16.msra.mxu0 %v1062_v5  ;;  %648 = vmatprep.subr.bf16.mxu1 %v1087_v13  ;;  %v1074_v19 = vld [vmem:[%s1243_s6 + $0x50] ss:$8 sps:$4 sm:$0xff]   ;;  %v1099_v20 = vld [vmem:[%s1243_s6 + $0x134] ss:$8 sps:$4 sm:$0xff]   ;;  %v1075_v21 = vld [vmem:[%s1243_s6 + $0x64] ss:$8 sps:$4 sm:$0xff]  }
  0x1f   : > { %609 = vmatprep.subr.bf16.mxu0 %v1063_v6  ;;  %v1101_v22 = vld [vmem:[%s1243_s6 + $0x130] ss:$8 sps:$4 sm:$0xff]   ;;  %v1077_v23 = vld [vmem:[%s1243_s6 + $0x60] ss:$8 sps:$4 sm:$0xff]   ;;  %v1105_v24 = vld [vmem:[%s1243_s6 + $0x144] ss:$8 sps:$4 sm:$0xff]  }
  0x20   : > { %v1078_v25 = vld [vmem:[%s1243_s6 + $0x74] ss:$8 sps:$4 sm:$0xff]   ;;  %v1107_v26 = vld [vmem:[%s1243_s6 + $0x140] ss:$8 sps:$4 sm:$0xff]   ;;  %v1080_v27 = vld [vmem:[%s1243_s6 + $0x70] ss:$8 sps:$4 sm:$0xff]  }
  0x21   : > { %649 = vmatpush1.bf16.msra.mxu1 %v1089_v14  ;;  %v1111_v28 = vld [vmem:[%s1243_s6 + $0x154] ss:$8 sps:$4 sm:$0xff]   ;;  %v1084_v29 = vld [vmem:[%s1243_s6 + $0x84] ss:$8 sps:$4 sm:$0xff]   ;;  %v1113_v30 = vld [vmem:[%s1243_s6 + $0x150] ss:$8 sps:$4 sm:$0xff]  }
  0x22   : > { %610 = vmatpush1.bf16.msra.mxu0 %v1065_v7  ;;  %650 = vmatprep.subr.bf16.mxu1 %v1093_v17  ;;  %v1086_v31 = vld [vmem:[%s1243_s6 + $0x80] ss:$8 sps:$4 sm:$0xff]   ;;  %v1117_v32 = vld [vmem:[%s1243_s6 + $0x164] ss:$8 sps:$4 sm:$0xff]   ;;  %v1090_v33 = vld [vmem:[%s1243_s6 + $0x94] ss:$8 sps:$4 sm:$0xff]  }
  0x23   : > { %611 = vmatprep.subr.bf16.mxu0 %v1066_v8  ;;  %v304_v34 = vld [vmem:[%s1238_s27] sm:$0xff]  ;;  %v1092_v37 = vld [vmem:[%s1243_s6 + $0x90] ss:$8 sps:$4 sm:$0xff]   ;;  %v1123_v38 = vld [vmem:[%s1243_s6 + $0x174] ss:$8 sps:$4 sm:$0xff]   ;;  %v1182_v6 = vmov (!%p1009_p7), 0  }
  0x24   : > { %v959_v35 = vcombine.high %v304_v34, %v304_v34  ;;  %v1119_v36 = vld [vmem:[%s1243_s6 + $0x160] ss:$8 sps:$4 sm:$0xff]   ;;  %v1096_v39 = vld [vmem:[%s1243_s6 + $0xa4] ss:$8 sps:$4 sm:$0xff]   ;;  %v1125_v40 = vld [vmem:[%s1243_s6 + $0x170] ss:$8 sps:$4 sm:$0xff]   ;;  %v958_v53 = vcombine.low %v304_v34, %v304_v34 }
  0x25   : > { %651 = vmatpush1.bf16.msra.mxu1 %v1095_v18  ;;  %v1098_v41 = vld [vmem:[%s1243_s6 + $0xa0] ss:$8 sps:$4 sm:$0xff]   ;;  %v1102_v42 = vld [vmem:[%s1243_s6 + $0xb4] ss:$8 sps:$4 sm:$0xff]   ;;  %v1104_v44 = vld [vmem:[%s1243_s6 + $0xb0] ss:$8 sps:$4 sm:$0xff]  }
  0x26   : > { %612 = vmatpush1.bf16.msra.mxu0 %v1068_v9  ;;  %652 = vmatprep.subr.bf16.mxu1 %v1099_v20  ;;  %v1129_v43 = vld [vmem:[%s1238_s27 + $0x8] ss:$0 sps:$4 sm:$0xff]   ;;  %v1108_v45 = vld [vmem:[%s1243_s6 + $0xc4] ss:$8 sps:$4 sm:$0xff]   ;;  %v1114_v47 = vld [vmem:[%s1243_s6 + $0xd4] ss:$8 sps:$4 sm:$0xff]  }
  0x27   : > { %613 = vmatprep.subr.bf16.mxu0 %v1069_v12  ;;  %637 = vmatprep.mubr.bf16.mxu0 %v959_v35  ;;  %v1110_v46 = vld [vmem:[%s1243_s6 + $0xc0] ss:$8 sps:$4 sm:$0xff]   ;;  %v1116_v48 = vld [vmem:[%s1243_s6 + $0xd0] ss:$8 sps:$4 sm:$0xff]   ;;  %v1120_v49 = vld [vmem:[%s1243_s6 + $0xe4] ss:$8 sps:$4 sm:$0xff]  }
  0x28   : > { %v1122_v50 = vld [vmem:[%s1243_s6 + $0xe0] ss:$8 sps:$4 sm:$0xff]   ;;  %v1126_v51 = vld [vmem:[%s1243_s6 + $0xf4] ss:$8 sps:$4 sm:$0xff]   ;;  %v1128_v52 = vld [vmem:[%s1243_s6 + $0xf0] ss:$8 sps:$4 sm:$0xff]  }
  0x29   : > { %653 = vmatpush1.bf16.msra.mxu1 %v1101_v22  ;;  %v302_v58 = vld [vmem:[#allocation2] sm:$0xff]  ;;  %v303_v61 = vld [vmem:[#allocation2 + $0x8] sm:$0xff]  ;;  %v1135_v7 = vld [vmem:[%s1370_s4 + $0x14] ss:$8 sps:$4 sm:$0xff] (!%p1009_p7)   ;;  %v699_v22 = vlaneseq (!%p1009_p7) }
  0x2a   : > { %614 = vmatpush1.bf16.msra.mxu0 %v1071_v15  ;;  %654 = vmatprep.subr.bf16.mxu1 %v1105_v24  ;;  %v1132_v4 = vld [vmem:[%s1370_s4 + $0x4] ss:$8 sps:$4 sm:$0xff] (!%p1009_p7)   ;;  %v1134_v5 = vld [vmem:[%s1370_s4] ss:$8 sps:$4 sm:$0xff] (!%p1009_p7)   ;;  %v1137_v8 = vld [vmem:[%s1370_s4 + $0x10] ss:$8 sps:$4 sm:$0xff] (!%p1009_p7)  }
  0x2b   : > { %615 = vmatprep.subr.bf16.mxu0 %v1072_v16  ;;  %v1138_v9 = vld [vmem:[%s1370_s4 + $0x24] ss:$8 sps:$4 sm:$0xff] (!%p1009_p7)   ;;  %v1140_v10 = vld [vmem:[%s1370_s4 + $0x20] ss:$8 sps:$4 sm:$0xff] (!%p1009_p7)   ;;  %v1141_v11 = vld [vmem:[%s1370_s4 + $0x34] ss:$8 sps:$4 sm:$0xff] (!%p1009_p7)  }
  0x2c   : > { %v1143_v12 = vld [vmem:[%s1370_s4 + $0x30] ss:$8 sps:$4 sm:$0xff] (!%p1009_p7)   ;;  %v1144_v13 = vld [vmem:[%s1370_s4 + $0x44] ss:$8 sps:$4 sm:$0xff] (!%p1009_p7)   ;;  %v1146_v14 = vld [vmem:[%s1370_s4 + $0x40] ss:$8 sps:$4 sm:$0xff] (!%p1009_p7)  }
  0x2d   : > { %655 = vmatpush1.bf16.msra.mxu1 %v1107_v26  ;;  %v1147_v15 = vld [vmem:[%s1370_s4 + $0x54] ss:$8 sps:$4 sm:$0xff] (!%p1009_p7)   ;;  %v1149_v16 = vld [vmem:[%s1370_s4 + $0x50] ss:$8 sps:$4 sm:$0xff] (!%p1009_p7)   ;;  %v1150_v17 = vld [vmem:[%s1370_s4 + $0x64] ss:$8 sps:$4 sm:$0xff] (!%p1009_p7)  }
  0x2e   : > { %616 = vmatpush1.bf16.msra.mxu0 %v1074_v19  ;;  %656 = vmatprep.subr.bf16.mxu1 %v1111_v28  ;;  %v1152_v18 = vld [vmem:[%s1370_s4 + $0x60] ss:$8 sps:$4 sm:$0xff] (!%p1009_p7)   ;;  %v1153_v19 = vld [vmem:[%s1370_s4 + $0x74] ss:$8 sps:$4 sm:$0xff] (!%p1009_p7)   ;;  %v1155_v20 = vld [vmem:[%s1370_s4 + $0x70] ss:$8 sps:$4 sm:$0xff] (!%p1009_p7)  }
  0x2f   : > { %617 = vmatprep.subr.bf16.mxu0 %v1075_v21  ;;  %v711_v21 = vld [vmem:[%s1369_s3] sm:$0xf] (!%p1009_p7) }
  0x31   : > { %657 = vmatpush1.bf16.msra.mxu1 %v1113_v30 }
  0x32   : > { %618 = vmatpush1.bf16.msra.mxu0 %v1077_v23  ;;  %658 = vmatprep.subr.bf16.mxu1 %v1117_v32  ;;  %v700_v23 = vshrl.u32 (!%p1009_p7), %v699_v22, 7 }
  0x33   : > { %619 = vmatprep.subr.bf16.mxu0 %v1078_v25  ;;  %v697_v25 = vld [vmem:[%s1368_s2] sm:$0x3] (!%p1009_p7) }
  0x34   : > { %v701_v24 = vsub.s32 (!%p1009_p7), 0, %v700_v23  ;;  %v705_v26 = vsub.s32 (!%p1009_p7), 1, %v700_v23 }
  0x35   : > { %659 = vmatpush1.bf16.msra.mxu1 %v1119_v36 }
  0x36   : > { %620 = vmatpush1.bf16.msra.mxu0 %v1080_v27  ;;  %660 = vmatprep.subr.bf16.mxu1 %v1123_v38  ;;  %v702_v27 = vrot.slane (!%p1009_p7), %v697_v25, %v701_v24 }
  0x37   : > { %621 = vmatprep.subr.bf16.mxu0 %v1084_v29  ;;  %v706_v29 = vrot.slane (!%p1009_p7), %v697_v25, %v705_v26 }
  0x39   : > { %661 = vmatpush1.bf16.msra.mxu1 %v1125_v40 }
  0x3a   : > { %622 = vmatpush1.bf16.msra.mxu0 %v1086_v31 }
  0x3b   : > { %623 = vmatprep.subr.bf16.mxu0 %v1090_v33 }
  0x3c   : > { %679 = vmatmul.mubr.bf16.vlgmr.msra.gmra.mrb[0].mxu1 %v1129_v43 }
  0x3e   : > { %624 = vmatpush1.bf16.msra.mxu0 %v1092_v37 }
  0x3f   : > { %625 = vmatprep.subr.bf16.mxu0 %v1096_v39 }
  0x42   : > { %626 = vmatpush1.bf16.msra.mxu0 %v1098_v41 }
  0x43   : > { %627 = vmatprep.subr.bf16.mxu0 %v1102_v42 }
  0x46   : > { %628 = vmatpush1.bf16.msra.mxu0 %v1104_v44 }
  0x47   : > { %629 = vmatprep.subr.bf16.mxu0 %v1108_v45 }
  0x4a   : > { %630 = vmatpush1.bf16.msra.mxu0 %v1110_v46 }
  0x4b   : > { %631 = vmatprep.subr.bf16.mxu0 %v1114_v47 }
  0x4e   : > { %632 = vmatpush1.bf16.msra.mxu0 %v1116_v48 }
  0x4f   : > { %633 = vmatprep.subr.bf16.mxu0 %v1120_v49 }
  0x52   : > { %634 = vmatpush1.bf16.msra.mxu0 %v1122_v50 }
  0x53   : > { %635 = vmatprep.subr.bf16.mxu0 %v1126_v51 }
  0x56   : > { %636 = vmatpush1.bf16.msra.mxu0 %v1128_v52 }
  0x57   : > { %808 = vmatprep.subr.bf16.mxu0 (!%p1009_p7), %v1132_v4 }
  0x59   : > { %638 = vmatmul.mubr.bf16.vlgmr.msra.gmra.mrb[0].mxu0 %v958_v53 }
  0x5a   : > { %840 = vmatprep.mubr.bf16.mxu0 (!%p1009_p7), %v1182_v6  ;;  %809 = vmatpush1.bf16.msra.mxu0 (!%p1009_p7), %v1134_v5 }
  0x5b   : > { %810 = vmatprep.subr.bf16.mxu0 (!%p1009_p7), %v1135_v7 }
  0x5e   : > { %811 = vmatpush1.bf16.msra.mxu0 (!%p1009_p7), %v1137_v8 }
  0x5f   : > { %812 = vmatprep.subr.bf16.mxu0 (!%p1009_p7), %v1138_v9 }
  0x62   : > { %813 = vmatpush1.bf16.msra.mxu0 (!%p1009_p7), %v1140_v10 }
  0x63   : > { %814 = vmatprep.subr.bf16.mxu0 (!%p1009_p7), %v1141_v11 }
  0x66   : > { %815 = vmatpush1.bf16.msra.mxu0 (!%p1009_p7), %v1143_v12 }
  0x67   : > { %816 = vmatprep.subr.bf16.mxu0 (!%p1009_p7), %v1144_v13 }
  0x6a   : > { %817 = vmatpush1.bf16.msra.mxu0 (!%p1009_p7), %v1146_v14 }
  0x6b   : > { %818 = vmatprep.subr.bf16.mxu0 (!%p1009_p7), %v1147_v15 }
  0x6e   : > { %819 = vmatpush1.bf16.msra.mxu0 (!%p1009_p7), %v1149_v16 }
  0x6f   : > { %820 = vmatprep.subr.bf16.mxu0 (!%p1009_p7), %v1150_v17 }
  0x72   : > { %821 = vmatpush1.bf16.msra.mxu0 (!%p1009_p7), %v1152_v18 }
  0x73   : > { %822 = vmatprep.subr.bf16.mxu0 (!%p1009_p7), %v1153_v19 }
  0x76   : > { %823 = vmatpush1.bf16.msra.mxu0 (!%p1009_p7), %v1155_v20 }
 0x10f   : > { %v680_v54 = vpop.f32.mrb[0].mxu1 }
 0x110   : > { %v682_v55 = vpop.f32.mrb[1].mxu1 }
 0x111   : > { %v684_v56 = vpop.f32.mrb[2].mxu1 }
 0x112   : > { %v685_v57 = vpop.f32.mrb[3].mxu1 }
 0x12c   : > { %v639_v59 = vpop.f32.mrb[0].mxu0  ;;  %694 = sbr.rel (%p1009_p7) target bundleno = 521 (0x209), region = 48 }
 0x12d   : > { %v681_v60 = vadd.f32 %v680_v54, %v639_v59  ;;  %v641_v62 = vpop.f32.mrb[1].mxu0 }
 0x12e   : > { %v683_v63 = vadd.f32 %v682_v55, %v641_v62  ;;  %v643_v0 = vpop.f32.mrb[2].mxu0 }
 0x12f   : > { %v687_v1 = vadd.f32 %v681_v60, %v302_v58  ;;  %v644_v2 = vpop.f32.mrb[3].mxu0  ;;  %841 = vmatmul.mubr.bf16.vlgmr.msra.gmra.mrb[0].mxu0 (!%p1009_p7), %v711_v21 }
 0x130   : > { %v688_v3 = vadd.f32 %v683_v63, %v303_v61 }
 0x131   : > { %689 = vst [vmem:[#allocation2] sm:$0xff] %v687_v1 }
 0x132   : > { %690 = vst [vmem:[#allocation2 + $0x8] sm:$0xff] %v688_v3 }
 0x138   : > { %v695_v28 = vld [vmem:[#allocation2] sm:$0xff] }
 0x139   : > { %v696_v30 = vld [vmem:[#allocation2 + $0x8] sm:$0xff]  ;;  %v709_v31 = vadd.f32 %v702_v27, %v695_v28 }
 0x13a   : > { %v710_v32 = vadd.f32 %v706_v29, %v696_v30 }
 0x202   : > { %v842_v33 = vpop.f32.mrb[0].mxu0 }
 0x203   : > { %v849_v34 = vadd.f32 %v842_v33, %v709_v31  ;;  %v844_v35 = vpop.f32.mrb[1].mxu0 }
 0x204   : > { %v850_v36 = vadd.f32 %v844_v35, %v710_v32  ;;  %v846_v37 = vpop.f32.mrb[2].mxu0 }
 0x205   : > { %v851_v38 = vmax.f32 %v849_v34, 0.0  ;;  %v847_v39 = vpop.f32.mrb[3].mxu0 }
 0x206   : > { %v852_v40 = vmax.f32 %v850_v36, 0.0 }
 0x207   : > { %853 = vst [vmem:[%s1371_s5] sm:$0xff] %v851_v38 }
 0x208   : > { %854 = vst [vmem:[%s1371_s5 + $0x8] sm:$0xff] %v852_v40 }
 0x209 PF: > { %s15_s20 = sadd.s32 1, %s1178_s20   ;;  %s1372_s18 = smov %s1174_s19 }
 0x20a   : > { %p12_p8 = scmp.ge.s32.totalorder %s15_s20, 8   ;;  %s1373_s19 = smov %s1375_s21 }
 0x20c   :  { %14 = sbr.rel (!%p12_p8) target bundleno = 2 (0x2), region = 84 }

// kernel: _forward.59
= control target key start
LH: loop header
LB: loop body
LE: loop exit
PB: predicated region body
PF: predicated region fallthrough
CT: control target
= control target key end

     0   :  { %s1006_s15 = smov 0   ;;  %s1008_s16 = smov 0   ;;  %s1114_s0 = inlined_call_operand.vmem [shape: bf16[8,2304], index: 0, kind: input, shape index: {}]   ;;  %s1115_s1 = inlined_call_operand.vmem [shape: bf16[2304,256], index: 1, kind: input, shape index: {}]   ;;  %s1116_s2 = inlined_call_operand.vmem [shape: f32[1,256], index: 2, kind: input, shape index: {}]   ;;  %s1117_s3 = inlined_call_operand.vmem [shape: f32[8,256], index: 3, kind: input, shape index: {}]   ;;  %s1118_s4 = inlined_call_operand.vmem [shape: f32[8,256], index: 4, kind: output, shape index: {}]  }
   0x1   :  { %s1010_s17 = smov 0  }
   0x2 LB: > { %s23_s18 = sadd.s32 1, %s973_s16  ;;  %p793_p0 = scmp.ge.s32.totalorder %s977_s17, 1  ;;  %s977_s17 = sphi %s1010_s17, %s14_s17   ;;  %s973_s16 = sphi %s1008_s16, %s1120_s16   ;;  %s969_s15 = sphi %s1006_s15, %s1119_s15  }
   0x3   : > { %p24_p1 = scmp.ge.s32.totalorder %s23_s18, 6  ;;  %p203_p2 = scmp.lt.s32.totalorder %s977_s17, 7 }
   0x5   : > { %s1122_s18 = smov (%p24_p1, %s23_s18), 0  ;;  %p204_p3 = pnand %p793_p0, %p203_p2 }
   0x6   : > { %s244_s19 = smul.u32 (!%p204_p3), 3, %s969_s15  ;;  %p797_p6 = scmp.ne.s32.totalorder (!%p204_p3), %s969_s15, 0 }
   0x7   : > { %207 = sbr.rel (%p204_p3) target bundleno = 321 (0x141), region = 36 }
   0x8   : > { %s254_s20 = smul.u32 (!%p204_p3), 48, %s969_s15  ;;  %p247_p4 = scmp.lt.s32.totalorder (!%p204_p3), %s244_s19, 17 }
   0xa   : > { %p255_p5 = scmp.lt.s32.totalorder (!%p204_p3), %s254_s20, 287 }
   0xe   : > { %s1124_s19 = smov (!%p247_p4, %s244_s19), 17  ;;  %s1126_s20 = smov (!%p255_p5, %s254_s20), 287 }
   0xf   : > { %s794_s21 = sshll.u32 %s1124_s19, 2  ;;  %s853_s25 = sshll.u32 %s1126_s20, 3  ;;  %v979_v0 = vmov (!%p797_p6), 0.0  }
  0x10   : > { %s1031_s24 = scalar_lea.vmem %s1114_s0, %s794_s21  ;;  %s1036_s28 = scalar_lea.vmem %s1115_s1, %s853_s25  ;;  %276 = vst [vmem:[#allocation2] sm:$0xff] (!%p797_p6), %v979_v0  ;;  %277 = vst [vmem:[#allocation2 + $0x8] sm:$0xff] (!%p797_p6), %v979_v0 }
  0x11   : > { %275 = sbr.rel (%p797_p6) target bundleno = 24 (0x18), region = 40 }
  0x18 PF: > { %v880_v1 = vld [vmem:[%s1036_s28 + $0x4] ss:$8 sps:$4 sm:$0xff]   ;;  %v882_v2 = vld [vmem:[%s1036_s28] ss:$8 sps:$4 sm:$0xff]   ;;  %v980_v3 = vmov 0   ;;  %p849_p7 = scmp.ne.s32.totalorder %s969_s15, 5 }
  0x19   : > { %654 = vmatprep.mubr.bf16.mxu1 %v980_v3  ;;  %581 = vmatprep.subr.bf16.mxu0 %v880_v1  ;;  %v883_v4 = vld [vmem:[%s1036_s28 + $0x14] ss:$8 sps:$4 sm:$0xff]   ;;  %v885_v5 = vld [vmem:[%s1036_s28 + $0x10] ss:$8 sps:$4 sm:$0xff]   ;;  %v886_v6 = vld [vmem:[%s1036_s28 + $0x24] ss:$8 sps:$4 sm:$0xff]  }
  0x1a   : > { %582 = vmatpush1.bf16.msra.mxu0 %v882_v2  ;;  %v888_v7 = vld [vmem:[%s1036_s28 + $0x20] ss:$8 sps:$4 sm:$0xff]   ;;  %v889_v8 = vld [vmem:[%s1036_s28 + $0x34] ss:$8 sps:$4 sm:$0xff]   ;;  %v891_v9 = vld [vmem:[%s1036_s28 + $0x30] ss:$8 sps:$4 sm:$0xff]  }
  0x1b   : > { %583 = vmatprep.subr.bf16.mxu0 %v883_v4  ;;  %v904_v10 = vld [vmem:[%s1036_s28 + $0x104] ss:$8 sps:$4 sm:$0xff]   ;;  %v906_v11 = vld [vmem:[%s1036_s28 + $0x100] ss:$8 sps:$4 sm:$0xff]   ;;  %v910_v13 = vld [vmem:[%s1036_s28 + $0x114] ss:$8 sps:$4 sm:$0xff]   ;;  %v675_v4 = vlaneseq (!%p849_p7) }
  0x1c   : > { %v892_v12 = vld [vmem:[%s1036_s28 + $0x44] ss:$8 sps:$4 sm:$0xff]   ;;  %622 = vmatprep.subr.bf16.mxu1 %v904_v10  ;;  %v912_v14 = vld [vmem:[%s1036_s28 + $0x110] ss:$8 sps:$4 sm:$0xff]   ;;  %v894_v15 = vld [vmem:[%s1036_s28 + $0x40] ss:$8 sps:$4 sm:$0xff]  }
  0x1d   : > { %623 = vmatpush1.bf16.msra.mxu1 %v906_v11  ;;  %v895_v16 = vld [vmem:[%s1036_s28 + $0x54] ss:$8 sps:$4 sm:$0xff]   ;;  %v916_v17 = vld [vmem:[%s1036_s28 + $0x124] ss:$8 sps:$4 sm:$0xff]   ;;  %v918_v18 = vld [vmem:[%s1036_s28 + $0x120] ss:$8 sps:$4 sm:$0xff]  }
  0x1e   : > { %584 = vmatpush1.bf16.msra.mxu0 %v885_v5  ;;  %624 = vmatprep.subr.bf16.mxu1 %v910_v13  ;;  %v897_v19 = vld [vmem:[%s1036_s28 + $0x50] ss:$8 sps:$4 sm:$0xff]   ;;  %v922_v20 = vld [vmem:[%s1036_s28 + $0x134] ss:$8 sps:$4 sm:$0xff]   ;;  %v898_v21 = vld [vmem:[%s1036_s28 + $0x64] ss:$8 sps:$4 sm:$0xff]  }
  0x1f   : > { %585 = vmatprep.subr.bf16.mxu0 %v886_v6  ;;  %v924_v22 = vld [vmem:[%s1036_s28 + $0x130] ss:$8 sps:$4 sm:$0xff]   ;;  %v900_v23 = vld [vmem:[%s1036_s28 + $0x60] ss:$8 sps:$4 sm:$0xff]   ;;  %v928_v24 = vld [vmem:[%s1036_s28 + $0x144] ss:$8 sps:$4 sm:$0xff]  }
  0x20   : > { %v901_v25 = vld [vmem:[%s1036_s28 + $0x74] ss:$8 sps:$4 sm:$0xff]   ;;  %v930_v26 = vld [vmem:[%s1036_s28 + $0x140] ss:$8 sps:$4 sm:$0xff]   ;;  %v903_v27 = vld [vmem:[%s1036_s28 + $0x70] ss:$8 sps:$4 sm:$0xff]  }
  0x21   : > { %625 = vmatpush1.bf16.msra.mxu1 %v912_v14  ;;  %v934_v28 = vld [vmem:[%s1036_s28 + $0x154] ss:$8 sps:$4 sm:$0xff]   ;;  %v907_v29 = vld [vmem:[%s1036_s28 + $0x84] ss:$8 sps:$4 sm:$0xff]   ;;  %v936_v30 = vld [vmem:[%s1036_s28 + $0x150] ss:$8 sps:$4 sm:$0xff]  }
  0x22   : > { %586 = vmatpush1.bf16.msra.mxu0 %v888_v7  ;;  %626 = vmatprep.subr.bf16.mxu1 %v916_v17  ;;  %v909_v31 = vld [vmem:[%s1036_s28 + $0x80] ss:$8 sps:$4 sm:$0xff]   ;;  %v940_v32 = vld [vmem:[%s1036_s28 + $0x164] ss:$8 sps:$4 sm:$0xff]   ;;  %v913_v33 = vld [vmem:[%s1036_s28 + $0x94] ss:$8 sps:$4 sm:$0xff]  }
  0x23   : > { %587 = vmatprep.subr.bf16.mxu0 %v889_v8  ;;  %v280_v34 = vld [vmem:[%s1031_s24] sm:$0xff]  ;;  %v915_v37 = vld [vmem:[%s1036_s28 + $0x90] ss:$8 sps:$4 sm:$0xff]   ;;  %v946_v38 = vld [vmem:[%s1036_s28 + $0x174] ss:$8 sps:$4 sm:$0xff]   ;;  %v676_v5 = vshrl.u32 (!%p849_p7), %v675_v4, 7 }
  0x24   : > { %v799_v35 = vcombine.high %v280_v34, %v280_v34  ;;  %v942_v36 = vld [vmem:[%s1036_s28 + $0x160] ss:$8 sps:$4 sm:$0xff]   ;;  %v919_v39 = vld [vmem:[%s1036_s28 + $0xa4] ss:$8 sps:$4 sm:$0xff]   ;;  %v948_v40 = vld [vmem:[%s1036_s28 + $0x170] ss:$8 sps:$4 sm:$0xff]   ;;  %v798_v53 = vcombine.low %v280_v34, %v280_v34 }
  0x25   : > { %627 = vmatpush1.bf16.msra.mxu1 %v918_v18  ;;  %v921_v41 = vld [vmem:[%s1036_s28 + $0xa0] ss:$8 sps:$4 sm:$0xff]   ;;  %v925_v42 = vld [vmem:[%s1036_s28 + $0xb4] ss:$8 sps:$4 sm:$0xff]   ;;  %v927_v44 = vld [vmem:[%s1036_s28 + $0xb0] ss:$8 sps:$4 sm:$0xff]  }
  0x26   : > { %588 = vmatpush1.bf16.msra.mxu0 %v891_v9  ;;  %628 = vmatprep.subr.bf16.mxu1 %v922_v20  ;;  %v952_v43 = vld [vmem:[%s1031_s24 + $0x8] ss:$0 sps:$4 sm:$0xff]   ;;  %v931_v45 = vld [vmem:[%s1036_s28 + $0xc4] ss:$8 sps:$4 sm:$0xff]   ;;  %v937_v47 = vld [vmem:[%s1036_s28 + $0xd4] ss:$8 sps:$4 sm:$0xff]  }
  0x27   : > { %589 = vmatprep.subr.bf16.mxu0 %v892_v12  ;;  %613 = vmatprep.mubr.bf16.mxu0 %v799_v35  ;;  %v933_v46 = vld [vmem:[%s1036_s28 + $0xc0] ss:$8 sps:$4 sm:$0xff]   ;;  %v939_v48 = vld [vmem:[%s1036_s28 + $0xd0] ss:$8 sps:$4 sm:$0xff]   ;;  %v943_v49 = vld [vmem:[%s1036_s28 + $0xe4] ss:$8 sps:$4 sm:$0xff]  }
  0x28   : > { %v945_v50 = vld [vmem:[%s1036_s28 + $0xe0] ss:$8 sps:$4 sm:$0xff]   ;;  %v949_v51 = vld [vmem:[%s1036_s28 + $0xf4] ss:$8 sps:$4 sm:$0xff]   ;;  %v951_v52 = vld [vmem:[%s1036_s28 + $0xf0] ss:$8 sps:$4 sm:$0xff]  }
  0x29   : > { %629 = vmatpush1.bf16.msra.mxu1 %v924_v22  ;;  %v278_v58 = vld [vmem:[#allocation2] sm:$0xff]  ;;  %v279_v61 = vld [vmem:[#allocation2 + $0x8] sm:$0xff]  ;;  %v677_v7 = vsub.s32 (!%p849_p7), 0, %v676_v5  ;;  %v681_v8 = vsub.s32 (!%p849_p7), 1, %v676_v5 }
  0x2a   : > { %590 = vmatpush1.bf16.msra.mxu0 %v894_v15  ;;  %630 = vmatprep.subr.bf16.mxu1 %v928_v24  ;;  %v673_v6 = vld [vmem:[%s1116_s2] sm:$0x3] (!%p849_p7)  ;;  %v688_v14 = vld [vmem:[%s1117_s3 + $0x8] sm:$0xff] (!%p849_p7) }
  0x2b   : > { %591 = vmatprep.subr.bf16.mxu0 %v895_v16  ;;  %v678_v11 = vrot.slane (!%p849_p7), %v673_v6, %v677_v7  ;;  %v682_v12 = vrot.slane (!%p849_p7), %v673_v6, %v681_v8  ;;  %v687_v13 = vld [vmem:[%s1117_s3] sm:$0xff] (!%p849_p7) }
  0x2d   : > { %631 = vmatpush1.bf16.msra.mxu1 %v930_v26 }
  0x2e   : > { %592 = vmatpush1.bf16.msra.mxu0 %v897_v19  ;;  %632 = vmatprep.subr.bf16.mxu1 %v934_v28 }
  0x2f   : > { %593 = vmatprep.subr.bf16.mxu0 %v898_v21 }
  0x31   : > { %633 = vmatpush1.bf16.msra.mxu1 %v936_v30 }
  0x32   : > { %594 = vmatpush1.bf16.msra.mxu0 %v900_v23  ;;  %634 = vmatprep.subr.bf16.mxu1 %v940_v32 }
  0x33   : > { %595 = vmatprep.subr.bf16.mxu0 %v901_v25 }
  0x35   : > { %635 = vmatpush1.bf16.msra.mxu1 %v942_v36 }
  0x36   : > { %596 = vmatpush1.bf16.msra.mxu0 %v903_v27  ;;  %636 = vmatprep.subr.bf16.mxu1 %v946_v38 }
  0x37   : > { %597 = vmatprep.subr.bf16.mxu0 %v907_v29 }
  0x39   : > { %637 = vmatpush1.bf16.msra.mxu1 %v948_v40 }
  0x3a   : > { %598 = vmatpush1.bf16.msra.mxu0 %v909_v31 }
  0x3b   : > { %599 = vmatprep.subr.bf16.mxu0 %v913_v33 }
  0x3c   : > { %655 = vmatmul.mubr.bf16.vlgmr.msra.gmra.mrb[0].mxu1 %v952_v43 }
  0x3e   : > { %600 = vmatpush1.bf16.msra.mxu0 %v915_v37 }
  0x3f   : > { %601 = vmatprep.subr.bf16.mxu0 %v919_v39 }
  0x42   : > { %602 = vmatpush1.bf16.msra.mxu0 %v921_v41 }
  0x43   : > { %603 = vmatprep.subr.bf16.mxu0 %v925_v42 }
  0x46   : > { %604 = vmatpush1.bf16.msra.mxu0 %v927_v44 }
  0x47   : > { %605 = vmatprep.subr.bf16.mxu0 %v931_v45 }
  0x4a   : > { %606 = vmatpush1.bf16.msra.mxu0 %v933_v46 }
  0x4b   : > { %607 = vmatprep.subr.bf16.mxu0 %v937_v47 }
  0x4e   : > { %608 = vmatpush1.bf16.msra.mxu0 %v939_v48 }
  0x4f   : > { %609 = vmatprep.subr.bf16.mxu0 %v943_v49 }
  0x52   : > { %610 = vmatpush1.bf16.msra.mxu0 %v945_v50 }
  0x53   : > { %611 = vmatprep.subr.bf16.mxu0 %v949_v51 }
  0x56   : > { %612 = vmatpush1.bf16.msra.mxu0 %v951_v52 }
  0x59   : > { %614 = vmatmul.mubr.bf16.vlgmr.msra.gmra.mrb[0].mxu0 %v798_v53 }
 0x10f   : > { %v656_v54 = vpop.f32.mrb[0].mxu1 }
 0x110   : > { %v658_v55 = vpop.f32.mrb[1].mxu1 }
 0x111   : > { %v660_v56 = vpop.f32.mrb[2].mxu1 }
 0x112   : > { %v661_v57 = vpop.f32.mrb[3].mxu1 }
 0x12c   : > { %v615_v59 = vpop.f32.mrb[0].mxu0  ;;  %670 = sbr.rel (%p849_p7) target bundleno = 321 (0x141), region = 44 }
 0x12d   : > { %v657_v60 = vadd.f32 %v656_v54, %v615_v59  ;;  %v617_v62 = vpop.f32.mrb[1].mxu0 }
 0x12e   : > { %v659_v63 = vadd.f32 %v658_v55, %v617_v62  ;;  %v619_v0 = vpop.f32.mrb[2].mxu0 }
 0x12f   : > { %v663_v1 = vadd.f32 %v657_v60, %v278_v58  ;;  %v620_v2 = vpop.f32.mrb[3].mxu0 }
 0x130   : > { %v664_v3 = vadd.f32 %v659_v63, %v279_v61 }
 0x131   : > { %665 = vst [vmem:[#allocation2] sm:$0xff] %v663_v1 }
 0x132   : > { %666 = vst [vmem:[#allocation2 + $0x8] sm:$0xff] %v664_v3 }
 0x138   : > { %v671_v9 = vld [vmem:[#allocation2] sm:$0xff] }
 0x139   : > { %v672_v10 = vld [vmem:[#allocation2 + $0x8] sm:$0xff]  ;;  %v685_v15 = vadd.f32 %v678_v11, %v671_v9 }
 0x13a   : > { %v686_v16 = vadd.f32 %v682_v12, %v672_v10 }
 0x13b   : > { %v689_v17 = vadd.f32 %v687_v13, %v685_v15 }
 0x13c   : > { %v690_v18 = vadd.f32 %v688_v14, %v686_v16 }
 0x13d   : > { %v691_v19 = vmax.f32 %v689_v17, 0.0 }
 0x13e   : > { %v692_v20 = vmax.f32 %v690_v18, 0.0 }
 0x13f   : > { %693 = vst [vmem:[%s1118_s4] sm:$0xff] %v691_v19 }
 0x140   : > { %694 = vst [vmem:[%s1118_s4 + $0x8] sm:$0xff] %v692_v20 }
 0x141 PF: > { %s14_s17 = sadd.s32 1, %s977_s17   ;;  %s1119_s15 = smov %s973_s16 }
 0x142   : > { %p11_p8 = scmp.ge.s32.totalorder %s14_s17, 8   ;;  %s1120_s16 = smov %s1122_s18 }
 0x144   :  { %13 = sbr.rel (!%p11_p8) target bundleno = 2 (0x2), region = 80 }

// kernel: _forward.68
= control target key start
LH: loop header
LB: loop body
LE: loop exit
PB: predicated region body
PF: predicated region fallthrough
CT: control target
= control target key end

     0   :  { %s1450_s12 = smov 0   ;;  %s1452_s13 = smov 0   ;;  %s1616_s0 = inlined_call_operand.vmem [shape: bf16[8,2304], index: 0, kind: input, shape index: {}]   ;;  %s1617_s1 = inlined_call_operand.vmem [shape: bf16[2304,512], index: 1, kind: input, shape index: {}]   ;;  %s1618_s2 = inlined_call_operand.vmem [shape: f32[1,512], index: 2, kind: input, shape index: {}]   ;;  %s1619_s3 = inlined_call_operand.vmem [shape: f32[8,512], index: 3, kind: output, shape index: {}]  }
   0x1   :  { %s1454_s14 = smov 0  }
   0x2 LB: > { %s22_s15 = sadd.s32 1, %s1422_s13  ;;  %p1122_p0 = scmp.ge.s32.totalorder %s1426_s14, 1  ;;  %s1426_s14 = sphi %s1454_s14, %s13_s14   ;;  %s1422_s13 = sphi %s1452_s13, %s1621_s13   ;;  %s1418_s12 = sphi %s1450_s12, %s1620_s12  }
   0x3   : > { %p23_p1 = scmp.ge.s32.totalorder %s22_s15, 6  ;;  %p168_p2 = scmp.lt.s32.totalorder %s1426_s14, 7 }
   0x5   : > { %s1623_s15 = smov (%p23_p1, %s22_s15), 0  ;;  %p169_p3 = pnand %p1122_p0, %p168_p2 }
   0x6   : > { %s202_s16 = smul.u32 (!%p169_p3), 3, %s1418_s12  ;;  %p1126_p6 = scmp.ne.s32.totalorder (!%p169_p3), %s1418_s12, 0 }
   0x7   : > { %172 = sbr.rel (%p169_p3) target bundleno = 352 (0x160), region = 32 }
   0x8   : > { %s212_s17 = smul.u32 (!%p169_p3), 48, %s1418_s12  ;;  %p205_p4 = scmp.lt.s32.totalorder (!%p169_p3), %s202_s16, 17 }
   0xa   : > { %p213_p5 = scmp.lt.s32.totalorder (!%p169_p3), %s212_s17, 287 }
   0xe   : > { %s1625_s16 = smov (!%p205_p4, %s202_s16), 17  ;;  %s1627_s17 = smov (!%p213_p5, %s212_s17), 287 }
   0xf   : > { %s1123_s18 = sshll.u32 %s1625_s16, 2  ;;  %s1230_s22 = sshll.u32 %s1627_s17, 4  ;;  %v1428_v0 = vmov (!%p1126_p6), 0.0  }
  0x10   : > { %s1475_s21 = scalar_lea.vmem %s1616_s0, %s1123_s18  ;;  %s1480_s25 = scalar_lea.vmem %s1617_s1, %s1230_s22  ;;  %229 = vst [vmem:[#allocation2] sm:$0xff] (!%p1126_p6), %v1428_v0  ;;  %230 = vst [vmem:[#allocation2 + $0x8] sm:$0xff] (!%p1126_p6), %v1428_v0 }
  0x11   : > { %228 = sbr.rel (%p1126_p6) target bundleno = 24 (0x18), region = 36  ;;  %231 = vst [vmem:[#allocation2 + $0x10] sm:$0xff] (!%p1126_p6), %v1428_v0  ;;  %232 = vst [vmem:[#allocation2 + $0x18] sm:$0xff] (!%p1126_p6), %v1428_v0 }
  0x18 PF: > { %v1257_v1 = vld [vmem:[%s1480_s25 + $0x4] ss:$16 sps:$4 sm:$0xff]   ;;  %v1429_v3 = vmov 0   ;;  %v1261_v4 = vld [vmem:[%s1480_s25] ss:$16 sps:$4 sm:$0xff]   ;;  %p1226_p7 = scmp.ne.s32.totalorder %s1418_s12, 5 }
  0x19   : > { %v1259_v2 = vld [vmem:[%s1480_s25 + $0x204] ss:$16 sps:$4 sm:$0xff]   ;;  %899 = vmatprep.mubr.bf16.mxu1 %v1429_v3  ;;  %826 = vmatprep.subr.bf16.mxu0 %v1257_v1  ;;  %v1262_v5 = vld [vmem:[%s1480_s25 + $0x200] ss:$16 sps:$4 sm:$0xff]   ;;  %v1310_v35 = vld [vmem:[%s1480_s25 + $0xc] ss:$16 sps:$4 sm:$0xff]  }
  0x1a   : > { %867 = vmatprep.subr.bf16.mxu1 %v1259_v2  ;;  %v1263_v6 = vld [vmem:[%s1480_s25 + $0x24] ss:$16 sps:$4 sm:$0xff]   ;;  %827 = vmatpush1.bf16.msra.mxu0 %v1261_v4  ;;  %v1267_v8 = vld [vmem:[%s1480_s25 + $0x20] ss:$16 sps:$4 sm:$0xff]   ;;  %v1519_v36 = vld [vmem:[%s1475_s21 + $0x8] ss:$0 sps:$4 sm:$0xff]  }
  0x1b   : > { %868 = vmatpush1.bf16.msra.mxu1 %v1262_v5  ;;  %v1265_v7 = vld [vmem:[%s1480_s25 + $0x224] ss:$16 sps:$4 sm:$0xff]   ;;  %828 = vmatprep.subr.bf16.mxu0 %v1263_v6  ;;  %v1268_v9 = vld [vmem:[%s1480_s25 + $0x220] ss:$16 sps:$4 sm:$0xff]   ;;  %v1308_v37 = vld [vmem:[%s1480_s25 + $0x8] ss:$16 sps:$4 sm:$0xff]  }
  0x1c   : > { %869 = vmatprep.subr.bf16.mxu1 %v1265_v7  ;;  %v1269_v10 = vld [vmem:[%s1480_s25 + $0x44] ss:$16 sps:$4 sm:$0xff]   ;;  %v1273_v12 = vld [vmem:[%s1480_s25 + $0x40] ss:$16 sps:$4 sm:$0xff]   ;;  %v1316_v40 = vld [vmem:[%s1480_s25 + $0x2c] ss:$16 sps:$4 sm:$0xff]  }
  0x1d   : > { %v1271_v11 = vld [vmem:[%s1480_s25 + $0x244] ss:$16 sps:$4 sm:$0xff]   ;;  %v1274_v13 = vld [vmem:[%s1480_s25 + $0x240] ss:$16 sps:$4 sm:$0xff]   ;;  %v1314_v41 = vld [vmem:[%s1480_s25 + $0x28] ss:$16 sps:$4 sm:$0xff]  }
  0x1e   : > { %829 = vmatpush1.bf16.msra.mxu0 %v1267_v8  ;;  %v1275_v14 = vld [vmem:[%s1480_s25 + $0x64] ss:$16 sps:$4 sm:$0xff]   ;;  %v1279_v16 = vld [vmem:[%s1480_s25 + $0x60] ss:$16 sps:$4 sm:$0xff]   ;;  %v1322_v44 = vld [vmem:[%s1480_s25 + $0x4c] ss:$16 sps:$4 sm:$0xff]  }
  0x1f   : > { %870 = vmatpush1.bf16.msra.mxu1 %v1268_v9  ;;  %830 = vmatprep.subr.bf16.mxu0 %v1269_v10  ;;  %v1277_v15 = vld [vmem:[%s1480_s25 + $0x264] ss:$16 sps:$4 sm:$0xff]   ;;  %v1280_v17 = vld [vmem:[%s1480_s25 + $0x260] ss:$16 sps:$4 sm:$0xff]   ;;  %v1320_v45 = vld [vmem:[%s1480_s25 + $0x48] ss:$16 sps:$4 sm:$0xff]  }
  0x20   : > { %871 = vmatprep.subr.bf16.mxu1 %v1271_v11  ;;  %v1281_v18 = vld [vmem:[%s1480_s25 + $0x84] ss:$16 sps:$4 sm:$0xff]   ;;  %v1285_v20 = vld [vmem:[%s1480_s25 + $0x80] ss:$16 sps:$4 sm:$0xff]   ;;  %v1328_v48 = vld [vmem:[%s1480_s25 + $0x6c] ss:$16 sps:$4 sm:$0xff]  }
  0x21   : > { %v1283_v19 = vld [vmem:[%s1480_s25 + $0x284] ss:$16 sps:$4 sm:$0xff]   ;;  %v1286_v21 = vld [vmem:[%s1480_s25 + $0x280] ss:$16 sps:$4 sm:$0xff]   ;;  %v1326_v49 = vld [vmem:[%s1480_s25 + $0x68] ss:$16 sps:$4 sm:$0xff]  }
  0x22   : > { %831 = vmatpush1.bf16.msra.mxu0 %v1273_v12  ;;  %v1287_v22 = vld [vmem:[%s1480_s25 + $0xa4] ss:$16 sps:$4 sm:$0xff]   ;;  %v1291_v24 = vld [vmem:[%s1480_s25 + $0xa0] ss:$16 sps:$4 sm:$0xff]   ;;  %v1334_v54 = vld [vmem:[%s1480_s25 + $0x8c] ss:$16 sps:$4 sm:$0xff]  }
  0x23   : > { %872 = vmatpush1.bf16.msra.mxu1 %v1274_v13  ;;  %832 = vmatprep.subr.bf16.mxu0 %v1275_v14  ;;  %v1289_v23 = vld [vmem:[%s1480_s25 + $0x2a4] ss:$16 sps:$4 sm:$0xff]   ;;  %v1292_v25 = vld [vmem:[%s1480_s25 + $0x2a0] ss:$16 sps:$4 sm:$0xff]   ;;  %v1332_v55 = vld [vmem:[%s1480_s25 + $0x88] ss:$16 sps:$4 sm:$0xff]  }
  0x24   : > { %873 = vmatprep.subr.bf16.mxu1 %v1277_v15  ;;  %v1293_v26 = vld [vmem:[%s1480_s25 + $0xc4] ss:$16 sps:$4 sm:$0xff]   ;;  %v1297_v28 = vld [vmem:[%s1480_s25 + $0xc0] ss:$16 sps:$4 sm:$0xff]   ;;  %v1340_v58 = vld [vmem:[%s1480_s25 + $0xac] ss:$16 sps:$4 sm:$0xff]  }
  0x25   : > { %v1295_v27 = vld [vmem:[%s1480_s25 + $0x2c4] ss:$16 sps:$4 sm:$0xff]   ;;  %v1298_v29 = vld [vmem:[%s1480_s25 + $0x2c0] ss:$16 sps:$4 sm:$0xff]   ;;  %v1338_v59 = vld [vmem:[%s1480_s25 + $0xa8] ss:$16 sps:$4 sm:$0xff]  }
  0x26   : > { %833 = vmatpush1.bf16.msra.mxu0 %v1279_v16  ;;  %v1299_v30 = vld [vmem:[%s1480_s25 + $0xe4] ss:$16 sps:$4 sm:$0xff]   ;;  %v1303_v32 = vld [vmem:[%s1480_s25 + $0xe0] ss:$16 sps:$4 sm:$0xff]   ;;  %v1346_v62 = vld [vmem:[%s1480_s25 + $0xcc] ss:$16 sps:$4 sm:$0xff]  }
  0x27   : > { %874 = vmatpush1.bf16.msra.mxu1 %v1280_v17  ;;  %834 = vmatprep.subr.bf16.mxu0 %v1281_v18  ;;  %v1301_v31 = vld [vmem:[%s1480_s25 + $0x2e4] ss:$16 sps:$4 sm:$0xff]   ;;  %v1304_v33 = vld [vmem:[%s1480_s25 + $0x2e0] ss:$16 sps:$4 sm:$0xff]   ;;  %v1344_v63 = vld [vmem:[%s1480_s25 + $0xc8] ss:$16 sps:$4 sm:$0xff]  }
  0x28   : > { %875 = vmatprep.subr.bf16.mxu1 %v1283_v19  ;;  %v1305_v34 = vld [vmem:[%s1480_s25 + $0x104] ss:$16 sps:$4 sm:$0xff]   ;;  %v1311_v38 = vld [vmem:[%s1480_s25 + $0x100] ss:$16 sps:$4 sm:$0xff]   ;;  %v1352_v2 = vld [vmem:[%s1480_s25 + $0xec] ss:$16 sps:$4 sm:$0xff]  }
  0x29   : > { %v1312_v39 = vld [vmem:[%s1480_s25 + $0x124] ss:$16 sps:$4 sm:$0xff]   ;;  %v1317_v42 = vld [vmem:[%s1480_s25 + $0x120] ss:$16 sps:$4 sm:$0xff]   ;;  %v1350_v4 = vld [vmem:[%s1480_s25 + $0xe8] ss:$16 sps:$4 sm:$0xff]  }
  0x2a   : > { %835 = vmatpush1.bf16.msra.mxu0 %v1285_v20  ;;  %v1318_v43 = vld [vmem:[%s1480_s25 + $0x144] ss:$16 sps:$4 sm:$0xff]   ;;  %v1323_v46 = vld [vmem:[%s1480_s25 + $0x140] ss:$16 sps:$4 sm:$0xff]   ;;  %v1358_v6 = vld [vmem:[%s1480_s25 + $0x10c] ss:$16 sps:$4 sm:$0xff]  }
  0x2b   : > { %876 = vmatpush1.bf16.msra.mxu1 %v1286_v21  ;;  %836 = vmatprep.subr.bf16.mxu0 %v1287_v22  ;;  %v1324_v47 = vld [vmem:[%s1480_s25 + $0x164] ss:$16 sps:$4 sm:$0xff]   ;;  %v1329_v51 = vld [vmem:[%s1480_s25 + $0x160] ss:$16 sps:$4 sm:$0xff]   ;;  %v1361_v7 = vld [vmem:[%s1480_s25 + $0x20c] ss:$16 sps:$4 sm:$0xff]  }
  0x2c   : > { %877 = vmatprep.subr.bf16.mxu1 %v1289_v23  ;;  %v237_v50 = vld [vmem:[%s1475_s21] sm:$0xff]  ;;  %v1356_v9 = vld [vmem:[%s1480_s25 + $0x108] ss:$16 sps:$4 sm:$0xff]   ;;  %v1364_v11 = vld [vmem:[%s1480_s25 + $0x12c] ss:$16 sps:$4 sm:$0xff]  }
  0x2d   : > { %v1330_v52 = vld [vmem:[%s1480_s25 + $0x184] ss:$16 sps:$4 sm:$0xff]   ;;  %v1128_v53 = vcombine.high %v237_v50, %v237_v50  ;;  %v1335_v56 = vld [vmem:[%s1480_s25 + $0x180] ss:$16 sps:$4 sm:$0xff]   ;;  %v1555_v8 = vcombine.low %v237_v50, %v237_v50  ;;  %v1359_v10 = vld [vmem:[%s1480_s25 + $0x208] ss:$16 sps:$4 sm:$0xff]  }
  0x2e   : > { %837 = vmatpush1.bf16.msra.mxu0 %v1291_v24  ;;  %v1336_v57 = vld [vmem:[%s1480_s25 + $0x1a4] ss:$16 sps:$4 sm:$0xff]   ;;  %v1341_v60 = vld [vmem:[%s1480_s25 + $0x1a0] ss:$16 sps:$4 sm:$0xff]   ;;  %v1367_v12 = vld [vmem:[%s1480_s25 + $0x22c] ss:$16 sps:$4 sm:$0xff]  }
  0x2f   : > { %878 = vmatpush1.bf16.msra.mxu1 %v1292_v25  ;;  %838 = vmatprep.subr.bf16.mxu0 %v1293_v26  ;;  %v1342_v61 = vld [vmem:[%s1480_s25 + $0x1c4] ss:$16 sps:$4 sm:$0xff]   ;;  %v1347_v0 = vld [vmem:[%s1480_s25 + $0x1c0] ss:$16 sps:$4 sm:$0xff]   ;;  %v1362_v13 = vld [vmem:[%s1480_s25 + $0x128] ss:$16 sps:$4 sm:$0xff]  }
  0x30   : > { %879 = vmatprep.subr.bf16.mxu1 %v1295_v27  ;;  %858 = vmatprep.mubr.bf16.mxu0 %v1128_v53  ;;  %v1348_v1 = vld [vmem:[%s1480_s25 + $0x1e4] ss:$16 sps:$4 sm:$0xff]   ;;  %v1353_v5 = vld [vmem:[%s1480_s25 + $0x1e0] ss:$16 sps:$4 sm:$0xff]   ;;  %v1365_v14 = vld [vmem:[%s1480_s25 + $0x228] ss:$16 sps:$4 sm:$0xff]  }
  0x31   : > { %v1370_v15 = vld [vmem:[%s1480_s25 + $0x14c] ss:$16 sps:$4 sm:$0xff]   ;;  %v1368_v17 = vld [vmem:[%s1480_s25 + $0x148] ss:$16 sps:$4 sm:$0xff]  }
  0x32   : > { %839 = vmatpush1.bf16.msra.mxu0 %v1297_v28  ;;  %v1373_v16 = vld [vmem:[%s1480_s25 + $0x24c] ss:$16 sps:$4 sm:$0xff]   ;;  %v1371_v18 = vld [vmem:[%s1480_s25 + $0x248] ss:$16 sps:$4 sm:$0xff]  }
  0x33   : > { %880 = vmatpush1.bf16.msra.mxu1 %v1298_v29  ;;  %840 = vmatprep.subr.bf16.mxu0 %v1299_v30  ;;  %v1376_v19 = vld [vmem:[%s1480_s25 + $0x16c] ss:$16 sps:$4 sm:$0xff]   ;;  %v1374_v21 = vld [vmem:[%s1480_s25 + $0x168] ss:$16 sps:$4 sm:$0xff]  }
  0x34   : > { %881 = vmatprep.subr.bf16.mxu1 %v1301_v31  ;;  %v1379_v20 = vld [vmem:[%s1480_s25 + $0x26c] ss:$16 sps:$4 sm:$0xff]   ;;  %v1377_v22 = vld [vmem:[%s1480_s25 + $0x268] ss:$16 sps:$4 sm:$0xff]  }
  0x35   : > { %v1385_v23 = vld [vmem:[%s1480_s25 + $0x28c] ss:$16 sps:$4 sm:$0xff]   ;;  %v1380_v24 = vld [vmem:[%s1480_s25 + $0x188] ss:$16 sps:$4 sm:$0xff]  }
  0x36   : > { %841 = vmatpush1.bf16.msra.mxu0 %v1303_v32  ;;  %v1383_v25 = vld [vmem:[%s1480_s25 + $0x288] ss:$16 sps:$4 sm:$0xff]   ;;  %v1388_v26 = vld [vmem:[%s1480_s25 + $0x1ac] ss:$16 sps:$4 sm:$0xff]  }
  0x37   : > { %882 = vmatpush1.bf16.msra.mxu1 %v1304_v33  ;;  %842 = vmatprep.subr.bf16.mxu0 %v1305_v34  ;;  %v1391_v27 = vld [vmem:[%s1480_s25 + $0x2ac] ss:$16 sps:$4 sm:$0xff]   ;;  %v1386_v28 = vld [vmem:[%s1480_s25 + $0x1a8] ss:$16 sps:$4 sm:$0xff]  }
  0x38   : > { %908 = vmatprep.subr.bf16.mxu1 %v1310_v35  ;;  %v1389_v29 = vld [vmem:[%s1480_s25 + $0x2a8] ss:$16 sps:$4 sm:$0xff]   ;;  %v1394_v30 = vld [vmem:[%s1480_s25 + $0x1cc] ss:$16 sps:$4 sm:$0xff]  }
  0x39   : > { %v1397_v31 = vld [vmem:[%s1480_s25 + $0x2cc] ss:$16 sps:$4 sm:$0xff]   ;;  %v1392_v32 = vld [vmem:[%s1480_s25 + $0x1c8] ss:$16 sps:$4 sm:$0xff]  }
  0x3a   : > { %900 = vmatmul.mubr.bf16.vlgmr.msra.gmra.mrb[0].mxu1 %v1519_v36  ;;  %843 = vmatpush1.bf16.msra.mxu0 %v1311_v38  ;;  %v1395_v33 = vld [vmem:[%s1480_s25 + $0x2c8] ss:$16 sps:$4 sm:$0xff]   ;;  %v1400_v34 = vld [vmem:[%s1480_s25 + $0x1ec] ss:$16 sps:$4 sm:$0xff]  }
  0x3b   : > { %909 = vmatpush1.bf16.msra.mxu1 %v1308_v37  ;;  %844 = vmatprep.subr.bf16.mxu0 %v1312_v39  ;;  %v1403_v35 = vld [vmem:[%s1480_s25 + $0x2ec] ss:$16 sps:$4 sm:$0xff]   ;;  %v1398_v37 = vld [vmem:[%s1480_s25 + $0x1e8] ss:$16 sps:$4 sm:$0xff]  }
  0x3c   : > { %910 = vmatprep.subr.bf16.mxu1 %v1316_v40  ;;  %940 = vmatprep.mubr.bf16.mxu1 %v1128_v53  ;;  %v1401_v38 = vld [vmem:[%s1480_s25 + $0x2e8] ss:$16 sps:$4 sm:$0xff]  }
  0x3e   : > { %845 = vmatpush1.bf16.msra.mxu0 %v1317_v42 }
  0x3f   : > { %911 = vmatpush1.bf16.msra.mxu1 %v1314_v41  ;;  %846 = vmatprep.subr.bf16.mxu0 %v1318_v43  ;;  %v233_v43 = vld [vmem:[#allocation2] sm:$0xff] }
  0x40   : > { %912 = vmatprep.subr.bf16.mxu1 %v1322_v44 }
  0x42   : > { %847 = vmatpush1.bf16.msra.mxu0 %v1323_v46  ;;  %v234_v46 = vld [vmem:[#allocation2 + $0x8] sm:$0xff] }
  0x43   : > { %913 = vmatpush1.bf16.msra.mxu1 %v1320_v45  ;;  %848 = vmatprep.subr.bf16.mxu0 %v1324_v47 }
  0x44   : > { %914 = vmatprep.subr.bf16.mxu1 %v1328_v48 }
  0x46   : > { %849 = vmatpush1.bf16.msra.mxu0 %v1329_v51 }
  0x47   : > { %915 = vmatpush1.bf16.msra.mxu1 %v1326_v49  ;;  %850 = vmatprep.subr.bf16.mxu0 %v1330_v52 }
  0x48   : > { %916 = vmatprep.subr.bf16.mxu1 %v1334_v54  ;;  %v235_v54 = vld [vmem:[#allocation2 + $0x10] sm:$0xff] }
  0x4a   : > { %851 = vmatpush1.bf16.msra.mxu0 %v1335_v56 }
  0x4b   : > { %917 = vmatpush1.bf16.msra.mxu1 %v1332_v55  ;;  %852 = vmatprep.subr.bf16.mxu0 %v1336_v57  ;;  %v236_v57 = vld [vmem:[#allocation2 + $0x18] sm:$0xff] }
  0x4c   : > { %918 = vmatprep.subr.bf16.mxu1 %v1340_v58 }
  0x4e   : > { %853 = vmatpush1.bf16.msra.mxu0 %v1341_v60 }
  0x4f   : > { %919 = vmatpush1.bf16.msra.mxu1 %v1338_v59  ;;  %854 = vmatprep.subr.bf16.mxu0 %v1342_v61 }
  0x50   : > { %920 = vmatprep.subr.bf16.mxu1 %v1346_v62 }
  0x52   : > { %855 = vmatpush1.bf16.msra.mxu0 %v1347_v0 }
  0x53   : > { %921 = vmatpush1.bf16.msra.mxu1 %v1344_v63  ;;  %856 = vmatprep.subr.bf16.mxu0 %v1348_v1 }
  0x54   : > { %922 = vmatprep.subr.bf16.mxu1 %v1352_v2  ;;  %v1008_v2 = vlaneseq (!%p1226_p7) }
  0x56   : > { %857 = vmatpush1.bf16.msra.mxu0 %v1353_v5  ;;  %v1006_v5 = vld [vmem:[%s1618_s2] sm:$0xf] (!%p1226_p7) }
  0x57   : > { %923 = vmatpush1.bf16.msra.mxu1 %v1350_v4  ;;  %949 = vmatprep.subr.bf16.mxu0 %v1361_v7  ;;  %v1009_v4 = vshrl.u32 (!%p1226_p7), %v1008_v2, 7 }
  0x58   : > { %924 = vmatprep.subr.bf16.mxu1 %v1358_v6 }
  0x59   : > { %859 = vmatmul.mubr.bf16.vlgmr.msra.gmra.mrb[0].mxu0 %v1555_v8  ;;  %v1010_v7 = vsub.s32 (!%p1226_p7), 0, %v1009_v4 }
  0x5a   : > { %950 = vmatpush1.bf16.msra.mxu0 %v1359_v10  ;;  %981 = vmatprep.mubr.bf16.mxu0 %v1429_v3  ;;  %v1382_v3 = vld [vmem:[%s1480_s25 + $0x18c] ss:$16 sps:$4 sm:$0xff]   ;;  %v1022_v10 = vsub.s32 (!%p1226_p7), 3, %v1009_v4 }
  0x5b   : > { %925 = vmatpush1.bf16.msra.mxu1 %v1356_v9  ;;  %951 = vmatprep.subr.bf16.mxu0 %v1367_v12  ;;  %v1018_v9 = vsub.s32 (!%p1226_p7), 2, %v1009_v4 }
  0x5c   : > { %926 = vmatprep.subr.bf16.mxu1 %v1364_v11 }
  0x5e   : > { %952 = vmatpush1.bf16.msra.mxu0 %v1365_v14  ;;  %v1011_v14 = vrot.slane (!%p1226_p7), %v1006_v5, %v1010_v7 }
  0x5f   : > { %927 = vmatpush1.bf16.msra.mxu1 %v1362_v13  ;;  %953 = vmatprep.subr.bf16.mxu0 %v1373_v16  ;;  %v1019_v16 = vrot.slane (!%p1226_p7), %v1006_v5, %v1018_v9 }
  0x60   : > { %928 = vmatprep.subr.bf16.mxu1 %v1370_v15 }
  0x62   : > { %954 = vmatpush1.bf16.msra.mxu0 %v1371_v18 }
  0x63   : > { %929 = vmatpush1.bf16.msra.mxu1 %v1368_v17  ;;  %955 = vmatprep.subr.bf16.mxu0 %v1379_v20  ;;  %v1023_v17 = vrot.slane (!%p1226_p7), %v1006_v5, %v1022_v10 }
  0x64   : > { %930 = vmatprep.subr.bf16.mxu1 %v1376_v19 }
  0x66   : > { %956 = vmatpush1.bf16.msra.mxu0 %v1377_v22 }
  0x67   : > { %931 = vmatpush1.bf16.msra.mxu1 %v1374_v21  ;;  %957 = vmatprep.subr.bf16.mxu0 %v1385_v23 }
  0x68   : > { %932 = vmatprep.subr.bf16.mxu1 %v1382_v3 }
  0x6a   : > { %958 = vmatpush1.bf16.msra.mxu0 %v1383_v25 }
  0x6b   : > { %933 = vmatpush1.bf16.msra.mxu1 %v1380_v24  ;;  %959 = vmatprep.subr.bf16.mxu0 %v1391_v27 }
  0x6c   : > { %934 = vmatprep.subr.bf16.mxu1 %v1388_v26 }
  0x6e   : > { %960 = vmatpush1.bf16.msra.mxu0 %v1389_v29 }
  0x6f   : > { %935 = vmatpush1.bf16.msra.mxu1 %v1386_v28  ;;  %961 = vmatprep.subr.bf16.mxu0 %v1397_v31 }
  0x70   : > { %936 = vmatprep.subr.bf16.mxu1 %v1394_v30 }
  0x72   : > { %962 = vmatpush1.bf16.msra.mxu0 %v1395_v33 }
  0x73   : > { %937 = vmatpush1.bf16.msra.mxu1 %v1392_v32  ;;  %963 = vmatprep.subr.bf16.mxu0 %v1403_v35 }
  0x74   : > { %938 = vmatprep.subr.bf16.mxu1 %v1400_v34 }
  0x76   : > { %964 = vmatpush1.bf16.msra.mxu0 %v1401_v38 }
  0x77   : > { %939 = vmatpush1.bf16.msra.mxu1 %v1398_v37 }
  0x79   : > { %982 = vmatmul.mubr.bf16.vlgmr.msra.gmra.mrb[4].mxu0 %v1519_v36 }
  0x7a   : > { %941 = vmatmul.mubr.bf16.vlgmr.msra.gmra.mrb[4].mxu1 %v1555_v8  ;;  %v1014_v8 = vsub.s32 (!%p1226_p7), 1, %v1009_v4 }
  0x7c   : > { %v1015_v15 = vrot.slane (!%p1226_p7), %v1006_v5, %v1014_v8 }
 0x10d   : > { %v901_v39 = vpop.f32.mrb[0].mxu1 }
 0x10e   : > { %v903_v40 = vpop.f32.mrb[1].mxu1 }
 0x10f   : > { %v905_v41 = vpop.f32.mrb[2].mxu1 }
 0x110   : > { %v906_v42 = vpop.f32.mrb[3].mxu1 }
 0x12c   : > { %v860_v44 = vpop.f32.mrb[0].mxu0 }
 0x12d   : > { %v902_v45 = vadd.f32 %v901_v39, %v860_v44  ;;  %v862_v47 = vpop.f32.mrb[1].mxu0 }
 0x12e   : > { %v904_v48 = vadd.f32 %v903_v40, %v862_v47  ;;  %v864_v49 = vpop.f32.mrb[2].mxu0 }
 0x12f   : > { %v990_v50 = vadd.f32 %v902_v45, %v233_v43  ;;  %v865_v51 = vpop.f32.mrb[3].mxu0 }
 0x130   : > { %v991_v52 = vadd.f32 %v904_v48, %v234_v46 }
 0x131   : > { %994 = vst [vmem:[#allocation2] sm:$0xff] %v990_v50 }
 0x132   : > { %995 = vst [vmem:[#allocation2 + $0x8] sm:$0xff] %v991_v52 }
 0x138   : > { %v1002_v6 = vld [vmem:[#allocation2] sm:$0xff] (!%p1226_p7) }
 0x139   : > { %v1003_v11 = vld [vmem:[#allocation2 + $0x8] sm:$0xff] (!%p1226_p7)  ;;  %v1028_v18 = vadd.f32 (!%p1226_p7), %v1011_v14, %v1002_v6 }
 0x13a   : > { %v1029_v19 = vadd.f32 (!%p1226_p7), %v1015_v15, %v1003_v11 }
 0x13b   : > { %v1032_v22 = vmax.f32 (!%p1226_p7), %v1028_v18, 0.0 }
 0x13c   : > { %v1033_v3 = vmax.f32 (!%p1226_p7), %v1029_v19, 0.0 }
 0x13d   : > { %1036 = vst [vmem:[%s1619_s3] sm:$0xff] (!%p1226_p7), %v1032_v22 }
 0x13e   : > { %1037 = vst [vmem:[%s1619_s3 + $0x8] sm:$0xff] (!%p1226_p7), %v1033_v3 }
 0x14c   : > { %v983_v55 = vpop.f32.mrb[4].mxu0 }
 0x14d   : > { %v942_v53 = vpop.f32.mrb[4].mxu1  ;;  %v985_v58 = vpop.f32.mrb[5].mxu0  ;;  %1001 = sbr.rel (%p1226_p7) target bundleno = 352 (0x160), region = 40 }
 0x14e   : > { %v984_v36 = vadd.f32 %v983_v55, %v942_v53  ;;  %v944_v56 = vpop.f32.mrb[5].mxu1  ;;  %v987_v61 = vpop.f32.mrb[6].mxu0 }
 0x14f   : > { %v986_v59 = vadd.f32 %v985_v58, %v944_v56  ;;  %v946_v60 = vpop.f32.mrb[6].mxu1  ;;  %v988_v0 = vpop.f32.mrb[7].mxu0 }
 0x150   : > { %v992_v62 = vadd.f32 %v984_v36, %v235_v54  ;;  %v947_v63 = vpop.f32.mrb[7].mxu1 }
 0x151   : > { %v993_v1 = vadd.f32 %v986_v59, %v236_v57 }
 0x152   : > { %996 = vst [vmem:[#allocation2 + $0x10] sm:$0xff] %v992_v62 }
 0x153   : > { %997 = vst [vmem:[#allocation2 + $0x18] sm:$0xff] %v993_v1 }
 0x159   : > { %v1004_v12 = vld [vmem:[#allocation2 + $0x10] sm:$0xff] }
 0x15a   : > { %v1005_v13 = vld [vmem:[#allocation2 + $0x18] sm:$0xff]  ;;  %v1030_v20 = vadd.f32 %v1019_v16, %v1004_v12 }
 0x15b   : > { %v1031_v21 = vadd.f32 %v1023_v17, %v1005_v13 }
 0x15c   : > { %v1034_v23 = vmax.f32 %v1030_v20, 0.0 }
 0x15d   : > { %v1035_v24 = vmax.f32 %v1031_v21, 0.0 }
 0x15e   : > { %1038 = vst [vmem:[%s1619_s3 + $0x10] sm:$0xff] %v1034_v23 }
 0x15f   : > { %1039 = vst [vmem:[%s1619_s3 + $0x18] sm:$0xff] %v1035_v24 }
 0x160 PF: > { %s13_s14 = sadd.s32 1, %s1426_s14   ;;  %s1620_s12 = smov %s1422_s13 }
 0x161   : > { %p10_p8 = scmp.ge.s32.totalorder %s13_s14, 8   ;;  %s1621_s13 = smov %s1623_s15 }
 0x163   :  { %12 = sbr.rel (!%p10_p8) target bundleno = 2 (0x2), region = 73 }

// kernel: _forward.70
= control target key start
LH: loop header
LB: loop body
LE: loop exit
PB: predicated region body
PF: predicated region fallthrough
CT: control target
= control target key end

     0   :  { %s1726_s12 = smov 0   ;;  %s1728_s13 = smov 0   ;;  %s1926_s0 = inlined_call_operand.vmem [shape: bf16[8,4608], index: 0, kind: input, shape index: {}]   ;;  %s1927_s1 = inlined_call_operand.vmem [shape: bf16[4608,512], index: 1, kind: input, shape index: {}]   ;;  %s1928_s2 = inlined_call_operand.vmem [shape: f32[1,512], index: 2, kind: input, shape index: {}]   ;;  %s1929_s3 = inlined_call_operand.vmem [shape: f32[8,512], index: 3, kind: output, shape index: {}]  }
   0x1   :  { %s1730_s14 = smov 0  }
   0x2 LB: > { %s22_s15 = sadd.s32 1, %s1699_s13  ;;  %p1316_p0 = scmp.ge.s32.totalorder %s1703_s14, 1  ;;  %s1703_s14 = sphi %s1730_s14, %s13_s14   ;;  %s1699_s13 = sphi %s1728_s13, %s1931_s13   ;;  %s1695_s12 = sphi %s1726_s12, %s1930_s12  }
   0x3   : > { %p23_p1 = scmp.ge.s32.totalorder %s22_s15, 9  ;;  %p168_p2 = scmp.lt.s32.totalorder %s1703_s14, 10 }
   0x5   : > { %s1933_s15 = smov (%p23_p1, %s22_s15), 0  ;;  %p169_p3 = pnand %p1316_p0, %p168_p2 }
   0x6   : > { %s1317_s16 = sshll.u32 (!%p169_p3), %s1695_s12, 2  ;;  %s1319_s17 = sshll.u32 (!%p169_p3), %s1695_s12, 6 }
   0x7   : > { %172 = sbr.rel (%p169_p3) target bundleno = 384 (0x180), region = 32  ;;  %p205_p4 = scmp.lt.s32.totalorder (!%p169_p3), %s1317_s16, 35 }
   0x8   : > { %p213_p5 = scmp.lt.s32.totalorder (!%p169_p3), %s1319_s17, 575  ;;  %p1322_p6 = scmp.ne.s32.totalorder (!%p169_p3), %s1695_s12, 0 }
   0xe   : > { %s1935_s16 = smov (!%p205_p4, %s1317_s16), 35  ;;  %s1937_s17 = smov (!%p213_p5, %s1319_s17), 575 }
   0xf   : > { %s1318_s18 = sshll.u32 %s1935_s16, 2  ;;  %s1459_s22 = sshll.u32 %s1937_s17, 4  ;;  %v1705_v0 = vmov (!%p1322_p6), 0.0  }
  0x10   : > { %s1751_s21 = scalar_lea.vmem %s1926_s0, %s1318_s18  ;;  %s1756_s25 = scalar_lea.vmem %s1927_s1, %s1459_s22  ;;  %228 = vst [vmem:[#allocation2] sm:$0xff] (!%p1322_p6), %v1705_v0  ;;  %229 = vst [vmem:[#allocation2 + $0x8] sm:$0xff] (!%p1322_p6), %v1705_v0 }
  0x11   : > { %227 = sbr.rel (%p1322_p6) target bundleno = 24 (0x18), region = 36  ;;  %230 = vst [vmem:[#allocation2 + $0x10] sm:$0xff] (!%p1322_p6), %v1705_v0  ;;  %231 = vst [vmem:[#allocation2 + $0x18] sm:$0xff] (!%p1322_p6), %v1705_v0 }
  0x18 PF: > { %v1485_v1 = vld [vmem:[%s1756_s25 + $0x4] ss:$16 sps:$4 sm:$0xff]   ;;  %v1489_v3 = vld [vmem:[%s1756_s25] ss:$16 sps:$4 sm:$0xff]   ;;  %v237_v49 = vld [vmem:[%s1751_s21 + $0x8] sm:$0xff]  ;;  %p1455_p7 = scmp.ne.s32.totalorder %s1695_s12, 8 }
  0x19   : > { %v1487_v2 = vld [vmem:[%s1756_s25 + $0x204] ss:$16 sps:$4 sm:$0xff]   ;;  %1020 = vmatprep.subr.bf16.mxu0 %v1485_v1  ;;  %v1490_v4 = vld [vmem:[%s1756_s25 + $0x200] ss:$16 sps:$4 sm:$0xff]   ;;  %v1326_v52 = vcombine.high %v237_v49, %v237_v49 }
  0x1a   : > { %1061 = vmatprep.subr.bf16.mxu1 %v1487_v2  ;;  %v1491_v5 = vld [vmem:[%s1756_s25 + $0x24] ss:$16 sps:$4 sm:$0xff]   ;;  %1021 = vmatpush1.bf16.msra.mxu0 %v1489_v3  ;;  %v1495_v7 = vld [vmem:[%s1756_s25 + $0x20] ss:$16 sps:$4 sm:$0xff]  }
  0x1b   : > { %1062 = vmatpush1.bf16.msra.mxu1 %v1490_v4  ;;  %v1493_v6 = vld [vmem:[%s1756_s25 + $0x224] ss:$16 sps:$4 sm:$0xff]   ;;  %1022 = vmatprep.subr.bf16.mxu0 %v1491_v5  ;;  %v1496_v8 = vld [vmem:[%s1756_s25 + $0x220] ss:$16 sps:$4 sm:$0xff]   ;;  %v1587_v5 = vld [vmem:[%s1756_s25 + $0xc] ss:$16 sps:$4 sm:$0xff]  }
  0x1c   : > { %1063 = vmatprep.subr.bf16.mxu1 %v1493_v6  ;;  %v1497_v9 = vld [vmem:[%s1756_s25 + $0x44] ss:$16 sps:$4 sm:$0xff]   ;;  %v1501_v11 = vld [vmem:[%s1756_s25 + $0x40] ss:$16 sps:$4 sm:$0xff]   ;;  %1093 = vmatprep.mubr.bf16.mxu1 %v1326_v52  ;;  %v1590_v6 = vld [vmem:[%s1756_s25 + $0x20c] ss:$16 sps:$4 sm:$0xff]  }
  0x1d   : > { %v1499_v10 = vld [vmem:[%s1756_s25 + $0x244] ss:$16 sps:$4 sm:$0xff]   ;;  %v1502_v12 = vld [vmem:[%s1756_s25 + $0x240] ss:$16 sps:$4 sm:$0xff]  }
  0x1e   : > { %1023 = vmatpush1.bf16.msra.mxu0 %v1495_v7  ;;  %v1503_v13 = vld [vmem:[%s1756_s25 + $0x64] ss:$16 sps:$4 sm:$0xff]   ;;  %v1507_v15 = vld [vmem:[%s1756_s25 + $0x60] ss:$16 sps:$4 sm:$0xff]  }
  0x1f   : > { %1064 = vmatpush1.bf16.msra.mxu1 %v1496_v8  ;;  %1024 = vmatprep.subr.bf16.mxu0 %v1497_v9  ;;  %v1505_v14 = vld [vmem:[%s1756_s25 + $0x264] ss:$16 sps:$4 sm:$0xff]   ;;  %v1508_v16 = vld [vmem:[%s1756_s25 + $0x260] ss:$16 sps:$4 sm:$0xff]   ;;  %v1832_v8 = vcombine.low %v237_v49, %v237_v49  ;;  %v1585_v9 = vld [vmem:[%s1756_s25 + $0x8] ss:$16 sps:$4 sm:$0xff]  }
  0x20   : > { %1065 = vmatprep.subr.bf16.mxu1 %v1499_v10  ;;  %v1509_v17 = vld [vmem:[%s1756_s25 + $0x84] ss:$16 sps:$4 sm:$0xff]   ;;  %v1513_v19 = vld [vmem:[%s1756_s25 + $0x80] ss:$16 sps:$4 sm:$0xff]   ;;  %v1588_v10 = vld [vmem:[%s1756_s25 + $0x208] ss:$16 sps:$4 sm:$0xff]  }
  0x21   : > { %v1511_v18 = vld [vmem:[%s1756_s25 + $0x284] ss:$16 sps:$4 sm:$0xff]   ;;  %v1514_v20 = vld [vmem:[%s1756_s25 + $0x280] ss:$16 sps:$4 sm:$0xff]   ;;  %v1645_v49 = vld [vmem:[%s1756_s25 + $0x148] ss:$16 sps:$4 sm:$0xff]  }
  0x22   : > { %1025 = vmatpush1.bf16.msra.mxu0 %v1501_v11  ;;  %v1515_v21 = vld [vmem:[%s1756_s25 + $0xa4] ss:$16 sps:$4 sm:$0xff]   ;;  %v1519_v23 = vld [vmem:[%s1756_s25 + $0xa0] ss:$16 sps:$4 sm:$0xff]   ;;  %v1593_v11 = vld [vmem:[%s1756_s25 + $0x2c] ss:$16 sps:$4 sm:$0xff]  }
  0x23   : > { %1066 = vmatpush1.bf16.msra.mxu1 %v1502_v12  ;;  %1026 = vmatprep.subr.bf16.mxu0 %v1503_v13  ;;  %v1517_v22 = vld [vmem:[%s1756_s25 + $0x2a4] ss:$16 sps:$4 sm:$0xff]   ;;  %v1520_v24 = vld [vmem:[%s1756_s25 + $0x2a0] ss:$16 sps:$4 sm:$0xff]   ;;  %v1596_v12 = vld [vmem:[%s1756_s25 + $0x22c] ss:$16 sps:$4 sm:$0xff]  }
  0x24   : > { %1067 = vmatprep.subr.bf16.mxu1 %v1505_v14  ;;  %v1521_v25 = vld [vmem:[%s1756_s25 + $0xc4] ss:$16 sps:$4 sm:$0xff]   ;;  %v1525_v27 = vld [vmem:[%s1756_s25 + $0xc0] ss:$16 sps:$4 sm:$0xff]   ;;  %v1591_v13 = vld [vmem:[%s1756_s25 + $0x28] ss:$16 sps:$4 sm:$0xff]  }
  0x25   : > { %v1523_v26 = vld [vmem:[%s1756_s25 + $0x2c4] ss:$16 sps:$4 sm:$0xff]   ;;  %v1526_v28 = vld [vmem:[%s1756_s25 + $0x2c0] ss:$16 sps:$4 sm:$0xff]   ;;  %v1594_v14 = vld [vmem:[%s1756_s25 + $0x228] ss:$16 sps:$4 sm:$0xff]  }
  0x26   : > { %1027 = vmatpush1.bf16.msra.mxu0 %v1507_v15  ;;  %v1527_v29 = vld [vmem:[%s1756_s25 + $0xe4] ss:$16 sps:$4 sm:$0xff]   ;;  %v1531_v31 = vld [vmem:[%s1756_s25 + $0xe0] ss:$16 sps:$4 sm:$0xff]   ;;  %v1599_v15 = vld [vmem:[%s1756_s25 + $0x4c] ss:$16 sps:$4 sm:$0xff]  }
  0x27   : > { %1068 = vmatpush1.bf16.msra.mxu1 %v1508_v16  ;;  %1028 = vmatprep.subr.bf16.mxu0 %v1509_v17  ;;  %v1529_v30 = vld [vmem:[%s1756_s25 + $0x2e4] ss:$16 sps:$4 sm:$0xff]   ;;  %v1532_v32 = vld [vmem:[%s1756_s25 + $0x2e0] ss:$16 sps:$4 sm:$0xff]   ;;  %v1602_v16 = vld [vmem:[%s1756_s25 + $0x24c] ss:$16 sps:$4 sm:$0xff]  }
  0x28   : > { %1069 = vmatprep.subr.bf16.mxu1 %v1511_v18  ;;  %v1533_v33 = vld [vmem:[%s1756_s25 + $0x104] ss:$16 sps:$4 sm:$0xff]   ;;  %v1537_v35 = vld [vmem:[%s1756_s25 + $0x100] ss:$16 sps:$4 sm:$0xff]   ;;  %v1597_v17 = vld [vmem:[%s1756_s25 + $0x48] ss:$16 sps:$4 sm:$0xff]  }
  0x29   : > { %v1535_v34 = vld [vmem:[%s1756_s25 + $0x304] ss:$16 sps:$4 sm:$0xff]   ;;  %v1538_v36 = vld [vmem:[%s1756_s25 + $0x300] ss:$16 sps:$4 sm:$0xff]   ;;  %v1600_v18 = vld [vmem:[%s1756_s25 + $0x248] ss:$16 sps:$4 sm:$0xff]  }
  0x2a   : > { %1029 = vmatpush1.bf16.msra.mxu0 %v1513_v19  ;;  %v1539_v37 = vld [vmem:[%s1756_s25 + $0x124] ss:$16 sps:$4 sm:$0xff]   ;;  %v1543_v39 = vld [vmem:[%s1756_s25 + $0x120] ss:$16 sps:$4 sm:$0xff]   ;;  %v1605_v19 = vld [vmem:[%s1756_s25 + $0x6c] ss:$16 sps:$4 sm:$0xff]  }
  0x2b   : > { %1070 = vmatpush1.bf16.msra.mxu1 %v1514_v20  ;;  %1030 = vmatprep.subr.bf16.mxu0 %v1515_v21  ;;  %v1541_v38 = vld [vmem:[%s1756_s25 + $0x324] ss:$16 sps:$4 sm:$0xff]   ;;  %v1544_v40 = vld [vmem:[%s1756_s25 + $0x320] ss:$16 sps:$4 sm:$0xff]   ;;  %v1608_v20 = vld [vmem:[%s1756_s25 + $0x26c] ss:$16 sps:$4 sm:$0xff]  }
  0x2c   : > { %1071 = vmatprep.subr.bf16.mxu1 %v1517_v22  ;;  %v1545_v41 = vld [vmem:[%s1756_s25 + $0x144] ss:$16 sps:$4 sm:$0xff]   ;;  %v1549_v43 = vld [vmem:[%s1756_s25 + $0x140] ss:$16 sps:$4 sm:$0xff]   ;;  %v1603_v21 = vld [vmem:[%s1756_s25 + $0x68] ss:$16 sps:$4 sm:$0xff]  }
  0x2d   : > { %v1547_v42 = vld [vmem:[%s1756_s25 + $0x344] ss:$16 sps:$4 sm:$0xff]   ;;  %v1550_v44 = vld [vmem:[%s1756_s25 + $0x340] ss:$16 sps:$4 sm:$0xff]   ;;  %v1606_v22 = vld [vmem:[%s1756_s25 + $0x268] ss:$16 sps:$4 sm:$0xff]  }
  0x2e   : > { %1031 = vmatpush1.bf16.msra.mxu0 %v1519_v23  ;;  %v1551_v45 = vld [vmem:[%s1756_s25 + $0x164] ss:$16 sps:$4 sm:$0xff]   ;;  %v1555_v50 = vld [vmem:[%s1756_s25 + $0x160] ss:$16 sps:$4 sm:$0xff]   ;;  %v1611_v23 = vld [vmem:[%s1756_s25 + $0x8c] ss:$16 sps:$4 sm:$0xff]  }
  0x2f   : > { %1072 = vmatpush1.bf16.msra.mxu1 %v1520_v24  ;;  %1032 = vmatprep.subr.bf16.mxu0 %v1521_v25  ;;  %v1553_v46 = vld [vmem:[%s1756_s25 + $0x364] ss:$16 sps:$4 sm:$0xff]   ;;  %v1556_v51 = vld [vmem:[%s1756_s25 + $0x360] ss:$16 sps:$4 sm:$0xff]   ;;  %v1614_v24 = vld [vmem:[%s1756_s25 + $0x28c] ss:$16 sps:$4 sm:$0xff]  }
  0x30   : > { %1073 = vmatprep.subr.bf16.mxu1 %v1523_v26  ;;  %v236_v47 = vld [vmem:[%s1751_s21] sm:$0xff]  ;;  %v1609_v25 = vld [vmem:[%s1756_s25 + $0x88] ss:$16 sps:$4 sm:$0xff]  }
  0x31   : > { %v1806_v48 = vcombine.high %v236_v47, %v236_v47  ;;  %v1557_v53 = vld [vmem:[%s1756_s25 + $0x184] ss:$16 sps:$4 sm:$0xff]   ;;  %v1561_v55 = vld [vmem:[%s1756_s25 + $0x180] ss:$16 sps:$4 sm:$0xff]   ;;  %v1830_v7 = vcombine.low %v236_v47, %v236_v47  ;;  %v1612_v26 = vld [vmem:[%s1756_s25 + $0x288] ss:$16 sps:$4 sm:$0xff]  }
  0x32   : > { %1033 = vmatpush1.bf16.msra.mxu0 %v1525_v27  ;;  %v1559_v54 = vld [vmem:[%s1756_s25 + $0x384] ss:$16 sps:$4 sm:$0xff]   ;;  %v1562_v56 = vld [vmem:[%s1756_s25 + $0x380] ss:$16 sps:$4 sm:$0xff]   ;;  %v1617_v27 = vld [vmem:[%s1756_s25 + $0xac] ss:$16 sps:$4 sm:$0xff]  }
  0x33   : > { %1074 = vmatpush1.bf16.msra.mxu1 %v1526_v28  ;;  %1034 = vmatprep.subr.bf16.mxu0 %v1527_v29  ;;  %v1563_v57 = vld [vmem:[%s1756_s25 + $0x1a4] ss:$16 sps:$4 sm:$0xff]   ;;  %v1567_v59 = vld [vmem:[%s1756_s25 + $0x1a0] ss:$16 sps:$4 sm:$0xff]   ;;  %v1620_v28 = vld [vmem:[%s1756_s25 + $0x2ac] ss:$16 sps:$4 sm:$0xff]  }
  0x34   : > { %1075 = vmatprep.subr.bf16.mxu1 %v1529_v30  ;;  %1052 = vmatprep.mubr.bf16.mxu0 %v1806_v48  ;;  %v1565_v58 = vld [vmem:[%s1756_s25 + $0x3a4] ss:$16 sps:$4 sm:$0xff]   ;;  %v1568_v60 = vld [vmem:[%s1756_s25 + $0x3a0] ss:$16 sps:$4 sm:$0xff]   ;;  %v1615_v29 = vld [vmem:[%s1756_s25 + $0xa8] ss:$16 sps:$4 sm:$0xff]  }
  0x35   : > { %v1569_v61 = vld [vmem:[%s1756_s25 + $0x1c4] ss:$16 sps:$4 sm:$0xff]   ;;  %v1573_v63 = vld [vmem:[%s1756_s25 + $0x1c0] ss:$16 sps:$4 sm:$0xff]   ;;  %v1618_v30 = vld [vmem:[%s1756_s25 + $0x2a8] ss:$16 sps:$4 sm:$0xff]  }
  0x36   : > { %1035 = vmatpush1.bf16.msra.mxu0 %v1531_v31  ;;  %v1571_v62 = vld [vmem:[%s1756_s25 + $0x3c4] ss:$16 sps:$4 sm:$0xff]   ;;  %v1574_v0 = vld [vmem:[%s1756_s25 + $0x3c0] ss:$16 sps:$4 sm:$0xff]   ;;  %v1623_v31 = vld [vmem:[%s1756_s25 + $0xcc] ss:$16 sps:$4 sm:$0xff]  }
  0x37   : > { %1076 = vmatpush1.bf16.msra.mxu1 %v1532_v32  ;;  %1036 = vmatprep.subr.bf16.mxu0 %v1533_v33  ;;  %v1575_v1 = vld [vmem:[%s1756_s25 + $0x1e4] ss:$16 sps:$4 sm:$0xff]   ;;  %v1579_v3 = vld [vmem:[%s1756_s25 + $0x1e0] ss:$16 sps:$4 sm:$0xff]   ;;  %v1626_v32 = vld [vmem:[%s1756_s25 + $0x2cc] ss:$16 sps:$4 sm:$0xff]  }
  0x38   : > { %1077 = vmatprep.subr.bf16.mxu1 %v1535_v34  ;;  %v1577_v2 = vld [vmem:[%s1756_s25 + $0x3e4] ss:$16 sps:$4 sm:$0xff]   ;;  %v1580_v4 = vld [vmem:[%s1756_s25 + $0x3e0] ss:$16 sps:$4 sm:$0xff]   ;;  %v1621_v33 = vld [vmem:[%s1756_s25 + $0xc8] ss:$16 sps:$4 sm:$0xff]  }
  0x39   : > { %v1624_v34 = vld [vmem:[%s1756_s25 + $0x2c8] ss:$16 sps:$4 sm:$0xff]   ;;  %v1647_v47 = vld [vmem:[%s1756_s25 + $0x14c] ss:$16 sps:$4 sm:$0xff]  }
  0x3a   : > { %1037 = vmatpush1.bf16.msra.mxu0 %v1537_v35  ;;  %v1629_v35 = vld [vmem:[%s1756_s25 + $0xec] ss:$16 sps:$4 sm:$0xff]  }
  0x3b   : > { %1078 = vmatpush1.bf16.msra.mxu1 %v1538_v36  ;;  %1038 = vmatprep.subr.bf16.mxu0 %v1539_v37  ;;  %v1632_v36 = vld [vmem:[%s1756_s25 + $0x2ec] ss:$16 sps:$4 sm:$0xff]   ;;  %v1627_v37 = vld [vmem:[%s1756_s25 + $0xe8] ss:$16 sps:$4 sm:$0xff]  }
  0x3c   : > { %1079 = vmatprep.subr.bf16.mxu1 %v1541_v38  ;;  %v1630_v38 = vld [vmem:[%s1756_s25 + $0x2e8] ss:$16 sps:$4 sm:$0xff]  }
  0x3e   : > { %1039 = vmatpush1.bf16.msra.mxu0 %v1543_v39  ;;  %v1635_v39 = vld [vmem:[%s1756_s25 + $0x10c] ss:$16 sps:$4 sm:$0xff]  }
  0x3f   : > { %1080 = vmatpush1.bf16.msra.mxu1 %v1544_v40  ;;  %1040 = vmatprep.subr.bf16.mxu0 %v1545_v41  ;;  %v1638_v40 = vld [vmem:[%s1756_s25 + $0x30c] ss:$16 sps:$4 sm:$0xff]   ;;  %v1633_v41 = vld [vmem:[%s1756_s25 + $0x108] ss:$16 sps:$4 sm:$0xff]  }
  0x40   : > { %1081 = vmatprep.subr.bf16.mxu1 %v1547_v42  ;;  %v1636_v42 = vld [vmem:[%s1756_s25 + $0x308] ss:$16 sps:$4 sm:$0xff]  }
  0x42   : > { %1041 = vmatpush1.bf16.msra.mxu0 %v1549_v43  ;;  %v1641_v43 = vld [vmem:[%s1756_s25 + $0x12c] ss:$16 sps:$4 sm:$0xff]  }
  0x43   : > { %1082 = vmatpush1.bf16.msra.mxu1 %v1550_v44  ;;  %1042 = vmatprep.subr.bf16.mxu0 %v1551_v45  ;;  %v1644_v44 = vld [vmem:[%s1756_s25 + $0x32c] ss:$16 sps:$4 sm:$0xff]   ;;  %v1639_v45 = vld [vmem:[%s1756_s25 + $0x128] ss:$16 sps:$4 sm:$0xff]  }
  0x44   : > { %1083 = vmatprep.subr.bf16.mxu1 %v1553_v46  ;;  %v1642_v46 = vld [vmem:[%s1756_s25 + $0x328] ss:$16 sps:$4 sm:$0xff]  }
  0x46   : > { %1043 = vmatpush1.bf16.msra.mxu0 %v1555_v50  ;;  %v1648_v50 = vld [vmem:[%s1756_s25 + $0x348] ss:$16 sps:$4 sm:$0xff]  }
  0x47   : > { %1084 = vmatpush1.bf16.msra.mxu1 %v1556_v51  ;;  %1044 = vmatprep.subr.bf16.mxu0 %v1557_v53  ;;  %v1653_v51 = vld [vmem:[%s1756_s25 + $0x16c] ss:$16 sps:$4 sm:$0xff]   ;;  %v1651_v53 = vld [vmem:[%s1756_s25 + $0x168] ss:$16 sps:$4 sm:$0xff]  }
  0x48   : > { %1085 = vmatprep.subr.bf16.mxu1 %v1559_v54  ;;  %v1654_v54 = vld [vmem:[%s1756_s25 + $0x368] ss:$16 sps:$4 sm:$0xff]  }
  0x4a   : > { %1045 = vmatpush1.bf16.msra.mxu0 %v1561_v55  ;;  %v1659_v55 = vld [vmem:[%s1756_s25 + $0x18c] ss:$16 sps:$4 sm:$0xff]  }
  0x4b   : > { %1086 = vmatpush1.bf16.msra.mxu1 %v1562_v56  ;;  %1046 = vmatprep.subr.bf16.mxu0 %v1563_v57  ;;  %v1662_v56 = vld [vmem:[%s1756_s25 + $0x38c] ss:$16 sps:$4 sm:$0xff]   ;;  %v1657_v57 = vld [vmem:[%s1756_s25 + $0x188] ss:$16 sps:$4 sm:$0xff]  }
  0x4c   : > { %1087 = vmatprep.subr.bf16.mxu1 %v1565_v58  ;;  %v1660_v58 = vld [vmem:[%s1756_s25 + $0x388] ss:$16 sps:$4 sm:$0xff]  }
  0x4e   : > { %1047 = vmatpush1.bf16.msra.mxu0 %v1567_v59  ;;  %v1665_v59 = vld [vmem:[%s1756_s25 + $0x1ac] ss:$16 sps:$4 sm:$0xff]  }
  0x4f   : > { %1088 = vmatpush1.bf16.msra.mxu1 %v1568_v60  ;;  %1048 = vmatprep.subr.bf16.mxu0 %v1569_v61  ;;  %v1668_v60 = vld [vmem:[%s1756_s25 + $0x3ac] ss:$16 sps:$4 sm:$0xff]   ;;  %v1663_v61 = vld [vmem:[%s1756_s25 + $0x1a8] ss:$16 sps:$4 sm:$0xff]  }
  0x50   : > { %1089 = vmatprep.subr.bf16.mxu1 %v1571_v62  ;;  %v1666_v62 = vld [vmem:[%s1756_s25 + $0x3a8] ss:$16 sps:$4 sm:$0xff]  }
  0x52   : > { %1049 = vmatpush1.bf16.msra.mxu0 %v1573_v63  ;;  %v1671_v63 = vld [vmem:[%s1756_s25 + $0x1cc] ss:$16 sps:$4 sm:$0xff]  }
  0x53   : > { %1090 = vmatpush1.bf16.msra.mxu1 %v1574_v0  ;;  %1050 = vmatprep.subr.bf16.mxu0 %v1575_v1  ;;  %v1674_v0 = vld [vmem:[%s1756_s25 + $0x3cc] ss:$16 sps:$4 sm:$0xff]   ;;  %v1669_v1 = vld [vmem:[%s1756_s25 + $0x1c8] ss:$16 sps:$4 sm:$0xff]  }
  0x54   : > { %1091 = vmatprep.subr.bf16.mxu1 %v1577_v2  ;;  %v1672_v2 = vld [vmem:[%s1756_s25 + $0x3c8] ss:$16 sps:$4 sm:$0xff]  }
  0x56   : > { %1051 = vmatpush1.bf16.msra.mxu0 %v1579_v3  ;;  %v1677_v3 = vld [vmem:[%s1756_s25 + $0x1ec] ss:$16 sps:$4 sm:$0xff]  }
  0x57   : > { %1092 = vmatpush1.bf16.msra.mxu1 %v1580_v4  ;;  %1102 = vmatprep.subr.bf16.mxu0 %v1587_v5  ;;  %v1680_v4 = vld [vmem:[%s1756_s25 + $0x3ec] ss:$16 sps:$4 sm:$0xff]   ;;  %v1675_v5 = vld [vmem:[%s1756_s25 + $0x1e8] ss:$16 sps:$4 sm:$0xff]  }
  0x58   : > { %1143 = vmatprep.subr.bf16.mxu1 %v1590_v6  ;;  %v1678_v6 = vld [vmem:[%s1756_s25 + $0x3e8] ss:$16 sps:$4 sm:$0xff]  }
  0x59   : > { %1053 = vmatmul.mubr.bf16.vlgmr.msra.gmra.mrb[0].mxu0 %v1830_v7 }
  0x5a   : > { %1094 = vmatmul.mubr.bf16.vlgmr.msra.gmra.mrb[0].mxu1 %v1832_v8  ;;  %1103 = vmatpush1.bf16.msra.mxu0 %v1585_v9 }
  0x5b   : > { %1144 = vmatpush1.bf16.msra.mxu1 %v1588_v10  ;;  %1104 = vmatprep.subr.bf16.mxu0 %v1593_v11  ;;  %v232_v10 = vld [vmem:[#allocation2] sm:$0xff] }
  0x5c   : > { %1145 = vmatprep.subr.bf16.mxu1 %v1596_v12  ;;  %1134 = vmatprep.mubr.bf16.mxu0 %v1806_v48  ;;  %v1650_v48 = vld [vmem:[%s1756_s25 + $0x34c] ss:$16 sps:$4 sm:$0xff]  }
  0x5d   : > { %1175 = vmatprep.mubr.bf16.mxu1 %v1326_v52  ;;  %v1656_v52 = vld [vmem:[%s1756_s25 + $0x36c] ss:$16 sps:$4 sm:$0xff]  }
  0x5e   : > { %1105 = vmatpush1.bf16.msra.mxu0 %v1591_v13 }
  0x5f   : > { %1146 = vmatpush1.bf16.msra.mxu1 %v1594_v14  ;;  %1106 = vmatprep.subr.bf16.mxu0 %v1599_v15  ;;  %v233_v14 = vld [vmem:[#allocation2 + $0x8] sm:$0xff] }
  0x60   : > { %1147 = vmatprep.subr.bf16.mxu1 %v1602_v16 }
  0x62   : > { %1107 = vmatpush1.bf16.msra.mxu0 %v1597_v17 }
  0x63   : > { %1148 = vmatpush1.bf16.msra.mxu1 %v1600_v18  ;;  %1108 = vmatprep.subr.bf16.mxu0 %v1605_v19 }
  0x64   : > { %1149 = vmatprep.subr.bf16.mxu1 %v1608_v20 }
  0x66   : > { %1109 = vmatpush1.bf16.msra.mxu0 %v1603_v21 }
  0x67   : > { %1150 = vmatpush1.bf16.msra.mxu1 %v1606_v22  ;;  %1110 = vmatprep.subr.bf16.mxu0 %v1611_v23 }
  0x68   : > { %1151 = vmatprep.subr.bf16.mxu1 %v1614_v24 }
  0x6a   : > { %1111 = vmatpush1.bf16.msra.mxu0 %v1609_v25 }
  0x6b   : > { %1152 = vmatpush1.bf16.msra.mxu1 %v1612_v26  ;;  %1112 = vmatprep.subr.bf16.mxu0 %v1617_v27  ;;  %v235_v26 = vld [vmem:[#allocation2 + $0x18] sm:$0xff] }
  0x6c   : > { %1153 = vmatprep.subr.bf16.mxu1 %v1620_v28 }
  0x6e   : > { %1113 = vmatpush1.bf16.msra.mxu0 %v1615_v29 }
  0x6f   : > { %1154 = vmatpush1.bf16.msra.mxu1 %v1618_v30  ;;  %1114 = vmatprep.subr.bf16.mxu0 %v1623_v31 }
  0x70   : > { %1155 = vmatprep.subr.bf16.mxu1 %v1626_v32 }
  0x72   : > { %1115 = vmatpush1.bf16.msra.mxu0 %v1621_v33 }
  0x73   : > { %1156 = vmatpush1.bf16.msra.mxu1 %v1624_v34  ;;  %1116 = vmatprep.subr.bf16.mxu0 %v1629_v35  ;;  %v1202_v35 = vlaneseq (!%p1455_p7) }
  0x74   : > { %1157 = vmatprep.subr.bf16.mxu1 %v1632_v36 }
  0x75   : > { %v1203_v36 = vshrl.u32 (!%p1455_p7), %v1202_v35, 7 }
  0x76   : > { %1117 = vmatpush1.bf16.msra.mxu0 %v1627_v37  ;;  %v1200_v37 = vld [vmem:[%s1928_s2] sm:$0xf] (!%p1455_p7) }
  0x77   : > { %1158 = vmatpush1.bf16.msra.mxu1 %v1630_v38  ;;  %1118 = vmatprep.subr.bf16.mxu0 %v1635_v39  ;;  %v1204_v39 = vsub.s32 (!%p1455_p7), 0, %v1203_v36 }
  0x78   : > { %1159 = vmatprep.subr.bf16.mxu1 %v1638_v40  ;;  %v1208_v40 = vsub.s32 (!%p1455_p7), 1, %v1203_v36 }
  0x7a   : > { %1119 = vmatpush1.bf16.msra.mxu0 %v1633_v41  ;;  %v1212_v41 = vsub.s32 (!%p1455_p7), 2, %v1203_v36 }
  0x7b   : > { %1160 = vmatpush1.bf16.msra.mxu1 %v1636_v42  ;;  %1120 = vmatprep.subr.bf16.mxu0 %v1641_v43  ;;  %v1216_v42 = vsub.s32 (!%p1455_p7), 3, %v1203_v36 }
  0x7c   : > { %1161 = vmatprep.subr.bf16.mxu1 %v1644_v44 }
  0x7e   : > { %1121 = vmatpush1.bf16.msra.mxu0 %v1639_v45 }
  0x7f   : > { %1162 = vmatpush1.bf16.msra.mxu1 %v1642_v46  ;;  %1122 = vmatprep.subr.bf16.mxu0 %v1647_v47  ;;  %v1205_v46 = vrot.slane (!%p1455_p7), %v1200_v37, %v1204_v39  ;;  %v1209_v47 = vrot.slane (!%p1455_p7), %v1200_v37, %v1208_v40 }
  0x80   : > { %1163 = vmatprep.subr.bf16.mxu1 %v1650_v48  ;;  %v1213_v48 = vrot.slane (!%p1455_p7), %v1200_v37, %v1212_v41 }
  0x82   : > { %1123 = vmatpush1.bf16.msra.mxu0 %v1645_v49  ;;  %v1217_v49 = vrot.slane (!%p1455_p7), %v1200_v37, %v1216_v42 }
  0x83   : > { %1164 = vmatpush1.bf16.msra.mxu1 %v1648_v50  ;;  %1124 = vmatprep.subr.bf16.mxu0 %v1653_v51 }
  0x84   : > { %1165 = vmatprep.subr.bf16.mxu1 %v1656_v52 }
  0x86   : > { %1125 = vmatpush1.bf16.msra.mxu0 %v1651_v53 }
  0x87   : > { %1166 = vmatpush1.bf16.msra.mxu1 %v1654_v54  ;;  %1126 = vmatprep.subr.bf16.mxu0 %v1659_v55 }
  0x88   : > { %1167 = vmatprep.subr.bf16.mxu1 %v1662_v56 }
  0x8a   : > { %1127 = vmatpush1.bf16.msra.mxu0 %v1657_v57 }
  0x8b   : > { %1168 = vmatpush1.bf16.msra.mxu1 %v1660_v58  ;;  %1128 = vmatprep.subr.bf16.mxu0 %v1665_v59 }
  0x8c   : > { %1169 = vmatprep.subr.bf16.mxu1 %v1668_v60 }
  0x8e   : > { %1129 = vmatpush1.bf16.msra.mxu0 %v1663_v61 }
  0x8f   : > { %1170 = vmatpush1.bf16.msra.mxu1 %v1666_v62  ;;  %1130 = vmatprep.subr.bf16.mxu0 %v1671_v63 }
  0x90   : > { %1171 = vmatprep.subr.bf16.mxu1 %v1674_v0 }
  0x92   : > { %1131 = vmatpush1.bf16.msra.mxu0 %v1669_v1 }
  0x93   : > { %1172 = vmatpush1.bf16.msra.mxu1 %v1672_v2  ;;  %1132 = vmatprep.subr.bf16.mxu0 %v1677_v3 }
  0x94   : > { %1173 = vmatprep.subr.bf16.mxu1 %v1680_v4 }
  0x96   : > { %1133 = vmatpush1.bf16.msra.mxu0 %v1675_v5 }
  0x97   : > { %1174 = vmatpush1.bf16.msra.mxu1 %v1678_v6 }
  0x99   : > { %1135 = vmatmul.mubr.bf16.vlgmr.msra.gmra.mrb[4].mxu0 %v1830_v7  ;;  %v234_v7 = vld [vmem:[#allocation2 + $0x10] sm:$0xff] }
  0x9a   : > { %1176 = vmatmul.mubr.bf16.vlgmr.msra.gmra.mrb[4].mxu1 %v1832_v8 }
 0x12c   : > { %v1054_v9 = vpop.f32.mrb[0].mxu0 }
 0x12d   : > { %v1095_v11 = vpop.f32.mrb[0].mxu1  ;;  %v1056_v13 = vpop.f32.mrb[1].mxu0 }
 0x12e   : > { %v1096_v12 = vadd.f32 %v1095_v11, %v1054_v9  ;;  %v1097_v15 = vpop.f32.mrb[1].mxu1  ;;  %v1058_v17 = vpop.f32.mrb[2].mxu0 }
 0x12f   : > { %v1098_v16 = vadd.f32 %v1097_v15, %v1056_v13  ;;  %v1099_v18 = vpop.f32.mrb[2].mxu1  ;;  %v1059_v20 = vpop.f32.mrb[3].mxu0 }
 0x130   : > { %v1184_v19 = vadd.f32 %v1096_v12, %v232_v10  ;;  %v1100_v21 = vpop.f32.mrb[3].mxu1 }
 0x131   : > { %v1185_v22 = vadd.f32 %v1098_v16, %v233_v14 }
 0x132   : > { %1188 = vst [vmem:[#allocation2] sm:$0xff] %v1184_v19 }
 0x133   : > { %1189 = vst [vmem:[#allocation2 + $0x8] sm:$0xff] %v1185_v22 }
 0x139   : > { %v1196_v38 = vld [vmem:[#allocation2] sm:$0xff] (!%p1455_p7) }
 0x13a   : > { %v1197_v43 = vld [vmem:[#allocation2 + $0x8] sm:$0xff] (!%p1455_p7)  ;;  %v1222_v50 = vadd.f32 (!%p1455_p7), %v1205_v46, %v1196_v38 }
 0x13b   : > { %v1223_v51 = vadd.f32 (!%p1455_p7), %v1209_v47, %v1197_v43 }
 0x13c   : > { %v1226_v54 = vmax.f32 (!%p1455_p7), %v1222_v50, 0.0 }
 0x13d   : > { %v1227_v55 = vmax.f32 (!%p1455_p7), %v1223_v51, 0.0 }
 0x13e   : > { %1230 = vst [vmem:[%s1929_s3] sm:$0xff] (!%p1455_p7), %v1226_v54 }
 0x13f   : > { %1231 = vst [vmem:[%s1929_s3 + $0x8] sm:$0xff] (!%p1455_p7), %v1227_v55 }
 0x16c   : > { %v1136_v23 = vpop.f32.mrb[4].mxu0 }
 0x16d   : > { %v1177_v24 = vpop.f32.mrb[4].mxu1  ;;  %v1138_v25 = vpop.f32.mrb[5].mxu0  ;;  %1195 = sbr.rel (%p1455_p7) target bundleno = 384 (0x180), region = 40 }
 0x16e   : > { %v1178_v8 = vadd.f32 %v1177_v24, %v1136_v23  ;;  %v1179_v27 = vpop.f32.mrb[5].mxu1  ;;  %v1140_v29 = vpop.f32.mrb[6].mxu0 }
 0x16f   : > { %v1180_v28 = vadd.f32 %v1179_v27, %v1138_v25  ;;  %v1181_v30 = vpop.f32.mrb[6].mxu1  ;;  %v1141_v32 = vpop.f32.mrb[7].mxu0 }
 0x170   : > { %v1186_v31 = vadd.f32 %v1178_v8, %v234_v7  ;;  %v1182_v33 = vpop.f32.mrb[7].mxu1 }
 0x171   : > { %v1187_v34 = vadd.f32 %v1180_v28, %v235_v26 }
 0x172   : > { %1190 = vst [vmem:[#allocation2 + $0x10] sm:$0xff] %v1186_v31 }
 0x173   : > { %1191 = vst [vmem:[#allocation2 + $0x18] sm:$0xff] %v1187_v34 }
 0x179   : > { %v1198_v44 = vld [vmem:[#allocation2 + $0x10] sm:$0xff] }
 0x17a   : > { %v1199_v45 = vld [vmem:[#allocation2 + $0x18] sm:$0xff]  ;;  %v1224_v52 = vadd.f32 %v1213_v48, %v1198_v44 }
 0x17b   : > { %v1225_v53 = vadd.f32 %v1217_v49, %v1199_v45 }
 0x17c   : > { %v1228_v56 = vmax.f32 %v1224_v52, 0.0 }
 0x17d   : > { %v1229_v57 = vmax.f32 %v1225_v53, 0.0 }
 0x17e   : > { %1232 = vst [vmem:[%s1929_s3 + $0x10] sm:$0xff] %v1228_v56 }
 0x17f   : > { %1233 = vst [vmem:[%s1929_s3 + $0x18] sm:$0xff] %v1229_v57 }
 0x180 PF: > { %s13_s14 = sadd.s32 1, %s1703_s14   ;;  %s1930_s12 = smov %s1699_s13 }
 0x181   : > { %p10_p8 = scmp.ge.s32.totalorder %s13_s14, 11   ;;  %s1931_s13 = smov %s1933_s15 }
 0x183   :  { %12 = sbr.rel (!%p10_p8) target bundleno = 2 (0x2), region = 73 }

// kernel: _forward.71
= control target key start
LH: loop header
LB: loop body
LE: loop exit
PB: predicated region body
PF: predicated region fallthrough
CT: control target
= control target key end

     0   :  { %s1802_s15 = smov 0   ;;  %s1804_s16 = smov 0   ;;  %s2014_s0 = inlined_call_operand.vmem [shape: bf16[8,4608], index: 0, kind: input, shape index: {}]   ;;  %s2015_s1 = inlined_call_operand.vmem [shape: bf16[4608,512], index: 1, kind: input, shape index: {}]   ;;  %s2016_s2 = inlined_call_operand.vmem [shape: f32[1,512], index: 2, kind: input, shape index: {}]   ;;  %s2017_s3 = inlined_call_operand.vmem [shape: f32[8,512], index: 3, kind: input, shape index: {}]   ;;  %s2018_s4 = inlined_call_operand.vmem [shape: f32[8,512], index: 4, kind: output, shape index: {}]  }
   0x1   :  { %s1806_s17 = smov 0  }
   0x2 LB: > { %s23_s18 = sadd.s32 1, %s1770_s16  ;;  %p1387_p0 = scmp.ge.s32.totalorder %s1774_s17, 1  ;;  %s1774_s17 = sphi %s1806_s17, %s14_s17   ;;  %s1770_s16 = sphi %s1804_s16, %s2020_s16   ;;  %s1766_s15 = sphi %s1802_s15, %s2019_s15  }
   0x3   : > { %p24_p1 = scmp.ge.s32.totalorder %s23_s18, 9  ;;  %p203_p2 = scmp.lt.s32.totalorder %s1774_s17, 10 }
   0x5   : > { %s2022_s18 = smov (%p24_p1, %s23_s18), 0  ;;  %p204_p3 = pnand %p1387_p0, %p203_p2 }
   0x6   : > { %s1388_s19 = sshll.u32 (!%p204_p3), %s1766_s15, 2  ;;  %s1390_s20 = sshll.u32 (!%p204_p3), %s1766_s15, 6 }
   0x7   : > { %207 = sbr.rel (%p204_p3) target bundleno = 386 (0x182), region = 36  ;;  %p247_p4 = scmp.lt.s32.totalorder (!%p204_p3), %s1388_s19, 35 }
   0x8   : > { %p255_p5 = scmp.lt.s32.totalorder (!%p204_p3), %s1390_s20, 575  ;;  %p1393_p6 = scmp.ne.s32.totalorder (!%p204_p3), %s1766_s15, 0 }
   0xe   : > { %s2024_s19 = smov (!%p247_p4, %s1388_s19), 35  ;;  %s2026_s20 = smov (!%p255_p5, %s1390_s20), 575 }
   0xf   : > { %s1389_s21 = sshll.u32 %s2024_s19, 2  ;;  %s1530_s25 = sshll.u32 %s2026_s20, 4  ;;  %v1776_v0 = vmov (!%p1393_p6), 0.0  }
  0x10   : > { %s1827_s24 = scalar_lea.vmem %s2014_s0, %s1389_s21  ;;  %s1832_s28 = scalar_lea.vmem %s2015_s1, %s1530_s25  ;;  %275 = vst [vmem:[#allocation2] sm:$0xff] (!%p1393_p6), %v1776_v0  ;;  %276 = vst [vmem:[#allocation2 + $0x8] sm:$0xff] (!%p1393_p6), %v1776_v0 }
  0x11   : > { %274 = sbr.rel (%p1393_p6) target bundleno = 24 (0x18), region = 40  ;;  %277 = vst [vmem:[#allocation2 + $0x10] sm:$0xff] (!%p1393_p6), %v1776_v0  ;;  %278 = vst [vmem:[#allocation2 + $0x18] sm:$0xff] (!%p1393_p6), %v1776_v0 }
  0x18 PF: > { %v1556_v1 = vld [vmem:[%s1832_s28 + $0x4] ss:$16 sps:$4 sm:$0xff]   ;;  %v1560_v3 = vld [vmem:[%s1832_s28] ss:$16 sps:$4 sm:$0xff]   ;;  %v284_v49 = vld [vmem:[%s1827_s24 + $0x8] sm:$0xff]  ;;  %p1526_p7 = scmp.ne.s32.totalorder %s1766_s15, 8 }
  0x19   : > { %v1558_v2 = vld [vmem:[%s1832_s28 + $0x204] ss:$16 sps:$4 sm:$0xff]   ;;  %1067 = vmatprep.subr.bf16.mxu0 %v1556_v1  ;;  %v1561_v4 = vld [vmem:[%s1832_s28 + $0x200] ss:$16 sps:$4 sm:$0xff]   ;;  %v1397_v52 = vcombine.high %v284_v49, %v284_v49 }
  0x1a   : > { %1108 = vmatprep.subr.bf16.mxu1 %v1558_v2  ;;  %v1562_v5 = vld [vmem:[%s1832_s28 + $0x24] ss:$16 sps:$4 sm:$0xff]   ;;  %1068 = vmatpush1.bf16.msra.mxu0 %v1560_v3  ;;  %v1566_v7 = vld [vmem:[%s1832_s28 + $0x20] ss:$16 sps:$4 sm:$0xff]  }
  0x1b   : > { %1109 = vmatpush1.bf16.msra.mxu1 %v1561_v4  ;;  %v1564_v6 = vld [vmem:[%s1832_s28 + $0x224] ss:$16 sps:$4 sm:$0xff]   ;;  %1069 = vmatprep.subr.bf16.mxu0 %v1562_v5  ;;  %v1567_v8 = vld [vmem:[%s1832_s28 + $0x220] ss:$16 sps:$4 sm:$0xff]   ;;  %v1658_v5 = vld [vmem:[%s1832_s28 + $0xc] ss:$16 sps:$4 sm:$0xff]  }
  0x1c   : > { %1110 = vmatprep.subr.bf16.mxu1 %v1564_v6  ;;  %v1568_v9 = vld [vmem:[%s1832_s28 + $0x44] ss:$16 sps:$4 sm:$0xff]   ;;  %v1572_v11 = vld [vmem:[%s1832_s28 + $0x40] ss:$16 sps:$4 sm:$0xff]   ;;  %1140 = vmatprep.mubr.bf16.mxu1 %v1397_v52  ;;  %v1661_v6 = vld [vmem:[%s1832_s28 + $0x20c] ss:$16 sps:$4 sm:$0xff]  }
  0x1d   : > { %v1570_v10 = vld [vmem:[%s1832_s28 + $0x244] ss:$16 sps:$4 sm:$0xff]   ;;  %v1573_v12 = vld [vmem:[%s1832_s28 + $0x240] ss:$16 sps:$4 sm:$0xff]  }
  0x1e   : > { %1070 = vmatpush1.bf16.msra.mxu0 %v1566_v7  ;;  %v1574_v13 = vld [vmem:[%s1832_s28 + $0x64] ss:$16 sps:$4 sm:$0xff]   ;;  %v1578_v15 = vld [vmem:[%s1832_s28 + $0x60] ss:$16 sps:$4 sm:$0xff]  }
  0x1f   : > { %1111 = vmatpush1.bf16.msra.mxu1 %v1567_v8  ;;  %1071 = vmatprep.subr.bf16.mxu0 %v1568_v9  ;;  %v1576_v14 = vld [vmem:[%s1832_s28 + $0x264] ss:$16 sps:$4 sm:$0xff]   ;;  %v1579_v16 = vld [vmem:[%s1832_s28 + $0x260] ss:$16 sps:$4 sm:$0xff]   ;;  %v1908_v8 = vcombine.low %v284_v49, %v284_v49  ;;  %v1656_v9 = vld [vmem:[%s1832_s28 + $0x8] ss:$16 sps:$4 sm:$0xff]  }
  0x20   : > { %1112 = vmatprep.subr.bf16.mxu1 %v1570_v10  ;;  %v1580_v17 = vld [vmem:[%s1832_s28 + $0x84] ss:$16 sps:$4 sm:$0xff]   ;;  %v1584_v19 = vld [vmem:[%s1832_s28 + $0x80] ss:$16 sps:$4 sm:$0xff]   ;;  %v1659_v10 = vld [vmem:[%s1832_s28 + $0x208] ss:$16 sps:$4 sm:$0xff]  }
  0x21   : > { %v1582_v18 = vld [vmem:[%s1832_s28 + $0x284] ss:$16 sps:$4 sm:$0xff]   ;;  %v1585_v20 = vld [vmem:[%s1832_s28 + $0x280] ss:$16 sps:$4 sm:$0xff]   ;;  %v1716_v49 = vld [vmem:[%s1832_s28 + $0x148] ss:$16 sps:$4 sm:$0xff]  }
  0x22   : > { %1072 = vmatpush1.bf16.msra.mxu0 %v1572_v11  ;;  %v1586_v21 = vld [vmem:[%s1832_s28 + $0xa4] ss:$16 sps:$4 sm:$0xff]   ;;  %v1590_v23 = vld [vmem:[%s1832_s28 + $0xa0] ss:$16 sps:$4 sm:$0xff]   ;;  %v1664_v11 = vld [vmem:[%s1832_s28 + $0x2c] ss:$16 sps:$4 sm:$0xff]  }
  0x23   : > { %1113 = vmatpush1.bf16.msra.mxu1 %v1573_v12  ;;  %1073 = vmatprep.subr.bf16.mxu0 %v1574_v13  ;;  %v1588_v22 = vld [vmem:[%s1832_s28 + $0x2a4] ss:$16 sps:$4 sm:$0xff]   ;;  %v1591_v24 = vld [vmem:[%s1832_s28 + $0x2a0] ss:$16 sps:$4 sm:$0xff]   ;;  %v1667_v12 = vld [vmem:[%s1832_s28 + $0x22c] ss:$16 sps:$4 sm:$0xff]  }
  0x24   : > { %1114 = vmatprep.subr.bf16.mxu1 %v1576_v14  ;;  %v1592_v25 = vld [vmem:[%s1832_s28 + $0xc4] ss:$16 sps:$4 sm:$0xff]   ;;  %v1596_v27 = vld [vmem:[%s1832_s28 + $0xc0] ss:$16 sps:$4 sm:$0xff]   ;;  %v1662_v13 = vld [vmem:[%s1832_s28 + $0x28] ss:$16 sps:$4 sm:$0xff]  }
  0x25   : > { %v1594_v26 = vld [vmem:[%s1832_s28 + $0x2c4] ss:$16 sps:$4 sm:$0xff]   ;;  %v1597_v28 = vld [vmem:[%s1832_s28 + $0x2c0] ss:$16 sps:$4 sm:$0xff]   ;;  %v1665_v14 = vld [vmem:[%s1832_s28 + $0x228] ss:$16 sps:$4 sm:$0xff]  }
  0x26   : > { %1074 = vmatpush1.bf16.msra.mxu0 %v1578_v15  ;;  %v1598_v29 = vld [vmem:[%s1832_s28 + $0xe4] ss:$16 sps:$4 sm:$0xff]   ;;  %v1602_v31 = vld [vmem:[%s1832_s28 + $0xe0] ss:$16 sps:$4 sm:$0xff]   ;;  %v1670_v15 = vld [vmem:[%s1832_s28 + $0x4c] ss:$16 sps:$4 sm:$0xff]  }
  0x27   : > { %1115 = vmatpush1.bf16.msra.mxu1 %v1579_v16  ;;  %1075 = vmatprep.subr.bf16.mxu0 %v1580_v17  ;;  %v1600_v30 = vld [vmem:[%s1832_s28 + $0x2e4] ss:$16 sps:$4 sm:$0xff]   ;;  %v1603_v32 = vld [vmem:[%s1832_s28 + $0x2e0] ss:$16 sps:$4 sm:$0xff]   ;;  %v1673_v16 = vld [vmem:[%s1832_s28 + $0x24c] ss:$16 sps:$4 sm:$0xff]  }
  0x28   : > { %1116 = vmatprep.subr.bf16.mxu1 %v1582_v18  ;;  %v1604_v33 = vld [vmem:[%s1832_s28 + $0x104] ss:$16 sps:$4 sm:$0xff]   ;;  %v1608_v35 = vld [vmem:[%s1832_s28 + $0x100] ss:$16 sps:$4 sm:$0xff]   ;;  %v1668_v17 = vld [vmem:[%s1832_s28 + $0x48] ss:$16 sps:$4 sm:$0xff]  }
  0x29   : > { %v1606_v34 = vld [vmem:[%s1832_s28 + $0x304] ss:$16 sps:$4 sm:$0xff]   ;;  %v1609_v36 = vld [vmem:[%s1832_s28 + $0x300] ss:$16 sps:$4 sm:$0xff]   ;;  %v1671_v18 = vld [vmem:[%s1832_s28 + $0x248] ss:$16 sps:$4 sm:$0xff]  }
  0x2a   : > { %1076 = vmatpush1.bf16.msra.mxu0 %v1584_v19  ;;  %v1610_v37 = vld [vmem:[%s1832_s28 + $0x124] ss:$16 sps:$4 sm:$0xff]   ;;  %v1614_v39 = vld [vmem:[%s1832_s28 + $0x120] ss:$16 sps:$4 sm:$0xff]   ;;  %v1676_v19 = vld [vmem:[%s1832_s28 + $0x6c] ss:$16 sps:$4 sm:$0xff]  }
  0x2b   : > { %1117 = vmatpush1.bf16.msra.mxu1 %v1585_v20  ;;  %1077 = vmatprep.subr.bf16.mxu0 %v1586_v21  ;;  %v1612_v38 = vld [vmem:[%s1832_s28 + $0x324] ss:$16 sps:$4 sm:$0xff]   ;;  %v1615_v40 = vld [vmem:[%s1832_s28 + $0x320] ss:$16 sps:$4 sm:$0xff]   ;;  %v1679_v20 = vld [vmem:[%s1832_s28 + $0x26c] ss:$16 sps:$4 sm:$0xff]  }
  0x2c   : > { %1118 = vmatprep.subr.bf16.mxu1 %v1588_v22  ;;  %v1616_v41 = vld [vmem:[%s1832_s28 + $0x144] ss:$16 sps:$4 sm:$0xff]   ;;  %v1620_v43 = vld [vmem:[%s1832_s28 + $0x140] ss:$16 sps:$4 sm:$0xff]   ;;  %v1674_v21 = vld [vmem:[%s1832_s28 + $0x68] ss:$16 sps:$4 sm:$0xff]  }
  0x2d   : > { %v1618_v42 = vld [vmem:[%s1832_s28 + $0x344] ss:$16 sps:$4 sm:$0xff]   ;;  %v1621_v44 = vld [vmem:[%s1832_s28 + $0x340] ss:$16 sps:$4 sm:$0xff]   ;;  %v1677_v22 = vld [vmem:[%s1832_s28 + $0x268] ss:$16 sps:$4 sm:$0xff]  }
  0x2e   : > { %1078 = vmatpush1.bf16.msra.mxu0 %v1590_v23  ;;  %v1622_v45 = vld [vmem:[%s1832_s28 + $0x164] ss:$16 sps:$4 sm:$0xff]   ;;  %v1626_v50 = vld [vmem:[%s1832_s28 + $0x160] ss:$16 sps:$4 sm:$0xff]   ;;  %v1682_v23 = vld [vmem:[%s1832_s28 + $0x8c] ss:$16 sps:$4 sm:$0xff]  }
  0x2f   : > { %1119 = vmatpush1.bf16.msra.mxu1 %v1591_v24  ;;  %1079 = vmatprep.subr.bf16.mxu0 %v1592_v25  ;;  %v1624_v46 = vld [vmem:[%s1832_s28 + $0x364] ss:$16 sps:$4 sm:$0xff]   ;;  %v1627_v51 = vld [vmem:[%s1832_s28 + $0x360] ss:$16 sps:$4 sm:$0xff]   ;;  %v1685_v24 = vld [vmem:[%s1832_s28 + $0x28c] ss:$16 sps:$4 sm:$0xff]  }
  0x30   : > { %1120 = vmatprep.subr.bf16.mxu1 %v1594_v26  ;;  %v283_v47 = vld [vmem:[%s1827_s24] sm:$0xff]  ;;  %v1680_v25 = vld [vmem:[%s1832_s28 + $0x88] ss:$16 sps:$4 sm:$0xff]  }
  0x31   : > { %v1882_v48 = vcombine.high %v283_v47, %v283_v47  ;;  %v1628_v53 = vld [vmem:[%s1832_s28 + $0x184] ss:$16 sps:$4 sm:$0xff]   ;;  %v1632_v55 = vld [vmem:[%s1832_s28 + $0x180] ss:$16 sps:$4 sm:$0xff]   ;;  %v1906_v7 = vcombine.low %v283_v47, %v283_v47  ;;  %v1683_v26 = vld [vmem:[%s1832_s28 + $0x288] ss:$16 sps:$4 sm:$0xff]  }
  0x32   : > { %1080 = vmatpush1.bf16.msra.mxu0 %v1596_v27  ;;  %v1630_v54 = vld [vmem:[%s1832_s28 + $0x384] ss:$16 sps:$4 sm:$0xff]   ;;  %v1633_v56 = vld [vmem:[%s1832_s28 + $0x380] ss:$16 sps:$4 sm:$0xff]   ;;  %v1688_v27 = vld [vmem:[%s1832_s28 + $0xac] ss:$16 sps:$4 sm:$0xff]  }
  0x33   : > { %1121 = vmatpush1.bf16.msra.mxu1 %v1597_v28  ;;  %1081 = vmatprep.subr.bf16.mxu0 %v1598_v29  ;;  %v1634_v57 = vld [vmem:[%s1832_s28 + $0x1a4] ss:$16 sps:$4 sm:$0xff]   ;;  %v1638_v59 = vld [vmem:[%s1832_s28 + $0x1a0] ss:$16 sps:$4 sm:$0xff]   ;;  %v1691_v28 = vld [vmem:[%s1832_s28 + $0x2ac] ss:$16 sps:$4 sm:$0xff]  }
  0x34   : > { %1122 = vmatprep.subr.bf16.mxu1 %v1600_v30  ;;  %1099 = vmatprep.mubr.bf16.mxu0 %v1882_v48  ;;  %v1636_v58 = vld [vmem:[%s1832_s28 + $0x3a4] ss:$16 sps:$4 sm:$0xff]   ;;  %v1639_v60 = vld [vmem:[%s1832_s28 + $0x3a0] ss:$16 sps:$4 sm:$0xff]   ;;  %v1686_v29 = vld [vmem:[%s1832_s28 + $0xa8] ss:$16 sps:$4 sm:$0xff]  }
  0x35   : > { %v1640_v61 = vld [vmem:[%s1832_s28 + $0x1c4] ss:$16 sps:$4 sm:$0xff]   ;;  %v1644_v63 = vld [vmem:[%s1832_s28 + $0x1c0] ss:$16 sps:$4 sm:$0xff]   ;;  %v1689_v30 = vld [vmem:[%s1832_s28 + $0x2a8] ss:$16 sps:$4 sm:$0xff]  }
  0x36   : > { %1082 = vmatpush1.bf16.msra.mxu0 %v1602_v31  ;;  %v1642_v62 = vld [vmem:[%s1832_s28 + $0x3c4] ss:$16 sps:$4 sm:$0xff]   ;;  %v1645_v0 = vld [vmem:[%s1832_s28 + $0x3c0] ss:$16 sps:$4 sm:$0xff]   ;;  %v1694_v31 = vld [vmem:[%s1832_s28 + $0xcc] ss:$16 sps:$4 sm:$0xff]  }
  0x37   : > { %1123 = vmatpush1.bf16.msra.mxu1 %v1603_v32  ;;  %1083 = vmatprep.subr.bf16.mxu0 %v1604_v33  ;;  %v1646_v1 = vld [vmem:[%s1832_s28 + $0x1e4] ss:$16 sps:$4 sm:$0xff]   ;;  %v1650_v3 = vld [vmem:[%s1832_s28 + $0x1e0] ss:$16 sps:$4 sm:$0xff]   ;;  %v1697_v32 = vld [vmem:[%s1832_s28 + $0x2cc] ss:$16 sps:$4 sm:$0xff]  }
  0x38   : > { %1124 = vmatprep.subr.bf16.mxu1 %v1606_v34  ;;  %v1648_v2 = vld [vmem:[%s1832_s28 + $0x3e4] ss:$16 sps:$4 sm:$0xff]   ;;  %v1651_v4 = vld [vmem:[%s1832_s28 + $0x3e0] ss:$16 sps:$4 sm:$0xff]   ;;  %v1692_v33 = vld [vmem:[%s1832_s28 + $0xc8] ss:$16 sps:$4 sm:$0xff]  }
  0x39   : > { %v1695_v34 = vld [vmem:[%s1832_s28 + $0x2c8] ss:$16 sps:$4 sm:$0xff]   ;;  %v1718_v47 = vld [vmem:[%s1832_s28 + $0x14c] ss:$16 sps:$4 sm:$0xff]  }
  0x3a   : > { %1084 = vmatpush1.bf16.msra.mxu0 %v1608_v35  ;;  %v1700_v35 = vld [vmem:[%s1832_s28 + $0xec] ss:$16 sps:$4 sm:$0xff]  }
  0x3b   : > { %1125 = vmatpush1.bf16.msra.mxu1 %v1609_v36  ;;  %1085 = vmatprep.subr.bf16.mxu0 %v1610_v37  ;;  %v1703_v36 = vld [vmem:[%s1832_s28 + $0x2ec] ss:$16 sps:$4 sm:$0xff]   ;;  %v1698_v37 = vld [vmem:[%s1832_s28 + $0xe8] ss:$16 sps:$4 sm:$0xff]  }
  0x3c   : > { %1126 = vmatprep.subr.bf16.mxu1 %v1612_v38  ;;  %v1701_v38 = vld [vmem:[%s1832_s28 + $0x2e8] ss:$16 sps:$4 sm:$0xff]  }
  0x3e   : > { %1086 = vmatpush1.bf16.msra.mxu0 %v1614_v39  ;;  %v1706_v39 = vld [vmem:[%s1832_s28 + $0x10c] ss:$16 sps:$4 sm:$0xff]  }
  0x3f   : > { %1127 = vmatpush1.bf16.msra.mxu1 %v1615_v40  ;;  %1087 = vmatprep.subr.bf16.mxu0 %v1616_v41  ;;  %v1709_v40 = vld [vmem:[%s1832_s28 + $0x30c] ss:$16 sps:$4 sm:$0xff]   ;;  %v1704_v41 = vld [vmem:[%s1832_s28 + $0x108] ss:$16 sps:$4 sm:$0xff]  }
  0x40   : > { %1128 = vmatprep.subr.bf16.mxu1 %v1618_v42  ;;  %v1707_v42 = vld [vmem:[%s1832_s28 + $0x308] ss:$16 sps:$4 sm:$0xff]  }
  0x42   : > { %1088 = vmatpush1.bf16.msra.mxu0 %v1620_v43  ;;  %v1712_v43 = vld [vmem:[%s1832_s28 + $0x12c] ss:$16 sps:$4 sm:$0xff]  }
  0x43   : > { %1129 = vmatpush1.bf16.msra.mxu1 %v1621_v44  ;;  %1089 = vmatprep.subr.bf16.mxu0 %v1622_v45  ;;  %v1715_v44 = vld [vmem:[%s1832_s28 + $0x32c] ss:$16 sps:$4 sm:$0xff]   ;;  %v1710_v45 = vld [vmem:[%s1832_s28 + $0x128] ss:$16 sps:$4 sm:$0xff]  }
  0x44   : > { %1130 = vmatprep.subr.bf16.mxu1 %v1624_v46  ;;  %v1713_v46 = vld [vmem:[%s1832_s28 + $0x328] ss:$16 sps:$4 sm:$0xff]  }
  0x46   : > { %1090 = vmatpush1.bf16.msra.mxu0 %v1626_v50  ;;  %v1719_v50 = vld [vmem:[%s1832_s28 + $0x348] ss:$16 sps:$4 sm:$0xff]  }
  0x47   : > { %1131 = vmatpush1.bf16.msra.mxu1 %v1627_v51  ;;  %1091 = vmatprep.subr.bf16.mxu0 %v1628_v53  ;;  %v1724_v51 = vld [vmem:[%s1832_s28 + $0x16c] ss:$16 sps:$4 sm:$0xff]   ;;  %v1722_v53 = vld [vmem:[%s1832_s28 + $0x168] ss:$16 sps:$4 sm:$0xff]  }
  0x48   : > { %1132 = vmatprep.subr.bf16.mxu1 %v1630_v54  ;;  %v1725_v54 = vld [vmem:[%s1832_s28 + $0x368] ss:$16 sps:$4 sm:$0xff]  }
  0x4a   : > { %1092 = vmatpush1.bf16.msra.mxu0 %v1632_v55  ;;  %v1730_v55 = vld [vmem:[%s1832_s28 + $0x18c] ss:$16 sps:$4 sm:$0xff]  }
  0x4b   : > { %1133 = vmatpush1.bf16.msra.mxu1 %v1633_v56  ;;  %1093 = vmatprep.subr.bf16.mxu0 %v1634_v57  ;;  %v1733_v56 = vld [vmem:[%s1832_s28 + $0x38c] ss:$16 sps:$4 sm:$0xff]   ;;  %v1728_v57 = vld [vmem:[%s1832_s28 + $0x188] ss:$16 sps:$4 sm:$0xff]  }
  0x4c   : > { %1134 = vmatprep.subr.bf16.mxu1 %v1636_v58  ;;  %v1731_v58 = vld [vmem:[%s1832_s28 + $0x388] ss:$16 sps:$4 sm:$0xff]  }
  0x4e   : > { %1094 = vmatpush1.bf16.msra.mxu0 %v1638_v59  ;;  %v1736_v59 = vld [vmem:[%s1832_s28 + $0x1ac] ss:$16 sps:$4 sm:$0xff]  }
  0x4f   : > { %1135 = vmatpush1.bf16.msra.mxu1 %v1639_v60  ;;  %1095 = vmatprep.subr.bf16.mxu0 %v1640_v61  ;;  %v1739_v60 = vld [vmem:[%s1832_s28 + $0x3ac] ss:$16 sps:$4 sm:$0xff]   ;;  %v1734_v61 = vld [vmem:[%s1832_s28 + $0x1a8] ss:$16 sps:$4 sm:$0xff]  }
  0x50   : > { %1136 = vmatprep.subr.bf16.mxu1 %v1642_v62  ;;  %v1737_v62 = vld [vmem:[%s1832_s28 + $0x3a8] ss:$16 sps:$4 sm:$0xff]  }
  0x52   : > { %1096 = vmatpush1.bf16.msra.mxu0 %v1644_v63  ;;  %v1742_v63 = vld [vmem:[%s1832_s28 + $0x1cc] ss:$16 sps:$4 sm:$0xff]  }
  0x53   : > { %1137 = vmatpush1.bf16.msra.mxu1 %v1645_v0  ;;  %1097 = vmatprep.subr.bf16.mxu0 %v1646_v1  ;;  %v1745_v0 = vld [vmem:[%s1832_s28 + $0x3cc] ss:$16 sps:$4 sm:$0xff]   ;;  %v1740_v1 = vld [vmem:[%s1832_s28 + $0x1c8] ss:$16 sps:$4 sm:$0xff]  }
  0x54   : > { %1138 = vmatprep.subr.bf16.mxu1 %v1648_v2  ;;  %v1743_v2 = vld [vmem:[%s1832_s28 + $0x3c8] ss:$16 sps:$4 sm:$0xff]  }
  0x56   : > { %1098 = vmatpush1.bf16.msra.mxu0 %v1650_v3  ;;  %v1748_v3 = vld [vmem:[%s1832_s28 + $0x1ec] ss:$16 sps:$4 sm:$0xff]  }
  0x57   : > { %1139 = vmatpush1.bf16.msra.mxu1 %v1651_v4  ;;  %1149 = vmatprep.subr.bf16.mxu0 %v1658_v5  ;;  %v1751_v4 = vld [vmem:[%s1832_s28 + $0x3ec] ss:$16 sps:$4 sm:$0xff]   ;;  %v1746_v5 = vld [vmem:[%s1832_s28 + $0x1e8] ss:$16 sps:$4 sm:$0xff]  }
  0x58   : > { %1190 = vmatprep.subr.bf16.mxu1 %v1661_v6  ;;  %v1749_v6 = vld [vmem:[%s1832_s28 + $0x3e8] ss:$16 sps:$4 sm:$0xff]  }
  0x59   : > { %1100 = vmatmul.mubr.bf16.vlgmr.msra.gmra.mrb[0].mxu0 %v1906_v7 }
  0x5a   : > { %1141 = vmatmul.mubr.bf16.vlgmr.msra.gmra.mrb[0].mxu1 %v1908_v8  ;;  %1150 = vmatpush1.bf16.msra.mxu0 %v1656_v9 }
  0x5b   : > { %1191 = vmatpush1.bf16.msra.mxu1 %v1659_v10  ;;  %1151 = vmatprep.subr.bf16.mxu0 %v1664_v11  ;;  %v279_v10 = vld [vmem:[#allocation2] sm:$0xff] }
  0x5c   : > { %1192 = vmatprep.subr.bf16.mxu1 %v1667_v12  ;;  %1181 = vmatprep.mubr.bf16.mxu0 %v1882_v48  ;;  %v1721_v48 = vld [vmem:[%s1832_s28 + $0x34c] ss:$16 sps:$4 sm:$0xff]  }
  0x5d   : > { %1222 = vmatprep.mubr.bf16.mxu1 %v1397_v52  ;;  %v1727_v52 = vld [vmem:[%s1832_s28 + $0x36c] ss:$16 sps:$4 sm:$0xff]  }
  0x5e   : > { %1152 = vmatpush1.bf16.msra.mxu0 %v1662_v13 }
  0x5f   : > { %1193 = vmatpush1.bf16.msra.mxu1 %v1665_v14  ;;  %1153 = vmatprep.subr.bf16.mxu0 %v1670_v15  ;;  %v280_v14 = vld [vmem:[#allocation2 + $0x8] sm:$0xff] }
  0x60   : > { %1194 = vmatprep.subr.bf16.mxu1 %v1673_v16 }
  0x62   : > { %1154 = vmatpush1.bf16.msra.mxu0 %v1668_v17 }
  0x63   : > { %1195 = vmatpush1.bf16.msra.mxu1 %v1671_v18  ;;  %1155 = vmatprep.subr.bf16.mxu0 %v1676_v19 }
  0x64   : > { %1196 = vmatprep.subr.bf16.mxu1 %v1679_v20 }
  0x66   : > { %1156 = vmatpush1.bf16.msra.mxu0 %v1674_v21 }
  0x67   : > { %1197 = vmatpush1.bf16.msra.mxu1 %v1677_v22  ;;  %1157 = vmatprep.subr.bf16.mxu0 %v1682_v23 }
  0x68   : > { %1198 = vmatprep.subr.bf16.mxu1 %v1685_v24 }
  0x6a   : > { %1158 = vmatpush1.bf16.msra.mxu0 %v1680_v25 }
  0x6b   : > { %1199 = vmatpush1.bf16.msra.mxu1 %v1683_v26  ;;  %1159 = vmatprep.subr.bf16.mxu0 %v1688_v27  ;;  %v282_v26 = vld [vmem:[#allocation2 + $0x18] sm:$0xff] }
  0x6c   : > { %1200 = vmatprep.subr.bf16.mxu1 %v1691_v28 }
  0x6e   : > { %1160 = vmatpush1.bf16.msra.mxu0 %v1686_v29 }
  0x6f   : > { %1201 = vmatpush1.bf16.msra.mxu1 %v1689_v30  ;;  %1161 = vmatprep.subr.bf16.mxu0 %v1694_v31 }
  0x70   : > { %1202 = vmatprep.subr.bf16.mxu1 %v1697_v32 }
  0x72   : > { %1162 = vmatpush1.bf16.msra.mxu0 %v1692_v33 }
  0x73   : > { %1203 = vmatpush1.bf16.msra.mxu1 %v1695_v34  ;;  %1163 = vmatprep.subr.bf16.mxu0 %v1700_v35  ;;  %v1249_v35 = vlaneseq (!%p1526_p7) }
  0x74   : > { %1204 = vmatprep.subr.bf16.mxu1 %v1703_v36 }
  0x75   : > { %v1250_v36 = vshrl.u32 (!%p1526_p7), %v1249_v35, 7 }
  0x76   : > { %1164 = vmatpush1.bf16.msra.mxu0 %v1698_v37  ;;  %v1247_v37 = vld [vmem:[%s2016_s2] sm:$0xf] (!%p1526_p7) }
  0x77   : > { %1205 = vmatpush1.bf16.msra.mxu1 %v1701_v38  ;;  %1165 = vmatprep.subr.bf16.mxu0 %v1706_v39  ;;  %v1251_v39 = vsub.s32 (!%p1526_p7), 0, %v1250_v36 }
  0x78   : > { %1206 = vmatprep.subr.bf16.mxu1 %v1709_v40  ;;  %v1255_v40 = vsub.s32 (!%p1526_p7), 1, %v1250_v36 }
  0x7a   : > { %1166 = vmatpush1.bf16.msra.mxu0 %v1704_v41  ;;  %v1259_v41 = vsub.s32 (!%p1526_p7), 2, %v1250_v36 }
  0x7b   : > { %1207 = vmatpush1.bf16.msra.mxu1 %v1707_v42  ;;  %1167 = vmatprep.subr.bf16.mxu0 %v1712_v43  ;;  %v1263_v42 = vsub.s32 (!%p1526_p7), 3, %v1250_v36 }
  0x7c   : > { %1208 = vmatprep.subr.bf16.mxu1 %v1715_v44 }
  0x7e   : > { %1168 = vmatpush1.bf16.msra.mxu0 %v1710_v45 }
  0x7f   : > { %1209 = vmatpush1.bf16.msra.mxu1 %v1713_v46  ;;  %1169 = vmatprep.subr.bf16.mxu0 %v1718_v47  ;;  %v1252_v46 = vrot.slane (!%p1526_p7), %v1247_v37, %v1251_v39  ;;  %v1273_v47 = vld [vmem:[%s2017_s3] sm:$0xff] (!%p1526_p7) }
  0x80   : > { %1210 = vmatprep.subr.bf16.mxu1 %v1721_v48  ;;  %v1256_v48 = vrot.slane (!%p1526_p7), %v1247_v37, %v1255_v40 }
  0x82   : > { %1170 = vmatpush1.bf16.msra.mxu0 %v1716_v49  ;;  %v1260_v49 = vrot.slane (!%p1526_p7), %v1247_v37, %v1259_v41 }
  0x83   : > { %1211 = vmatpush1.bf16.msra.mxu1 %v1719_v50  ;;  %1171 = vmatprep.subr.bf16.mxu0 %v1724_v51  ;;  %v1264_v50 = vrot.slane (!%p1526_p7), %v1247_v37, %v1263_v42  ;;  %v1274_v51 = vld [vmem:[%s2017_s3 + $0x8] sm:$0xff] (!%p1526_p7) }
  0x84   : > { %1212 = vmatprep.subr.bf16.mxu1 %v1727_v52  ;;  %v1275_v52 = vld [vmem:[%s2017_s3 + $0x10] sm:$0xff] (!%p1526_p7) }
  0x86   : > { %1172 = vmatpush1.bf16.msra.mxu0 %v1722_v53  ;;  %v1276_v53 = vld [vmem:[%s2017_s3 + $0x18] sm:$0xff] (!%p1526_p7) }
  0x87   : > { %1213 = vmatpush1.bf16.msra.mxu1 %v1725_v54  ;;  %1173 = vmatprep.subr.bf16.mxu0 %v1730_v55 }
  0x88   : > { %1214 = vmatprep.subr.bf16.mxu1 %v1733_v56 }
  0x8a   : > { %1174 = vmatpush1.bf16.msra.mxu0 %v1728_v57 }
  0x8b   : > { %1215 = vmatpush1.bf16.msra.mxu1 %v1731_v58  ;;  %1175 = vmatprep.subr.bf16.mxu0 %v1736_v59 }
  0x8c   : > { %1216 = vmatprep.subr.bf16.mxu1 %v1739_v60 }
  0x8e   : > { %1176 = vmatpush1.bf16.msra.mxu0 %v1734_v61 }
  0x8f   : > { %1217 = vmatpush1.bf16.msra.mxu1 %v1737_v62  ;;  %1177 = vmatprep.subr.bf16.mxu0 %v1742_v63 }
  0x90   : > { %1218 = vmatprep.subr.bf16.mxu1 %v1745_v0 }
  0x92   : > { %1178 = vmatpush1.bf16.msra.mxu0 %v1740_v1 }
  0x93   : > { %1219 = vmatpush1.bf16.msra.mxu1 %v1743_v2  ;;  %1179 = vmatprep.subr.bf16.mxu0 %v1748_v3 }
  0x94   : > { %1220 = vmatprep.subr.bf16.mxu1 %v1751_v4 }
  0x96   : > { %1180 = vmatpush1.bf16.msra.mxu0 %v1746_v5 }
  0x97   : > { %1221 = vmatpush1.bf16.msra.mxu1 %v1749_v6 }
  0x99   : > { %1182 = vmatmul.mubr.bf16.vlgmr.msra.gmra.mrb[4].mxu0 %v1906_v7  ;;  %v281_v7 = vld [vmem:[#allocation2 + $0x10] sm:$0xff] }
  0x9a   : > { %1223 = vmatmul.mubr.bf16.vlgmr.msra.gmra.mrb[4].mxu1 %v1908_v8 }
 0x12c   : > { %v1101_v9 = vpop.f32.mrb[0].mxu0 }
 0x12d   : > { %v1142_v11 = vpop.f32.mrb[0].mxu1  ;;  %v1103_v13 = vpop.f32.mrb[1].mxu0 }
 0x12e   : > { %v1143_v12 = vadd.f32 %v1142_v11, %v1101_v9  ;;  %v1144_v15 = vpop.f32.mrb[1].mxu1  ;;  %v1105_v17 = vpop.f32.mrb[2].mxu0 }
 0x12f   : > { %v1145_v16 = vadd.f32 %v1144_v15, %v1103_v13  ;;  %v1146_v18 = vpop.f32.mrb[2].mxu1  ;;  %v1106_v20 = vpop.f32.mrb[3].mxu0 }
 0x130   : > { %v1231_v19 = vadd.f32 %v1143_v12, %v279_v10  ;;  %v1147_v21 = vpop.f32.mrb[3].mxu1 }
 0x131   : > { %v1232_v22 = vadd.f32 %v1145_v16, %v280_v14 }
 0x132   : > { %1235 = vst [vmem:[#allocation2] sm:$0xff] %v1231_v19 }
 0x133   : > { %1236 = vst [vmem:[#allocation2 + $0x8] sm:$0xff] %v1232_v22 }
 0x139   : > { %v1243_v38 = vld [vmem:[#allocation2] sm:$0xff] (!%p1526_p7) }
 0x13a   : > { %v1244_v43 = vld [vmem:[#allocation2 + $0x8] sm:$0xff] (!%p1526_p7)  ;;  %v1269_v54 = vadd.f32 (!%p1526_p7), %v1252_v46, %v1243_v38 }
 0x13b   : > { %v1270_v55 = vadd.f32 (!%p1526_p7), %v1256_v48, %v1244_v43 }
 0x13c   : > { %v1277_v58 = vadd.f32 (!%p1526_p7), %v1273_v47, %v1269_v54 }
 0x13d   : > { %v1278_v59 = vadd.f32 (!%p1526_p7), %v1274_v51, %v1270_v55 }
 0x13e   : > { %v1281_v62 = vmax.f32 (!%p1526_p7), %v1277_v58, 0.0 }
 0x13f   : > { %v1282_v63 = vmax.f32 (!%p1526_p7), %v1278_v59, 0.0 }
 0x140   : > { %1285 = vst [vmem:[%s2018_s4] sm:$0xff] (!%p1526_p7), %v1281_v62 }
 0x141   : > { %1286 = vst [vmem:[%s2018_s4 + $0x8] sm:$0xff] (!%p1526_p7), %v1282_v63 }
 0x16c   : > { %v1183_v23 = vpop.f32.mrb[4].mxu0 }
 0x16d   : > { %v1224_v24 = vpop.f32.mrb[4].mxu1  ;;  %v1185_v25 = vpop.f32.mrb[5].mxu0  ;;  %1242 = sbr.rel (%p1526_p7) target bundleno = 386 (0x182), region = 44 }
 0x16e   : > { %v1225_v8 = vadd.f32 %v1224_v24, %v1183_v23  ;;  %v1226_v27 = vpop.f32.mrb[5].mxu1  ;;  %v1187_v29 = vpop.f32.mrb[6].mxu0 }
 0x16f   : > { %v1227_v28 = vadd.f32 %v1226_v27, %v1185_v25  ;;  %v1228_v30 = vpop.f32.mrb[6].mxu1  ;;  %v1188_v32 = vpop.f32.mrb[7].mxu0 }
 0x170   : > { %v1233_v31 = vadd.f32 %v1225_v8, %v281_v7  ;;  %v1229_v33 = vpop.f32.mrb[7].mxu1 }
 0x171   : > { %v1234_v34 = vadd.f32 %v1227_v28, %v282_v26 }
 0x172   : > { %1237 = vst [vmem:[#allocation2 + $0x10] sm:$0xff] %v1233_v31 }
 0x173   : > { %1238 = vst [vmem:[#allocation2 + $0x18] sm:$0xff] %v1234_v34 }
 0x179   : > { %v1245_v44 = vld [vmem:[#allocation2 + $0x10] sm:$0xff] }
 0x17a   : > { %v1246_v45 = vld [vmem:[#allocation2 + $0x18] sm:$0xff]  ;;  %v1271_v56 = vadd.f32 %v1260_v49, %v1245_v44 }
 0x17b   : > { %v1272_v57 = vadd.f32 %v1264_v50, %v1246_v45 }
 0x17c   : > { %v1279_v60 = vadd.f32 %v1275_v52, %v1271_v56 }
 0x17d   : > { %v1280_v61 = vadd.f32 %v1276_v53, %v1272_v57 }
 0x17e   : > { %v1283_v0 = vmax.f32 %v1279_v60, 0.0 }
 0x17f   : > { %v1284_v1 = vmax.f32 %v1280_v61, 0.0 }
 0x180   : > { %1287 = vst [vmem:[%s2018_s4 + $0x10] sm:$0xff] %v1283_v0 }
 0x181   : > { %1288 = vst [vmem:[%s2018_s4 + $0x18] sm:$0xff] %v1284_v1 }
 0x182 PF: > { %s14_s17 = sadd.s32 1, %s1774_s17   ;;  %s2019_s15 = smov %s1770_s16 }
 0x183   : > { %p11_p8 = scmp.ge.s32.totalorder %s14_s17, 11   ;;  %s2020_s16 = smov %s2022_s18 }
 0x185   :  { %13 = sbr.rel (!%p11_p8) target bundleno = 2 (0x2), region = 80 }

// kernel: _forward.69
= control target key start
LH: loop header
LB: loop body
LE: loop exit
PB: predicated region body
PF: predicated region fallthrough
CT: control target
= control target key end

     0   :  { %s2468_s18 = smov 0   ;;  %s2470_s19 = smov 0   ;;  %s2863_s0 = inlined_call_operand.vmem [shape: bf16[8,4608], index: 0, kind: input, shape index: {}]   ;;  %s2864_s1 = inlined_call_operand.vmem [shape: bf16[4608,512], index: 1, kind: input, shape index: {}]   ;;  %s2865_s2 = inlined_call_operand.vmem [shape: f32[1,512], index: 2, kind: input, shape index: {}]   ;;  %s2866_s3 = inlined_call_operand.vmem [shape: bf16[8,256], index: 3, kind: input, shape index: {}]   ;;  %s2867_s4 = inlined_call_operand.vmem [shape: bf16[256,512], index: 4, kind: input, shape index: {}]   ;;  %s2868_s5 = inlined_call_operand.vmem [shape: f32[8,512], index: 5, kind: output, shape index: {}]  }
   0x1   :  { %s2472_s20 = smov 0  }
   0x2 LB: > { %s24_s21 = sadd.s32 1, %s2431_s19  ;;  %p1884_p0 = scmp.ge.s32.totalorder %s2435_s20, 1  ;;  %s2435_s20 = sphi %s2472_s20, %s15_s20   ;;  %s2431_s19 = sphi %s2470_s19, %s2870_s19   ;;  %s2427_s18 = sphi %s2468_s18, %s2869_s18  }
   0x3   : > { %p25_p1 = scmp.ge.s32.totalorder %s24_s21, 9  ;;  %p228_p2 = scmp.lt.s32.totalorder %s2435_s20, 10 }
   0x5   : > { %s2872_s21 = smov (%p25_p1, %s24_s21), 0  ;;  %p229_p3 = pnand %p1884_p0, %p228_p2 }
   0x6   : > { %s1885_s22 = sshll.u32 (!%p229_p3), %s2427_s18, 2  ;;  %s1887_s23 = sshll.u32 (!%p229_p3), %s2427_s18, 6 }
   0x7   : > { %232 = sbr.rel (%p229_p3) target bundleno = 603 (0x25b), region = 40  ;;  %p274_p4 = scmp.lt.s32.totalorder (!%p229_p3), %s1885_s22, 35 }
   0x8   : > { %p282_p5 = scmp.lt.s32.totalorder (!%p229_p3), %s1887_s23, 575  ;;  %p1890_p6 = scmp.ne.s32.totalorder (!%p229_p3), %s2427_s18, 0 }
   0xe   : > { %s2874_s22 = smov (!%p274_p4, %s1885_s22), 35  ;;  %s2876_s23 = smov (!%p282_p5, %s1887_s23), 575 }
   0xf   : > { %s1886_s24 = sshll.u32 %s2874_s22, 2  ;;  %s2093_s28 = sshll.u32 %s2876_s23, 4  ;;  %v2437_v0 = vmov (!%p1890_p6), 0.0  }
  0x10   : > { %s2493_s27 = scalar_lea.vmem %s2863_s0, %s1886_s24  ;;  %s2498_s6 = scalar_lea.vmem %s2864_s1, %s2093_s28  ;;  %302 = vst [vmem:[#allocation2] sm:$0xff] (!%p1890_p6), %v2437_v0  ;;  %303 = vst [vmem:[#allocation2 + $0x8] sm:$0xff] (!%p1890_p6), %v2437_v0 }
  0x11   : > { %301 = sbr.rel (%p1890_p6) target bundleno = 24 (0x18), region = 44  ;;  %304 = vst [vmem:[#allocation2 + $0x10] sm:$0xff] (!%p1890_p6), %v2437_v0  ;;  %305 = vst [vmem:[#allocation2 + $0x18] sm:$0xff] (!%p1890_p6), %v2437_v0 }
  0x18 PF: > { %v2119_v1 = vld [vmem:[%s2498_s6 + $0x4] ss:$16 sps:$4 sm:$0xff]   ;;  %v2123_v3 = vld [vmem:[%s2498_s6] ss:$16 sps:$4 sm:$0xff]   ;;  %v311_v49 = vld [vmem:[%s2493_s27 + $0x8] sm:$0xff]  ;;  %p2023_p7 = scmp.ne.s32.totalorder %s2427_s18, 8 }
  0x19   : > { %v2121_v2 = vld [vmem:[%s2498_s6 + $0x204] ss:$16 sps:$4 sm:$0xff]   ;;  %1094 = vmatprep.subr.bf16.mxu0 %v2119_v1  ;;  %v2124_v4 = vld [vmem:[%s2498_s6 + $0x200] ss:$16 sps:$4 sm:$0xff]   ;;  %v1894_v52 = vcombine.high %v311_v49, %v311_v49 }
  0x1a   : > { %1135 = vmatprep.subr.bf16.mxu1 %v2121_v2  ;;  %v2125_v5 = vld [vmem:[%s2498_s6 + $0x24] ss:$16 sps:$4 sm:$0xff]   ;;  %1095 = vmatpush1.bf16.msra.mxu0 %v2123_v3  ;;  %v2129_v7 = vld [vmem:[%s2498_s6 + $0x20] ss:$16 sps:$4 sm:$0xff]  }
  0x1b   : > { %1136 = vmatpush1.bf16.msra.mxu1 %v2124_v4  ;;  %v2127_v6 = vld [vmem:[%s2498_s6 + $0x224] ss:$16 sps:$4 sm:$0xff]   ;;  %1096 = vmatprep.subr.bf16.mxu0 %v2125_v5  ;;  %v2130_v8 = vld [vmem:[%s2498_s6 + $0x220] ss:$16 sps:$4 sm:$0xff]   ;;  %v2221_v5 = vld [vmem:[%s2498_s6 + $0xc] ss:$16 sps:$4 sm:$0xff]  }
  0x1c   : > { %1137 = vmatprep.subr.bf16.mxu1 %v2127_v6  ;;  %v2131_v9 = vld [vmem:[%s2498_s6 + $0x44] ss:$16 sps:$4 sm:$0xff]   ;;  %v2135_v11 = vld [vmem:[%s2498_s6 + $0x40] ss:$16 sps:$4 sm:$0xff]   ;;  %1167 = vmatprep.mubr.bf16.mxu1 %v1894_v52  ;;  %v2224_v6 = vld [vmem:[%s2498_s6 + $0x20c] ss:$16 sps:$4 sm:$0xff]  }
  0x1d   : > { %v2133_v10 = vld [vmem:[%s2498_s6 + $0x244] ss:$16 sps:$4 sm:$0xff]   ;;  %v2136_v12 = vld [vmem:[%s2498_s6 + $0x240] ss:$16 sps:$4 sm:$0xff]  }
  0x1e   : > { %1097 = vmatpush1.bf16.msra.mxu0 %v2129_v7  ;;  %v2137_v13 = vld [vmem:[%s2498_s6 + $0x64] ss:$16 sps:$4 sm:$0xff]   ;;  %v2141_v15 = vld [vmem:[%s2498_s6 + $0x60] ss:$16 sps:$4 sm:$0xff]  }
  0x1f   : > { %1138 = vmatpush1.bf16.msra.mxu1 %v2130_v8  ;;  %1098 = vmatprep.subr.bf16.mxu0 %v2131_v9  ;;  %v2139_v14 = vld [vmem:[%s2498_s6 + $0x264] ss:$16 sps:$4 sm:$0xff]   ;;  %v2142_v16 = vld [vmem:[%s2498_s6 + $0x260] ss:$16 sps:$4 sm:$0xff]   ;;  %v2574_v8 = vcombine.low %v311_v49, %v311_v49  ;;  %v2219_v9 = vld [vmem:[%s2498_s6 + $0x8] ss:$16 sps:$4 sm:$0xff]  }
  0x20   : > { %1139 = vmatprep.subr.bf16.mxu1 %v2133_v10  ;;  %v2143_v17 = vld [vmem:[%s2498_s6 + $0x84] ss:$16 sps:$4 sm:$0xff]   ;;  %v2147_v19 = vld [vmem:[%s2498_s6 + $0x80] ss:$16 sps:$4 sm:$0xff]   ;;  %v2222_v10 = vld [vmem:[%s2498_s6 + $0x208] ss:$16 sps:$4 sm:$0xff]  }
  0x21   : > { %v2145_v18 = vld [vmem:[%s2498_s6 + $0x284] ss:$16 sps:$4 sm:$0xff]   ;;  %v2148_v20 = vld [vmem:[%s2498_s6 + $0x280] ss:$16 sps:$4 sm:$0xff]   ;;  %v2279_v49 = vld [vmem:[%s2498_s6 + $0x148] ss:$16 sps:$4 sm:$0xff]  }
  0x22   : > { %1099 = vmatpush1.bf16.msra.mxu0 %v2135_v11  ;;  %v2149_v21 = vld [vmem:[%s2498_s6 + $0xa4] ss:$16 sps:$4 sm:$0xff]   ;;  %v2153_v23 = vld [vmem:[%s2498_s6 + $0xa0] ss:$16 sps:$4 sm:$0xff]   ;;  %v2227_v11 = vld [vmem:[%s2498_s6 + $0x2c] ss:$16 sps:$4 sm:$0xff]  }
  0x23   : > { %1140 = vmatpush1.bf16.msra.mxu1 %v2136_v12  ;;  %1100 = vmatprep.subr.bf16.mxu0 %v2137_v13  ;;  %v2151_v22 = vld [vmem:[%s2498_s6 + $0x2a4] ss:$16 sps:$4 sm:$0xff]   ;;  %v2154_v24 = vld [vmem:[%s2498_s6 + $0x2a0] ss:$16 sps:$4 sm:$0xff]   ;;  %v2230_v12 = vld [vmem:[%s2498_s6 + $0x22c] ss:$16 sps:$4 sm:$0xff]  }
  0x24   : > { %1141 = vmatprep.subr.bf16.mxu1 %v2139_v14  ;;  %v2155_v25 = vld [vmem:[%s2498_s6 + $0xc4] ss:$16 sps:$4 sm:$0xff]   ;;  %v2159_v27 = vld [vmem:[%s2498_s6 + $0xc0] ss:$16 sps:$4 sm:$0xff]   ;;  %v2225_v13 = vld [vmem:[%s2498_s6 + $0x28] ss:$16 sps:$4 sm:$0xff]  }
  0x25   : > { %v2157_v26 = vld [vmem:[%s2498_s6 + $0x2c4] ss:$16 sps:$4 sm:$0xff]   ;;  %v2160_v28 = vld [vmem:[%s2498_s6 + $0x2c0] ss:$16 sps:$4 sm:$0xff]   ;;  %v2228_v14 = vld [vmem:[%s2498_s6 + $0x228] ss:$16 sps:$4 sm:$0xff]  }
  0x26   : > { %1101 = vmatpush1.bf16.msra.mxu0 %v2141_v15  ;;  %v2161_v29 = vld [vmem:[%s2498_s6 + $0xe4] ss:$16 sps:$4 sm:$0xff]   ;;  %v2165_v31 = vld [vmem:[%s2498_s6 + $0xe0] ss:$16 sps:$4 sm:$0xff]   ;;  %v2233_v15 = vld [vmem:[%s2498_s6 + $0x4c] ss:$16 sps:$4 sm:$0xff]  }
  0x27   : > { %1142 = vmatpush1.bf16.msra.mxu1 %v2142_v16  ;;  %1102 = vmatprep.subr.bf16.mxu0 %v2143_v17  ;;  %v2163_v30 = vld [vmem:[%s2498_s6 + $0x2e4] ss:$16 sps:$4 sm:$0xff]   ;;  %v2166_v32 = vld [vmem:[%s2498_s6 + $0x2e0] ss:$16 sps:$4 sm:$0xff]   ;;  %v2236_v16 = vld [vmem:[%s2498_s6 + $0x24c] ss:$16 sps:$4 sm:$0xff]  }
  0x28   : > { %1143 = vmatprep.subr.bf16.mxu1 %v2145_v18  ;;  %v2167_v33 = vld [vmem:[%s2498_s6 + $0x104] ss:$16 sps:$4 sm:$0xff]   ;;  %v2171_v35 = vld [vmem:[%s2498_s6 + $0x100] ss:$16 sps:$4 sm:$0xff]   ;;  %v2231_v17 = vld [vmem:[%s2498_s6 + $0x48] ss:$16 sps:$4 sm:$0xff]  }
  0x29   : > { %v2169_v34 = vld [vmem:[%s2498_s6 + $0x304] ss:$16 sps:$4 sm:$0xff]   ;;  %v2172_v36 = vld [vmem:[%s2498_s6 + $0x300] ss:$16 sps:$4 sm:$0xff]   ;;  %v2234_v18 = vld [vmem:[%s2498_s6 + $0x248] ss:$16 sps:$4 sm:$0xff]  }
  0x2a   : > { %1103 = vmatpush1.bf16.msra.mxu0 %v2147_v19  ;;  %v2173_v37 = vld [vmem:[%s2498_s6 + $0x124] ss:$16 sps:$4 sm:$0xff]   ;;  %v2177_v39 = vld [vmem:[%s2498_s6 + $0x120] ss:$16 sps:$4 sm:$0xff]   ;;  %v2239_v19 = vld [vmem:[%s2498_s6 + $0x6c] ss:$16 sps:$4 sm:$0xff]  }
  0x2b   : > { %1144 = vmatpush1.bf16.msra.mxu1 %v2148_v20  ;;  %1104 = vmatprep.subr.bf16.mxu0 %v2149_v21  ;;  %v2175_v38 = vld [vmem:[%s2498_s6 + $0x324] ss:$16 sps:$4 sm:$0xff]   ;;  %v2178_v40 = vld [vmem:[%s2498_s6 + $0x320] ss:$16 sps:$4 sm:$0xff]   ;;  %v2242_v20 = vld [vmem:[%s2498_s6 + $0x26c] ss:$16 sps:$4 sm:$0xff]  }
  0x2c   : > { %1145 = vmatprep.subr.bf16.mxu1 %v2151_v22  ;;  %v2179_v41 = vld [vmem:[%s2498_s6 + $0x144] ss:$16 sps:$4 sm:$0xff]   ;;  %v2183_v43 = vld [vmem:[%s2498_s6 + $0x140] ss:$16 sps:$4 sm:$0xff]   ;;  %v2237_v21 = vld [vmem:[%s2498_s6 + $0x68] ss:$16 sps:$4 sm:$0xff]  }
  0x2d   : > { %v2181_v42 = vld [vmem:[%s2498_s6 + $0x344] ss:$16 sps:$4 sm:$0xff]   ;;  %v2184_v44 = vld [vmem:[%s2498_s6 + $0x340] ss:$16 sps:$4 sm:$0xff]   ;;  %v2240_v22 = vld [vmem:[%s2498_s6 + $0x268] ss:$16 sps:$4 sm:$0xff]  }
  0x2e   : > { %1105 = vmatpush1.bf16.msra.mxu0 %v2153_v23  ;;  %v2185_v45 = vld [vmem:[%s2498_s6 + $0x164] ss:$16 sps:$4 sm:$0xff]   ;;  %v2189_v50 = vld [vmem:[%s2498_s6 + $0x160] ss:$16 sps:$4 sm:$0xff]   ;;  %v2245_v23 = vld [vmem:[%s2498_s6 + $0x8c] ss:$16 sps:$4 sm:$0xff]  }
  0x2f   : > { %1146 = vmatpush1.bf16.msra.mxu1 %v2154_v24  ;;  %1106 = vmatprep.subr.bf16.mxu0 %v2155_v25  ;;  %v2187_v46 = vld [vmem:[%s2498_s6 + $0x364] ss:$16 sps:$4 sm:$0xff]   ;;  %v2190_v51 = vld [vmem:[%s2498_s6 + $0x360] ss:$16 sps:$4 sm:$0xff]   ;;  %v2248_v24 = vld [vmem:[%s2498_s6 + $0x28c] ss:$16 sps:$4 sm:$0xff]  }
  0x30   : > { %1147 = vmatprep.subr.bf16.mxu1 %v2157_v26  ;;  %v310_v47 = vld [vmem:[%s2493_s27] sm:$0xff]  ;;  %v2243_v25 = vld [vmem:[%s2498_s6 + $0x88] ss:$16 sps:$4 sm:$0xff]  }
  0x31   : > { %v2548_v48 = vcombine.high %v310_v47, %v310_v47  ;;  %v2191_v53 = vld [vmem:[%s2498_s6 + $0x184] ss:$16 sps:$4 sm:$0xff]   ;;  %v2195_v55 = vld [vmem:[%s2498_s6 + $0x180] ss:$16 sps:$4 sm:$0xff]   ;;  %v2572_v7 = vcombine.low %v310_v47, %v310_v47  ;;  %v2246_v26 = vld [vmem:[%s2498_s6 + $0x288] ss:$16 sps:$4 sm:$0xff]  }
  0x32   : > { %1107 = vmatpush1.bf16.msra.mxu0 %v2159_v27  ;;  %v2193_v54 = vld [vmem:[%s2498_s6 + $0x384] ss:$16 sps:$4 sm:$0xff]   ;;  %v2196_v56 = vld [vmem:[%s2498_s6 + $0x380] ss:$16 sps:$4 sm:$0xff]   ;;  %v2251_v27 = vld [vmem:[%s2498_s6 + $0xac] ss:$16 sps:$4 sm:$0xff]  }
  0x33   : > { %1148 = vmatpush1.bf16.msra.mxu1 %v2160_v28  ;;  %1108 = vmatprep.subr.bf16.mxu0 %v2161_v29  ;;  %v2197_v57 = vld [vmem:[%s2498_s6 + $0x1a4] ss:$16 sps:$4 sm:$0xff]   ;;  %v2201_v59 = vld [vmem:[%s2498_s6 + $0x1a0] ss:$16 sps:$4 sm:$0xff]   ;;  %v2254_v28 = vld [vmem:[%s2498_s6 + $0x2ac] ss:$16 sps:$4 sm:$0xff]  }
  0x34   : > { %1149 = vmatprep.subr.bf16.mxu1 %v2163_v30  ;;  %1126 = vmatprep.mubr.bf16.mxu0 %v2548_v48  ;;  %v2199_v58 = vld [vmem:[%s2498_s6 + $0x3a4] ss:$16 sps:$4 sm:$0xff]   ;;  %v2202_v60 = vld [vmem:[%s2498_s6 + $0x3a0] ss:$16 sps:$4 sm:$0xff]   ;;  %v2249_v29 = vld [vmem:[%s2498_s6 + $0xa8] ss:$16 sps:$4 sm:$0xff]  }
  0x35   : > { %v2203_v61 = vld [vmem:[%s2498_s6 + $0x1c4] ss:$16 sps:$4 sm:$0xff]   ;;  %v2207_v63 = vld [vmem:[%s2498_s6 + $0x1c0] ss:$16 sps:$4 sm:$0xff]   ;;  %v2252_v30 = vld [vmem:[%s2498_s6 + $0x2a8] ss:$16 sps:$4 sm:$0xff]  }
  0x36   : > { %1109 = vmatpush1.bf16.msra.mxu0 %v2165_v31  ;;  %v2205_v62 = vld [vmem:[%s2498_s6 + $0x3c4] ss:$16 sps:$4 sm:$0xff]   ;;  %v2208_v0 = vld [vmem:[%s2498_s6 + $0x3c0] ss:$16 sps:$4 sm:$0xff]   ;;  %v2257_v31 = vld [vmem:[%s2498_s6 + $0xcc] ss:$16 sps:$4 sm:$0xff]  }
  0x37   : > { %1150 = vmatpush1.bf16.msra.mxu1 %v2166_v32  ;;  %1110 = vmatprep.subr.bf16.mxu0 %v2167_v33  ;;  %v2209_v1 = vld [vmem:[%s2498_s6 + $0x1e4] ss:$16 sps:$4 sm:$0xff]   ;;  %v2213_v3 = vld [vmem:[%s2498_s6 + $0x1e0] ss:$16 sps:$4 sm:$0xff]   ;;  %v2260_v32 = vld [vmem:[%s2498_s6 + $0x2cc] ss:$16 sps:$4 sm:$0xff]  }
  0x38   : > { %1151 = vmatprep.subr.bf16.mxu1 %v2169_v34  ;;  %v2211_v2 = vld [vmem:[%s2498_s6 + $0x3e4] ss:$16 sps:$4 sm:$0xff]   ;;  %v2214_v4 = vld [vmem:[%s2498_s6 + $0x3e0] ss:$16 sps:$4 sm:$0xff]   ;;  %v2255_v33 = vld [vmem:[%s2498_s6 + $0xc8] ss:$16 sps:$4 sm:$0xff]  }
  0x39   : > { %v2258_v34 = vld [vmem:[%s2498_s6 + $0x2c8] ss:$16 sps:$4 sm:$0xff]   ;;  %v2281_v47 = vld [vmem:[%s2498_s6 + $0x14c] ss:$16 sps:$4 sm:$0xff]  }
  0x3a   : > { %1111 = vmatpush1.bf16.msra.mxu0 %v2171_v35  ;;  %v2263_v35 = vld [vmem:[%s2498_s6 + $0xec] ss:$16 sps:$4 sm:$0xff]  }
  0x3b   : > { %1152 = vmatpush1.bf16.msra.mxu1 %v2172_v36  ;;  %1112 = vmatprep.subr.bf16.mxu0 %v2173_v37  ;;  %v2266_v36 = vld [vmem:[%s2498_s6 + $0x2ec] ss:$16 sps:$4 sm:$0xff]   ;;  %v2261_v37 = vld [vmem:[%s2498_s6 + $0xe8] ss:$16 sps:$4 sm:$0xff]  }
  0x3c   : > { %1153 = vmatprep.subr.bf16.mxu1 %v2175_v38  ;;  %v2264_v38 = vld [vmem:[%s2498_s6 + $0x2e8] ss:$16 sps:$4 sm:$0xff]  }
  0x3e   : > { %1113 = vmatpush1.bf16.msra.mxu0 %v2177_v39  ;;  %v2269_v39 = vld [vmem:[%s2498_s6 + $0x10c] ss:$16 sps:$4 sm:$0xff]  }
  0x3f   : > { %1154 = vmatpush1.bf16.msra.mxu1 %v2178_v40  ;;  %1114 = vmatprep.subr.bf16.mxu0 %v2179_v41  ;;  %v2272_v40 = vld [vmem:[%s2498_s6 + $0x30c] ss:$16 sps:$4 sm:$0xff]   ;;  %v2267_v41 = vld [vmem:[%s2498_s6 + $0x108] ss:$16 sps:$4 sm:$0xff]  }
  0x40   : > { %1155 = vmatprep.subr.bf16.mxu1 %v2181_v42  ;;  %v2270_v42 = vld [vmem:[%s2498_s6 + $0x308] ss:$16 sps:$4 sm:$0xff]  }
  0x42   : > { %1115 = vmatpush1.bf16.msra.mxu0 %v2183_v43  ;;  %v2275_v43 = vld [vmem:[%s2498_s6 + $0x12c] ss:$16 sps:$4 sm:$0xff]  }
  0x43   : > { %1156 = vmatpush1.bf16.msra.mxu1 %v2184_v44  ;;  %1116 = vmatprep.subr.bf16.mxu0 %v2185_v45  ;;  %v2278_v44 = vld [vmem:[%s2498_s6 + $0x32c] ss:$16 sps:$4 sm:$0xff]   ;;  %v2273_v45 = vld [vmem:[%s2498_s6 + $0x128] ss:$16 sps:$4 sm:$0xff]  }
  0x44   : > { %1157 = vmatprep.subr.bf16.mxu1 %v2187_v46  ;;  %v2276_v46 = vld [vmem:[%s2498_s6 + $0x328] ss:$16 sps:$4 sm:$0xff]  }
  0x46   : > { %1117 = vmatpush1.bf16.msra.mxu0 %v2189_v50  ;;  %v2282_v50 = vld [vmem:[%s2498_s6 + $0x348] ss:$16 sps:$4 sm:$0xff]  }
  0x47   : > { %1158 = vmatpush1.bf16.msra.mxu1 %v2190_v51  ;;  %1118 = vmatprep.subr.bf16.mxu0 %v2191_v53  ;;  %v2287_v51 = vld [vmem:[%s2498_s6 + $0x16c] ss:$16 sps:$4 sm:$0xff]   ;;  %v2285_v53 = vld [vmem:[%s2498_s6 + $0x168] ss:$16 sps:$4 sm:$0xff]  }
  0x48   : > { %1159 = vmatprep.subr.bf16.mxu1 %v2193_v54  ;;  %v2288_v54 = vld [vmem:[%s2498_s6 + $0x368] ss:$16 sps:$4 sm:$0xff]  }
  0x4a   : > { %1119 = vmatpush1.bf16.msra.mxu0 %v2195_v55  ;;  %v2293_v55 = vld [vmem:[%s2498_s6 + $0x18c] ss:$16 sps:$4 sm:$0xff]  }
  0x4b   : > { %1160 = vmatpush1.bf16.msra.mxu1 %v2196_v56  ;;  %1120 = vmatprep.subr.bf16.mxu0 %v2197_v57  ;;  %v2296_v56 = vld [vmem:[%s2498_s6 + $0x38c] ss:$16 sps:$4 sm:$0xff]   ;;  %v2291_v57 = vld [vmem:[%s2498_s6 + $0x188] ss:$16 sps:$4 sm:$0xff]  }
  0x4c   : > { %1161 = vmatprep.subr.bf16.mxu1 %v2199_v58  ;;  %v2294_v58 = vld [vmem:[%s2498_s6 + $0x388] ss:$16 sps:$4 sm:$0xff]  }
  0x4e   : > { %1121 = vmatpush1.bf16.msra.mxu0 %v2201_v59  ;;  %v2299_v59 = vld [vmem:[%s2498_s6 + $0x1ac] ss:$16 sps:$4 sm:$0xff]  }
  0x4f   : > { %1162 = vmatpush1.bf16.msra.mxu1 %v2202_v60  ;;  %1122 = vmatprep.subr.bf16.mxu0 %v2203_v61  ;;  %v2302_v60 = vld [vmem:[%s2498_s6 + $0x3ac] ss:$16 sps:$4 sm:$0xff]   ;;  %v2297_v61 = vld [vmem:[%s2498_s6 + $0x1a8] ss:$16 sps:$4 sm:$0xff]  }
  0x50   : > { %1163 = vmatprep.subr.bf16.mxu1 %v2205_v62  ;;  %v2300_v62 = vld [vmem:[%s2498_s6 + $0x3a8] ss:$16 sps:$4 sm:$0xff]  }
  0x52   : > { %1123 = vmatpush1.bf16.msra.mxu0 %v2207_v63  ;;  %v2305_v63 = vld [vmem:[%s2498_s6 + $0x1cc] ss:$16 sps:$4 sm:$0xff]  }
  0x53   : > { %1164 = vmatpush1.bf16.msra.mxu1 %v2208_v0  ;;  %1124 = vmatprep.subr.bf16.mxu0 %v2209_v1  ;;  %v2308_v0 = vld [vmem:[%s2498_s6 + $0x3cc] ss:$16 sps:$4 sm:$0xff]   ;;  %v2303_v1 = vld [vmem:[%s2498_s6 + $0x1c8] ss:$16 sps:$4 sm:$0xff]  }
  0x54   : > { %1165 = vmatprep.subr.bf16.mxu1 %v2211_v2  ;;  %v2306_v2 = vld [vmem:[%s2498_s6 + $0x3c8] ss:$16 sps:$4 sm:$0xff]  }
  0x56   : > { %1125 = vmatpush1.bf16.msra.mxu0 %v2213_v3  ;;  %v2311_v3 = vld [vmem:[%s2498_s6 + $0x1ec] ss:$16 sps:$4 sm:$0xff]  }
  0x57   : > { %1166 = vmatpush1.bf16.msra.mxu1 %v2214_v4  ;;  %1176 = vmatprep.subr.bf16.mxu0 %v2221_v5  ;;  %v2314_v4 = vld [vmem:[%s2498_s6 + $0x3ec] ss:$16 sps:$4 sm:$0xff]   ;;  %v2309_v5 = vld [vmem:[%s2498_s6 + $0x1e8] ss:$16 sps:$4 sm:$0xff]  }
  0x58   : > { %1217 = vmatprep.subr.bf16.mxu1 %v2224_v6  ;;  %v2312_v6 = vld [vmem:[%s2498_s6 + $0x3e8] ss:$16 sps:$4 sm:$0xff]  }
  0x59   : > { %1127 = vmatmul.mubr.bf16.vlgmr.msra.gmra.mrb[0].mxu0 %v2572_v7 }
  0x5a   : > { %1168 = vmatmul.mubr.bf16.vlgmr.msra.gmra.mrb[0].mxu1 %v2574_v8  ;;  %1177 = vmatpush1.bf16.msra.mxu0 %v2219_v9 }
  0x5b   : > { %1218 = vmatpush1.bf16.msra.mxu1 %v2222_v10  ;;  %1178 = vmatprep.subr.bf16.mxu0 %v2227_v11  ;;  %v306_v10 = vld [vmem:[#allocation2] sm:$0xff] }
  0x5c   : > { %1219 = vmatprep.subr.bf16.mxu1 %v2230_v12  ;;  %1208 = vmatprep.mubr.bf16.mxu0 %v2548_v48  ;;  %v2284_v48 = vld [vmem:[%s2498_s6 + $0x34c] ss:$16 sps:$4 sm:$0xff]  }
  0x5d   : > { %1249 = vmatprep.mubr.bf16.mxu1 %v1894_v52  ;;  %v2290_v52 = vld [vmem:[%s2498_s6 + $0x36c] ss:$16 sps:$4 sm:$0xff]  }
  0x5e   : > { %1179 = vmatpush1.bf16.msra.mxu0 %v2225_v13 }
  0x5f   : > { %1220 = vmatpush1.bf16.msra.mxu1 %v2228_v14  ;;  %1180 = vmatprep.subr.bf16.mxu0 %v2233_v15  ;;  %v307_v14 = vld [vmem:[#allocation2 + $0x8] sm:$0xff] }
  0x60   : > { %1221 = vmatprep.subr.bf16.mxu1 %v2236_v16 }
  0x62   : > { %1181 = vmatpush1.bf16.msra.mxu0 %v2231_v17 }
  0x63   : > { %1222 = vmatpush1.bf16.msra.mxu1 %v2234_v18  ;;  %1182 = vmatprep.subr.bf16.mxu0 %v2239_v19 }
  0x64   : > { %1223 = vmatprep.subr.bf16.mxu1 %v2242_v20 }
  0x66   : > { %1183 = vmatpush1.bf16.msra.mxu0 %v2237_v21 }
  0x67   : > { %1224 = vmatpush1.bf16.msra.mxu1 %v2240_v22  ;;  %1184 = vmatprep.subr.bf16.mxu0 %v2245_v23 }
  0x68   : > { %1225 = vmatprep.subr.bf16.mxu1 %v2248_v24 }
  0x6a   : > { %1185 = vmatpush1.bf16.msra.mxu0 %v2243_v25 }
  0x6b   : > { %1226 = vmatpush1.bf16.msra.mxu1 %v2246_v26  ;;  %1186 = vmatprep.subr.bf16.mxu0 %v2251_v27  ;;  %v309_v26 = vld [vmem:[#allocation2 + $0x18] sm:$0xff] }
  0x6c   : > { %1227 = vmatprep.subr.bf16.mxu1 %v2254_v28 }
  0x6e   : > { %1187 = vmatpush1.bf16.msra.mxu0 %v2249_v29 }
  0x6f   : > { %1228 = vmatpush1.bf16.msra.mxu1 %v2252_v30  ;;  %1188 = vmatprep.subr.bf16.mxu0 %v2257_v31 }
  0x70   : > { %1229 = vmatprep.subr.bf16.mxu1 %v2260_v32 }
  0x72   : > { %1189 = vmatpush1.bf16.msra.mxu0 %v2255_v33 }
  0x73   : > { %1230 = vmatpush1.bf16.msra.mxu1 %v2258_v34  ;;  %1190 = vmatprep.subr.bf16.mxu0 %v2263_v35  ;;  %v2315_v35 = vld [vmem:[%s2867_s4 + $0x4] ss:$16 sps:$4 sm:$0xff] (!%p2023_p7)  }
  0x74   : > { %1231 = vmatprep.subr.bf16.mxu1 %v2266_v36  ;;  %v2317_v36 = vld [vmem:[%s2867_s4 + $0xc] ss:$16 sps:$4 sm:$0xff] (!%p2023_p7)  }
  0x76   : > { %1191 = vmatpush1.bf16.msra.mxu0 %v2261_v37  ;;  %v2319_v37 = vld [vmem:[%s2867_s4] ss:$16 sps:$4 sm:$0xff] (!%p2023_p7)  }
  0x77   : > { %1232 = vmatpush1.bf16.msra.mxu1 %v2264_v38  ;;  %1192 = vmatprep.subr.bf16.mxu0 %v2269_v39  ;;  %v2320_v38 = vld [vmem:[%s2867_s4 + $0x8] ss:$16 sps:$4 sm:$0xff] (!%p2023_p7)   ;;  %v2321_v39 = vld [vmem:[%s2867_s4 + $0x24] ss:$16 sps:$4 sm:$0xff] (!%p2023_p7)  }
  0x78   : > { %1233 = vmatprep.subr.bf16.mxu1 %v2272_v40  ;;  %v2323_v40 = vld [vmem:[%s2867_s4 + $0x2c] ss:$16 sps:$4 sm:$0xff] (!%p2023_p7)  }
  0x7a   : > { %1193 = vmatpush1.bf16.msra.mxu0 %v2267_v41  ;;  %v2325_v41 = vld [vmem:[%s2867_s4 + $0x20] ss:$16 sps:$4 sm:$0xff] (!%p2023_p7)  }
  0x7b   : > { %1234 = vmatpush1.bf16.msra.mxu1 %v2270_v42  ;;  %1194 = vmatprep.subr.bf16.mxu0 %v2275_v43  ;;  %v2326_v42 = vld [vmem:[%s2867_s4 + $0x28] ss:$16 sps:$4 sm:$0xff] (!%p2023_p7)   ;;  %v2327_v43 = vld [vmem:[%s2867_s4 + $0x44] ss:$16 sps:$4 sm:$0xff] (!%p2023_p7)  }
  0x7c   : > { %1235 = vmatprep.subr.bf16.mxu1 %v2278_v44  ;;  %v2329_v44 = vld [vmem:[%s2867_s4 + $0x4c] ss:$16 sps:$4 sm:$0xff] (!%p2023_p7)  }
  0x7e   : > { %1195 = vmatpush1.bf16.msra.mxu0 %v2273_v45  ;;  %v2331_v45 = vld [vmem:[%s2867_s4 + $0x40] ss:$16 sps:$4 sm:$0xff] (!%p2023_p7)  }
  0x7f   : > { %1236 = vmatpush1.bf16.msra.mxu1 %v2276_v46  ;;  %1196 = vmatprep.subr.bf16.mxu0 %v2281_v47  ;;  %v2332_v46 = vld [vmem:[%s2867_s4 + $0x48] ss:$16 sps:$4 sm:$0xff] (!%p2023_p7)   ;;  %v2333_v47 = vld [vmem:[%s2867_s4 + $0x64] ss:$16 sps:$4 sm:$0xff] (!%p2023_p7)  }
  0x80   : > { %1237 = vmatprep.subr.bf16.mxu1 %v2284_v48  ;;  %v2335_v48 = vld [vmem:[%s2867_s4 + $0x6c] ss:$16 sps:$4 sm:$0xff] (!%p2023_p7)  }
  0x82   : > { %1197 = vmatpush1.bf16.msra.mxu0 %v2279_v49  ;;  %v2337_v49 = vld [vmem:[%s2867_s4 + $0x60] ss:$16 sps:$4 sm:$0xff] (!%p2023_p7)  }
  0x83   : > { %1238 = vmatpush1.bf16.msra.mxu1 %v2282_v50  ;;  %1198 = vmatprep.subr.bf16.mxu0 %v2287_v51  ;;  %v2338_v50 = vld [vmem:[%s2867_s4 + $0x68] ss:$16 sps:$4 sm:$0xff] (!%p2023_p7)   ;;  %v2339_v51 = vld [vmem:[%s2867_s4 + $0x84] ss:$16 sps:$4 sm:$0xff] (!%p2023_p7)  }
  0x84   : > { %1239 = vmatprep.subr.bf16.mxu1 %v2290_v52  ;;  %v2341_v52 = vld [vmem:[%s2867_s4 + $0x8c] ss:$16 sps:$4 sm:$0xff] (!%p2023_p7)  }
  0x86   : > { %1199 = vmatpush1.bf16.msra.mxu0 %v2285_v53  ;;  %v2343_v53 = vld [vmem:[%s2867_s4 + $0x80] ss:$16 sps:$4 sm:$0xff] (!%p2023_p7)  }
  0x87   : > { %1240 = vmatpush1.bf16.msra.mxu1 %v2288_v54  ;;  %1200 = vmatprep.subr.bf16.mxu0 %v2293_v55  ;;  %v2344_v54 = vld [vmem:[%s2867_s4 + $0x88] ss:$16 sps:$4 sm:$0xff] (!%p2023_p7)   ;;  %v2345_v55 = vld [vmem:[%s2867_s4 + $0xa4] ss:$16 sps:$4 sm:$0xff] (!%p2023_p7)  }
  0x88   : > { %1241 = vmatprep.subr.bf16.mxu1 %v2296_v56  ;;  %v2347_v56 = vld [vmem:[%s2867_s4 + $0xac] ss:$16 sps:$4 sm:$0xff] (!%p2023_p7)  }
  0x8a   : > { %1201 = vmatpush1.bf16.msra.mxu0 %v2291_v57  ;;  %v2349_v57 = vld [vmem:[%s2867_s4 + $0xa0] ss:$16 sps:$4 sm:$0xff] (!%p2023_p7)  }
  0x8b   : > { %1242 = vmatpush1.bf16.msra.mxu1 %v2294_v58  ;;  %1202 = vmatprep.subr.bf16.mxu0 %v2299_v59  ;;  %v2350_v58 = vld [vmem:[%s2867_s4 + $0xa8] ss:$16 sps:$4 sm:$0xff] (!%p2023_p7)   ;;  %v2351_v59 = vld [vmem:[%s2867_s4 + $0xc4] ss:$16 sps:$4 sm:$0xff] (!%p2023_p7)  }
  0x8c   : > { %1243 = vmatprep.subr.bf16.mxu1 %v2302_v60  ;;  %v2353_v60 = vld [vmem:[%s2867_s4 + $0xcc] ss:$16 sps:$4 sm:$0xff] (!%p2023_p7)  }
  0x8e   : > { %1203 = vmatpush1.bf16.msra.mxu0 %v2297_v61  ;;  %v2355_v61 = vld [vmem:[%s2867_s4 + $0xc0] ss:$16 sps:$4 sm:$0xff] (!%p2023_p7)  }
  0x8f   : > { %1244 = vmatpush1.bf16.msra.mxu1 %v2300_v62  ;;  %1204 = vmatprep.subr.bf16.mxu0 %v2305_v63  ;;  %v2356_v62 = vld [vmem:[%s2867_s4 + $0xc8] ss:$16 sps:$4 sm:$0xff] (!%p2023_p7)   ;;  %v2357_v63 = vld [vmem:[%s2867_s4 + $0xe4] ss:$16 sps:$4 sm:$0xff] (!%p2023_p7)  }
  0x90   : > { %1245 = vmatprep.subr.bf16.mxu1 %v2308_v0  ;;  %v2359_v0 = vld [vmem:[%s2867_s4 + $0xec] ss:$16 sps:$4 sm:$0xff] (!%p2023_p7)  }
  0x92   : > { %1205 = vmatpush1.bf16.msra.mxu0 %v2303_v1  ;;  %v2361_v1 = vld [vmem:[%s2867_s4 + $0xe0] ss:$16 sps:$4 sm:$0xff] (!%p2023_p7)  }
  0x93   : > { %1246 = vmatpush1.bf16.msra.mxu1 %v2306_v2  ;;  %1206 = vmatprep.subr.bf16.mxu0 %v2311_v3  ;;  %v2362_v2 = vld [vmem:[%s2867_s4 + $0xe8] ss:$16 sps:$4 sm:$0xff] (!%p2023_p7)   ;;  %v2363_v3 = vld [vmem:[%s2867_s4 + $0x104] ss:$16 sps:$4 sm:$0xff] (!%p2023_p7)  }
  0x94   : > { %1247 = vmatprep.subr.bf16.mxu1 %v2314_v4  ;;  %v2365_v4 = vld [vmem:[%s2867_s4 + $0x10c] ss:$16 sps:$4 sm:$0xff] (!%p2023_p7)  }
  0x96   : > { %1207 = vmatpush1.bf16.msra.mxu0 %v2309_v5  ;;  %v2367_v5 = vld [vmem:[%s2867_s4 + $0x100] ss:$16 sps:$4 sm:$0xff] (!%p2023_p7)  }
  0x97   : > { %1248 = vmatpush1.bf16.msra.mxu1 %v2312_v6  ;;  %1692 = vmatprep.subr.bf16.mxu0 (!%p2023_p7), %v2315_v35  ;;  %v2368_v6 = vld [vmem:[%s2867_s4 + $0x108] ss:$16 sps:$4 sm:$0xff] (!%p2023_p7)   ;;  %v2409_v35 = vld [vmem:[%s2867_s4 + $0x1e0] ss:$16 sps:$4 sm:$0xff] (!%p2023_p7)  }
  0x98   : > { %1733 = vmatprep.subr.bf16.mxu1 (!%p2023_p7), %v2317_v36  ;;  %v2410_v36 = vld [vmem:[%s2867_s4 + $0x1e8] ss:$16 sps:$4 sm:$0xff] (!%p2023_p7)  }
  0x99   : > { %1209 = vmatmul.mubr.bf16.vlgmr.msra.gmra.mrb[4].mxu0 %v2572_v7  ;;  %v308_v7 = vld [vmem:[#allocation2 + $0x10] sm:$0xff] }
  0x9a   : > { %1250 = vmatmul.mubr.bf16.vlgmr.msra.gmra.mrb[4].mxu1 %v2574_v8  ;;  %1693 = vmatpush1.bf16.msra.mxu0 (!%p2023_p7), %v2319_v37 }
  0x9b   : > { %1734 = vmatpush1.bf16.msra.mxu1 (!%p2023_p7), %v2320_v38  ;;  %1694 = vmatprep.subr.bf16.mxu0 (!%p2023_p7), %v2321_v39  ;;  %v1276_v38 = vlaneseq (!%p2023_p7) }
  0x9c   : > { %1735 = vmatprep.subr.bf16.mxu1 (!%p2023_p7), %v2323_v40 }
  0x9d   : > { %v1277_v39 = vshrl.u32 (!%p2023_p7), %v1276_v38, 7 }
  0x9e   : > { %1695 = vmatpush1.bf16.msra.mxu0 (!%p2023_p7), %v2325_v41 }
  0x9f   : > { %1736 = vmatpush1.bf16.msra.mxu1 (!%p2023_p7), %v2326_v42  ;;  %1696 = vmatprep.subr.bf16.mxu0 (!%p2023_p7), %v2327_v43  ;;  %v1278_v40 = vsub.s32 (!%p2023_p7), 0, %v1277_v39  ;;  %v1286_v41 = vsub.s32 (!%p2023_p7), 2, %v1277_v39  ;;  %v1274_v42 = vld [vmem:[%s2865_s2] sm:$0xf] (!%p2023_p7)  ;;  %v1282_v43 = vsub.s32 (!%p2023_p7), 1, %v1277_v39 }
  0xa0   : > { %1737 = vmatprep.subr.bf16.mxu1 (!%p2023_p7), %v2329_v44  ;;  %v1290_v44 = vsub.s32 (!%p2023_p7), 3, %v1277_v39 }
  0xa2   : > { %1697 = vmatpush1.bf16.msra.mxu0 (!%p2023_p7), %v2331_v45  ;;  %v1279_v45 = vrot.slane (!%p2023_p7), %v1274_v42, %v1278_v40 }
  0xa3   : > { %1738 = vmatpush1.bf16.msra.mxu1 (!%p2023_p7), %v2332_v46  ;;  %1698 = vmatprep.subr.bf16.mxu0 (!%p2023_p7), %v2333_v47  ;;  %v1287_v46 = vrot.slane (!%p2023_p7), %v1274_v42, %v1286_v41 }
  0xa4   : > { %1739 = vmatprep.subr.bf16.mxu1 (!%p2023_p7), %v2335_v48 }
  0xa6   : > { %1699 = vmatpush1.bf16.msra.mxu0 (!%p2023_p7), %v2337_v49  ;;  %v1283_v49 = vrot.slane (!%p2023_p7), %v1274_v42, %v1282_v43 }
  0xa7   : > { %1740 = vmatpush1.bf16.msra.mxu1 (!%p2023_p7), %v2338_v50  ;;  %1700 = vmatprep.subr.bf16.mxu0 (!%p2023_p7), %v2339_v51  ;;  %v1291_v50 = vrot.slane (!%p2023_p7), %v1274_v42, %v1290_v44 }
  0xa8   : > { %1741 = vmatprep.subr.bf16.mxu1 (!%p2023_p7), %v2341_v52 }
  0xaa   : > { %1701 = vmatpush1.bf16.msra.mxu0 (!%p2023_p7), %v2343_v53 }
  0xab   : > { %1742 = vmatpush1.bf16.msra.mxu1 (!%p2023_p7), %v2344_v54  ;;  %1702 = vmatprep.subr.bf16.mxu0 (!%p2023_p7), %v2345_v55 }
  0xac   : > { %1743 = vmatprep.subr.bf16.mxu1 (!%p2023_p7), %v2347_v56 }
  0xae   : > { %1703 = vmatpush1.bf16.msra.mxu0 (!%p2023_p7), %v2349_v57 }
  0xaf   : > { %1744 = vmatpush1.bf16.msra.mxu1 (!%p2023_p7), %v2350_v58  ;;  %1704 = vmatprep.subr.bf16.mxu0 (!%p2023_p7), %v2351_v59 }
  0xb0   : > { %1745 = vmatprep.subr.bf16.mxu1 (!%p2023_p7), %v2353_v60 }
  0xb2   : > { %1705 = vmatpush1.bf16.msra.mxu0 (!%p2023_p7), %v2355_v61 }
  0xb3   : > { %1746 = vmatpush1.bf16.msra.mxu1 (!%p2023_p7), %v2356_v62  ;;  %1706 = vmatprep.subr.bf16.mxu0 (!%p2023_p7), %v2357_v63 }
  0xb4   : > { %1747 = vmatprep.subr.bf16.mxu1 (!%p2023_p7), %v2359_v0 }
  0xb6   : > { %1707 = vmatpush1.bf16.msra.mxu0 (!%p2023_p7), %v2361_v1 }
  0xb7   : > { %1748 = vmatpush1.bf16.msra.mxu1 (!%p2023_p7), %v2362_v2  ;;  %1708 = vmatprep.subr.bf16.mxu0 (!%p2023_p7), %v2363_v3 }
  0xb8   : > { %1749 = vmatprep.subr.bf16.mxu1 (!%p2023_p7), %v2365_v4 }
  0xba   : > { %1709 = vmatpush1.bf16.msra.mxu0 (!%p2023_p7), %v2367_v5 }
  0xbb   : > { %1750 = vmatpush1.bf16.msra.mxu1 (!%p2023_p7), %v2368_v6 }
 0x12c   : > { %v1128_v9 = vpop.f32.mrb[0].mxu0 }
 0x12d   : > { %v1169_v11 = vpop.f32.mrb[0].mxu1  ;;  %v1130_v13 = vpop.f32.mrb[1].mxu0 }
 0x12e   : > { %v1170_v12 = vadd.f32 %v1169_v11, %v1128_v9  ;;  %v1171_v15 = vpop.f32.mrb[1].mxu1  ;;  %v1132_v17 = vpop.f32.mrb[2].mxu0  ;;  %v2369_v9 = vld [vmem:[%s2867_s4 + $0x124] ss:$16 sps:$4 sm:$0xff] (!%p2023_p7)   ;;  %v2373_v11 = vld [vmem:[%s2867_s4 + $0x120] ss:$16 sps:$4 sm:$0xff] (!%p2023_p7)  }
 0x12f   : > { %v1172_v16 = vadd.f32 %v1171_v15, %v1130_v13  ;;  %v1173_v18 = vpop.f32.mrb[2].mxu1  ;;  %v1133_v20 = vpop.f32.mrb[3].mxu0  ;;  %v2375_v13 = vld [vmem:[%s2867_s4 + $0x144] ss:$16 sps:$4 sm:$0xff] (!%p2023_p7)   ;;  %1710 = vmatprep.subr.bf16.mxu0 (!%p2023_p7), %v2369_v9  ;;  %v2379_v15 = vld [vmem:[%s2867_s4 + $0x140] ss:$16 sps:$4 sm:$0xff] (!%p2023_p7)  }
 0x130   : > { %v1258_v19 = vadd.f32 %v1170_v12, %v306_v10  ;;  %v1174_v21 = vpop.f32.mrb[3].mxu1  ;;  %v2371_v10 = vld [vmem:[%s2867_s4 + $0x12c] ss:$16 sps:$4 sm:$0xff] (!%p2023_p7)   ;;  %v2374_v12 = vld [vmem:[%s2867_s4 + $0x128] ss:$16 sps:$4 sm:$0xff] (!%p2023_p7)   ;;  %1711 = vmatpush1.bf16.msra.mxu0 (!%p2023_p7), %v2373_v11 }
 0x131   : > { %v1259_v22 = vadd.f32 %v1172_v16, %v307_v14  ;;  %1751 = vmatprep.subr.bf16.mxu1 (!%p2023_p7), %v2371_v10  ;;  %v2377_v14 = vld [vmem:[%s2867_s4 + $0x14c] ss:$16 sps:$4 sm:$0xff] (!%p2023_p7)   ;;  %v2380_v16 = vld [vmem:[%s2867_s4 + $0x148] ss:$16 sps:$4 sm:$0xff] (!%p2023_p7)   ;;  %v2381_v17 = vld [vmem:[%s2867_s4 + $0x164] ss:$16 sps:$4 sm:$0xff] (!%p2023_p7)   ;;  %1712 = vmatprep.subr.bf16.mxu0 (!%p2023_p7), %v2375_v13 }
 0x132   : > { %1262 = vst [vmem:[#allocation2] sm:$0xff] %v1258_v19  ;;  %1752 = vmatpush1.bf16.msra.mxu1 (!%p2023_p7), %v2374_v12  ;;  %v2383_v18 = vld [vmem:[%s2867_s4 + $0x16c] ss:$16 sps:$4 sm:$0xff] (!%p2023_p7)   ;;  %v1300_v19 = vld [vmem:[%s2866_s3] sm:$0xff] (!%p2023_p7) }
 0x133   : > { %1263 = vst [vmem:[#allocation2 + $0x8] sm:$0xff] %v1259_v22  ;;  %1753 = vmatprep.subr.bf16.mxu1 (!%p2023_p7), %v2377_v14  ;;  %v2025_v20 = vcombine.high (!%p2023_p7), %v1300_v19, %v1300_v19  ;;  %v2385_v21 = vld [vmem:[%s2867_s4 + $0x160] ss:$16 sps:$4 sm:$0xff] (!%p2023_p7)   ;;  %v2386_v22 = vld [vmem:[%s2867_s4 + $0x168] ss:$16 sps:$4 sm:$0xff] (!%p2023_p7)   ;;  %v2024_v37 = vcombine.low (!%p2023_p7), %v1300_v19, %v1300_v19 }
 0x134   : > { %1713 = vmatpush1.bf16.msra.mxu0 (!%p2023_p7), %v2379_v15 }
 0x135   : > { %1714 = vmatprep.subr.bf16.mxu0 (!%p2023_p7), %v2381_v17  ;;  %1724 = vmatprep.mubr.bf16.mxu0 (!%p2023_p7), %v2025_v20 }
 0x136   : > { %1754 = vmatpush1.bf16.msra.mxu1 (!%p2023_p7), %v2380_v16  ;;  %1765 = vmatprep.mubr.bf16.mxu1 (!%p2023_p7), %v2025_v20 }
 0x137   : > { %1755 = vmatprep.subr.bf16.mxu1 (!%p2023_p7), %v2383_v18 }
 0x138   : > { %1715 = vmatpush1.bf16.msra.mxu0 (!%p2023_p7), %v2385_v21 }
 0x139   : > { %v1270_v47 = vld [vmem:[#allocation2] sm:$0xff] (!%p2023_p7) }
 0x13a   : > { %1756 = vmatpush1.bf16.msra.mxu1 (!%p2023_p7), %v2386_v22  ;;  %v1271_v51 = vld [vmem:[#allocation2 + $0x8] sm:$0xff] (!%p2023_p7)  ;;  %v1296_v53 = vadd.f32 (!%p2023_p7), %v1279_v45, %v1270_v47 }
 0x13b   : > { %v1297_v55 = vadd.f32 (!%p2023_p7), %v1283_v49, %v1271_v51 }
 0x16c   : > { %v1210_v23 = vpop.f32.mrb[4].mxu0 }
 0x16d   : > { %v1251_v24 = vpop.f32.mrb[4].mxu1  ;;  %v1212_v25 = vpop.f32.mrb[5].mxu0  ;;  %1269 = sbr.rel (%p2023_p7) target bundleno = 603 (0x25b), region = 48 }
 0x16e   : > { %v1252_v8 = vadd.f32 %v1251_v24, %v1210_v23  ;;  %v1253_v27 = vpop.f32.mrb[5].mxu1  ;;  %v1214_v29 = vpop.f32.mrb[6].mxu0  ;;  %v2387_v23 = vld [vmem:[%s2867_s4 + $0x184] ss:$16 sps:$4 sm:$0xff] (!%p2023_p7)   ;;  %v2391_v24 = vld [vmem:[%s2867_s4 + $0x180] ss:$16 sps:$4 sm:$0xff] (!%p2023_p7)  }
 0x16f   : > { %v1254_v28 = vadd.f32 %v1253_v27, %v1212_v25  ;;  %v1255_v30 = vpop.f32.mrb[6].mxu1  ;;  %v1215_v32 = vpop.f32.mrb[7].mxu0  ;;  %1716 = vmatprep.subr.bf16.mxu0 (!%p2023_p7), %v2387_v23  ;;  %v2393_v25 = vld [vmem:[%s2867_s4 + $0x1a4] ss:$16 sps:$4 sm:$0xff] (!%p2023_p7)   ;;  %v2397_v27 = vld [vmem:[%s2867_s4 + $0x1a0] ss:$16 sps:$4 sm:$0xff] (!%p2023_p7)  }
 0x170   : > { %v1260_v31 = vadd.f32 %v1252_v8, %v308_v7  ;;  %v1256_v33 = vpop.f32.mrb[7].mxu1  ;;  %v2389_v7 = vld [vmem:[%s2867_s4 + $0x18c] ss:$16 sps:$4 sm:$0xff] (!%p2023_p7)   ;;  %v2392_v8 = vld [vmem:[%s2867_s4 + $0x188] ss:$16 sps:$4 sm:$0xff] (!%p2023_p7)   ;;  %1717 = vmatpush1.bf16.msra.mxu0 (!%p2023_p7), %v2391_v24 }
 0x171   : > { %v1261_v34 = vadd.f32 %v1254_v28, %v309_v26  ;;  %1757 = vmatprep.subr.bf16.mxu1 (!%p2023_p7), %v2389_v7  ;;  %v2395_v26 = vld [vmem:[%s2867_s4 + $0x1ac] ss:$16 sps:$4 sm:$0xff] (!%p2023_p7)   ;;  %v2398_v28 = vld [vmem:[%s2867_s4 + $0x1a8] ss:$16 sps:$4 sm:$0xff] (!%p2023_p7)   ;;  %1718 = vmatprep.subr.bf16.mxu0 (!%p2023_p7), %v2393_v25  ;;  %v2399_v29 = vld [vmem:[%s2867_s4 + $0x1c4] ss:$16 sps:$4 sm:$0xff] (!%p2023_p7)  }
 0x172   : > { %1264 = vst [vmem:[#allocation2 + $0x10] sm:$0xff] %v1260_v31  ;;  %1758 = vmatpush1.bf16.msra.mxu1 (!%p2023_p7), %v2392_v8  ;;  %v2401_v30 = vld [vmem:[%s2867_s4 + $0x1cc] ss:$16 sps:$4 sm:$0xff] (!%p2023_p7)   ;;  %v2403_v31 = vld [vmem:[%s2867_s4 + $0x1c0] ss:$16 sps:$4 sm:$0xff] (!%p2023_p7)  }
 0x173   : > { %1265 = vst [vmem:[#allocation2 + $0x18] sm:$0xff] %v1261_v34  ;;  %1759 = vmatprep.subr.bf16.mxu1 (!%p2023_p7), %v2395_v26  ;;  %v2404_v32 = vld [vmem:[%s2867_s4 + $0x1c8] ss:$16 sps:$4 sm:$0xff] (!%p2023_p7)   ;;  %v2405_v33 = vld [vmem:[%s2867_s4 + $0x1e4] ss:$16 sps:$4 sm:$0xff] (!%p2023_p7)  }
 0x174   : > { %1719 = vmatpush1.bf16.msra.mxu0 %v2397_v27  ;;  %v2407_v34 = vld [vmem:[%s2867_s4 + $0x1ec] ss:$16 sps:$4 sm:$0xff]  }
 0x175   : > { %1720 = vmatprep.subr.bf16.mxu0 %v2399_v29 }
 0x176   : > { %1760 = vmatpush1.bf16.msra.mxu1 %v2398_v28 }
 0x177   : > { %1761 = vmatprep.subr.bf16.mxu1 %v2401_v30 }
 0x178   : > { %1721 = vmatpush1.bf16.msra.mxu0 %v2403_v31 }
 0x179   : > { %1722 = vmatprep.subr.bf16.mxu0 %v2405_v33  ;;  %v1272_v48 = vld [vmem:[#allocation2 + $0x10] sm:$0xff] }
 0x17a   : > { %1762 = vmatpush1.bf16.msra.mxu1 %v2404_v32  ;;  %v1273_v52 = vld [vmem:[#allocation2 + $0x18] sm:$0xff]  ;;  %v1298_v54 = vadd.f32 %v1287_v46, %v1272_v48 }
 0x17b   : > { %1763 = vmatprep.subr.bf16.mxu1 %v2407_v34  ;;  %v1299_v56 = vadd.f32 %v1291_v50, %v1273_v52 }
 0x17c   : > { %1723 = vmatpush1.bf16.msra.mxu0 %v2409_v35 }
 0x17e   : > { %1764 = vmatpush1.bf16.msra.mxu1 %v2410_v36 }
 0x17f   : > { %1725 = vmatmul.mubr.bf16.vlgmr.msra.gmra.mrb[0].mxu0 %v2024_v37 }
 0x181   : > { %1766 = vmatmul.mubr.bf16.vlgmr.msra.gmra.mrb[0].mxu1 %v2024_v37 }
 0x252   : > { %v1726_v57 = vpop.f32.mrb[0].mxu0 }
 0x253   : > { %v1774_v59 = vadd.f32 %v1726_v57, %v1296_v53  ;;  %v1728_v61 = vpop.f32.mrb[1].mxu0 }
 0x254   : > { %v1767_v58 = vpop.f32.mrb[0].mxu1  ;;  %v1775_v63 = vadd.f32 %v1728_v61, %v1297_v55  ;;  %v1730_v1 = vpop.f32.mrb[2].mxu0 }
 0x255   : > { %v1776_v60 = vadd.f32 %v1767_v58, %v1298_v54  ;;  %v1769_v62 = vpop.f32.mrb[1].mxu1  ;;  %v1778_v3 = vmax.f32 %v1774_v59, 0.0  ;;  %v1731_v5 = vpop.f32.mrb[3].mxu0 }
 0x256   : > { %v1777_v0 = vadd.f32 %v1769_v62, %v1299_v56  ;;  %v1771_v2 = vpop.f32.mrb[2].mxu1  ;;  %v1779_v9 = vmax.f32 %v1775_v63, 0.0 }
 0x257   : > { %v1780_v4 = vmax.f32 %v1776_v60, 0.0  ;;  %v1772_v6 = vpop.f32.mrb[3].mxu1  ;;  %1782 = vst [vmem:[%s2868_s5] sm:$0xff] %v1778_v3 }
 0x258   : > { %v1781_v10 = vmax.f32 %v1777_v0, 0.0  ;;  %1783 = vst [vmem:[%s2868_s5 + $0x8] sm:$0xff] %v1779_v9 }
 0x259   : > { %1784 = vst [vmem:[%s2868_s5 + $0x10] sm:$0xff] %v1780_v4 }
 0x25a   : > { %1785 = vst [vmem:[%s2868_s5 + $0x18] sm:$0xff] %v1781_v10 }
 0x25b PF: > { %s15_s20 = sadd.s32 1, %s2435_s20   ;;  %s2869_s18 = smov %s2431_s19 }
 0x25c   : > { %p12_p8 = scmp.ge.s32.totalorder %s15_s20, 11   ;;  %s2870_s19 = smov %s2872_s21 }
 0x25e   :  { %14 = sbr.rel (!%p12_p8) target bundleno = 2 (0x2), region = 84 }

// kernel: _forward.74
= control target key start
LH: loop header
LB: loop body
LE: loop exit
PB: predicated region body
PF: predicated region fallthrough
CT: control target
= control target key end

     0   :  { %s44_s0 = inlined_call_operand.vmem [shape: f32[2,1,512], index: 0, kind: input, shape index: {}]   ;;  %s45_s1 = inlined_call_operand.vmem [shape: f32[2,512], index: 1, kind: output, shape index: {}]  }
   0x1   :  { %v27_v0 = vld [vmem:[%s44_s0] sm:$0xff]  }
   0x2   :  { %26 = vst.sshfl [vmem:[%s45_s1] sm:$0xff pattern:$0x75316420] %v27_v0 }

// kernel: _forward.75
= control target key start
LH: loop header
LB: loop body
LE: loop exit
PB: predicated region body
PF: predicated region fallthrough
CT: control target
= control target key end

     0   :  { %s1792_s1 = inlined_call_operand.vmem [shape: bf16[512,512], index: 1, kind: input, shape index: {}]   ;;  %s1793_s0 = inlined_call_operand.vmem [shape: bf16[8,512], index: 0, kind: input, shape index: {}]   ;;  %s1794_s2 = inlined_call_operand.vmem [shape: f32[1,512], index: 2, kind: input, shape index: {}]   ;;  %s1795_s3 = inlined_call_operand.vmem [shape: f32[8,512], index: 3, kind: output, shape index: {}]  }
   0x1   :  { %v1159_v0 = vld [vmem:[%s1792_s1 + $0x4] ss:$16 sps:$4 sm:$0xff]   ;;  %v1163_v2 = vld [vmem:[%s1792_s1] ss:$16 sps:$4 sm:$0xff]   ;;  %v27_v48 = vld [vmem:[%s1793_s0 + $0x8] sm:$0xff] }
   0x2   :  { %v1161_v1 = vld [vmem:[%s1792_s1 + $0x204] ss:$16 sps:$4 sm:$0xff]   ;;  %810 = vmatprep.subr.bf16.mxu0 %v1159_v0  ;;  %v1164_v3 = vld [vmem:[%s1792_s1 + $0x200] ss:$16 sps:$4 sm:$0xff]   ;;  %v1030_v51 = vcombine.high %v27_v48, %v27_v48 }
   0x3   :  { %851 = vmatprep.subr.bf16.mxu1 %v1161_v1  ;;  %v1165_v4 = vld [vmem:[%s1792_s1 + $0x24] ss:$16 sps:$4 sm:$0xff]   ;;  %811 = vmatpush1.bf16.msra.mxu0 %v1163_v2  ;;  %v1169_v6 = vld [vmem:[%s1792_s1 + $0x20] ss:$16 sps:$4 sm:$0xff]  }
   0x4   :  { %852 = vmatpush1.bf16.msra.mxu1 %v1164_v3  ;;  %v1167_v5 = vld [vmem:[%s1792_s1 + $0x224] ss:$16 sps:$4 sm:$0xff]   ;;  %812 = vmatprep.subr.bf16.mxu0 %v1165_v4  ;;  %v1170_v7 = vld [vmem:[%s1792_s1 + $0x220] ss:$16 sps:$4 sm:$0xff]   ;;  %v1261_v4 = vld [vmem:[%s1792_s1 + $0xc] ss:$16 sps:$4 sm:$0xff]  }
   0x5   :  { %853 = vmatprep.subr.bf16.mxu1 %v1167_v5  ;;  %v1171_v8 = vld [vmem:[%s1792_s1 + $0x44] ss:$16 sps:$4 sm:$0xff]   ;;  %v1175_v10 = vld [vmem:[%s1792_s1 + $0x40] ss:$16 sps:$4 sm:$0xff]   ;;  %883 = vmatprep.mubr.bf16.mxu1 %v1030_v51  ;;  %v1264_v5 = vld [vmem:[%s1792_s1 + $0x20c] ss:$16 sps:$4 sm:$0xff]  }
   0x6   :  { %v1173_v9 = vld [vmem:[%s1792_s1 + $0x244] ss:$16 sps:$4 sm:$0xff]   ;;  %v1176_v11 = vld [vmem:[%s1792_s1 + $0x240] ss:$16 sps:$4 sm:$0xff]  }
   0x7   :  { %813 = vmatpush1.bf16.msra.mxu0 %v1169_v6  ;;  %v1177_v12 = vld [vmem:[%s1792_s1 + $0x64] ss:$16 sps:$4 sm:$0xff]   ;;  %v1181_v14 = vld [vmem:[%s1792_s1 + $0x60] ss:$16 sps:$4 sm:$0xff]  }
   0x8   :  { %854 = vmatpush1.bf16.msra.mxu1 %v1170_v7  ;;  %814 = vmatprep.subr.bf16.mxu0 %v1171_v8  ;;  %v1179_v13 = vld [vmem:[%s1792_s1 + $0x264] ss:$16 sps:$4 sm:$0xff]   ;;  %v1182_v15 = vld [vmem:[%s1792_s1 + $0x260] ss:$16 sps:$4 sm:$0xff]   ;;  %v1584_v7 = vcombine.low %v27_v48, %v27_v48  ;;  %v1259_v8 = vld [vmem:[%s1792_s1 + $0x8] ss:$16 sps:$4 sm:$0xff]  }
   0x9   :  { %855 = vmatprep.subr.bf16.mxu1 %v1173_v9  ;;  %v1183_v16 = vld [vmem:[%s1792_s1 + $0x84] ss:$16 sps:$4 sm:$0xff]   ;;  %v1187_v18 = vld [vmem:[%s1792_s1 + $0x80] ss:$16 sps:$4 sm:$0xff]   ;;  %v1262_v9 = vld [vmem:[%s1792_s1 + $0x208] ss:$16 sps:$4 sm:$0xff]  }
   0xa   :  { %v1185_v17 = vld [vmem:[%s1792_s1 + $0x284] ss:$16 sps:$4 sm:$0xff]   ;;  %v1188_v19 = vld [vmem:[%s1792_s1 + $0x280] ss:$16 sps:$4 sm:$0xff]   ;;  %v1319_v48 = vld [vmem:[%s1792_s1 + $0x148] ss:$16 sps:$4 sm:$0xff]  }
   0xb   :  { %815 = vmatpush1.bf16.msra.mxu0 %v1175_v10  ;;  %v1189_v20 = vld [vmem:[%s1792_s1 + $0xa4] ss:$16 sps:$4 sm:$0xff]   ;;  %v1193_v22 = vld [vmem:[%s1792_s1 + $0xa0] ss:$16 sps:$4 sm:$0xff]   ;;  %v1267_v10 = vld [vmem:[%s1792_s1 + $0x2c] ss:$16 sps:$4 sm:$0xff]  }
   0xc   :  { %856 = vmatpush1.bf16.msra.mxu1 %v1176_v11  ;;  %816 = vmatprep.subr.bf16.mxu0 %v1177_v12  ;;  %v1191_v21 = vld [vmem:[%s1792_s1 + $0x2a4] ss:$16 sps:$4 sm:$0xff]   ;;  %v1194_v23 = vld [vmem:[%s1792_s1 + $0x2a0] ss:$16 sps:$4 sm:$0xff]   ;;  %v1270_v11 = vld [vmem:[%s1792_s1 + $0x22c] ss:$16 sps:$4 sm:$0xff]  }
   0xd   :  { %857 = vmatprep.subr.bf16.mxu1 %v1179_v13  ;;  %v1195_v24 = vld [vmem:[%s1792_s1 + $0xc4] ss:$16 sps:$4 sm:$0xff]   ;;  %v1199_v26 = vld [vmem:[%s1792_s1 + $0xc0] ss:$16 sps:$4 sm:$0xff]   ;;  %v1265_v12 = vld [vmem:[%s1792_s1 + $0x28] ss:$16 sps:$4 sm:$0xff]  }
   0xe   :  { %v1197_v25 = vld [vmem:[%s1792_s1 + $0x2c4] ss:$16 sps:$4 sm:$0xff]   ;;  %v1200_v27 = vld [vmem:[%s1792_s1 + $0x2c0] ss:$16 sps:$4 sm:$0xff]   ;;  %v1268_v13 = vld [vmem:[%s1792_s1 + $0x228] ss:$16 sps:$4 sm:$0xff]  }
   0xf   :  { %817 = vmatpush1.bf16.msra.mxu0 %v1181_v14  ;;  %v1201_v28 = vld [vmem:[%s1792_s1 + $0xe4] ss:$16 sps:$4 sm:$0xff]   ;;  %v1205_v30 = vld [vmem:[%s1792_s1 + $0xe0] ss:$16 sps:$4 sm:$0xff]   ;;  %v1273_v14 = vld [vmem:[%s1792_s1 + $0x4c] ss:$16 sps:$4 sm:$0xff]  }
  0x10   :  { %858 = vmatpush1.bf16.msra.mxu1 %v1182_v15  ;;  %818 = vmatprep.subr.bf16.mxu0 %v1183_v16  ;;  %v1203_v29 = vld [vmem:[%s1792_s1 + $0x2e4] ss:$16 sps:$4 sm:$0xff]   ;;  %v1206_v31 = vld [vmem:[%s1792_s1 + $0x2e0] ss:$16 sps:$4 sm:$0xff]   ;;  %v1276_v15 = vld [vmem:[%s1792_s1 + $0x24c] ss:$16 sps:$4 sm:$0xff]  }
  0x11   :  { %859 = vmatprep.subr.bf16.mxu1 %v1185_v17  ;;  %v1207_v32 = vld [vmem:[%s1792_s1 + $0x104] ss:$16 sps:$4 sm:$0xff]   ;;  %v1211_v34 = vld [vmem:[%s1792_s1 + $0x100] ss:$16 sps:$4 sm:$0xff]   ;;  %v1271_v16 = vld [vmem:[%s1792_s1 + $0x48] ss:$16 sps:$4 sm:$0xff]  }
  0x12   :  { %v1209_v33 = vld [vmem:[%s1792_s1 + $0x304] ss:$16 sps:$4 sm:$0xff]   ;;  %v1212_v35 = vld [vmem:[%s1792_s1 + $0x300] ss:$16 sps:$4 sm:$0xff]   ;;  %v1274_v17 = vld [vmem:[%s1792_s1 + $0x248] ss:$16 sps:$4 sm:$0xff]  }
  0x13   :  { %819 = vmatpush1.bf16.msra.mxu0 %v1187_v18  ;;  %v1213_v36 = vld [vmem:[%s1792_s1 + $0x124] ss:$16 sps:$4 sm:$0xff]   ;;  %v1217_v38 = vld [vmem:[%s1792_s1 + $0x120] ss:$16 sps:$4 sm:$0xff]   ;;  %v1279_v18 = vld [vmem:[%s1792_s1 + $0x6c] ss:$16 sps:$4 sm:$0xff]  }
  0x14   :  { %860 = vmatpush1.bf16.msra.mxu1 %v1188_v19  ;;  %820 = vmatprep.subr.bf16.mxu0 %v1189_v20  ;;  %v1215_v37 = vld [vmem:[%s1792_s1 + $0x324] ss:$16 sps:$4 sm:$0xff]   ;;  %v1218_v39 = vld [vmem:[%s1792_s1 + $0x320] ss:$16 sps:$4 sm:$0xff]   ;;  %v1282_v19 = vld [vmem:[%s1792_s1 + $0x26c] ss:$16 sps:$4 sm:$0xff]  }
  0x15   :  { %861 = vmatprep.subr.bf16.mxu1 %v1191_v21  ;;  %v1219_v40 = vld [vmem:[%s1792_s1 + $0x144] ss:$16 sps:$4 sm:$0xff]   ;;  %v1223_v42 = vld [vmem:[%s1792_s1 + $0x140] ss:$16 sps:$4 sm:$0xff]   ;;  %v1277_v20 = vld [vmem:[%s1792_s1 + $0x68] ss:$16 sps:$4 sm:$0xff]  }
  0x16   :  { %v1221_v41 = vld [vmem:[%s1792_s1 + $0x344] ss:$16 sps:$4 sm:$0xff]   ;;  %v1224_v43 = vld [vmem:[%s1792_s1 + $0x340] ss:$16 sps:$4 sm:$0xff]   ;;  %v1280_v21 = vld [vmem:[%s1792_s1 + $0x268] ss:$16 sps:$4 sm:$0xff]  }
  0x17   :  { %821 = vmatpush1.bf16.msra.mxu0 %v1193_v22  ;;  %v1225_v44 = vld [vmem:[%s1792_s1 + $0x164] ss:$16 sps:$4 sm:$0xff]   ;;  %v1229_v49 = vld [vmem:[%s1792_s1 + $0x160] ss:$16 sps:$4 sm:$0xff]   ;;  %v1285_v22 = vld [vmem:[%s1792_s1 + $0x8c] ss:$16 sps:$4 sm:$0xff]  }
  0x18   :  { %862 = vmatpush1.bf16.msra.mxu1 %v1194_v23  ;;  %822 = vmatprep.subr.bf16.mxu0 %v1195_v24  ;;  %v1227_v45 = vld [vmem:[%s1792_s1 + $0x364] ss:$16 sps:$4 sm:$0xff]   ;;  %v1230_v50 = vld [vmem:[%s1792_s1 + $0x360] ss:$16 sps:$4 sm:$0xff]   ;;  %v1288_v23 = vld [vmem:[%s1792_s1 + $0x28c] ss:$16 sps:$4 sm:$0xff]  }
  0x19   :  { %863 = vmatprep.subr.bf16.mxu1 %v1197_v25  ;;  %v26_v46 = vld [vmem:[%s1793_s0] sm:$0xff]  ;;  %v1283_v24 = vld [vmem:[%s1792_s1 + $0x88] ss:$16 sps:$4 sm:$0xff]  }
  0x1a   :  { %v1516_v47 = vcombine.high %v26_v46, %v26_v46  ;;  %v1231_v52 = vld [vmem:[%s1792_s1 + $0x184] ss:$16 sps:$4 sm:$0xff]   ;;  %v1235_v54 = vld [vmem:[%s1792_s1 + $0x180] ss:$16 sps:$4 sm:$0xff]   ;;  %v1582_v6 = vcombine.low %v26_v46, %v26_v46  ;;  %v1286_v25 = vld [vmem:[%s1792_s1 + $0x288] ss:$16 sps:$4 sm:$0xff]  }
  0x1b   :  { %823 = vmatpush1.bf16.msra.mxu0 %v1199_v26  ;;  %v1233_v53 = vld [vmem:[%s1792_s1 + $0x384] ss:$16 sps:$4 sm:$0xff]   ;;  %v1236_v55 = vld [vmem:[%s1792_s1 + $0x380] ss:$16 sps:$4 sm:$0xff]   ;;  %v1291_v26 = vld [vmem:[%s1792_s1 + $0xac] ss:$16 sps:$4 sm:$0xff]  }
  0x1c   :  { %864 = vmatpush1.bf16.msra.mxu1 %v1200_v27  ;;  %824 = vmatprep.subr.bf16.mxu0 %v1201_v28  ;;  %v1237_v56 = vld [vmem:[%s1792_s1 + $0x1a4] ss:$16 sps:$4 sm:$0xff]   ;;  %v1241_v58 = vld [vmem:[%s1792_s1 + $0x1a0] ss:$16 sps:$4 sm:$0xff]   ;;  %v1294_v27 = vld [vmem:[%s1792_s1 + $0x2ac] ss:$16 sps:$4 sm:$0xff]  }
  0x1d   :  { %865 = vmatprep.subr.bf16.mxu1 %v1203_v29  ;;  %842 = vmatprep.mubr.bf16.mxu0 %v1516_v47  ;;  %v1239_v57 = vld [vmem:[%s1792_s1 + $0x3a4] ss:$16 sps:$4 sm:$0xff]   ;;  %v1242_v59 = vld [vmem:[%s1792_s1 + $0x3a0] ss:$16 sps:$4 sm:$0xff]   ;;  %v1289_v28 = vld [vmem:[%s1792_s1 + $0xa8] ss:$16 sps:$4 sm:$0xff]  }
  0x1e   :  { %v1243_v60 = vld [vmem:[%s1792_s1 + $0x1c4] ss:$16 sps:$4 sm:$0xff]   ;;  %v1247_v62 = vld [vmem:[%s1792_s1 + $0x1c0] ss:$16 sps:$4 sm:$0xff]   ;;  %v1292_v29 = vld [vmem:[%s1792_s1 + $0x2a8] ss:$16 sps:$4 sm:$0xff]  }
  0x1f   :  { %825 = vmatpush1.bf16.msra.mxu0 %v1205_v30  ;;  %v1245_v61 = vld [vmem:[%s1792_s1 + $0x3c4] ss:$16 sps:$4 sm:$0xff]   ;;  %v1248_v63 = vld [vmem:[%s1792_s1 + $0x3c0] ss:$16 sps:$4 sm:$0xff]   ;;  %v1297_v30 = vld [vmem:[%s1792_s1 + $0xcc] ss:$16 sps:$4 sm:$0xff]  }
  0x20   :  { %866 = vmatpush1.bf16.msra.mxu1 %v1206_v31  ;;  %826 = vmatprep.subr.bf16.mxu0 %v1207_v32  ;;  %v1249_v0 = vld [vmem:[%s1792_s1 + $0x1e4] ss:$16 sps:$4 sm:$0xff]   ;;  %v1253_v2 = vld [vmem:[%s1792_s1 + $0x1e0] ss:$16 sps:$4 sm:$0xff]   ;;  %v1300_v31 = vld [vmem:[%s1792_s1 + $0x2cc] ss:$16 sps:$4 sm:$0xff]  }
  0x21   :  { %867 = vmatprep.subr.bf16.mxu1 %v1209_v33  ;;  %v1251_v1 = vld [vmem:[%s1792_s1 + $0x3e4] ss:$16 sps:$4 sm:$0xff]   ;;  %v1254_v3 = vld [vmem:[%s1792_s1 + $0x3e0] ss:$16 sps:$4 sm:$0xff]   ;;  %v1295_v32 = vld [vmem:[%s1792_s1 + $0xc8] ss:$16 sps:$4 sm:$0xff]  }
  0x22   :  { %v1298_v33 = vld [vmem:[%s1792_s1 + $0x2c8] ss:$16 sps:$4 sm:$0xff]   ;;  %v1321_v46 = vld [vmem:[%s1792_s1 + $0x14c] ss:$16 sps:$4 sm:$0xff]  }
  0x23   :  { %827 = vmatpush1.bf16.msra.mxu0 %v1211_v34  ;;  %v1303_v34 = vld [vmem:[%s1792_s1 + $0xec] ss:$16 sps:$4 sm:$0xff]  }
  0x24   :  { %868 = vmatpush1.bf16.msra.mxu1 %v1212_v35  ;;  %828 = vmatprep.subr.bf16.mxu0 %v1213_v36  ;;  %v1306_v35 = vld [vmem:[%s1792_s1 + $0x2ec] ss:$16 sps:$4 sm:$0xff]   ;;  %v1301_v36 = vld [vmem:[%s1792_s1 + $0xe8] ss:$16 sps:$4 sm:$0xff]  }
  0x25   :  { %869 = vmatprep.subr.bf16.mxu1 %v1215_v37  ;;  %v1304_v37 = vld [vmem:[%s1792_s1 + $0x2e8] ss:$16 sps:$4 sm:$0xff]  }
  0x27   :  { %829 = vmatpush1.bf16.msra.mxu0 %v1217_v38  ;;  %v1309_v38 = vld [vmem:[%s1792_s1 + $0x10c] ss:$16 sps:$4 sm:$0xff]  }
  0x28   :  { %870 = vmatpush1.bf16.msra.mxu1 %v1218_v39  ;;  %830 = vmatprep.subr.bf16.mxu0 %v1219_v40  ;;  %v1312_v39 = vld [vmem:[%s1792_s1 + $0x30c] ss:$16 sps:$4 sm:$0xff]   ;;  %v1307_v40 = vld [vmem:[%s1792_s1 + $0x108] ss:$16 sps:$4 sm:$0xff]  }
  0x29   :  { %871 = vmatprep.subr.bf16.mxu1 %v1221_v41  ;;  %v1310_v41 = vld [vmem:[%s1792_s1 + $0x308] ss:$16 sps:$4 sm:$0xff]  }
  0x2b   :  { %831 = vmatpush1.bf16.msra.mxu0 %v1223_v42  ;;  %v1315_v42 = vld [vmem:[%s1792_s1 + $0x12c] ss:$16 sps:$4 sm:$0xff]  }
  0x2c   :  { %872 = vmatpush1.bf16.msra.mxu1 %v1224_v43  ;;  %832 = vmatprep.subr.bf16.mxu0 %v1225_v44  ;;  %v1318_v43 = vld [vmem:[%s1792_s1 + $0x32c] ss:$16 sps:$4 sm:$0xff]   ;;  %v1313_v44 = vld [vmem:[%s1792_s1 + $0x128] ss:$16 sps:$4 sm:$0xff]  }
  0x2d   :  { %873 = vmatprep.subr.bf16.mxu1 %v1227_v45  ;;  %v1316_v45 = vld [vmem:[%s1792_s1 + $0x328] ss:$16 sps:$4 sm:$0xff]  }
  0x2f   :  { %833 = vmatpush1.bf16.msra.mxu0 %v1229_v49  ;;  %v1322_v49 = vld [vmem:[%s1792_s1 + $0x348] ss:$16 sps:$4 sm:$0xff]  }
  0x30   :  { %874 = vmatpush1.bf16.msra.mxu1 %v1230_v50  ;;  %834 = vmatprep.subr.bf16.mxu0 %v1231_v52  ;;  %v1327_v50 = vld [vmem:[%s1792_s1 + $0x16c] ss:$16 sps:$4 sm:$0xff]   ;;  %v1325_v52 = vld [vmem:[%s1792_s1 + $0x168] ss:$16 sps:$4 sm:$0xff]  }
  0x31   :  { %875 = vmatprep.subr.bf16.mxu1 %v1233_v53  ;;  %v1328_v53 = vld [vmem:[%s1792_s1 + $0x368] ss:$16 sps:$4 sm:$0xff]  }
  0x33   :  { %835 = vmatpush1.bf16.msra.mxu0 %v1235_v54  ;;  %v1333_v54 = vld [vmem:[%s1792_s1 + $0x18c] ss:$16 sps:$4 sm:$0xff]  }
  0x34   :  { %876 = vmatpush1.bf16.msra.mxu1 %v1236_v55  ;;  %836 = vmatprep.subr.bf16.mxu0 %v1237_v56  ;;  %v1336_v55 = vld [vmem:[%s1792_s1 + $0x38c] ss:$16 sps:$4 sm:$0xff]   ;;  %v1331_v56 = vld [vmem:[%s1792_s1 + $0x188] ss:$16 sps:$4 sm:$0xff]  }
  0x35   :  { %877 = vmatprep.subr.bf16.mxu1 %v1239_v57  ;;  %v1334_v57 = vld [vmem:[%s1792_s1 + $0x388] ss:$16 sps:$4 sm:$0xff]  }
  0x37   :  { %837 = vmatpush1.bf16.msra.mxu0 %v1241_v58  ;;  %v1339_v58 = vld [vmem:[%s1792_s1 + $0x1ac] ss:$16 sps:$4 sm:$0xff]  }
  0x38   :  { %878 = vmatpush1.bf16.msra.mxu1 %v1242_v59  ;;  %838 = vmatprep.subr.bf16.mxu0 %v1243_v60  ;;  %v1342_v59 = vld [vmem:[%s1792_s1 + $0x3ac] ss:$16 sps:$4 sm:$0xff]   ;;  %v1337_v60 = vld [vmem:[%s1792_s1 + $0x1a8] ss:$16 sps:$4 sm:$0xff]  }
  0x39   :  { %879 = vmatprep.subr.bf16.mxu1 %v1245_v61  ;;  %v1340_v61 = vld [vmem:[%s1792_s1 + $0x3a8] ss:$16 sps:$4 sm:$0xff]  }
  0x3b   :  { %839 = vmatpush1.bf16.msra.mxu0 %v1247_v62  ;;  %v1345_v62 = vld [vmem:[%s1792_s1 + $0x1cc] ss:$16 sps:$4 sm:$0xff]  }
  0x3c   :  { %880 = vmatpush1.bf16.msra.mxu1 %v1248_v63  ;;  %840 = vmatprep.subr.bf16.mxu0 %v1249_v0  ;;  %v1348_v63 = vld [vmem:[%s1792_s1 + $0x3cc] ss:$16 sps:$4 sm:$0xff]   ;;  %v1343_v0 = vld [vmem:[%s1792_s1 + $0x1c8] ss:$16 sps:$4 sm:$0xff]  }
  0x3d   :  { %881 = vmatprep.subr.bf16.mxu1 %v1251_v1  ;;  %v1346_v1 = vld [vmem:[%s1792_s1 + $0x3c8] ss:$16 sps:$4 sm:$0xff]  }
  0x3f   :  { %841 = vmatpush1.bf16.msra.mxu0 %v1253_v2  ;;  %v1351_v2 = vld [vmem:[%s1792_s1 + $0x1ec] ss:$16 sps:$4 sm:$0xff]  }
  0x40   :  { %882 = vmatpush1.bf16.msra.mxu1 %v1254_v3  ;;  %892 = vmatprep.subr.bf16.mxu0 %v1261_v4  ;;  %v1354_v3 = vld [vmem:[%s1792_s1 + $0x3ec] ss:$16 sps:$4 sm:$0xff]   ;;  %v1349_v4 = vld [vmem:[%s1792_s1 + $0x1e8] ss:$16 sps:$4 sm:$0xff]  }
  0x41   :  { %933 = vmatprep.subr.bf16.mxu1 %v1264_v5  ;;  %v1352_v5 = vld [vmem:[%s1792_s1 + $0x3e8] ss:$16 sps:$4 sm:$0xff]  }
  0x42   :  { %843 = vmatmul.mubr.bf16.vlgmr.msra.gmra.mrb[0].mxu0 %v1582_v6 }
  0x43   :  { %884 = vmatmul.mubr.bf16.vlgmr.msra.gmra.mrb[0].mxu1 %v1584_v7  ;;  %893 = vmatpush1.bf16.msra.mxu0 %v1259_v8  ;;  %v991_v8 = vlaneseq }
  0x44   :  { %934 = vmatpush1.bf16.msra.mxu1 %v1262_v9  ;;  %894 = vmatprep.subr.bf16.mxu0 %v1267_v10 }
  0x45   :  { %935 = vmatprep.subr.bf16.mxu1 %v1270_v11  ;;  %924 = vmatprep.mubr.bf16.mxu0 %v1516_v47  ;;  %v1324_v47 = vld [vmem:[%s1792_s1 + $0x34c] ss:$16 sps:$4 sm:$0xff]   ;;  %v992_v9 = vshrl.u32 %v991_v8, 7  ;;  %v989_v11 = vld [vmem:[%s1794_s2] sm:$0xf] }
  0x46   :  { %965 = vmatprep.mubr.bf16.mxu1 %v1030_v51  ;;  %v1330_v51 = vld [vmem:[%s1792_s1 + $0x36c] ss:$16 sps:$4 sm:$0xff]  }
  0x47   :  { %895 = vmatpush1.bf16.msra.mxu0 %v1265_v12  ;;  %v1001_v10 = vsub.s32 2, %v992_v9  ;;  %v1005_v12 = vsub.s32 3, %v992_v9 }
  0x48   :  { %936 = vmatpush1.bf16.msra.mxu1 %v1268_v13  ;;  %896 = vmatprep.subr.bf16.mxu0 %v1273_v14 }
  0x49   :  { %937 = vmatprep.subr.bf16.mxu1 %v1276_v15  ;;  %v1002_v13 = vrot.slane %v989_v11, %v1001_v10  ;;  %v1006_v14 = vrot.slane %v989_v11, %v1005_v12  ;;  %v993_v15 = vsub.s32 0, %v992_v9 }
  0x4b   :  { %897 = vmatpush1.bf16.msra.mxu0 %v1271_v16  ;;  %v997_v16 = vsub.s32 1, %v992_v9 }
  0x4c   :  { %938 = vmatpush1.bf16.msra.mxu1 %v1274_v17  ;;  %898 = vmatprep.subr.bf16.mxu0 %v1279_v18  ;;  %v994_v17 = vrot.slane %v989_v11, %v993_v15 }
  0x4d   :  { %939 = vmatprep.subr.bf16.mxu1 %v1282_v19 }
  0x4f   :  { %899 = vmatpush1.bf16.msra.mxu0 %v1277_v20  ;;  %v998_v20 = vrot.slane %v989_v11, %v997_v16 }
  0x50   :  { %940 = vmatpush1.bf16.msra.mxu1 %v1280_v21  ;;  %900 = vmatprep.subr.bf16.mxu0 %v1285_v22 }
  0x51   :  { %941 = vmatprep.subr.bf16.mxu1 %v1288_v23 }
  0x53   :  { %901 = vmatpush1.bf16.msra.mxu0 %v1283_v24 }
  0x54   :  { %942 = vmatpush1.bf16.msra.mxu1 %v1286_v25  ;;  %902 = vmatprep.subr.bf16.mxu0 %v1291_v26 }
  0x55   :  { %943 = vmatprep.subr.bf16.mxu1 %v1294_v27 }
  0x57   :  { %903 = vmatpush1.bf16.msra.mxu0 %v1289_v28 }
  0x58   :  { %944 = vmatpush1.bf16.msra.mxu1 %v1292_v29  ;;  %904 = vmatprep.subr.bf16.mxu0 %v1297_v30 }
  0x59   :  { %945 = vmatprep.subr.bf16.mxu1 %v1300_v31 }
  0x5b   :  { %905 = vmatpush1.bf16.msra.mxu0 %v1295_v32 }
  0x5c   :  { %946 = vmatpush1.bf16.msra.mxu1 %v1298_v33  ;;  %906 = vmatprep.subr.bf16.mxu0 %v1303_v34 }
  0x5d   :  { %947 = vmatprep.subr.bf16.mxu1 %v1306_v35 }
  0x5f   :  { %907 = vmatpush1.bf16.msra.mxu0 %v1301_v36 }
  0x60   :  { %948 = vmatpush1.bf16.msra.mxu1 %v1304_v37  ;;  %908 = vmatprep.subr.bf16.mxu0 %v1309_v38 }
  0x61   :  { %949 = vmatprep.subr.bf16.mxu1 %v1312_v39 }
  0x63   :  { %909 = vmatpush1.bf16.msra.mxu0 %v1307_v40 }
  0x64   :  { %950 = vmatpush1.bf16.msra.mxu1 %v1310_v41  ;;  %910 = vmatprep.subr.bf16.mxu0 %v1315_v42 }
  0x65   :  { %951 = vmatprep.subr.bf16.mxu1 %v1318_v43 }
  0x67   :  { %911 = vmatpush1.bf16.msra.mxu0 %v1313_v44 }
  0x68   :  { %952 = vmatpush1.bf16.msra.mxu1 %v1316_v45  ;;  %912 = vmatprep.subr.bf16.mxu0 %v1321_v46 }
  0x69   :  { %953 = vmatprep.subr.bf16.mxu1 %v1324_v47 }
  0x6b   :  { %913 = vmatpush1.bf16.msra.mxu0 %v1319_v48 }
  0x6c   :  { %954 = vmatpush1.bf16.msra.mxu1 %v1322_v49  ;;  %914 = vmatprep.subr.bf16.mxu0 %v1327_v50 }
  0x6d   :  { %955 = vmatprep.subr.bf16.mxu1 %v1330_v51 }
  0x6f   :  { %915 = vmatpush1.bf16.msra.mxu0 %v1325_v52 }
  0x70   :  { %956 = vmatpush1.bf16.msra.mxu1 %v1328_v53  ;;  %916 = vmatprep.subr.bf16.mxu0 %v1333_v54 }
  0x71   :  { %957 = vmatprep.subr.bf16.mxu1 %v1336_v55 }
  0x73   :  { %917 = vmatpush1.bf16.msra.mxu0 %v1331_v56 }
  0x74   :  { %958 = vmatpush1.bf16.msra.mxu1 %v1334_v57  ;;  %918 = vmatprep.subr.bf16.mxu0 %v1339_v58 }
  0x75   :  { %959 = vmatprep.subr.bf16.mxu1 %v1342_v59 }
  0x77   :  { %919 = vmatpush1.bf16.msra.mxu0 %v1337_v60 }
  0x78   :  { %960 = vmatpush1.bf16.msra.mxu1 %v1340_v61  ;;  %920 = vmatprep.subr.bf16.mxu0 %v1345_v62 }
  0x79   :  { %961 = vmatprep.subr.bf16.mxu1 %v1348_v63 }
  0x7b   :  { %921 = vmatpush1.bf16.msra.mxu0 %v1343_v0 }
  0x7c   :  { %962 = vmatpush1.bf16.msra.mxu1 %v1346_v1  ;;  %922 = vmatprep.subr.bf16.mxu0 %v1351_v2 }
  0x7d   :  { %963 = vmatprep.subr.bf16.mxu1 %v1354_v3 }
  0x7f   :  { %923 = vmatpush1.bf16.msra.mxu0 %v1349_v4 }
  0x80   :  { %964 = vmatpush1.bf16.msra.mxu1 %v1352_v5 }
  0x82   :  { %925 = vmatmul.mubr.bf16.vlgmr.msra.gmra.mrb[4].mxu0 %v1582_v6 }
  0x83   :  { %966 = vmatmul.mubr.bf16.vlgmr.msra.gmra.mrb[4].mxu1 %v1584_v7 }
 0x115   :  { %v844_v18 = vpop.f32.mrb[0].mxu0 }
 0x116   :  { %v885_v19 = vpop.f32.mrb[0].mxu1  ;;  %v846_v6 = vpop.f32.mrb[1].mxu0 }
 0x117   :  { %v886_v21 = vadd.f32 %v885_v19, %v844_v18  ;;  %v887_v22 = vpop.f32.mrb[1].mxu1  ;;  %v848_v23 = vpop.f32.mrb[2].mxu0 }
 0x118   :  { %v888_v7 = vadd.f32 %v887_v22, %v846_v6  ;;  %v889_v24 = vpop.f32.mrb[2].mxu1  ;;  %v849_v26 = vpop.f32.mrb[3].mxu0 }
 0x119   :  { %v1011_v25 = vadd.f32 %v994_v17, %v886_v21  ;;  %v890_v27 = vpop.f32.mrb[3].mxu1 }
 0x11a   :  { %v1012_v28 = vadd.f32 %v998_v20, %v888_v7 }
 0x11b   :  { %v1015_v29 = vmax.f32 %v1011_v25, 0.0 }
 0x11c   :  { %v1016_v30 = vmax.f32 %v1012_v28, 0.0 }
 0x11d   :  { %1019 = vst [vmem:[%s1795_s3] sm:$0xff] %v1015_v29 }
 0x11e   :  { %1020 = vst [vmem:[%s1795_s3 + $0x8] sm:$0xff] %v1016_v30 }
 0x155   :  { %v926_v31 = vpop.f32.mrb[4].mxu0 }
 0x156   :  { %v967_v32 = vpop.f32.mrb[4].mxu1  ;;  %v928_v34 = vpop.f32.mrb[5].mxu0 }
 0x157   :  { %v968_v33 = vadd.f32 %v967_v32, %v926_v31  ;;  %v969_v35 = vpop.f32.mrb[5].mxu1  ;;  %v930_v37 = vpop.f32.mrb[6].mxu0 }
 0x158   :  { %v970_v36 = vadd.f32 %v969_v35, %v928_v34  ;;  %v971_v38 = vpop.f32.mrb[6].mxu1  ;;  %v931_v40 = vpop.f32.mrb[7].mxu0 }
 0x159   :  { %v1013_v39 = vadd.f32 %v1002_v13, %v968_v33  ;;  %v972_v41 = vpop.f32.mrb[7].mxu1 }
 0x15a   :  { %v1014_v42 = vadd.f32 %v1006_v14, %v970_v36 }
 0x15b   :  { %v1017_v43 = vmax.f32 %v1013_v39, 0.0 }
 0x15c   :  { %v1018_v44 = vmax.f32 %v1014_v42, 0.0 }
 0x15d   :  { %1021 = vst [vmem:[%s1795_s3 + $0x10] sm:$0xff] %v1017_v43 }
 0x15e   :  { %1022 = vst [vmem:[%s1795_s3 + $0x18] sm:$0xff] %v1018_v44 }

// kernel: _forward.77
= control target key start
LH: loop header
LB: loop body
LE: loop exit
PB: predicated region body
PF: predicated region fallthrough
CT: control target
= control target key end

     0   :  { %vm21_vm0 = vcmask 64512   ;;  %s1503_s1 = inlined_call_operand.vmem [shape: bf16[512,264], index: 1, kind: input, shape index: {}]   ;;  %s1504_s0 = inlined_call_operand.vmem [shape: bf16[8,512], index: 0, kind: input, shape index: {}]   ;;  %s1505_s2 = inlined_call_operand.vmem [shape: f32[1,264], index: 2, kind: input, shape index: {}]   ;;  %s1506_s3 = inlined_call_operand.vmem [shape: f32[8,264], index: 3, kind: output, shape index: {}]  }
   0x1   :  { %v1029_v0 = vld [vmem:[%s1503_s1 + $0x4] ss:$12 sps:$4 sm:$0xff]   ;;  %v1033_v2 = vld [vmem:[%s1503_s1] ss:$12 sps:$4 sm:$0xff]   ;;  %v1035_v4 = vld [vmem:[%s1503_s1 + $0x1c] ss:$12 sps:$4 sm:$0xff]  }
   0x2   :  { %v1031_v1 = vld [vmem:[%s1503_s1 + $0x184] ss:$12 sps:$4 sm:$0xff]   ;;  %682 = vmatprep.subr.bf16.mxu0 %v1029_v0  ;;  %v1034_v3 = vld [vmem:[%s1503_s1 + $0x180] ss:$12 sps:$4 sm:$0xff]   ;;  %v1037_v5 = vld [vmem:[%s1503_s1 + $0x19c] ss:$12 sps:$4 sm:$0xff]  }
   0x3   :  { %723 = vmatprep.subr.bf16.mxu1 %v1031_v1  ;;  %683 = vmatpush1.bf16.msra.mxu0 %v1033_v2  ;;  %v1039_v6 = vld [vmem:[%s1503_s1 + $0x18] ss:$12 sps:$4 sm:$0xff]   ;;  %v1041_v8 = vld [vmem:[%s1503_s1 + $0x34] ss:$12 sps:$4 sm:$0xff]   ;;  %v1045_v10 = vld [vmem:[%s1503_s1 + $0x30] ss:$12 sps:$4 sm:$0xff]  }
   0x4   :  { %724 = vmatpush1.bf16.msra.mxu1 %v1034_v3  ;;  %684 = vmatprep.subr.bf16.mxu0 %v1035_v4  ;;  %v1040_v7 = vld [vmem:[%s1503_s1 + $0x198] ss:$12 sps:$4 sm:$0xff]   ;;  %v1043_v9 = vld [vmem:[%s1503_s1 + $0x1b4] ss:$12 sps:$4 sm:$0xff]   ;;  %v1046_v11 = vld [vmem:[%s1503_s1 + $0x1b0] ss:$12 sps:$4 sm:$0xff]  }
   0x5   :  { %725 = vmatprep.subr.bf16.mxu1 %v1037_v5  ;;  %v1047_v12 = vld [vmem:[%s1503_s1 + $0x4c] ss:$12 sps:$4 sm:$0xff]   ;;  %v1051_v14 = vld [vmem:[%s1503_s1 + $0x48] ss:$12 sps:$4 sm:$0xff]   ;;  %v1053_v16 = vld [vmem:[%s1503_s1 + $0x64] ss:$12 sps:$4 sm:$0xff]  }
   0x6   :  { %v1049_v13 = vld [vmem:[%s1503_s1 + $0x1cc] ss:$12 sps:$4 sm:$0xff]   ;;  %v1052_v15 = vld [vmem:[%s1503_s1 + $0x1c8] ss:$12 sps:$4 sm:$0xff]   ;;  %v1055_v17 = vld [vmem:[%s1503_s1 + $0x1e4] ss:$12 sps:$4 sm:$0xff]  }
   0x7   :  { %685 = vmatpush1.bf16.msra.mxu0 %v1039_v6  ;;  %v1057_v18 = vld [vmem:[%s1503_s1 + $0x60] ss:$12 sps:$4 sm:$0xff]   ;;  %v1059_v20 = vld [vmem:[%s1503_s1 + $0x7c] ss:$12 sps:$4 sm:$0xff]   ;;  %v1063_v22 = vld [vmem:[%s1503_s1 + $0x78] ss:$12 sps:$4 sm:$0xff]  }
   0x8   :  { %726 = vmatpush1.bf16.msra.mxu1 %v1040_v7  ;;  %686 = vmatprep.subr.bf16.mxu0 %v1041_v8  ;;  %v1058_v19 = vld [vmem:[%s1503_s1 + $0x1e0] ss:$12 sps:$4 sm:$0xff]   ;;  %v1061_v21 = vld [vmem:[%s1503_s1 + $0x1fc] ss:$12 sps:$4 sm:$0xff]   ;;  %v1064_v23 = vld [vmem:[%s1503_s1 + $0x1f8] ss:$12 sps:$4 sm:$0xff]  }
   0x9   :  { %727 = vmatprep.subr.bf16.mxu1 %v1043_v9  ;;  %v1065_v24 = vld [vmem:[%s1503_s1 + $0x94] ss:$12 sps:$4 sm:$0xff]   ;;  %v1069_v26 = vld [vmem:[%s1503_s1 + $0x90] ss:$12 sps:$4 sm:$0xff]   ;;  %v1071_v28 = vld [vmem:[%s1503_s1 + $0xac] ss:$12 sps:$4 sm:$0xff]  }
   0xa   :  { %v1067_v25 = vld [vmem:[%s1503_s1 + $0x214] ss:$12 sps:$4 sm:$0xff]   ;;  %v1070_v27 = vld [vmem:[%s1503_s1 + $0x210] ss:$12 sps:$4 sm:$0xff]   ;;  %v1073_v29 = vld [vmem:[%s1503_s1 + $0x22c] ss:$12 sps:$4 sm:$0xff]  }
   0xb   :  { %687 = vmatpush1.bf16.msra.mxu0 %v1045_v10  ;;  %v1075_v30 = vld [vmem:[%s1503_s1 + $0xa8] ss:$12 sps:$4 sm:$0xff]   ;;  %v1077_v32 = vld [vmem:[%s1503_s1 + $0xc4] ss:$12 sps:$4 sm:$0xff]   ;;  %v1081_v34 = vld [vmem:[%s1503_s1 + $0xc0] ss:$12 sps:$4 sm:$0xff]  }
   0xc   :  { %728 = vmatpush1.bf16.msra.mxu1 %v1046_v11  ;;  %688 = vmatprep.subr.bf16.mxu0 %v1047_v12  ;;  %v1076_v31 = vld [vmem:[%s1503_s1 + $0x228] ss:$12 sps:$4 sm:$0xff]   ;;  %v1079_v33 = vld [vmem:[%s1503_s1 + $0x244] ss:$12 sps:$4 sm:$0xff]   ;;  %v1082_v35 = vld [vmem:[%s1503_s1 + $0x240] ss:$12 sps:$4 sm:$0xff]  }
   0xd   :  { %729 = vmatprep.subr.bf16.mxu1 %v1049_v13  ;;  %v1083_v36 = vld [vmem:[%s1503_s1 + $0xdc] ss:$12 sps:$4 sm:$0xff]   ;;  %v1087_v38 = vld [vmem:[%s1503_s1 + $0xd8] ss:$12 sps:$4 sm:$0xff]   ;;  %v1089_v40 = vld [vmem:[%s1503_s1 + $0xf4] ss:$12 sps:$4 sm:$0xff]  }
   0xe   :  { %v1085_v37 = vld [vmem:[%s1503_s1 + $0x25c] ss:$12 sps:$4 sm:$0xff]   ;;  %v1088_v39 = vld [vmem:[%s1503_s1 + $0x258] ss:$12 sps:$4 sm:$0xff]   ;;  %v1091_v41 = vld [vmem:[%s1503_s1 + $0x274] ss:$12 sps:$4 sm:$0xff]  }
   0xf   :  { %689 = vmatpush1.bf16.msra.mxu0 %v1051_v14  ;;  %v1093_v42 = vld [vmem:[%s1503_s1 + $0xf0] ss:$12 sps:$4 sm:$0xff]   ;;  %v1095_v44 = vld [vmem:[%s1503_s1 + $0x10c] ss:$12 sps:$4 sm:$0xff]   ;;  %v1099_v46 = vld [vmem:[%s1503_s1 + $0x108] ss:$12 sps:$4 sm:$0xff]  }
  0x10   :  { %730 = vmatpush1.bf16.msra.mxu1 %v1052_v15  ;;  %690 = vmatprep.subr.bf16.mxu0 %v1053_v16  ;;  %v1094_v43 = vld [vmem:[%s1503_s1 + $0x270] ss:$12 sps:$4 sm:$0xff]   ;;  %v1097_v45 = vld [vmem:[%s1503_s1 + $0x28c] ss:$12 sps:$4 sm:$0xff]   ;;  %v1100_v47 = vld [vmem:[%s1503_s1 + $0x288] ss:$12 sps:$4 sm:$0xff]  }
  0x11   :  { %731 = vmatprep.subr.bf16.mxu1 %v1055_v17  ;;  %v26_v48 = vld [vmem:[%s1504_s0] sm:$0xff]  ;;  %v27_v50 = vld [vmem:[%s1504_s0 + $0x8] sm:$0xff]  ;;  %v1117_v62 = vld [vmem:[%s1503_s1 + $0x150] ss:$12 sps:$4 sm:$0xff]  }
  0x12   :  { %v1329_v49 = vcombine.high %v26_v48, %v26_v48  ;;  %v1101_v51 = vld [vmem:[%s1503_s1 + $0x124] ss:$12 sps:$4 sm:$0xff]   ;;  %v887_v52 = vcombine.high %v27_v50, %v27_v50  ;;  %v1105_v54 = vld [vmem:[%s1503_s1 + $0x120] ss:$12 sps:$4 sm:$0xff]   ;;  %v1107_v56 = vld [vmem:[%s1503_s1 + $0x13c] ss:$12 sps:$4 sm:$0xff]   ;;  %v1392_v7 = vcombine.low %v26_v48, %v26_v48  ;;  %v1394_v8 = vcombine.low %v27_v50, %v27_v50 }
  0x13   :  { %691 = vmatpush1.bf16.msra.mxu0 %v1057_v18  ;;  %v1103_v53 = vld [vmem:[%s1503_s1 + $0x2a4] ss:$12 sps:$4 sm:$0xff]   ;;  %v1106_v55 = vld [vmem:[%s1503_s1 + $0x2a0] ss:$12 sps:$4 sm:$0xff]   ;;  %v1109_v57 = vld [vmem:[%s1503_s1 + $0x2bc] ss:$12 sps:$4 sm:$0xff]  }
  0x14   :  { %732 = vmatpush1.bf16.msra.mxu1 %v1058_v19  ;;  %692 = vmatprep.subr.bf16.mxu0 %v1059_v20  ;;  %v1111_v58 = vld [vmem:[%s1503_s1 + $0x138] ss:$12 sps:$4 sm:$0xff]   ;;  %v1113_v60 = vld [vmem:[%s1503_s1 + $0x154] ss:$12 sps:$4 sm:$0xff]   ;;  %v1118_v63 = vld [vmem:[%s1503_s1 + $0x2d0] ss:$12 sps:$4 sm:$0xff]  }
  0x15   :  { %733 = vmatprep.subr.bf16.mxu1 %v1061_v21  ;;  %714 = vmatprep.mubr.bf16.mxu0 %v1329_v49  ;;  %v1112_v59 = vld [vmem:[%s1503_s1 + $0x2b8] ss:$12 sps:$4 sm:$0xff]   ;;  %v1115_v61 = vld [vmem:[%s1503_s1 + $0x2d4] ss:$12 sps:$4 sm:$0xff]   ;;  %v1141_v18 = vld [vmem:[%s1503_s1 + $0x110] ss:$12 sps:$4 sm:$0xff]  }
  0x16   :  { %755 = vmatprep.mubr.bf16.mxu1 %v887_v52  ;;  %v1119_v0 = vld [vmem:[%s1503_s1 + $0x16c] ss:$12 sps:$4 sm:$0xff]   ;;  %v1123_v2 = vld [vmem:[%s1503_s1 + $0x168] ss:$12 sps:$4 sm:$0xff]   ;;  %v1142_v19 = vld [vmem:[%s1503_s1 + $0x290] ss:$12 sps:$4 sm:$0xff]  }
  0x17   :  { %693 = vmatpush1.bf16.msra.mxu0 %v1063_v22  ;;  %v1121_v1 = vld [vmem:[%s1503_s1 + $0x2ec] ss:$12 sps:$4 sm:$0xff]   ;;  %v1124_v3 = vld [vmem:[%s1503_s1 + $0x2e8] ss:$12 sps:$4 sm:$0xff]   ;;  %v1143_v20 = vld [vmem:[%s1503_s1 + $0x50] ss:$12 sps:$4 sm:$0xff]  }
  0x18   :  { %734 = vmatpush1.bf16.msra.mxu1 %v1064_v23  ;;  %694 = vmatprep.subr.bf16.mxu0 %v1065_v24  ;;  %v1129_v4 = vld [vmem:[%s1503_s1 + $0xc8] ss:$12 sps:$4 sm:$0xff]   ;;  %v1133_v10 = vld [vmem:[%s1503_s1 + $0xe0] ss:$12 sps:$4 sm:$0xff]   ;;  %v1137_v14 = vld [vmem:[%s1503_s1 + $0xf8] ss:$12 sps:$4 sm:$0xff]  }
  0x19   :  { %735 = vmatprep.subr.bf16.mxu1 %v1067_v25  ;;  %v1130_v5 = vld [vmem:[%s1503_s1 + $0x248] ss:$12 sps:$4 sm:$0xff]   ;;  %v1134_v11 = vld [vmem:[%s1503_s1 + $0x260] ss:$12 sps:$4 sm:$0xff]   ;;  %v1138_v15 = vld [vmem:[%s1503_s1 + $0x278] ss:$12 sps:$4 sm:$0xff]  }
  0x1a   :  { %v1131_v6 = vld [vmem:[%s1503_s1 + $0x8] ss:$12 sps:$4 sm:$0xff]   ;;  %v1135_v12 = vld [vmem:[%s1503_s1 + $0x20] ss:$12 sps:$4 sm:$0xff]   ;;  %v1139_v16 = vld [vmem:[%s1503_s1 + $0x38] ss:$12 sps:$4 sm:$0xff]  }
  0x1b   :  { %695 = vmatpush1.bf16.msra.mxu0 %v1069_v26  ;;  %v1132_v9 = vld [vmem:[%s1503_s1 + $0x188] ss:$12 sps:$4 sm:$0xff]   ;;  %v1136_v13 = vld [vmem:[%s1503_s1 + $0x1a0] ss:$12 sps:$4 sm:$0xff]   ;;  %v1140_v17 = vld [vmem:[%s1503_s1 + $0x1b8] ss:$12 sps:$4 sm:$0xff]  }
  0x1c   :  { %736 = vmatpush1.bf16.msra.mxu1 %v1070_v27  ;;  %696 = vmatprep.subr.bf16.mxu0 %v1071_v28  ;;  %v1144_v21 = vld [vmem:[%s1503_s1 + $0x1d0] ss:$12 sps:$4 sm:$0xff]   ;;  %v1145_v22 = vld [vmem:[%s1503_s1 + $0x128] ss:$12 sps:$4 sm:$0xff]   ;;  %v1149_v26 = vld [vmem:[%s1503_s1 + $0x140] ss:$12 sps:$4 sm:$0xff]  }
  0x1d   :  { %737 = vmatprep.subr.bf16.mxu1 %v1073_v29  ;;  %v1146_v23 = vld [vmem:[%s1503_s1 + $0x2a8] ss:$12 sps:$4 sm:$0xff]   ;;  %v1150_v27 = vld [vmem:[%s1503_s1 + $0x2c0] ss:$12 sps:$4 sm:$0xff]  }
  0x1e   :  { %v1147_v24 = vld [vmem:[%s1503_s1 + $0x68] ss:$12 sps:$4 sm:$0xff]   ;;  %v1151_v28 = vld [vmem:[%s1503_s1 + $0x80] ss:$12 sps:$4 sm:$0xff]  }
  0x1f   :  { %697 = vmatpush1.bf16.msra.mxu0 %v1075_v30  ;;  %v1148_v25 = vld [vmem:[%s1503_s1 + $0x1e8] ss:$12 sps:$4 sm:$0xff]   ;;  %v1152_v29 = vld [vmem:[%s1503_s1 + $0x200] ss:$12 sps:$4 sm:$0xff]   ;;  %v1153_v30 = vld [vmem:[%s1503_s1 + $0x158] ss:$12 sps:$4 sm:$0xff]  }
  0x20   :  { %738 = vmatpush1.bf16.msra.mxu1 %v1076_v31  ;;  %698 = vmatprep.subr.bf16.mxu0 %v1077_v32  ;;  %v1154_v31 = vld [vmem:[%s1503_s1 + $0x2d8] ss:$12 sps:$4 sm:$0xff]  }
  0x21   :  { %739 = vmatprep.subr.bf16.mxu1 %v1079_v33  ;;  %v1155_v32 = vld [vmem:[%s1503_s1 + $0x98] ss:$12 sps:$4 sm:$0xff]  }
  0x22   :  { %v1156_v33 = vld [vmem:[%s1503_s1 + $0x218] ss:$12 sps:$4 sm:$0xff]  }
  0x23   :  { %699 = vmatpush1.bf16.msra.mxu0 %v1081_v34  ;;  %v1157_v34 = vld [vmem:[%s1503_s1 + $0x170] ss:$12 sps:$4 sm:$0xff]  }
  0x24   :  { %740 = vmatpush1.bf16.msra.mxu1 %v1082_v35  ;;  %700 = vmatprep.subr.bf16.mxu0 %v1083_v36  ;;  %v1158_v35 = vld [vmem:[%s1503_s1 + $0x2f0] ss:$12 sps:$4 sm:$0xff]  }
  0x25   :  { %741 = vmatprep.subr.bf16.mxu1 %v1085_v37  ;;  %v1159_v36 = vld [vmem:[%s1503_s1 + $0xb0] ss:$12 sps:$4 sm:$0xff]  }
  0x26   :  { %v1160_v37 = vld [vmem:[%s1503_s1 + $0x230] ss:$12 sps:$4 sm:$0xff]  }
  0x27   :  { %701 = vmatpush1.bf16.msra.mxu0 %v1087_v38  ;;  %v1161_v38 = vmov 0.0  }
  0x28   :  { %742 = vmatpush1.bf16.msra.mxu1 %v1088_v39  ;;  %702 = vmatprep.subr.bf16.mxu0 %v1089_v40  ;;  %22 = vst.msk [vmem:[#allocation2 + $0x10] sm:$0xff] %vm21_vm0, %v1161_v38  ;;  %v859_v39 = vlaneseq }
  0x29   :  { %743 = vmatprep.subr.bf16.mxu1 %v1091_v41 }
  0x2a   :  { %v860_v40 = vshrl.u32 %v859_v39, 7 }
  0x2b   :  { %703 = vmatpush1.bf16.msra.mxu0 %v1093_v42  ;;  %v857_v42 = vld [vmem:[%s1505_s2] sm:$0x7] }
  0x2c   :  { %744 = vmatpush1.bf16.msra.mxu1 %v1094_v43  ;;  %704 = vmatprep.subr.bf16.mxu0 %v1095_v44  ;;  %v861_v41 = vsub.s32 0, %v860_v40  ;;  %v865_v43 = vsub.s32 1, %v860_v40 }
  0x2d   :  { %745 = vmatprep.subr.bf16.mxu1 %v1097_v45 }
  0x2f   :  { %705 = vmatpush1.bf16.msra.mxu0 %v1099_v46 }
  0x30   :  { %746 = vmatpush1.bf16.msra.mxu1 %v1100_v47  ;;  %706 = vmatprep.subr.bf16.mxu0 %v1101_v51  ;;  %v862_v47 = vrot.slane %v857_v42, %v861_v41  ;;  %v866_v51 = vrot.slane %v857_v42, %v865_v43 }
  0x31   :  { %747 = vmatprep.subr.bf16.mxu1 %v1103_v53 }
  0x33   :  { %707 = vmatpush1.bf16.msra.mxu0 %v1105_v54 }
  0x34   :  { %748 = vmatpush1.bf16.msra.mxu1 %v1106_v55  ;;  %708 = vmatprep.subr.bf16.mxu0 %v1107_v56 }
  0x35   :  { %749 = vmatprep.subr.bf16.mxu1 %v1109_v57 }
  0x37   :  { %709 = vmatpush1.bf16.msra.mxu0 %v1111_v58 }
  0x38   :  { %750 = vmatpush1.bf16.msra.mxu1 %v1112_v59  ;;  %710 = vmatprep.subr.bf16.mxu0 %v1113_v60 }
  0x39   :  { %751 = vmatprep.subr.bf16.mxu1 %v1115_v61 }
  0x3b   :  { %711 = vmatpush1.bf16.msra.mxu0 %v1117_v62 }
  0x3c   :  { %752 = vmatpush1.bf16.msra.mxu1 %v1118_v63  ;;  %712 = vmatprep.subr.bf16.mxu0 %v1119_v0 }
  0x3d   :  { %753 = vmatprep.subr.bf16.mxu1 %v1121_v1 }
  0x3f   :  { %713 = vmatpush1.bf16.msra.mxu0 %v1123_v2  ;;  %v25_v2 = vld [vmem:[#allocation2 + $0x10] sm:$0xff] }
  0x40   :  { %754 = vmatpush1.bf16.msra.mxu1 %v1124_v3  ;;  %984 = vmatprep.subr.bf16.mxu0 %v1129_v4 }
  0x41   :  { %1006 = vmatprep.subr.bf16.mxu1 %v1130_v5 }
  0x42   :  { %715 = vmatmul.mubr.bf16.vlgmr.msra.gmra.mrb[0].mxu0 %v1392_v7 }
  0x43   :  { %756 = vmatmul.mubr.bf16.vlgmr.msra.gmra.mrb[0].mxu1 %v1394_v8  ;;  %985 = vmatpush3.bf16.msra.mxu0 %v1131_v6 }
  0x44   :  { %1007 = vmatpush3.bf16.msra.mxu1 %v1132_v9  ;;  %986 = vmatprep.subr.bf16.mxu0 %v1133_v10 }
  0x45   :  { %1008 = vmatprep.subr.bf16.mxu1 %v1134_v11  ;;  %796 = vmatprep.mubr.bf16.mxu0 %v1329_v49 }
  0x46   :  { %836 = vmatprep.mubr.bf16.mxu1 %v887_v52 }
  0x47   :  { %987 = vmatpush3.bf16.msra.mxu0 %v1135_v12 }
  0x48   :  { %1009 = vmatpush3.bf16.msra.mxu1 %v1136_v13  ;;  %988 = vmatprep.subr.bf16.mxu0 %v1137_v14 }
  0x49   :  { %1010 = vmatprep.subr.bf16.mxu1 %v1138_v15 }
  0x4b   :  { %989 = vmatpush3.bf16.msra.mxu0 %v1139_v16 }
  0x4c   :  { %1011 = vmatpush3.bf16.msra.mxu1 %v1140_v17  ;;  %990 = vmatprep.subr.bf16.mxu0 %v1141_v18 }
  0x4d   :  { %1012 = vmatprep.subr.bf16.mxu1 %v1142_v19 }
  0x4f   :  { %991 = vmatpush3.bf16.msra.mxu0 %v1143_v20 }
  0x50   :  { %1013 = vmatpush3.bf16.msra.mxu1 %v1144_v21  ;;  %992 = vmatprep.subr.bf16.mxu0 %v1145_v22 }
  0x51   :  { %1014 = vmatprep.subr.bf16.mxu1 %v1146_v23 }
  0x53   :  { %993 = vmatpush3.bf16.msra.mxu0 %v1147_v24 }
  0x54   :  { %1015 = vmatpush3.bf16.msra.mxu1 %v1148_v25  ;;  %994 = vmatprep.subr.bf16.mxu0 %v1149_v26 }
  0x55   :  { %1016 = vmatprep.subr.bf16.mxu1 %v1150_v27 }
  0x57   :  { %995 = vmatpush3.bf16.msra.mxu0 %v1151_v28 }
  0x58   :  { %1017 = vmatpush3.bf16.msra.mxu1 %v1152_v29  ;;  %996 = vmatprep.subr.bf16.mxu0 %v1153_v30 }
  0x59   :  { %1018 = vmatprep.subr.bf16.mxu1 %v1154_v31 }
  0x5b   :  { %997 = vmatpush3.bf16.msra.mxu0 %v1155_v32 }
  0x5c   :  { %1019 = vmatpush3.bf16.msra.mxu1 %v1156_v33  ;;  %998 = vmatprep.subr.bf16.mxu0 %v1157_v34 }
  0x5d   :  { %1020 = vmatprep.subr.bf16.mxu1 %v1158_v35 }
  0x5f   :  { %999 = vmatpush3.bf16.msra.mxu0 %v1159_v36 }
  0x60   :  { %1021 = vmatpush3.bf16.msra.mxu1 %v1160_v37 }
  0x62   :  { %797 = vmatmul.mubr.bf16.vlgmr.msra.gmra.mrb[4].mxu0 %v1392_v7  ;;  %v869_v7 = vsub.s32 2, %v860_v40 }
  0x63   :  { %837 = vmatmul.mubr.bf16.vlgmr.msra.gmra.mrb[4].mxu1 %v1394_v8 }
  0x64   :  { %v870_v8 = vrot.slane %v857_v42, %v869_v7 }
 0x115   :  { %v716_v44 = vpop.f32.mrb[0].mxu0 }
 0x116   :  { %v757_v45 = vpop.f32.mrb[0].mxu1  ;;  %v718_v48 = vpop.f32.mrb[1].mxu0 }
 0x117   :  { %v758_v46 = vadd.f32 %v757_v45, %v716_v44  ;;  %v759_v49 = vpop.f32.mrb[1].mxu1  ;;  %v720_v52 = vpop.f32.mrb[2].mxu0 }
 0x118   :  { %v760_v50 = vadd.f32 %v759_v49, %v718_v48  ;;  %v761_v53 = vpop.f32.mrb[2].mxu1  ;;  %v721_v54 = vpop.f32.mrb[3].mxu0 }
 0x119   :  { %v762_v55 = vpop.f32.mrb[3].mxu1  ;;  %v874_v56 = vadd.f32 %v862_v47, %v758_v46 }
 0x11a   :  { %v875_v57 = vadd.f32 %v866_v51, %v760_v50 }
 0x11b   :  { %877 = vst [vmem:[%s1506_s3] sm:$0xff] %v874_v56 }
 0x11c   :  { %878 = vst [vmem:[%s1506_s3 + $0x8] sm:$0xff] %v875_v57 }
 0x135   :  { %v1000_v58 = vpop.f32.mrb[4].mxu0 }
 0x136   :  { %v1022_v59 = vpop.f32.mrb[4].mxu1  ;;  %v1001_v60 = vpop.f32.mrb[5].mxu0 }
 0x137   :  { %v1023_v61 = vpop.f32.mrb[5].mxu1  ;;  %v1002_v62 = vadd.f32 %v1001_v60, %v1000_v58  ;;  %v1003_v0 = vpop.f32.mrb[6].mxu0 }
 0x138   :  { %v1024_v63 = vadd.f32 %v1023_v61, %v1022_v59  ;;  %v1025_v1 = vpop.f32.mrb[6].mxu1  ;;  %v1004_v3 = vpop.f32.mrb[7].mxu0 }
 0x139   :  { %v1026_v4 = vpop.f32.mrb[7].mxu1 }
 0x13a   :  { %v839_v5 = vadd.f32 %v1024_v63, %v1002_v62 }
 0x13c   :  { %v846_v6 = vadd.f32 %v839_v5, %v25_v2 }
 0x13e   :  { %850 = vst.msk [vmem:[#allocation2 + $0x10] sm:$0xff] %vm21_vm0, %v846_v6 }
 0x145   :  { %v856_v9 = vld [vmem:[#allocation2 + $0x10] sm:$0xff] }
 0x146   :  { %v876_v10 = vadd.f32 %v870_v8, %v856_v9 }
 0x148   :  { %879 = vst.msk [vmem:[%s1506_s3 + $0x10] sm:$0xff] %vm21_vm0, %v876_v10 }

</bundles_post_ra>
